<compile_context>
chip_gen: v7x
topology: tpu7x:2x2x1
jax: 0.10.0
libtpu: 0.0.40
codegen_flags: <defaults>
</compile_context>

<pallas_src>
import jax
import jax.numpy as jnp
from jax import lax
from jax.experimental import pallas as pl
from jax.experimental.pallas import tpu as pltpu

_EPS = 1e-5
_INV_SQRT2 = 0.7071067811865476
_LANES = 128

# Review item "cast MXU operands to bf16": left off by default to stay inside the 2e-3 tolerance
# at small K (see header).  Set True and re-verify against `reference` to enable.
MXU_BF16_OPERANDS = False


def _round_up(x, m):
    return (x + m - 1) // m * m


# --------------------------------------------------------------------------------- GELU

def _erf(x):
    # Abramowitz & Stegun 7.1.26 rational approximation (max abs err ~1.5e-7 with exact 1/d).
    p = 0.3275911
    a1, a2, a3, a4, a5 = 0.254829592, -0.284496736, 1.421413741, -1.453152027, 1.061405429
    s = jnp.where(x >= 0.0, 1.0, -1.0)
    ax = jnp.abs(x)
    d = 1.0 + p * ax
    t0 = pl.reciprocal(d, approx=True)      # EUP slot
    t = t0 * (2.0 - d * t0)                 # one Newton step -> ~full f32 precision
    poly = ((((a5 * t + a4) * t + a3) * t + a2) * t + a1) * t
    return s * (1.0 - poly * jnp.exp(-ax * ax))


def _gelu_exact(x):
    return 0.5 * x * (1.0 + _erf(x * _INV_SQRT2))


# ---------------------------------------------------------------- BatchNorm statistics (BN1)

def _bn_stats(x2):
    """x2: (rows, C) f32 -> per-channel (sum, sum_of_squares), each shape (C,)."""
    rows, c = x2.shape

    # Lane folding: for small C, group g rows into one lane-dense row of g*C channels so the
    # reduction does not waste 124/128 lanes per vreg (review item).
    g = 1
    if c < _LANES:
        g = max(1, _LANES // c)
        while g > 1 and rows % g != 0:
            g //= 2
    r, cg = rows // g, c * g
    xg = x2.reshape(r, cg)

    br = r if r <= 1024 else 1024            # 1024 is a multiple of 8; br==r is always legal
    nblk = pl.cdiv(r, br)
    need_mask = (r % br) != 0

    def kernel(x_ref, s_ref, q_ref):
        @pl.when(pl.program_id(0) == 0)
        def _init():
            s_ref[...] = jnp.zeros_like(s_ref)
            q_ref[...] = jnp.zeros_like(q_ref)

        xb = x_ref[...]
        if need_mask:  # masked tail (cdiv grid) instead of a whole-array fallback block
            rid = pl.program_id(0) * br + lax.broadcasted_iota(jnp.int32, (br, cg), 0)
            xb = jnp.where(rid < r, xb, 0.0)
        s_ref[...] += jnp.sum(xb, axis=0, keepdims=True)
        q_ref[...] += jnp.sum(xb * xb, axis=0, keepdims=True)

    s, q = pl.pallas_call(
        kernel,
        out_shape=(jax.ShapeDtypeStruct((1, cg), jnp.float32),
                   jax.ShapeDtypeStruct((1, cg), jnp.float32)),
        grid=(nblk,),
        in_specs=[pl.BlockSpec((br, cg), lambda i: (i, 0))],
        out_specs=(pl.BlockSpec((1, cg), lambda i: (0, 0)),
                   pl.BlockSpec((1, cg), lambda i: (0, 0))),
        compiler_params=pltpu.CompilerParams(dimension_semantics=("arbitrary",)),
    )(xg)
    return s.reshape(g, c).sum(axis=0), q.reshape(g, c).sum(axis=0)


# ----------------------------------------------------- row-tile sizing (generation aware)

def _step_bytes(th, w, ci, cp):
    f = 4
    io = 2 * th * w * ci + 4 * w * ci + 2 * 9 * ci * cp + 2 * th * w * cp + 3 * cp + 2 * ci
    scratch = (th + 2) * (w + 2) * ci
    trans = (th + 2) * w * ci + 3 * th * w * ci + 2 * th * w * cp
    return f * (io + scratch + trans)


def _pick_row_tile(h, w, ci, cp):
    try:
        cap = int(pltpu.get_tpu_info().vmem_capacity_bytes)
    except Exception:
        cap = 64 * 2 ** 20                      # conservative fallback = v7x per-core VMEM
    budget = min(cap // 2, 64 * 2 ** 20)        # ~32 MiB on v7x, ~64 MiB on v5e/v6e
    best = 1
    for th in range(1, min(h, 256) + 1):        # TH must divide H (keeps fused stats exact)
        if h % th == 0 and _step_bytes(th, w, ci, cp) <= budget:
            best = th
    return best, cap


def _make_row_halo(x, th):
    """Rows {t*th-1, (t+1)*th} for every row tile (zeros at the image edges): (N*T, 2, W, C)."""
    n, h, w, c = x.shape
    t = h // th
    xr = x.reshape(n, t, th, w, c)
    zero = jnp.zeros((n, 1, w, c), x.dtype)
    tops = jnp.concatenate([zero, xr[:, :-1, th - 1]], axis=1)      # (N, T, W, C)
    bots = jnp.concatenate([xr[:, 1:, 0], zero], axis=1)            # (N, T, W, C)
    return jnp.stack([tops, bots], axis=2).reshape(n * t, 2, w, c)


# ----------------------------------------------------------------- conv 3x3 + GELU kernel

def _make_conv_kernel(collect_stats):
    def kernel(x_ref, halo_ref, w_ref, b_ref, scale_ref, shift_ref, *rest):
        if collect_stats:
            o_ref, s_ref, q_ref, pad_ref = rest
        else:
            o_ref, pad_ref = rest

        t = pl.program_id(1)
        _, th, w, cp = o_ref.shape
        ci = x_ref.shape[3]

        scale = scale_ref[...]                               # (1, ci)
        shift = shift_ref[...]                               # (1, ci)

        # ---- padded tile: zero halo (== zero-padding of the BN output, like the reference),
        #      BN affine fused into the interior copy (so the copy does real work).
        zrow = jnp.zeros((1, w + 2, ci), jnp.float32)
        zcol = jnp.zeros((th + 2, 1, ci), jnp.float32)
        pad_ref[0:1, :, :] = zrow
        pad_ref[th + 1:th + 2, :, :] = zrow
        pad_ref[:, 0:1, :] = zcol
        pad_ref[:, w + 1:w + 2, :] = zcol
        pad_ref[1:th + 1, 1:w + 1, :] = x_ref[0] * scale + shift

        @pl.when(t > 0)
        def _top():
            pad_ref[0:1, 1:w + 1, :] = halo_ref[0, 0:1, :, :] * scale + shift

        @pl.when(t < pl.num_programs(1) - 1)
        def _bot():
            pad_ref[th + 1:th + 2, 1:w + 1, :] = halo_ref[0, 1:2, :, :] * scale + shift

        def mm(a, wk):
            if MXU_BF16_OPERANDS:
                a = a.astype(jnp.bfloat16)
                wk = wk.astype(jnp.bfloat16)
            return jnp.dot(a, wk, preferred_element_type=jnp.float32)

        # ---- conv: dx (sublane-shift) slabs hoisted -> 3 misaligned copies instead of 9;
        #      no full (H*W, 9*Ci) im2col is ever materialized.
        acc = jnp.zeros((th * w, cp), jnp.float32)
        if ci % _LANES == 0:
            # lane-aligned channels: one MXU matmul per dx with K = 3*Ci (256-friendly K depth)
            for dx in range(3):
                slab = pad_ref[:, dx:dx + w, :]                          # (th+2, w, ci)
                patches = jnp.concatenate(
                    [slab[dy:dy + th].reshape(th * w, ci) for dy in range(3)], axis=-1)
                acc = acc + mm(patches, w_ref[dx * 3 * ci:(dx + 1) * 3 * ci, :])
        else:
            # small / unaligned Ci (e.g. the first conv): per-tap matmuls, dx slabs shared.
            # TODO(synk): for mid-size Ci (e.g. 64) padding Ci up to 128 in the wrapper would
            # improve MXU K-utilization (low priority per review).
            for dx in range(3):
                slab = pad_ref[:, dx:dx + w, :]
                for dy in range(3):
                    j = dx * 3 + dy
                    win = slab[dy:dy + th].reshape(th * w, ci)
                    acc = acc + mm(win, w_ref[j * ci:(j + 1) * ci, :])

        y = _gelu_exact(acc + b_ref[...])                    # (th*w, cp), f32

        if collect_stats:
            # Fused second-BatchNorm statistics (per-image accumulators over the row-tile axis):
            # removes a full extra HBM read of the intermediate activation.
            @pl.when(t == 0)
            def _init():
                s_ref[...] = jnp.zeros_like(s_ref)
                q_ref[...] = jnp.zeros_like(q_ref)

            s_ref[...] += jnp.sum(y, axis=0, keepdims=True).reshape(1, 1, cp)
            q_ref[...] += jnp.sum(y * y, axis=0, keepdims=True).reshape(1, 1, cp)

        o_ref[...] = y.reshape(1, th, w, cp)

    return kernel


def _conv3x3_gelu(x, w, b, scale, shift, *, collect_stats=False):
    """x: (N,H,W,Ci) f32, w: (9*Ci,Cp) f32 with rows ordered (dx,dy,ci), b/scale/shift per channel.
    Returns (N,H,W,Cp) [+ per-image (N,1,Cp) sum and sum-of-squares of the output if requested]."""
    n, h, w_sp, ci = x.shape
    cp = w.shape[1]

    th, cap = _pick_row_tile(h, w_sp, ci, cp)
    t = h // th
    halo = _make_row_halo(x, th)
    est = _step_bytes(th, w_sp, ci, cp)
    vmem_limit = int(min(cap * 3 // 4, max(32 * 2 ** 20, 2 * est)))

    cost = pl.CostEstimate(
        flops=2 * n * h * w_sp * 9 * ci * cp,
        transcendentals=n * h * w_sp * cp,                   # exp inside erf
        bytes_accessed=4 * (n * h * w_sp * ci + n * t * 2 * w_sp * ci
                            + 9 * ci * cp + 3 * cp + 2 * ci + n * h * w_sp * cp))

    main_shape = jax.ShapeDtypeStruct((n, h, w_sp, cp), jnp.float32)
    main_spec = pl.BlockSpec((1, th, w_sp, cp), lambda i, j: (i, j, 0, 0))

    if collect_stats:
        out_shape = (main_shape,
                     jax.ShapeDtypeStruct((n, 1, cp), jnp.float32),
                     jax.ShapeDtypeStruct((n, 1, cp), jnp.float32))
        out_specs = (main_spec,
                     pl.BlockSpec((1, 1, cp), lambda i, j: (i, 0, 0)),
                     pl.BlockSpec((1, 1, cp), lambda i, j: (i, 0, 0)))
        # stats accumulate across the row-tile axis -> that axis must stay "arbitrary"
        dims = ("parallel", "arbitrary")
    else:
        out_shape = main_shape
        out_specs = main_spec
        dims = ("parallel", "parallel")      # both axes shard across v7x TensorCores

    tt = t  # close over for the halo index map

    return pl.pallas_call(
        _make_conv_kernel(collect_stats),
        out_shape=out_shape,
        grid=(n, t),
        in_specs=[
            pl.BlockSpec((1, th, w_sp, ci), lambda i, j: (i, j, 0, 0)),
            pl.BlockSpec((1, 2, w_sp, ci), lambda i, j: (i * tt + j, 0, 0, 0)),
            pl.BlockSpec((9 * ci, cp), lambda i, j: (0, 0)),
            pl.BlockSpec((1, cp), lambda i, j: (0, 0)),
            pl.BlockSpec((1, ci), lambda i, j: (0, 0)),
            pl.BlockSpec((1, ci), lambda i, j: (0, 0)),
        ],
        out_specs=out_specs,
        scratch_shapes=[pltpu.VMEM((th + 2, w_sp + 2, ci), jnp.float32)],
        compiler_params=pltpu.CompilerParams(
            dimension_semantics=dims, vmem_limit_bytes=vmem_limit),
        cost_estimate=cost,
    )(x, halo, w, b, scale, shift)


# ------------------------------------------------------------------------------ wrapper

def _weights_dxdy(w_oihw, cpad_in, cpad_out):
    """OIHW -> rows ordered (dx, dy, ci), shape (9*cpad_in, cpad_out), zero-padded channels."""
    co, ci = w_oihw.shape[0], w_oihw.shape[1]
    w_hwio = jnp.transpose(w_oihw, (2, 3, 1, 0))                       # (ky, kx, ci, co)
    w_hwio = jnp.pad(w_hwio, ((0, 0), (0, 0), (0, cpad_in - ci), (0, cpad_out - co)))
    return jnp.transpose(w_hwio, (1, 0, 2, 3)).reshape(9 * cpad_in, cpad_out)


def double_conv(x_nchw, params):
    """x_nchw: (N, Cin, H, W) float32 (PyTorch layout). Returns (N, Cout, H, W)."""
    n, cin, h, w = x_nchw.shape
    cout = params["w1"].shape[0]
    # Lane-pad only when inflation stays <= 2x (review: 16x padding at cout=8 is wasted HBM BW).
    cpad = _round_up(cout, _LANES) if cout >= 64 else _round_up(cout, 8)
    cnt = float(n * h * w)
    f32 = jnp.float32

    x = jnp.transpose(x_nchw.astype(f32), (0, 2, 3, 1))                # NHWC

    # ---- BatchNorm2d(inDim): batch statistics via Pallas reduction ----
    s1, q1 = _bn_stats(x.reshape(n * h * w, cin))
    mean1 = s1 / cnt
    var1 = q1 / cnt - mean1 * mean1
    scale1 = params["gamma1"].astype(f32) * lax.rsqrt(var1 + _EPS)
    shift1 = params["beta1"].astype(f32) - mean1 * scale1

    w1 = _weights_dxdy(params["w1"].astype(f32), cin, cpad)            # (9*cin, cpad)
    b1 = jnp.pad(params["b1"].astype(f32), (0, cpad - cout)).reshape(1, cpad)

    # ---- Conv2d(inDim, outDim, 3, pad=1) + GELU, with BN2 statistics fused in ----
    hact, s2p, q2p = _conv3x3_gelu(x, w1, b1,
                                   scale1.reshape(1, cin), shift1.reshape(1, cin),
                                   collect_stats=True)
    s2 = s2p.reshape(n, cpad).sum(axis=0)
    q2 = q2p.reshape(n, cpad).sum(axis=0)

    # ---- BatchNorm2d(outDim) parameters from fused stats ----
    mean2 = s2 / cnt
    var2 = q2 / cnt - mean2 * mean2
    gamma2 = jnp.pad(params["gamma2"].astype(f32), (0, cpad - cout))
    beta2 = jnp.pad(params["beta2"].astype(f32), (0, cpad - cout))
    scale2 = gamma2 * lax.rsqrt(var2 + _EPS)
    shift2 = beta2 - mean2 * scale2

    w2 = _weights_dxdy(params["w2"].astype(f32), cpad, cpad)           # (9*cpad, cpad)
    b2 = jnp.pad(params["b2"].astype(f32), (0, cpad - cout)).reshape(1, cpad)

    # ---- Conv2d(outDim, outDim, 3, pad=1) + GELU ----
    y = _conv3x3_gelu(hact, w2, b2,
                      scale2.reshape(1, cpad), shift2.reshape(1, cpad),
                      collect_stats=False)

    return jnp.transpose(y[..., :cout], (0, 3, 1, 2))                  # back to NCHW


# ---------------------------------------------------------------------------- reference

def reference(x, params):
    # Pure-JAX reference of the PyTorch forward (training-mode BN, exact GELU).
    def bn(x, g, b):
        m = x.mean(axis=(0, 2, 3), keepdims=True)
        v = ((x - m) ** 2).mean(axis=(0, 2, 3), keepdims=True)
        return (x - m) / jnp.sqrt(v + _EPS) * g[None, :, None, None] + b[None, :, None, None]

    def conv(x, w, b):
        y = lax.conv_general_dilated(
            x, w, (1, 1), "SAME",
            dimension_numbers=("NCHW", "OIHW", "NCHW"),
            precision=lax.Precision.HIGHEST)
        return y + b[None, :, None, None]

    h = jax.nn.gelu(conv(bn(x, params["gamma1"], params["beta1"]),
                         params["w1"], params["b1"]), approximate=False)
    return jax.nn.gelu(conv(bn(h, params["gamma2"], params["beta2"]),
                            params["w2"], params["b2"]), approximate=False)


if __name__ == "__main__":
    N, cin, cout, H, W = 2, 4, 8, 16, 16
    key = jax.random.PRNGKey(0)
    ks = jax.random.split(key, 9)
    params = {
        "gamma1": 1.0 + 0.1 * jax.random.normal(ks[0], (cin,), jnp.float32),
        "beta1": 0.1 * jax.random.normal(ks[1], (cin,), jnp.float32),
        "w1": 0.2 * jax.random.normal(ks[2], (cout, cin, 3, 3), jnp.float32),   # OIHW
        "b1": 0.1 * jax.random.normal(ks[3], (cout,), jnp.float32),
        "gamma2": 1.0 + 0.1 * jax.random.normal(ks[4], (cout,), jnp.float32),
        "beta2": 0.1 * jax.random.normal(ks[5], (cout,), jnp.float32),
        "w2": 0.2 * jax.random.normal(ks[6], (cout, cout, 3, 3), jnp.float32),  # OIHW
        "b2": 0.1 * jax.random.normal(ks[7], (cout,), jnp.float32),
    }
    x = jax.random.normal(ks[8], (N, cin, H, W), jnp.float32)

    out = jax.block_until_ready(jax.jit(double_conv)(x, params))
    ref = reference(x, params)
    assert out.shape == (N, cout, H, W), out.shape
    max_err = float(jnp.max(jnp.abs(out - ref)))
    assert max_err < 2e-3, f"max abs error vs reference: {max_err}"
    print("KERNEL_OK")
</pallas_src>

<mosaic_0001>
module attributes {stable_mosaic.version = 11 : i64} {
  func.func @kernel(%arg0: i32, %arg1: memref<16x128xf32, #tpu.memory_space<vmem>>, %arg2: memref<1x128xf32, #tpu.memory_space<vmem>>, %arg3: memref<1x128xf32, #tpu.memory_space<vmem>>) attributes {dimension_semantics = [#tpu.dimension_semantics<arbitrary>], iteration_bounds = array<i64: 1>, scalar_prefetch = 0 : i64, scratch_operands = 0 : i64, tpu.core_type = #tpu.core_type<tc>, window_params = [{transform_indices = @transform_0, window_bounds = array<i64: 16, 128>}, {pipeline_mode = #tpu.pipeline_mode<synchronous>, transform_indices = @transform_1, window_bounds = array<i64: 1, 128>}, {pipeline_mode = #tpu.pipeline_mode<synchronous>, transform_indices = @transform_2, window_bounds = array<i64: 1, 128>}]} {
    %c0_i32 = arith.constant 0 : i32
    %0 = arith.cmpi eq, %arg0, %c0_i32 : i32
    %1 = arith.extui %0 : i1 to i32
    %c0_i32_0 = arith.constant 0 : i32
    %2 = arith.cmpi ne, %1, %c0_i32_0 : i32
    scf.if %2 {
      %cst_11 = arith.constant 0.000000e+00 : f32
      %15 = vector.broadcast %cst_11 : f32 to vector<1x128xf32>
      %c0_12 = arith.constant 0 : index
      %c0_13 = arith.constant 0 : index
      %16 = vector.load %arg2[%c0_12, %c0_13] : memref<1x128xf32, #tpu.memory_space<vmem>>, vector<1x128xf32>
      tpu.vector_store %arg2[%c0_12, %c0_13], %15 {strides = array<i32>} : memref<1x128xf32, #tpu.memory_space<vmem>>, vector<1x128xf32>,
      %cst_14 = arith.constant 0.000000e+00 : f32
      %17 = vector.broadcast %cst_14 : f32 to vector<1x128xf32>
      %c0_15 = arith.constant 0 : index
      %c0_16 = arith.constant 0 : index
      %18 = vector.load %arg3[%c0_15, %c0_16] : memref<1x128xf32, #tpu.memory_space<vmem>>, vector<1x128xf32>
      tpu.vector_store %arg3[%c0_15, %c0_16], %17 {strides = array<i32>} : memref<1x128xf32, #tpu.memory_space<vmem>>, vector<1x128xf32>,
    } else {
    }
    %c0 = arith.constant 0 : index
    %c0_1 = arith.constant 0 : index
    %3 = vector.load %arg1[%c0, %c0_1] : memref<16x128xf32, #tpu.memory_space<vmem>>, vector<16x128xf32>
    %c0_2 = arith.constant 0 : index
    %c0_3 = arith.constant 0 : index
    %4 = vector.load %arg2[%c0_2, %c0_3] : memref<1x128xf32, #tpu.memory_space<vmem>>, vector<1x128xf32>
    %cst = arith.constant dense<0.000000e+00> : vector<128xf32>
    %5 = vector.multi_reduction <add>, %3, %cst [0] : vector<16x128xf32> to vector<128xf32>
    %6 = vector.shape_cast %5 : vector<128xf32> to vector<1x128xf32>
    %7 = arith.addf %4, %6 : vector<1x128xf32>
    %c0_4 = arith.constant 0 : index
    %c0_5 = arith.constant 0 : index
    %8 = vector.load %arg2[%c0_4, %c0_5] : memref<1x128xf32, #tpu.memory_space<vmem>>, vector<1x128xf32>
    tpu.vector_store %arg2[%c0_4, %c0_5], %7 {strides = array<i32>} : memref<1x128xf32, #tpu.memory_space<vmem>>, vector<1x128xf32>,
    %c0_6 = arith.constant 0 : index
    %c0_7 = arith.constant 0 : index
    %9 = vector.load %arg3[%c0_6, %c0_7] : memref<1x128xf32, #tpu.memory_space<vmem>>, vector<1x128xf32>
    %10 = arith.mulf %3, %3 : vector<16x128xf32>
    %cst_8 = arith.constant dense<0.000000e+00> : vector<128xf32>
    %11 = vector.multi_reduction <add>, %10, %cst_8 [0] : vector<16x128xf32> to vector<128xf32>
    %12 = vector.shape_cast %11 : vector<128xf32> to vector<1x128xf32>
    %13 = arith.addf %9, %12 : vector<1x128xf32>
    %c0_9 = arith.constant 0 : index
    %c0_10 = arith.constant 0 : index
    %14 = vector.load %arg3[%c0_9, %c0_10] : memref<1x128xf32, #tpu.memory_space<vmem>>, vector<1x128xf32>
    tpu.vector_store %arg3[%c0_9, %c0_10], %13 {strides = array<i32>} : memref<1x128xf32, #tpu.memory_space<vmem>>, vector<1x128xf32>,
    return
  }
  func.func @transform_0(%arg0: i32) -> (i32, i32) {
    %c0_i32 = arith.constant 0 : i32
    %c0_i32_0 = arith.constant 0 : i32
    return %arg0, %c0_i32 : i32, i32
  }
  func.func @transform_1(%arg0: i32) -> (i32, i32) {
    %c0_i32 = arith.constant 0 : i32
    %c0_i32_0 = arith.constant 0 : i32
    %c0_i32_1 = arith.constant 0 : i32
    return %c0_i32, %c0_i32_0 : i32, i32
  }
  func.func @transform_2(%arg0: i32) -> (i32, i32) {
    %c0_i32 = arith.constant 0 : i32
    %c0_i32_0 = arith.constant 0 : i32
    %c0_i32_1 = arith.constant 0 : i32
    return %c0_i32, %c0_i32_0 : i32, i32
  }
}

module attributes {stable_mosaic.version = 11 : i64} {
  func.func @kernel(%arg0: i32, %arg1: i32, %arg2: memref<1x16x16x4xf32, #tpu.memory_space<vmem>>, %arg3: memref<1x2x16x4xf32, #tpu.memory_space<vmem>>, %arg4: memref<36x8xf32, #tpu.memory_space<vmem>>, %arg5: memref<1x8xf32, #tpu.memory_space<vmem>>, %arg6: memref<1x4xf32, #tpu.memory_space<vmem>>, %arg7: memref<1x4xf32, #tpu.memory_space<vmem>>, %arg8: memref<1x16x16x8xf32, #tpu.memory_space<vmem>>, %arg9: memref<1x1x8xf32, #tpu.memory_space<vmem>>, %arg10: memref<1x1x8xf32, #tpu.memory_space<vmem>>, %arg11: memref<18x18x4xf32, #tpu.memory_space<vmem>>) attributes {dimension_semantics = [#tpu.dimension_semantics<parallel>, #tpu.dimension_semantics<arbitrary>], iteration_bounds = array<i64: 2, 1>, scalar_prefetch = 0 : i64, scratch_operands = 1 : i64, tpu.core_type = #tpu.core_type<tc>, window_params = [{transform_indices = @transform_0, window_bounds = array<i64: 1, 16, 16, 4>}, {transform_indices = @transform_1, window_bounds = array<i64: 1, 2, 16, 4>}, {pipeline_mode = #tpu.pipeline_mode<synchronous>, transform_indices = @transform_2, window_bounds = array<i64: 36, 8>}, {pipeline_mode = #tpu.pipeline_mode<synchronous>, transform_indices = @transform_3, window_bounds = array<i64: 1, 8>}, {pipeline_mode = #tpu.pipeline_mode<synchronous>, transform_indices = @transform_4, window_bounds = array<i64: 1, 4>}, {pipeline_mode = #tpu.pipeline_mode<synchronous>, transform_indices = @transform_5, window_bounds = array<i64: 1, 4>}, {transform_indices = @transform_6, window_bounds = array<i64: 1, 16, 16, 8>}, {transform_indices = @transform_7, window_bounds = array<i64: 1, 1, 8>}, {transform_indices = @transform_8, window_bounds = array<i64: 1, 1, 8>}]} {
    %c0 = arith.constant 0 : index
    %c0_0 = arith.constant 0 : index
    %0 = vector.load %arg6[%c0, %c0_0] : memref<1x4xf32, #tpu.memory_space<vmem>>, vector<1x4xf32>
    %c0_1 = arith.constant 0 : index
    %c0_2 = arith.constant 0 : index
    %1 = vector.load %arg7[%c0_1, %c0_2] : memref<1x4xf32, #tpu.memory_space<vmem>>, vector<1x4xf32>
    %cst = arith.constant 0.000000e+00 : f32
    %2 = vector.broadcast %cst : f32 to vector<1x18x4xf32>
    %cst_3 = arith.constant 0.000000e+00 : f32
    %3 = vector.broadcast %cst_3 : f32 to vector<18x1x4xf32>
    %c0_4 = arith.constant 0 : index
    %c0_5 = arith.constant 0 : index
    %c0_6 = arith.constant 0 : index
    %4 = vector.load %arg11[%c0_4, %c0_5, %c0_6] : memref<18x18x4xf32, #tpu.memory_space<vmem>>, vector<1x18x4xf32>
    tpu.vector_store %arg11[%c0_4, %c0_5, %c0_6], %2 {strides = array<i32>} : memref<18x18x4xf32, #tpu.memory_space<vmem>>, vector<1x18x4xf32>,
    %c17 = arith.constant 17 : index
    %c0_7 = arith.constant 0 : index
    %c0_8 = arith.constant 0 : index
    %5 = vector.load %arg11[%c17, %c0_7, %c0_8] : memref<18x18x4xf32, #tpu.memory_space<vmem>>, vector<1x18x4xf32>
    tpu.vector_store %arg11[%c17, %c0_7, %c0_8], %2 {strides = array<i32>} : memref<18x18x4xf32, #tpu.memory_space<vmem>>, vector<1x18x4xf32>,
    %c0_9 = arith.constant 0 : index
    %c0_10 = arith.constant 0 : index
    %c0_11 = arith.constant 0 : index
    %6 = vector.load %arg11[%c0_9, %c0_10, %c0_11] : memref<18x18x4xf32, #tpu.memory_space<vmem>>, vector<18x1x4xf32>
    tpu.vector_store %arg11[%c0_9, %c0_10, %c0_11], %3 {strides = array<i32>} : memref<18x18x4xf32, #tpu.memory_space<vmem>>, vector<18x1x4xf32>,
    %c0_12 = arith.constant 0 : index
    %c17_13 = arith.constant 17 : index
    %c0_14 = arith.constant 0 : index
    %7 = vector.load %arg11[%c0_12, %c17_13, %c0_14] : memref<18x18x4xf32, #tpu.memory_space<vmem>>, vector<18x1x4xf32>
    tpu.vector_store %arg11[%c0_12, %c17_13, %c0_14], %3 {strides = array<i32>} : memref<18x18x4xf32, #tpu.memory_space<vmem>>, vector<18x1x4xf32>,
    %c0_15 = arith.constant 0 : index
    %c0_16 = arith.constant 0 : index
    %c0_17 = arith.constant 0 : index
    %c0_18 = arith.constant 0 : index
    %8 = vector.load %arg2[%c0_15, %c0_16, %c0_17, %c0_18] : memref<1x16x16x4xf32, #tpu.memory_space<vmem>>, vector<1x16x16x4xf32>
    %9 = vector.shape_cast %8 : vector<1x16x16x4xf32> to vector<16x16x4xf32>
    %10 = vector.shape_cast %0 : vector<1x4xf32> to vector<1x1x4xf32>
    %11 = vector.broadcast %10 : vector<1x1x4xf32> to vector<16x16x4xf32>
    %12 = arith.mulf %9, %11 : vector<16x16x4xf32>
    %13 = vector.shape_cast %1 : vector<1x4xf32> to vector<1x1x4xf32>
    %14 = vector.broadcast %13 : vector<1x1x4xf32> to vector<16x16x4xf32>
    %15 = arith.addf %12, %14 : vector<16x16x4xf32>
    %c1 = arith.constant 1 : index
    %c1_19 = arith.constant 1 : index
    %c0_20 = arith.constant 0 : index
    %16 = vector.load %arg11[%c1, %c1_19, %c0_20] : memref<18x18x4xf32, #tpu.memory_space<vmem>>, vector<16x16x4xf32>
    tpu.vector_store %arg11[%c1, %c1_19, %c0_20], %15 {strides = array<i32>} : memref<18x18x4xf32, #tpu.memory_space<vmem>>, vector<16x16x4xf32>,
    %c0_i32 = arith.constant 0 : i32
    %17 = arith.cmpi sgt, %arg1, %c0_i32 : i32
    %18 = arith.extui %17 : i1 to i32
    %c0_i32_21 = arith.constant 0 : i32
    %19 = arith.cmpi ne, %18, %c0_i32_21 : i32
    scf.if %19 {
      %c0_90 = arith.constant 0 : index
      %c0_91 = arith.constant 0 : index
      %c0_92 = arith.constant 0 : index
      %c0_93 = arith.constant 0 : index
      %137 = vector.load %arg3[%c0_90, %c0_91, %c0_92, %c0_93] : memref<1x2x16x4xf32, #tpu.memory_space<vmem>>, vector<1x1x16x4xf32>
      %138 = vector.shape_cast %137 : vector<1x1x16x4xf32> to vector<1x16x4xf32>
      %139 = vector.shape_cast %0 : vector<1x4xf32> to vector<1x1x4xf32>
      %140 = vector.broadcast %139 : vector<1x1x4xf32> to vector<1x16x4xf32>
      %141 = arith.mulf %138, %140 : vector<1x16x4xf32>
      %142 = vector.shape_cast %1 : vector<1x4xf32> to vector<1x1x4xf32>
      %143 = vector.broadcast %142 : vector<1x1x4xf32> to vector<1x16x4xf32>
      %144 = arith.addf %141, %143 : vector<1x16x4xf32>
      %c0_94 = arith.constant 0 : index
      %c1_95 = arith.constant 1 : index
      %c0_96 = arith.constant 0 : index
      %145 = vector.load %arg11[%c0_94, %c1_95, %c0_96] : memref<18x18x4xf32, #tpu.memory_space<vmem>>, vector<1x16x4xf32>
      tpu.vector_store %arg11[%c0_94, %c1_95, %c0_96], %144 {strides = array<i32>} : memref<18x18x4xf32, #tpu.memory_space<vmem>>, vector<1x16x4xf32>,
    } else {
    }
    %c0_i32_22 = arith.constant 0 : i32
    %20 = arith.cmpi slt, %arg1, %c0_i32_22 : i32
    %21 = arith.extui %20 : i1 to i32
    %c0_i32_23 = arith.constant 0 : i32
    %22 = arith.cmpi ne, %21, %c0_i32_23 : i32
    scf.if %22 {
      %c0_90 = arith.constant 0 : index
      %c1_91 = arith.constant 1 : index
      %c0_92 = arith.constant 0 : index
      %c0_93 = arith.constant 0 : index
      %137 = vector.load %arg3[%c0_90, %c1_91, %c0_92, %c0_93] : memref<1x2x16x4xf32, #tpu.memory_space<vmem>>, vector<1x1x16x4xf32>
      %138 = vector.shape_cast %137 : vector<1x1x16x4xf32> to vector<1x16x4xf32>
      %139 = vector.shape_cast %0 : vector<1x4xf32> to vector<1x1x4xf32>
      %140 = vector.broadcast %139 : vector<1x1x4xf32> to vector<1x16x4xf32>
      %141 = arith.mulf %138, %140 : vector<1x16x4xf32>
      %142 = vector.shape_cast %1 : vector<1x4xf32> to vector<1x1x4xf32>
      %143 = vector.broadcast %142 : vector<1x1x4xf32> to vector<1x16x4xf32>
      %144 = arith.addf %141, %143 : vector<1x16x4xf32>
      %c17_94 = arith.constant 17 : index
      %c1_95 = arith.constant 1 : index
      %c0_96 = arith.constant 0 : index
      %145 = vector.load %arg11[%c17_94, %c1_95, %c0_96] : memref<18x18x4xf32, #tpu.memory_space<vmem>>, vector<1x16x4xf32>
      tpu.vector_store %arg11[%c17_94, %c1_95, %c0_96], %144 {strides = array<i32>} : memref<18x18x4xf32, #tpu.memory_space<vmem>>, vector<1x16x4xf32>,
    } else {
    }
    %cst_24 = arith.constant 0.000000e+00 : f32
    %23 = vector.broadcast %cst_24 : f32 to vector<256x8xf32>
    %c0_25 = arith.constant 0 : index
    %c0_26 = arith.constant 0 : index
    %c0_27 = arith.constant 0 : index
    %24 = vector.load %arg11[%c0_25, %c0_26, %c0_27] : memref<18x18x4xf32, #tpu.memory_space<vmem>>, vector<18x16x4xf32>
    %25 = vector.extract_strided_slice %24 {offsets = [0, 0, 0], sizes = [16, 16, 4], strides = [1, 1, 1]} : vector<18x16x4xf32> to vector<16x16x4xf32>
    %26 = vector.shape_cast %25 : vector<16x16x4xf32> to vector<256x4xf32>
    %c0_28 = arith.constant 0 : index
    %c0_29 = arith.constant 0 : index
    %27 = vector.load %arg4[%c0_28, %c0_29] : memref<36x8xf32, #tpu.memory_space<vmem>>, vector<4x8xf32>
    %cst_30 = arith.constant dense<0.000000e+00> : vector<256x8xf32>
    %28 = tpu.matmul %26, %27, %cst_30 {dimension_numbers = #tpu.dot_dimension_numbers<[1], [0], [0], [1], [0, 0, 1, 1], [], []>} : vector<256x4xf32>, vector<4x8xf32>, vector<256x8xf32> -> vector<256x8xf32>
    %29 = arith.addf %23, %28 : vector<256x8xf32>
    %30 = vector.extract_strided_slice %24 {offsets = [1, 0, 0], sizes = [16, 16, 4], strides = [1, 1, 1]} : vector<18x16x4xf32> to vector<16x16x4xf32>
    %31 = vector.shape_cast %30 : vector<16x16x4xf32> to vector<256x4xf32>
    %c4 = arith.constant 4 : index
    %c0_31 = arith.constant 0 : index
    %32 = vector.load %arg4[%c4, %c0_31] : memref<36x8xf32, #tpu.memory_space<vmem>>, vector<4x8xf32>
    %cst_32 = arith.constant dense<0.000000e+00> : vector<256x8xf32>
    %33 = tpu.matmul %31, %32, %cst_32 {dimension_numbers = #tpu.dot_dimension_numbers<[1], [0], [0], [1], [0, 0, 1, 1], [], []>} : vector<256x4xf32>, vector<4x8xf32>, vector<256x8xf32> -> vector<256x8xf32>
    %34 = arith.addf %29, %33 : vector<256x8xf32>
    %35 = vector.extract_strided_slice %24 {offsets = [2, 0, 0], sizes = [16, 16, 4], strides = [1, 1, 1]} : vector<18x16x4xf32> to vector<16x16x4xf32>
    %36 = vector.shape_cast %35 : vector<16x16x4xf32> to vector<256x4xf32>
    %c8 = arith.constant 8 : index
    %c0_33 = arith.constant 0 : index
    %37 = vector.load %arg4[%c8, %c0_33] : memref<36x8xf32, #tpu.memory_space<vmem>>, vector<4x8xf32>
    %cst_34 = arith.constant dense<0.000000e+00> : vector<256x8xf32>
    %38 = tpu.matmul %36, %37, %cst_34 {dimension_numbers = #tpu.dot_dimension_numbers<[1], [0], [0], [1], [0, 0, 1, 1], [], []>} : vector<256x4xf32>, vector<4x8xf32>, vector<256x8xf32> -> vector<256x8xf32>
    %39 = arith.addf %34, %38 : vector<256x8xf32>
    %c0_35 = arith.constant 0 : index
    %c1_36 = arith.constant 1 : index
    %c0_37 = arith.constant 0 : index
    %40 = vector.load %arg11[%c0_35, %c1_36, %c0_37] : memref<18x18x4xf32, #tpu.memory_space<vmem>>, vector<18x16x4xf32>
    %41 = vector.extract_strided_slice %40 {offsets = [0, 0, 0], sizes = [16, 16, 4], strides = [1, 1, 1]} : vector<18x16x4xf32> to vector<16x16x4xf32>
    %42 = vector.shape_cast %41 : vector<16x16x4xf32> to vector<256x4xf32>
    %c12 = arith.constant 12 : index
    %c0_38 = arith.constant 0 : index
    %43 = vector.load %arg4[%c12, %c0_38] : memref<36x8xf32, #tpu.memory_space<vmem>>, vector<4x8xf32>
    %cst_39 = arith.constant dense<0.000000e+00> : vector<256x8xf32>
    %44 = tpu.matmul %42, %43, %cst_39 {dimension_numbers = #tpu.dot_dimension_numbers<[1], [0], [0], [1], [0, 0, 1, 1], [], []>} : vector<256x4xf32>, vector<4x8xf32>, vector<256x8xf32> -> vector<256x8xf32>
    %45 = arith.addf %39, %44 : vector<256x8xf32>
    %46 = vector.extract_strided_slice %40 {offsets = [1, 0, 0], sizes = [16, 16, 4], strides = [1, 1, 1]} : vector<18x16x4xf32> to vector<16x16x4xf32>
    %47 = vector.shape_cast %46 : vector<16x16x4xf32> to vector<256x4xf32>
    %c16 = arith.constant 16 : index
    %c0_40 = arith.constant 0 : index
    %48 = vector.load %arg4[%c16, %c0_40] : memref<36x8xf32, #tpu.memory_space<vmem>>, vector<4x8xf32>
    %cst_41 = arith.constant dense<0.000000e+00> : vector<256x8xf32>
    %49 = tpu.matmul %47, %48, %cst_41 {dimension_numbers = #tpu.dot_dimension_numbers<[1], [0], [0], [1], [0, 0, 1, 1], [], []>} : vector<256x4xf32>, vector<4x8xf32>, vector<256x8xf32> -> vector<256x8xf32>
    %50 = arith.addf %45, %49 : vector<256x8xf32>
    %51 = vector.extract_strided_slice %40 {offsets = [2, 0, 0], sizes = [16, 16, 4], strides = [1, 1, 1]} : vector<18x16x4xf32> to vector<16x16x4xf32>
    %52 = vector.shape_cast %51 : vector<16x16x4xf32> to vector<256x4xf32>
    %c20 = arith.constant 20 : index
    %c0_42 = arith.constant 0 : index
    %53 = vector.load %arg4[%c20, %c0_42] : memref<36x8xf32, #tpu.memory_space<vmem>>, vector<4x8xf32>
    %cst_43 = arith.constant dense<0.000000e+00> : vector<256x8xf32>
    %54 = tpu.matmul %52, %53, %cst_43 {dimension_numbers = #tpu.dot_dimension_numbers<[1], [0], [0], [1], [0, 0, 1, 1], [], []>} : vector<256x4xf32>, vector<4x8xf32>, vector<256x8xf32> -> vector<256x8xf32>
    %55 = arith.addf %50, %54 : vector<256x8xf32>
    %c0_44 = arith.constant 0 : index
    %c2 = arith.constant 2 : index
    %c0_45 = arith.constant 0 : index
    %56 = vector.load %arg11[%c0_44, %c2, %c0_45] : memref<18x18x4xf32, #tpu.memory_space<vmem>>, vector<18x16x4xf32>
    %57 = vector.extract_strided_slice %56 {offsets = [0, 0, 0], sizes = [16, 16, 4], strides = [1, 1, 1]} : vector<18x16x4xf32> to vector<16x16x4xf32>
    %58 = vector.shape_cast %57 : vector<16x16x4xf32> to vector<256x4xf32>
    %c24 = arith.constant 24 : index
    %c0_46 = arith.constant 0 : index
    %59 = vector.load %arg4[%c24, %c0_46] : memref<36x8xf32, #tpu.memory_space<vmem>>, vector<4x8xf32>
    %cst_47 = arith.constant dense<0.000000e+00> : vector<256x8xf32>
    %60 = tpu.matmul %58, %59, %cst_47 {dimension_numbers = #tpu.dot_dimension_numbers<[1], [0], [0], [1], [0, 0, 1, 1], [], []>} : vector<256x4xf32>, vector<4x8xf32>, vector<256x8xf32> -> vector<256x8xf32>
    %61 = arith.addf %55, %60 : vector<256x8xf32>
    %62 = vector.extract_strided_slice %56 {offsets = [1, 0, 0], sizes = [16, 16, 4], strides = [1, 1, 1]} : vector<18x16x4xf32> to vector<16x16x4xf32>
    %63 = vector.shape_cast %62 : vector<16x16x4xf32> to vector<256x4xf32>
    %c28 = arith.constant 28 : index
    %c0_48 = arith.constant 0 : index
    %64 = vector.load %arg4[%c28, %c0_48] : memref<36x8xf32, #tpu.memory_space<vmem>>, vector<4x8xf32>
    %cst_49 = arith.constant dense<0.000000e+00> : vector<256x8xf32>
    %65 = tpu.matmul %63, %64, %cst_49 {dimension_numbers = #tpu.dot_dimension_numbers<[1], [0], [0], [1], [0, 0, 1, 1], [], []>} : vector<256x4xf32>, vector<4x8xf32>, vector<256x8xf32> -> vector<256x8xf32>
    %66 = arith.addf %61, %65 : vector<256x8xf32>
    %67 = vector.extract_strided_slice %56 {offsets = [2, 0, 0], sizes = [16, 16, 4], strides = [1, 1, 1]} : vector<18x16x4xf32> to vector<16x16x4xf32>
    %68 = vector.shape_cast %67 : vector<16x16x4xf32> to vector<256x4xf32>
    %c32 = arith.constant 32 : index
    %c0_50 = arith.constant 0 : index
    %69 = vector.load %arg4[%c32, %c0_50] : memref<36x8xf32, #tpu.memory_space<vmem>>, vector<4x8xf32>
    %cst_51 = arith.constant dense<0.000000e+00> : vector<256x8xf32>
    %70 = tpu.matmul %68, %69, %cst_51 {dimension_numbers = #tpu.dot_dimension_numbers<[1], [0], [0], [1], [0, 0, 1, 1], [], []>} : vector<256x4xf32>, vector<4x8xf32>, vector<256x8xf32> -> vector<256x8xf32>
    %71 = arith.addf %66, %70 : vector<256x8xf32>
    %c0_52 = arith.constant 0 : index
    %c0_53 = arith.constant 0 : index
    %72 = vector.load %arg5[%c0_52, %c0_53] : memref<1x8xf32, #tpu.memory_space<vmem>>, vector<1x8xf32>
    %73 = vector.broadcast %72 : vector<1x8xf32> to vector<256x8xf32>
    %74 = arith.addf %71, %73 : vector<256x8xf32>
    %cst_54 = arith.constant 5.000000e-01 : f32
    %75 = vector.broadcast %cst_54 : f32 to vector<256x8xf32>
    %76 = arith.mulf %75, %74 : vector<256x8xf32>
    %cst_55 = arith.constant 0.707106769 : f32
    %77 = vector.broadcast %cst_55 : f32 to vector<256x8xf32>
    %78 = arith.mulf %74, %77 : vector<256x8xf32>
    %cst_56 = arith.constant 0.000000e+00 : f32
    %79 = vector.broadcast %cst_56 : f32 to vector<256x8xf32>
    %80 = arith.cmpf oge, %78, %79 : vector<256x8xf32>
    %cst_57 = arith.constant 1.000000e+00 : f32
    %cst_58 = arith.constant -1.000000e+00 : f32
    %81 = vector.broadcast %cst_57 : f32 to vector<256x8xf32>
    %82 = vector.broadcast %cst_58 : f32 to vector<256x8xf32>
    %83 = arith.select %80, %81, %82 : vector<256x8xi1>, vector<256x8xf32>
    %84 = math.absf %78 : vector<256x8xf32>
    %cst_59 = arith.constant 0.327591091 : f32
    %85 = vector.broadcast %cst_59 : f32 to vector<256x8xf32>
    %86 = arith.mulf %85, %84 : vector<256x8xf32>
    %cst_60 = arith.constant 1.000000e+00 : f32
    %87 = vector.broadcast %cst_60 : f32 to vector<256x8xf32>
    %88 = arith.addf %87, %86 : vector<256x8xf32>
    %89 = tpu.reciprocal %88 {approx = true} : vector<256x8xf32> -> vector<256x8xf32>
    %90 = arith.mulf %88, %89 : vector<256x8xf32>
    %cst_61 = arith.constant 2.000000e+00 : f32
    %91 = vector.broadcast %cst_61 : f32 to vector<256x8xf32>
    %92 = arith.subf %91, %90 : vector<256x8xf32>
    %93 = arith.mulf %89, %92 : vector<256x8xf32>
    %cst_62 = arith.constant 1.06140542 : f32
    %94 = vector.broadcast %cst_62 : f32 to vector<256x8xf32>
    %95 = arith.mulf %94, %93 : vector<256x8xf32>
    %cst_63 = arith.constant -1.45315206 : f32
    %96 = vector.broadcast %cst_63 : f32 to vector<256x8xf32>
    %97 = arith.addf %95, %96 : vector<256x8xf32>
    %98 = arith.mulf %97, %93 : vector<256x8xf32>
    %cst_64 = arith.constant 1.42141378 : f32
    %99 = vector.broadcast %cst_64 : f32 to vector<256x8xf32>
    %100 = arith.addf %98, %99 : vector<256x8xf32>
    %101 = arith.mulf %100, %93 : vector<256x8xf32>
    %cst_65 = arith.constant -0.284496725 : f32
    %102 = vector.broadcast %cst_65 : f32 to vector<256x8xf32>
    %103 = arith.addf %101, %102 : vector<256x8xf32>
    %104 = arith.mulf %103, %93 : vector<256x8xf32>
    %cst_66 = arith.constant 0.254829586 : f32
    %105 = vector.broadcast %cst_66 : f32 to vector<256x8xf32>
    %106 = arith.addf %104, %105 : vector<256x8xf32>
    %107 = arith.mulf %106, %93 : vector<256x8xf32>
    %cst_67 = arith.constant 0.000000e+00 : f32
    %108 = vector.broadcast %cst_67 : f32 to vector<256x8xf32>
    %109 = arith.subf %108, %84 : vector<256x8xf32>
    %110 = arith.mulf %109, %84 : vector<256x8xf32>
    %111 = math.exp %110 : vector<256x8xf32>
    %112 = arith.mulf %107, %111 : vector<256x8xf32>
    %cst_68 = arith.constant 1.000000e+00 : f32
    %113 = vector.broadcast %cst_68 : f32 to vector<256x8xf32>
    %114 = arith.subf %113, %112 : vector<256x8xf32>
    %115 = arith.mulf %83, %114 : vector<256x8xf32>
    %cst_69 = arith.constant 1.000000e+00 : f32
    %116 = vector.broadcast %cst_69 : f32 to vector<256x8xf32>
    %117 = arith.addf %116, %115 : vector<256x8xf32>
    %118 = arith.mulf %76, %117 : vector<256x8xf32>
    %c0_i32_70 = arith.constant 0 : i32
    %119 = arith.cmpi eq, %arg1, %c0_i32_70 : i32
    %120 = arith.extui %119 : i1 to i32
    %c0_i32_71 = arith.constant 0 : i32
    %121 = arith.cmpi ne, %120, %c0_i32_71 : i32
    scf.if %121 {
      %cst_90 = arith.constant 0.000000e+00 : f32
      %137 = vector.broadcast %cst_90 : f32 to vector<1x1x8xf32>
      %c0_91 = arith.constant 0 : index
      %c0_92 = arith.constant 0 : index
      %c0_93 = arith.constant 0 : index
      %138 = vector.load %arg9[%c0_91, %c0_92, %c0_93] : memref<1x1x8xf32, #tpu.memory_space<vmem>>, vector<1x1x8xf32>
      tpu.vector_store %arg9[%c0_91, %c0_92, %c0_93], %137 {strides = array<i32>} : memref<1x1x8xf32, #tpu.memory_space<vmem>>, vector<1x1x8xf32>,
      %cst_94 = arith.constant 0.000000e+00 : f32
      %139 = vector.broadcast %cst_94 : f32 to vector<1x1x8xf32>
      %c0_95 = arith.constant 0 : index
      %c0_96 = arith.constant 0 : index
      %c0_97 = arith.constant 0 : index
      %140 = vector.load %arg10[%c0_95, %c0_96, %c0_97] : memref<1x1x8xf32, #tpu.memory_space<vmem>>, vector<1x1x8xf32>
      tpu.vector_store %arg10[%c0_95, %c0_96, %c0_97], %139 {strides = array<i32>} : memref<1x1x8xf32, #tpu.memory_space<vmem>>, vector<1x1x8xf32>,
    } else {
    }
    %c0_72 = arith.constant 0 : index
    %c0_73 = arith.constant 0 : index
    %c0_74 = arith.constant 0 : index
    %122 = vector.load %arg9[%c0_72, %c0_73, %c0_74] : memref<1x1x8xf32, #tpu.memory_space<vmem>>, vector<1x1x8xf32>
    %cst_75 = arith.constant dense<0.000000e+00> : vector<8xf32>
    %123 = vector.multi_reduction <add>, %118, %cst_75 [0] : vector<256x8xf32> to vector<8xf32>
    %124 = vector.shape_cast %123 : vector<8xf32> to vector<1x8xf32>
    %125 = vector.shape_cast %124 : vector<1x8xf32> to vector<1x1x8xf32>
    %126 = arith.addf %122, %125 : vector<1x1x8xf32>
    %c0_76 = arith.constant 0 : index
    %c0_77 = arith.constant 0 : index
    %c0_78 = arith.constant 0 : index
    %127 = vector.load %arg9[%c0_76, %c0_77, %c0_78] : memref<1x1x8xf32, #tpu.memory_space<vmem>>, vector<1x1x8xf32>
    tpu.vector_store %arg9[%c0_76, %c0_77, %c0_78], %126 {strides = array<i32>} : memref<1x1x8xf32, #tpu.memory_space<vmem>>, vector<1x1x8xf32>,
    %c0_79 = arith.constant 0 : index
    %c0_80 = arith.constant 0 : index
    %c0_81 = arith.constant 0 : index
    %128 = vector.load %arg10[%c0_79, %c0_80, %c0_81] : memref<1x1x8xf32, #tpu.memory_space<vmem>>, vector<1x1x8xf32>
    %129 = arith.mulf %118, %118 : vector<256x8xf32>
    %cst_82 = arith.constant dense<0.000000e+00> : vector<8xf32>
    %130 = vector.multi_reduction <add>, %129, %cst_82 [0] : vector<256x8xf32> to vector<8xf32>
    %131 = vector.shape_cast %130 : vector<8xf32> to vector<1x8xf32>
    %132 = vector.shape_cast %131 : vector<1x8xf32> to vector<1x1x8xf32>
    %133 = arith.addf %128, %132 : vector<1x1x8xf32>
    %c0_83 = arith.constant 0 : index
    %c0_84 = arith.constant 0 : index
    %c0_85 = arith.constant 0 : index
    %134 = vector.load %arg10[%c0_83, %c0_84, %c0_85] : memref<1x1x8xf32, #tpu.memory_space<vmem>>, vector<1x1x8xf32>
    tpu.vector_store %arg10[%c0_83, %c0_84, %c0_85], %133 {strides = array<i32>} : memref<1x1x8xf32, #tpu.memory_space<vmem>>, vector<1x1x8xf32>,
    %135 = vector.shape_cast %118 : vector<256x8xf32> to vector<1x16x16x8xf32>
    %c0_86 = arith.constant 0 : index
    %c0_87 = arith.constant 0 : index
    %c0_88 = arith.constant 0 : index
    %c0_89 = arith.constant 0 : index
    %136 = vector.load %arg8[%c0_86, %c0_87, %c0_88, %c0_89] : memref<1x16x16x8xf32, #tpu.memory_space<vmem>>, vector<1x16x16x8xf32>
    tpu.vector_store %arg8[%c0_86, %c0_87, %c0_88, %c0_89], %135 {strides = array<i32>} : memref<1x16x16x8xf32, #tpu.memory_space<vmem>>, vector<1x16x16x8xf32>,
    return
  }
  func.func @transform_0(%arg0: i32, %arg1: i32) -> (i32, i32, i32, i32) {
    %c0_i32 = arith.constant 0 : i32
    %c0_i32_0 = arith.constant 0 : i32
    %c0_i32_1 = arith.constant 0 : i32
    return %arg0, %arg1, %c0_i32, %c0_i32_0 : i32, i32, i32, i32
  }
  func.func @transform_1(%arg0: i32, %arg1: i32) -> (i32, i32, i32, i32) {
    %c1_i32 = arith.constant 1 : i32
    %0 = arith.muli %arg0, %c1_i32 : i32
    %1 = arith.addi %0, %arg1 : i32
    %c0_i32 = arith.constant 0 : i32
    %c0_i32_0 = arith.constant 0 : i32
    %c0_i32_1 = arith.constant 0 : i32
    %c0_i32_2 = arith.constant 0 : i32
    return %1, %c0_i32, %c0_i32_0, %c0_i32_1 : i32, i32, i32, i32
  }
  func.func @transform_2(%arg0: i32, %arg1: i32) -> (i32, i32) {
    %c0_i32 = arith.constant 0 : i32
    %c0_i32_0 = arith.constant 0 : i32
    %c0_i32_1 = arith.constant 0 : i32
    return %c0_i32, %c0_i32_0 : i32, i32
  }
  func.func @transform_3(%arg0: i32, %arg1: i32) -> (i32, i32) {
    %c0_i32 = arith.constant 0 : i32
    %c0_i32_0 = arith.constant 0 : i32
    %c0_i32_1 = arith.constant 0 : i32
    return %c0_i32, %c0_i32_0 : i32, i32
  }
  func.func @transform_4(%arg0: i32, %arg1: i32) -> (i32, i32) {
    %c0_i32 = arith.constant 0 : i32
    %c0_i32_0 = arith.constant 0 : i32
    %c0_i32_1 = arith.constant 0 : i32
    return %c0_i32, %c0_i32_0 : i32, i32
  }
  func.func @transform_5(%arg0: i32, %arg1: i32) -> (i32, i32) {
    %c0_i32 = arith.constant 0 : i32
    %c0_i32_0 = arith.constant 0 : i32
    %c0_i32_1 = arith.constant 0 : i32
    return %c0_i32, %c0_i32_0 : i32, i32
  }
  func.func @transform_6(%arg0: i32, %arg1: i32) -> (i32, i32, i32, i32) {
    %c0_i32 = arith.constant 0 : i32
    %c0_i32_0 = arith.constant 0 : i32
    %c0_i32_1 = arith.constant 0 : i32
    return %arg0, %arg1, %c0_i32, %c0_i32_0 : i32, i32, i32, i32
  }
  func.func @transform_7(%arg0: i32, %arg1: i32) -> (i32, i32, i32) {
    %c0_i32 = arith.constant 0 : i32
    %c0_i32_0 = arith.constant 0 : i32
    %c0_i32_1 = arith.constant 0 : i32
    return %arg0, %c0_i32, %c0_i32_0 : i32, i32, i32
  }
  func.func @transform_8(%arg0: i32, %arg1: i32) -> (i32, i32, i32) {
    %c0_i32 = arith.constant 0 : i32
    %c0_i32_0 = arith.constant 0 : i32
    %c0_i32_1 = arith.constant 0 : i32
    return %arg0, %c0_i32, %c0_i32_0 : i32, i32, i32
  }
}

module attributes {stable_mosaic.version = 11 : i64} {
  func.func @kernel(%arg0: i32, %arg1: i32, %arg2: memref<1x16x16x8xf32, #tpu.memory_space<vmem>>, %arg3: memref<1x2x16x8xf32, #tpu.memory_space<vmem>>, %arg4: memref<72x8xf32, #tpu.memory_space<vmem>>, %arg5: memref<1x8xf32, #tpu.memory_space<vmem>>, %arg6: memref<1x8xf32, #tpu.memory_space<vmem>>, %arg7: memref<1x8xf32, #tpu.memory_space<vmem>>, %arg8: memref<1x16x16x8xf32, #tpu.memory_space<vmem>>, %arg9: memref<18x18x8xf32, #tpu.memory_space<vmem>>) attributes {dimension_semantics = [#tpu.dimension_semantics<parallel>, #tpu.dimension_semantics<parallel>], iteration_bounds = array<i64: 2, 1>, scalar_prefetch = 0 : i64, scratch_operands = 1 : i64, tpu.core_type = #tpu.core_type<tc>, window_params = [{transform_indices = @transform_0, window_bounds = array<i64: 1, 16, 16, 8>}, {transform_indices = @transform_1, window_bounds = array<i64: 1, 2, 16, 8>}, {pipeline_mode = #tpu.pipeline_mode<synchronous>, transform_indices = @transform_2, window_bounds = array<i64: 72, 8>}, {pipeline_mode = #tpu.pipeline_mode<synchronous>, transform_indices = @transform_3, window_bounds = array<i64: 1, 8>}, {pipeline_mode = #tpu.pipeline_mode<synchronous>, transform_indices = @transform_4, window_bounds = array<i64: 1, 8>}, {pipeline_mode = #tpu.pipeline_mode<synchronous>, transform_indices = @transform_5, window_bounds = array<i64: 1, 8>}, {transform_indices = @transform_6, window_bounds = array<i64: 1, 16, 16, 8>}]} {
    %c0 = arith.constant 0 : index
    %c0_0 = arith.constant 0 : index
    %0 = vector.load %arg6[%c0, %c0_0] : memref<1x8xf32, #tpu.memory_space<vmem>>, vector<1x8xf32>
    %c0_1 = arith.constant 0 : index
    %c0_2 = arith.constant 0 : index
    %1 = vector.load %arg7[%c0_1, %c0_2] : memref<1x8xf32, #tpu.memory_space<vmem>>, vector<1x8xf32>
    %cst = arith.constant 0.000000e+00 : f32
    %2 = vector.broadcast %cst : f32 to vector<1x18x8xf32>
    %cst_3 = arith.constant 0.000000e+00 : f32
    %3 = vector.broadcast %cst_3 : f32 to vector<18x1x8xf32>
    %c0_4 = arith.constant 0 : index
    %c0_5 = arith.constant 0 : index
    %c0_6 = arith.constant 0 : index
    %4 = vector.load %arg9[%c0_4, %c0_5, %c0_6] : memref<18x18x8xf32, #tpu.memory_space<vmem>>, vector<1x18x8xf32>
    tpu.vector_store %arg9[%c0_4, %c0_5, %c0_6], %2 {strides = array<i32>} : memref<18x18x8xf32, #tpu.memory_space<vmem>>, vector<1x18x8xf32>,
    %c17 = arith.constant 17 : index
    %c0_7 = arith.constant 0 : index
    %c0_8 = arith.constant 0 : index
    %5 = vector.load %arg9[%c17, %c0_7, %c0_8] : memref<18x18x8xf32, #tpu.memory_space<vmem>>, vector<1x18x8xf32>
    tpu.vector_store %arg9[%c17, %c0_7, %c0_8], %2 {strides = array<i32>} : memref<18x18x8xf32, #tpu.memory_space<vmem>>, vector<1x18x8xf32>,
    %c0_9 = arith.constant 0 : index
    %c0_10 = arith.constant 0 : index
    %c0_11 = arith.constant 0 : index
    %6 = vector.load %arg9[%c0_9, %c0_10, %c0_11] : memref<18x18x8xf32, #tpu.memory_space<vmem>>, vector<18x1x8xf32>
    tpu.vector_store %arg9[%c0_9, %c0_10, %c0_11], %3 {strides = array<i32>} : memref<18x18x8xf32, #tpu.memory_space<vmem>>, vector<18x1x8xf32>,
    %c0_12 = arith.constant 0 : index
    %c17_13 = arith.constant 17 : index
    %c0_14 = arith.constant 0 : index
    %7 = vector.load %arg9[%c0_12, %c17_13, %c0_14] : memref<18x18x8xf32, #tpu.memory_space<vmem>>, vector<18x1x8xf32>
    tpu.vector_store %arg9[%c0_12, %c17_13, %c0_14], %3 {strides = array<i32>} : memref<18x18x8xf32, #tpu.memory_space<vmem>>, vector<18x1x8xf32>,
    %c0_15 = arith.constant 0 : index
    %c0_16 = arith.constant 0 : index
    %c0_17 = arith.constant 0 : index
    %c0_18 = arith.constant 0 : index
    %8 = vector.load %arg2[%c0_15, %c0_16, %c0_17, %c0_18] : memref<1x16x16x8xf32, #tpu.memory_space<vmem>>, vector<1x16x16x8xf32>
    %9 = vector.shape_cast %8 : vector<1x16x16x8xf32> to vector<16x16x8xf32>
    %10 = vector.shape_cast %0 : vector<1x8xf32> to vector<1x1x8xf32>
    %11 = vector.broadcast %10 : vector<1x1x8xf32> to vector<16x16x8xf32>
    %12 = arith.mulf %9, %11 : vector<16x16x8xf32>
    %13 = vector.shape_cast %1 : vector<1x8xf32> to vector<1x1x8xf32>
    %14 = vector.broadcast %13 : vector<1x1x8xf32> to vector<16x16x8xf32>
    %15 = arith.addf %12, %14 : vector<16x16x8xf32>
    %c1 = arith.constant 1 : index
    %c1_19 = arith.constant 1 : index
    %c0_20 = arith.constant 0 : index
    %16 = vector.load %arg9[%c1, %c1_19, %c0_20] : memref<18x18x8xf32, #tpu.memory_space<vmem>>, vector<16x16x8xf32>
    tpu.vector_store %arg9[%c1, %c1_19, %c0_20], %15 {strides = array<i32>} : memref<18x18x8xf32, #tpu.memory_space<vmem>>, vector<16x16x8xf32>,
    %c0_i32 = arith.constant 0 : i32
    %17 = arith.cmpi sgt, %arg1, %c0_i32 : i32
    %18 = arith.extui %17 : i1 to i32
    %c0_i32_21 = arith.constant 0 : i32
    %19 = arith.cmpi ne, %18, %c0_i32_21 : i32
    scf.if %19 {
      %c0_74 = arith.constant 0 : index
      %c0_75 = arith.constant 0 : index
      %c0_76 = arith.constant 0 : index
      %c0_77 = arith.constant 0 : index
      %121 = vector.load %arg3[%c0_74, %c0_75, %c0_76, %c0_77] : memref<1x2x16x8xf32, #tpu.memory_space<vmem>>, vector<1x1x16x8xf32>
      %122 = vector.shape_cast %121 : vector<1x1x16x8xf32> to vector<1x16x8xf32>
      %123 = vector.shape_cast %0 : vector<1x8xf32> to vector<1x1x8xf32>
      %124 = vector.broadcast %123 : vector<1x1x8xf32> to vector<1x16x8xf32>
      %125 = arith.mulf %122, %124 : vector<1x16x8xf32>
      %126 = vector.shape_cast %1 : vector<1x8xf32> to vector<1x1x8xf32>
      %127 = vector.broadcast %126 : vector<1x1x8xf32> to vector<1x16x8xf32>
      %128 = arith.addf %125, %127 : vector<1x16x8xf32>
      %c0_78 = arith.constant 0 : index
      %c1_79 = arith.constant 1 : index
      %c0_80 = arith.constant 0 : index
      %129 = vector.load %arg9[%c0_78, %c1_79, %c0_80] : memref<18x18x8xf32, #tpu.memory_space<vmem>>, vector<1x16x8xf32>
      tpu.vector_store %arg9[%c0_78, %c1_79, %c0_80], %128 {strides = array<i32>} : memref<18x18x8xf32, #tpu.memory_space<vmem>>, vector<1x16x8xf32>,
    } else {
    }
    %c0_i32_22 = arith.constant 0 : i32
    %20 = arith.cmpi slt, %arg1, %c0_i32_22 : i32
    %21 = arith.extui %20 : i1 to i32
    %c0_i32_23 = arith.constant 0 : i32
    %22 = arith.cmpi ne, %21, %c0_i32_23 : i32
    scf.if %22 {
      %c0_74 = arith.constant 0 : index
      %c1_75 = arith.constant 1 : index
      %c0_76 = arith.constant 0 : index
      %c0_77 = arith.constant 0 : index
      %121 = vector.load %arg3[%c0_74, %c1_75, %c0_76, %c0_77] : memref<1x2x16x8xf32, #tpu.memory_space<vmem>>, vector<1x1x16x8xf32>
      %122 = vector.shape_cast %121 : vector<1x1x16x8xf32> to vector<1x16x8xf32>
      %123 = vector.shape_cast %0 : vector<1x8xf32> to vector<1x1x8xf32>
      %124 = vector.broadcast %123 : vector<1x1x8xf32> to vector<1x16x8xf32>
      %125 = arith.mulf %122, %124 : vector<1x16x8xf32>
      %126 = vector.shape_cast %1 : vector<1x8xf32> to vector<1x1x8xf32>
      %127 = vector.broadcast %126 : vector<1x1x8xf32> to vector<1x16x8xf32>
      %128 = arith.addf %125, %127 : vector<1x16x8xf32>
      %c17_78 = arith.constant 17 : index
      %c1_79 = arith.constant 1 : index
      %c0_80 = arith.constant 0 : index
      %129 = vector.load %arg9[%c17_78, %c1_79, %c0_80] : memref<18x18x8xf32, #tpu.memory_space<vmem>>, vector<1x16x8xf32>
      tpu.vector_store %arg9[%c17_78, %c1_79, %c0_80], %128 {strides = array<i32>} : memref<18x18x8xf32, #tpu.memory_space<vmem>>, vector<1x16x8xf32>,
    } else {
    }
    %cst_24 = arith.constant 0.000000e+00 : f32
    %23 = vector.broadcast %cst_24 : f32 to vector<256x8xf32>
    %c0_25 = arith.constant 0 : index
    %c0_26 = arith.constant 0 : index
    %c0_27 = arith.constant 0 : index
    %24 = vector.load %arg9[%c0_25, %c0_26, %c0_27] : memref<18x18x8xf32, #tpu.memory_space<vmem>>, vector<18x16x8xf32>
    %25 = vector.extract_strided_slice %24 {offsets = [0, 0, 0], sizes = [16, 16, 8], strides = [1, 1, 1]} : vector<18x16x8xf32> to vector<16x16x8xf32>
    %26 = vector.shape_cast %25 : vector<16x16x8xf32> to vector<256x8xf32>
    %c0_28 = arith.constant 0 : index
    %c0_29 = arith.constant 0 : index
    %27 = vector.load %arg4[%c0_28, %c0_29] : memref<72x8xf32, #tpu.memory_space<vmem>>, vector<8x8xf32>
    %cst_30 = arith.constant dense<0.000000e+00> : vector<256x8xf32>
    %28 = tpu.matmul %26, %27, %cst_30 {dimension_numbers = #tpu.dot_dimension_numbers<[1], [0], [0], [1], [0, 0, 1, 1], [], []>} : vector<256x8xf32>, vector<8x8xf32>, vector<256x8xf32> -> vector<256x8xf32>
    %29 = arith.addf %23, %28 : vector<256x8xf32>
    %30 = vector.extract_strided_slice %24 {offsets = [1, 0, 0], sizes = [16, 16, 8], strides = [1, 1, 1]} : vector<18x16x8xf32> to vector<16x16x8xf32>
    %31 = vector.shape_cast %30 : vector<16x16x8xf32> to vector<256x8xf32>
    %c8 = arith.constant 8 : index
    %c0_31 = arith.constant 0 : index
    %32 = vector.load %arg4[%c8, %c0_31] : memref<72x8xf32, #tpu.memory_space<vmem>>, vector<8x8xf32>
    %cst_32 = arith.constant dense<0.000000e+00> : vector<256x8xf32>
    %33 = tpu.matmul %31, %32, %cst_32 {dimension_numbers = #tpu.dot_dimension_numbers<[1], [0], [0], [1], [0, 0, 1, 1], [], []>} : vector<256x8xf32>, vector<8x8xf32>, vector<256x8xf32> -> vector<256x8xf32>
    %34 = arith.addf %29, %33 : vector<256x8xf32>
    %35 = vector.extract_strided_slice %24 {offsets = [2, 0, 0], sizes = [16, 16, 8], strides = [1, 1, 1]} : vector<18x16x8xf32> to vector<16x16x8xf32>
    %36 = vector.shape_cast %35 : vector<16x16x8xf32> to vector<256x8xf32>
    %c16 = arith.constant 16 : index
    %c0_33 = arith.constant 0 : index
    %37 = vector.load %arg4[%c16, %c0_33] : memref<72x8xf32, #tpu.memory_space<vmem>>, vector<8x8xf32>
    %cst_34 = arith.constant dense<0.000000e+00> : vector<256x8xf32>
    %38 = tpu.matmul %36, %37, %cst_34 {dimension_numbers = #tpu.dot_dimension_numbers<[1], [0], [0], [1], [0, 0, 1, 1], [], []>} : vector<256x8xf32>, vector<8x8xf32>, vector<256x8xf32> -> vector<256x8xf32>
    %39 = arith.addf %34, %38 : vector<256x8xf32>
    %c0_35 = arith.constant 0 : index
    %c1_36 = arith.constant 1 : index
    %c0_37 = arith.constant 0 : index
    %40 = vector.load %arg9[%c0_35, %c1_36, %c0_37] : memref<18x18x8xf32, #tpu.memory_space<vmem>>, vector<18x16x8xf32>
    %41 = vector.extract_strided_slice %40 {offsets = [0, 0, 0], sizes = [16, 16, 8], strides = [1, 1, 1]} : vector<18x16x8xf32> to vector<16x16x8xf32>
    %42 = vector.shape_cast %41 : vector<16x16x8xf32> to vector<256x8xf32>
    %c24 = arith.constant 24 : index
    %c0_38 = arith.constant 0 : index
    %43 = vector.load %arg4[%c24, %c0_38] : memref<72x8xf32, #tpu.memory_space<vmem>>, vector<8x8xf32>
    %cst_39 = arith.constant dense<0.000000e+00> : vector<256x8xf32>
    %44 = tpu.matmul %42, %43, %cst_39 {dimension_numbers = #tpu.dot_dimension_numbers<[1], [0], [0], [1], [0, 0, 1, 1], [], []>} : vector<256x8xf32>, vector<8x8xf32>, vector<256x8xf32> -> vector<256x8xf32>
    %45 = arith.addf %39, %44 : vector<256x8xf32>
    %46 = vector.extract_strided_slice %40 {offsets = [1, 0, 0], sizes = [16, 16, 8], strides = [1, 1, 1]} : vector<18x16x8xf32> to vector<16x16x8xf32>
    %47 = vector.shape_cast %46 : vector<16x16x8xf32> to vector<256x8xf32>
    %c32 = arith.constant 32 : index
    %c0_40 = arith.constant 0 : index
    %48 = vector.load %arg4[%c32, %c0_40] : memref<72x8xf32, #tpu.memory_space<vmem>>, vector<8x8xf32>
    %cst_41 = arith.constant dense<0.000000e+00> : vector<256x8xf32>
    %49 = tpu.matmul %47, %48, %cst_41 {dimension_numbers = #tpu.dot_dimension_numbers<[1], [0], [0], [1], [0, 0, 1, 1], [], []>} : vector<256x8xf32>, vector<8x8xf32>, vector<256x8xf32> -> vector<256x8xf32>
    %50 = arith.addf %45, %49 : vector<256x8xf32>
    %51 = vector.extract_strided_slice %40 {offsets = [2, 0, 0], sizes = [16, 16, 8], strides = [1, 1, 1]} : vector<18x16x8xf32> to vector<16x16x8xf32>
    %52 = vector.shape_cast %51 : vector<16x16x8xf32> to vector<256x8xf32>
    %c40 = arith.constant 40 : index
    %c0_42 = arith.constant 0 : index
    %53 = vector.load %arg4[%c40, %c0_42] : memref<72x8xf32, #tpu.memory_space<vmem>>, vector<8x8xf32>
    %cst_43 = arith.constant dense<0.000000e+00> : vector<256x8xf32>
    %54 = tpu.matmul %52, %53, %cst_43 {dimension_numbers = #tpu.dot_dimension_numbers<[1], [0], [0], [1], [0, 0, 1, 1], [], []>} : vector<256x8xf32>, vector<8x8xf32>, vector<256x8xf32> -> vector<256x8xf32>
    %55 = arith.addf %50, %54 : vector<256x8xf32>
    %c0_44 = arith.constant 0 : index
    %c2 = arith.constant 2 : index
    %c0_45 = arith.constant 0 : index
    %56 = vector.load %arg9[%c0_44, %c2, %c0_45] : memref<18x18x8xf32, #tpu.memory_space<vmem>>, vector<18x16x8xf32>
    %57 = vector.extract_strided_slice %56 {offsets = [0, 0, 0], sizes = [16, 16, 8], strides = [1, 1, 1]} : vector<18x16x8xf32> to vector<16x16x8xf32>
    %58 = vector.shape_cast %57 : vector<16x16x8xf32> to vector<256x8xf32>
    %c48 = arith.constant 48 : index
    %c0_46 = arith.constant 0 : index
    %59 = vector.load %arg4[%c48, %c0_46] : memref<72x8xf32, #tpu.memory_space<vmem>>, vector<8x8xf32>
    %cst_47 = arith.constant dense<0.000000e+00> : vector<256x8xf32>
    %60 = tpu.matmul %58, %59, %cst_47 {dimension_numbers = #tpu.dot_dimension_numbers<[1], [0], [0], [1], [0, 0, 1, 1], [], []>} : vector<256x8xf32>, vector<8x8xf32>, vector<256x8xf32> -> vector<256x8xf32>
    %61 = arith.addf %55, %60 : vector<256x8xf32>
    %62 = vector.extract_strided_slice %56 {offsets = [1, 0, 0], sizes = [16, 16, 8], strides = [1, 1, 1]} : vector<18x16x8xf32> to vector<16x16x8xf32>
    %63 = vector.shape_cast %62 : vector<16x16x8xf32> to vector<256x8xf32>
    %c56 = arith.constant 56 : index
    %c0_48 = arith.constant 0 : index
    %64 = vector.load %arg4[%c56, %c0_48] : memref<72x8xf32, #tpu.memory_space<vmem>>, vector<8x8xf32>
    %cst_49 = arith.constant dense<0.000000e+00> : vector<256x8xf32>
    %65 = tpu.matmul %63, %64, %cst_49 {dimension_numbers = #tpu.dot_dimension_numbers<[1], [0], [0], [1], [0, 0, 1, 1], [], []>} : vector<256x8xf32>, vector<8x8xf32>, vector<256x8xf32> -> vector<256x8xf32>
    %66 = arith.addf %61, %65 : vector<256x8xf32>
    %67 = vector.extract_strided_slice %56 {offsets = [2, 0, 0], sizes = [16, 16, 8], strides = [1, 1, 1]} : vector<18x16x8xf32> to vector<16x16x8xf32>
    %68 = vector.shape_cast %67 : vector<16x16x8xf32> to vector<256x8xf32>
    %c64 = arith.constant 64 : index
    %c0_50 = arith.constant 0 : index
    %69 = vector.load %arg4[%c64, %c0_50] : memref<72x8xf32, #tpu.memory_space<vmem>>, vector<8x8xf32>
    %cst_51 = arith.constant dense<0.000000e+00> : vector<256x8xf32>
    %70 = tpu.matmul %68, %69, %cst_51 {dimension_numbers = #tpu.dot_dimension_numbers<[1], [0], [0], [1], [0, 0, 1, 1], [], []>} : vector<256x8xf32>, vector<8x8xf32>, vector<256x8xf32> -> vector<256x8xf32>
    %71 = arith.addf %66, %70 : vector<256x8xf32>
    %c0_52 = arith.constant 0 : index
    %c0_53 = arith.constant 0 : index
    %72 = vector.load %arg5[%c0_52, %c0_53] : memref<1x8xf32, #tpu.memory_space<vmem>>, vector<1x8xf32>
    %73 = vector.broadcast %72 : vector<1x8xf32> to vector<256x8xf32>
    %74 = arith.addf %71, %73 : vector<256x8xf32>
    %cst_54 = arith.constant 5.000000e-01 : f32
    %75 = vector.broadcast %cst_54 : f32 to vector<256x8xf32>
    %76 = arith.mulf %75, %74 : vector<256x8xf32>
    %cst_55 = arith.constant 0.707106769 : f32
    %77 = vector.broadcast %cst_55 : f32 to vector<256x8xf32>
    %78 = arith.mulf %74, %77 : vector<256x8xf32>
    %cst_56 = arith.constant 0.000000e+00 : f32
    %79 = vector.broadcast %cst_56 : f32 to vector<256x8xf32>
    %80 = arith.cmpf oge, %78, %79 : vector<256x8xf32>
    %cst_57 = arith.constant 1.000000e+00 : f32
    %cst_58 = arith.constant -1.000000e+00 : f32
    %81 = vector.broadcast %cst_57 : f32 to vector<256x8xf32>
    %82 = vector.broadcast %cst_58 : f32 to vector<256x8xf32>
    %83 = arith.select %80, %81, %82 : vector<256x8xi1>, vector<256x8xf32>
    %84 = math.absf %78 : vector<256x8xf32>
    %cst_59 = arith.constant 0.327591091 : f32
    %85 = vector.broadcast %cst_59 : f32 to vector<256x8xf32>
    %86 = arith.mulf %85, %84 : vector<256x8xf32>
    %cst_60 = arith.constant 1.000000e+00 : f32
    %87 = vector.broadcast %cst_60 : f32 to vector<256x8xf32>
    %88 = arith.addf %87, %86 : vector<256x8xf32>
    %89 = tpu.reciprocal %88 {approx = true} : vector<256x8xf32> -> vector<256x8xf32>
    %90 = arith.mulf %88, %89 : vector<256x8xf32>
    %cst_61 = arith.constant 2.000000e+00 : f32
    %91 = vector.broadcast %cst_61 : f32 to vector<256x8xf32>
    %92 = arith.subf %91, %90 : vector<256x8xf32>
    %93 = arith.mulf %89, %92 : vector<256x8xf32>
    %cst_62 = arith.constant 1.06140542 : f32
    %94 = vector.broadcast %cst_62 : f32 to vector<256x8xf32>
    %95 = arith.mulf %94, %93 : vector<256x8xf32>
    %cst_63 = arith.constant -1.45315206 : f32
    %96 = vector.broadcast %cst_63 : f32 to vector<256x8xf32>
    %97 = arith.addf %95, %96 : vector<256x8xf32>
    %98 = arith.mulf %97, %93 : vector<256x8xf32>
    %cst_64 = arith.constant 1.42141378 : f32
    %99 = vector.broadcast %cst_64 : f32 to vector<256x8xf32>
    %100 = arith.addf %98, %99 : vector<256x8xf32>
    %101 = arith.mulf %100, %93 : vector<256x8xf32>
    %cst_65 = arith.constant -0.284496725 : f32
    %102 = vector.broadcast %cst_65 : f32 to vector<256x8xf32>
    %103 = arith.addf %101, %102 : vector<256x8xf32>
    %104 = arith.mulf %103, %93 : vector<256x8xf32>
    %cst_66 = arith.constant 0.254829586 : f32
    %105 = vector.broadcast %cst_66 : f32 to vector<256x8xf32>
    %106 = arith.addf %104, %105 : vector<256x8xf32>
    %107 = arith.mulf %106, %93 : vector<256x8xf32>
    %cst_67 = arith.constant 0.000000e+00 : f32
    %108 = vector.broadcast %cst_67 : f32 to vector<256x8xf32>
    %109 = arith.subf %108, %84 : vector<256x8xf32>
    %110 = arith.mulf %109, %84 : vector<256x8xf32>
    %111 = math.exp %110 : vector<256x8xf32>
    %112 = arith.mulf %107, %111 : vector<256x8xf32>
    %cst_68 = arith.constant 1.000000e+00 : f32
    %113 = vector.broadcast %cst_68 : f32 to vector<256x8xf32>
    %114 = arith.subf %113, %112 : vector<256x8xf32>
    %115 = arith.mulf %83, %114 : vector<256x8xf32>
    %cst_69 = arith.constant 1.000000e+00 : f32
    %116 = vector.broadcast %cst_69 : f32 to vector<256x8xf32>
    %117 = arith.addf %116, %115 : vector<256x8xf32>
    %118 = arith.mulf %76, %117 : vector<256x8xf32>
    %119 = vector.shape_cast %118 : vector<256x8xf32> to vector<1x16x16x8xf32>
    %c0_70 = arith.constant 0 : index
    %c0_71 = arith.constant 0 : index
    %c0_72 = arith.constant 0 : index
    %c0_73 = arith.constant 0 : index
    %120 = vector.load %arg8[%c0_70, %c0_71, %c0_72, %c0_73] : memref<1x16x16x8xf32, #tpu.memory_space<vmem>>, vector<1x16x16x8xf32>
    tpu.vector_store %arg8[%c0_70, %c0_71, %c0_72, %c0_73], %119 {strides = array<i32>} : memref<1x16x16x8xf32, #tpu.memory_space<vmem>>, vector<1x16x16x8xf32>,
    return
  }
  func.func @transform_0(%arg0: i32, %arg1: i32) -> (i32, i32, i32, i32) {
    %c0_i32 = arith.constant 0 : i32
    %c0_i32_0 = arith.constant 0 : i32
    %c0_i32_1 = arith.constant 0 : i32
    return %arg0, %arg1, %c0_i32, %c0_i32_0 : i32, i32, i32, i32
  }
  func.func @transform_1(%arg0: i32, %arg1: i32) -> (i32, i32, i32, i32) {
    %c1_i32 = arith.constant 1 : i32
    %0 = arith.muli %arg0, %c1_i32 : i32
    %1 = arith.addi %0, %arg1 : i32
    %c0_i32 = arith.constant 0 : i32
    %c0_i32_0 = arith.constant 0 : i32
    %c0_i32_1 = arith.constant 0 : i32
    %c0_i32_2 = arith.constant 0 : i32
    return %1, %c0_i32, %c0_i32_0, %c0_i32_1 : i32, i32, i32, i32
  }
  func.func @transform_2(%arg0: i32, %arg1: i32) -> (i32, i32) {
    %c0_i32 = arith.constant 0 : i32
    %c0_i32_0 = arith.constant 0 : i32
    %c0_i32_1 = arith.constant 0 : i32
    return %c0_i32, %c0_i32_0 : i32, i32
  }
  func.func @transform_3(%arg0: i32, %arg1: i32) -> (i32, i32) {
    %c0_i32 = arith.constant 0 : i32
    %c0_i32_0 = arith.constant 0 : i32
    %c0_i32_1 = arith.constant 0 : i32
    return %c0_i32, %c0_i32_0 : i32, i32
  }
  func.func @transform_4(%arg0: i32, %arg1: i32) -> (i32, i32) {
    %c0_i32 = arith.constant 0 : i32
    %c0_i32_0 = arith.constant 0 : i32
    %c0_i32_1 = arith.constant 0 : i32
    return %c0_i32, %c0_i32_0 : i32, i32
  }
  func.func @transform_5(%arg0: i32, %arg1: i32) -> (i32, i32) {
    %c0_i32 = arith.constant 0 : i32
    %c0_i32_0 = arith.constant 0 : i32
    %c0_i32_1 = arith.constant 0 : i32
    return %c0_i32, %c0_i32_0 : i32, i32
  }
  func.func @transform_6(%arg0: i32, %arg1: i32) -> (i32, i32, i32, i32) {
    %c0_i32 = arith.constant 0 : i32
    %c0_i32_0 = arith.constant 0 : i32
    %c0_i32_1 = arith.constant 0 : i32
    return %arg0, %arg1, %c0_i32, %c0_i32_0 : i32, i32, i32, i32
  }
}

</mosaic_0001>

<bundles_post_ra>
// kernel: double_conv.3
= control target key start
LH: loop header
LB: loop body
LE: loop exit
PB: predicated region body
PF: predicated region fallthrough
CT: control target
= control target key end

     0   :  { %v49_v0 = vmov 0.0   ;;  %s89_s1 = inlined_call_operand.vmem [shape: f32[1,128], index: 1, kind: output, shape index: {0}]   ;;  %s90_s2 = inlined_call_operand.vmem [shape: f32[1,128], index: 2, kind: output, shape index: {1}]   ;;  %s91_s0 = inlined_call_operand.vmem [shape: f32[16,128], index: 0, kind: input, shape index: {}]  }
   0x1   :  { %14 = vst [vmem:[%s89_s1] sm:$0x1] %v49_v0  ;;  %15 = vst [vmem:[%s90_s2] sm:$0x1] %v49_v0  ;;  %v16_v1 = vld [vmem:[%s91_s0] sm:$0xff]  ;;  %v17_v2 = vld [vmem:[%s91_s0 + $0x8] sm:$0xff] }
   0x2   :  { %v19_v3 = vadd.f32 %v17_v2, %v16_v1  ;;  %v29_v4 = vmul.f32 %v16_v1, %v16_v1  ;;  %v30_v5 = vmul.f32 %v17_v2, %v17_v2 }
   0x4   :  { %v20_v6 = vrot.slane %v19_v3, 4  ;;  %v31_v7 = vadd.f32 %v30_v5, %v29_v4 }
   0x6   :  { %v21_v8 = vadd.f32 %v20_v6, %v19_v3  ;;  %v32_v9 = vrot.slane %v31_v7, 4 }
   0x8   :  { %v22_v10 = vrot.slane %v21_v8, 2  ;;  %v33_v11 = vadd.f32 %v32_v9, %v31_v7  ;;  %v18_v16 = vld [vmem:[%s89_s1] sm:$0x1] }
   0x9   :  { %v28_v19 = vld [vmem:[%s90_s2] sm:$0x1] }
   0xa   :  { %v23_v12 = vadd.f32 %v22_v10, %v21_v8  ;;  %v34_v13 = vrot.slane %v33_v11, 2 }
   0xc   :  { %v24_v14 = vrot.slane %v23_v12, 1  ;;  %v35_v15 = vadd.f32 %v34_v13, %v33_v11 }
   0xe   :  { %v25_v17 = vadd.f32 %v24_v14, %v23_v12  ;;  %v36_v18 = vrot.slane %v35_v15, 1 }
  0x10   :  { %v26_v20 = vadd.f32 %v25_v17, %v18_v16  ;;  %v37_v21 = vadd.f32 %v36_v18, %v35_v15 }
  0x12   :  { %27 = vst [vmem:[%s89_s1] sm:$0x1] %v26_v20  ;;  %v38_v22 = vadd.f32 %v37_v21, %v28_v19 }
  0x14   :  { %39 = vst [vmem:[%s90_s2] sm:$0x1] %v38_v22 }

// kernel: double_conv.4
= control target key start
LH: loop header
LB: loop body
LE: loop exit
PB: predicated region body
PF: predicated region fallthrough
CT: control target
= control target key end

     0   :  { %s6218_s26 = smov 0   ;;  %s6220_s27 = smov 0   ;;  %s8387_s0 = inlined_call_operand.vmem [shape: f32[2,16,16,4], index: 0, kind: input, shape index: {}]   ;;  %s8388_s1 = inlined_call_operand.vmem [shape: f32[2,2,16,4], index: 1, kind: input, shape index: {}]   ;;  %s8389_s2 = inlined_call_operand.vmem [shape: f32[36,8], index: 2, kind: input, shape index: {}]   ;;  %s8390_s3 = inlined_call_operand.vmem [shape: f32[1,8], index: 3, kind: input, shape index: {}]   ;;  %s8391_s4 = inlined_call_operand.vmem [shape: f32[1,4], index: 4, kind: input, shape index: {}]   ;;  %s8392_s5 = inlined_call_operand.vmem [shape: f32[1,4], index: 5, kind: input, shape index: {}]   ;;  %s8393_s6 = inlined_call_operand.vmem [shape: f32[2,16,16,8], index: 6, kind: output, shape index: {0}]   ;;  %s8394_s7 = inlined_call_operand.vmem [shape: f32[2,1,8], index: 7, kind: output, shape index: {1}]   ;;  %s8395_s8 = inlined_call_operand.vmem [shape: f32[2,1,8], index: 8, kind: output, shape index: {2}]  }
   0x1   :  { %s6222_s28 = smov 0  }
   0x2 LB: > { %s31_s29 = sadd.s32 1, %s6165_s27  ;;  %p4672_p0 = scmp.ge.s32.totalorder %s6169_s28, 1  ;;  %s6169_s28 = sphi %s6222_s28, %s19_s28   ;;  %s6165_s27 = sphi %s6220_s27, %s8514_s27   ;;  %s6161_s26 = sphi %s6218_s26, %s8513_s26  }
   0x3   : > { %p33_p1 = scmp.ge.s32.totalorder %s31_s29, 2  ;;  %p303_p2 = scmp.lt.s32.totalorder %s6169_s28, 3 }
   0x5   : > { %s8516_s29 = smov (%p33_p1, %s31_s29), 0  ;;  %p304_p3 = pnand %p4672_p0, %p303_p2 }
   0x7   : > { %307 = sbr.rel (%p304_p3) target bundleno = 813 (0x32d), region = 44 }
   0xe   : > { %v645_v0 = vld [vmem:[%s8389_s2 + $0x4] sm:$0xf]  ;;  %vm742_vm0 = vcmask 1043456   ;;  %v6242_v1 = vld [vmem:[%s8389_s2 + $0x10] sm:$0xf]  ;;  %p360_p4 = scmp.lt.s32.totalorder %s6161_s26, 1 }
   0xf   : > { %5283 = vmatprep.subr.msk.mxu1 %vm742_vm0, %v645_v0  ;;  %5483 = vmatprep.subr.msk.mxu0 %vm742_vm0, %v6242_v1  ;;  %vm396_vm1 = vcmask 31744   ;;  %vm405_vm2 = vcmask 24576   ;;  %v8396_v2 = vmov 0.0   ;;  %v6263_v3 = vld [vmem:[%s8389_s2] sm:$0xf]  ;;  %vm399_vm3 = vcmask 25600  }
  0x10   : > { %5284 = vmatpush3.msk.msra.mxu1 %vm742_vm0, %v645_v0  ;;  %5484 = vmatpush3.msk.msra.mxu0 %vm742_vm0, %v6242_v1  ;;  %s8518_s26 = smov (!%p360_p4, %s6161_s26), 1  ;;  %397 = vst.msk [vmem:[#allocation2] sm:$0xff] %vm396_vm1, %v8396_v2  ;;  %398 = vst.msk [vmem:[#allocation2 + $0x8] sm:$0xff] %vm396_vm1, %v8396_v2  ;;  %v6268_v4 = vld [vmem:[%s8389_s2 + $0x14] sm:$0xf]  ;;  %vm4301_vm9 = vcmask 64512  }
  0x11   : > { %402 = vst.msk [vmem:[#allocation2 + $0x198] sm:$0xff] %vm396_vm1, %v8396_v2  ;;  %403 = vst.msk [vmem:[#allocation2 + $0x1a0] sm:$0xff] %vm396_vm1, %v8396_v2  ;;  %5333 = vmatprep.subr.msk.mxu1 %vm742_vm0, %v6263_v3  ;;  %5533 = vmatprep.subr.msk.mxu0 %vm742_vm0, %v6268_v4  ;;  %s4983_s16 = sshll.u32 %s8518_s26, 8  ;;  %v6346_v5 = vld [vmem:[%s8391_s4] ss:$0 sm:$0xff]  ;;  %s8259_s24 = scalar_lea.vmem %s8394_s7, %s8518_s26 }
  0x12   : > { %407 = vst.msk [vmem:[#allocation2 + $0x18] sm:$0x1] %vm405_vm2, %v8396_v2  ;;  %408 = vst.msk [vmem:[#allocation2 + $0x30] sm:$0x1] %vm405_vm2, %v8396_v2  ;;  %s6355_s21 = scalar_lea.vmem %s8387_s0, %s4983_s16  ;;  %v6360_v6 = vld [vmem:[%s8392_s5] ss:$0 sm:$0xff]  ;;  %s7531_s20 = scalar_lea.vmem %s8393_s6, %s4983_s16 }
  0x13   : > { %409 = vst.msk [vmem:[#allocation2 + $0x48] sm:$0x1] %vm405_vm2, %v8396_v2  ;;  %410 = vst.msk [vmem:[#allocation2 + $0x60] sm:$0x1] %vm405_vm2, %v8396_v2  ;;  %v442_v7 = vld [vmem:[%s6355_s21] sm:$0xff]  ;;  %v443_v8 = vld [vmem:[%s6355_s21 + $0x8] sm:$0xff]  ;;  %s8265_s30 = scalar_lea.vmem %s8395_s8, %s8518_s26 }
  0x14   : > { %411 = vst.msk [vmem:[#allocation2 + $0x78] sm:$0x1] %vm405_vm2, %v8396_v2  ;;  %412 = vst.msk [vmem:[#allocation2 + $0x90] sm:$0x1] %vm405_vm2, %v8396_v2  ;;  %v444_v9 = vld [vmem:[%s6355_s21 + $0x10] sm:$0xff]  ;;  %v480_v10 = vmul.f32 %v6346_v5, %v442_v7  ;;  %v481_v11 = vmul.f32 %v6346_v5, %v443_v8  ;;  %v445_v13 = vld [vmem:[%s6355_s21 + $0x18] sm:$0xff] }
  0x15   : > { %413 = vst.msk [vmem:[#allocation2 + $0xa8] sm:$0x1] %vm405_vm2, %v8396_v2  ;;  %414 = vst.msk [vmem:[#allocation2 + $0xc0] sm:$0x1] %vm405_vm2, %v8396_v2  ;;  %v482_v12 = vmul.f32 %v6346_v5, %v444_v9  ;;  %v446_v14 = vld [vmem:[%s6355_s21 + $0x20] sm:$0xff]  ;;  %v447_v15 = vld [vmem:[%s6355_s21 + $0x28] sm:$0xff]  ;;  %v483_v16 = vmul.f32 %v6346_v5, %v445_v13 }
  0x16   : > { %415 = vst.msk [vmem:[#allocation2 + $0xd8] sm:$0x1] %vm405_vm2, %v8396_v2  ;;  %416 = vst.msk [vmem:[#allocation2 + $0xf0] sm:$0x1] %vm405_vm2, %v8396_v2  ;;  %v484_v17 = vmul.f32 %v6346_v5, %v446_v14  ;;  %v485_v18 = vmul.f32 %v6346_v5, %v447_v15  ;;  %v448_v19 = vld [vmem:[%s6355_s21 + $0x30] sm:$0xff]  ;;  %v449_v20 = vld [vmem:[%s6355_s21 + $0x38] sm:$0xff]  ;;  %v518_v22 = vadd.f32 %v6360_v6, %v480_v10 }
  0x17   : > { %417 = vst.msk [vmem:[#allocation2 + $0x108] sm:$0x1] %vm405_vm2, %v8396_v2  ;;  %418 = vst.msk [vmem:[#allocation2 + $0x120] sm:$0x1] %vm405_vm2, %v8396_v2  ;;  %v450_v21 = vld [vmem:[%s6355_s21 + $0x40] sm:$0xff]  ;;  %v519_v23 = vadd.f32 %v6360_v6, %v481_v11  ;;  %v520_v24 = vadd.f32 %v6360_v6, %v482_v12  ;;  %v486_v25 = vmul.f32 %v6346_v5, %v448_v19  ;;  %v451_v26 = vld [vmem:[%s6355_s21 + $0x48] sm:$0xff] }
  0x18   : > { %419 = vst.msk [vmem:[#allocation2 + $0x138] sm:$0x1] %vm405_vm2, %v8396_v2  ;;  %420 = vst.msk [vmem:[#allocation2 + $0x150] sm:$0x1] %vm405_vm2, %v8396_v2  ;;  %v452_v27 = vld [vmem:[%s6355_s21 + $0x50] sm:$0xff]  ;;  %v453_v28 = vld [vmem:[%s6355_s21 + $0x58] sm:$0xff]  ;;  %v521_v29 = vadd.f32 %v6360_v6, %v483_v16  ;;  %v522_v30 = vadd.f32 %v6360_v6, %v484_v17  ;;  %v523_v31 = vadd.f32 %v6360_v6, %v485_v18 }
  0x19   : > { %421 = vst.msk [vmem:[#allocation2 + $0x168] sm:$0x1] %vm405_vm2, %v8396_v2  ;;  %422 = vst.msk [vmem:[#allocation2 + $0x180] sm:$0x1] %vm405_vm2, %v8396_v2  ;;  %v487_v32 = vmul.f32 %v6346_v5, %v449_v20  ;;  %v454_v33 = vld [vmem:[%s6355_s21 + $0x60] sm:$0xff]  ;;  %v455_v34 = vld [vmem:[%s6355_s21 + $0x68] sm:$0xff]  ;;  %v524_v36 = vadd.f32 %v6360_v6, %v486_v25  ;;  %v488_v37 = vmul.f32 %v6346_v5, %v450_v21 }
  0x1a   : > { %425 = vst.msk [vmem:[#allocation2 + $0x29] sm:$0x1] %vm405_vm2, %v8396_v2  ;;  %426 = vst.msk [vmem:[#allocation2 + $0x41] sm:$0x1] %vm405_vm2, %v8396_v2  ;;  %v456_v35 = vld [vmem:[%s6355_s21 + $0x70] sm:$0xff]  ;;  %v489_v38 = vmul.f32 %v6346_v5, %v451_v26  ;;  %v490_v39 = vmul.f32 %v6346_v5, %v452_v27  ;;  %v457_v40 = vld [vmem:[%s6355_s21 + $0x78] sm:$0xff]  ;;  %v491_v42 = vmul.f32 %v6346_v5, %v453_v28 }
  0x1b   : > { %427 = vst.msk [vmem:[#allocation2 + $0x59] sm:$0x1] %vm405_vm2, %v8396_v2  ;;  %428 = vst.msk [vmem:[#allocation2 + $0x71] sm:$0x1] %vm405_vm2, %v8396_v2  ;;  %v525_v41 = vadd.f32 %v6360_v6, %v487_v32  ;;  %v492_v43 = vmul.f32 %v6346_v5, %v454_v33  ;;  %v493_v44 = vmul.f32 %v6346_v5, %v455_v34  ;;  %v458_v45 = vld [vmem:[%s6355_s21 + $0x80] sm:$0xff]  ;;  %v459_v46 = vld [vmem:[%s6355_s21 + $0x88] sm:$0xff] }
  0x1c   : > { %429 = vst.msk [vmem:[#allocation2 + $0x89] sm:$0x1] %vm405_vm2, %v8396_v2  ;;  %430 = vst.msk [vmem:[#allocation2 + $0xa1] sm:$0x1] %vm405_vm2, %v8396_v2  ;;  %v460_v47 = vld [vmem:[%s6355_s21 + $0x90] sm:$0xff]  ;;  %v526_v48 = vadd.f32 %v6360_v6, %v488_v37  ;;  %v527_v49 = vadd.f32 %v6360_v6, %v489_v38  ;;  %v528_v50 = vadd.f32 %v6360_v6, %v490_v39  ;;  %v461_v52 = vld [vmem:[%s6355_s21 + $0x98] sm:$0xff] }
  0x1d   : > { %431 = vst.msk [vmem:[#allocation2 + $0xb9] sm:$0x1] %vm405_vm2, %v8396_v2  ;;  %432 = vst.msk [vmem:[#allocation2 + $0xd1] sm:$0x1] %vm405_vm2, %v8396_v2  ;;  %v494_v51 = vmul.f32 %v6346_v5, %v456_v35  ;;  %v462_v53 = vld [vmem:[%s6355_s21 + $0xa0] sm:$0xff]  ;;  %v463_v54 = vld [vmem:[%s6355_s21 + $0xa8] sm:$0xff]  ;;  %v529_v55 = vadd.f32 %v6360_v6, %v491_v42  ;;  %v530_v56 = vadd.f32 %v6360_v6, %v492_v43 }
  0x1e   : > { %433 = vst.msk [vmem:[#allocation2 + $0xe9] sm:$0x1] %vm405_vm2, %v8396_v2  ;;  %434 = vst.msk [vmem:[#allocation2 + $0x101] sm:$0x1] %vm405_vm2, %v8396_v2  ;;  %v531_v57 = vadd.f32 %v6360_v6, %v493_v44  ;;  %v495_v58 = vmul.f32 %v6346_v5, %v457_v40  ;;  %v464_v59 = vld [vmem:[%s6355_s21 + $0xb0] sm:$0xff]  ;;  %v496_v61 = vmul.f32 %v6346_v5, %v458_v45  ;;  %v465_v0 = vld [vmem:[%s6355_s21 + $0xb8] sm:$0xff] }
  0x1f   : > { %435 = vst.msk [vmem:[#allocation2 + $0x119] sm:$0x1] %vm405_vm2, %v8396_v2  ;;  %436 = vst.msk [vmem:[#allocation2 + $0x131] sm:$0x1] %vm405_vm2, %v8396_v2  ;;  %v532_v60 = vadd.f32 %v6360_v6, %v494_v51  ;;  %v497_v62 = vmul.f32 %v6346_v5, %v459_v46  ;;  %v498_v63 = vmul.f32 %v6346_v5, %v460_v47  ;;  %v466_v11 = vld [vmem:[%s6355_s21 + $0xc0] sm:$0xff]  ;;  %v467_v12 = vld [vmem:[%s6355_s21 + $0xc8] sm:$0xff] }
  0x20   : > { %437 = vst.msk [vmem:[#allocation2 + $0x149] sm:$0x1] %vm405_vm2, %v8396_v2  ;;  %438 = vst.msk [vmem:[#allocation2 + $0x161] sm:$0x1] %vm405_vm2, %v8396_v2  ;;  %v533_v7 = vadd.f32 %v6360_v6, %v495_v58  ;;  %v499_v8 = vmul.f32 %v6346_v5, %v461_v52  ;;  %v500_v9 = vmul.f32 %v6346_v5, %v462_v53  ;;  %v468_v13 = vld [vmem:[%s6355_s21 + $0xd0] sm:$0xff]  ;;  %v469_v18 = vld [vmem:[%s6355_s21 + $0xd8] sm:$0xff] }
  0x21   : > { %439 = vst.msk [vmem:[#allocation2 + $0x179] sm:$0x1] %vm405_vm2, %v8396_v2  ;;  %440 = vst.msk [vmem:[#allocation2 + $0x191] sm:$0x1] %vm405_vm2, %v8396_v2  ;;  %v501_v10 = vmul.f32 %v6346_v5, %v463_v54  ;;  %v534_v14 = vadd.f32 %v6360_v6, %v496_v61  ;;  %v535_v15 = vadd.f32 %v6360_v6, %v497_v62  ;;  %v470_v19 = vld [vmem:[%s6355_s21 + $0xe0] sm:$0xff]  ;;  %v471_v20 = vld [vmem:[%s6355_s21 + $0xe8] sm:$0xff] }
  0x22   : > { %406 = vst.msk [vmem:[#allocation2] sm:$0x1] %vm405_vm2, %v8396_v2  ;;  %423 = vst.msk [vmem:[#allocation2 + $0x198] sm:$0x1] %vm405_vm2, %v8396_v2  ;;  %v536_v16 = vadd.f32 %v6360_v6, %v498_v63  ;;  %v502_v17 = vmul.f32 %v6346_v5, %v464_v59  ;;  %v537_v25 = vadd.f32 %v6360_v6, %v499_v8  ;;  %v472_v38 = vld [vmem:[%s6355_s21 + $0xf0] sm:$0xff]  ;;  %v473_v39 = vld [vmem:[%s6355_s21 + $0xf8] sm:$0xff] }
  0x23   : > { %400 = vst.msk [vmem:[#allocation2 + $0x10] sm:$0x3] %vm399_vm3, %v8396_v2  ;;  %404 = vst.msk [vmem:[#allocation2 + $0x1a8] sm:$0x3] %vm399_vm3, %v8396_v2  ;;  %v538_v26 = vadd.f32 %v6360_v6, %v500_v9  ;;  %v539_v27 = vadd.f32 %v6360_v6, %v501_v10  ;;  %v503_v28 = vmul.f32 %v6346_v5, %v465_v0  ;;  %v6500_v40 = vld [vmem:[%s8389_s2 + $0x8] sm:$0xf] }
  0x24   : > { %424 = vst.msk [vmem:[#allocation2 + $0x11] sm:$0x1] %vm405_vm2, %v8396_v2  ;;  %441 = vst.msk [vmem:[#allocation2 + $0x1a9] sm:$0x1] %vm405_vm2, %v8396_v2  ;;  %v540_v32 = vadd.f32 %v6360_v6, %v502_v17  ;;  %v504_v33 = vmul.f32 %v6346_v5, %v466_v11  ;;  %v505_v34 = vmul.f32 %v6346_v5, %v467_v12 }
  0x25   : > { %551 = vst.msk [vmem:[#allocation2 + $0x19] sm:$0xff] %vm396_vm1, %v518_v22  ;;  %552 = vst.msk [vmem:[#allocation2 + $0x21] sm:$0xff] %vm396_vm1, %v519_v23  ;;  %v541_v35 = vadd.f32 %v6360_v6, %v503_v28  ;;  %v507_v37 = vmul.f32 %v6346_v5, %v469_v18  ;;  %v508_v45 = vmul.f32 %v6346_v5, %v470_v19 }
  0x26   : > { %553 = vst.msk [vmem:[#allocation2 + $0x31] sm:$0xff] %vm396_vm1, %v520_v24  ;;  %554 = vst.msk [vmem:[#allocation2 + $0x39] sm:$0xff] %vm396_vm1, %v521_v29  ;;  %v6463_v24 = vld [vmem:[%s8389_s2 + $0x18] sm:$0xf]  ;;  %v542_v43 = vadd.f32 %v6360_v6, %v504_v33  ;;  %v543_v44 = vadd.f32 %v6360_v6, %v505_v34  ;;  %v511_v51 = vmul.f32 %v6346_v5, %v473_v39 }
  0x27   : > { %555 = vst.msk [vmem:[#allocation2 + $0x49] sm:$0xff] %vm396_vm1, %v522_v30  ;;  %556 = vst.msk [vmem:[#allocation2 + $0x51] sm:$0xff] %vm396_vm1, %v523_v31  ;;  %v545_v47 = vadd.f32 %v6360_v6, %v507_v37 }
  0x28   : > { %557 = vst.msk [vmem:[#allocation2 + $0x61] sm:$0xff] %vm396_vm1, %v524_v36  ;;  %558 = vst.msk [vmem:[#allocation2 + $0x69] sm:$0xff] %vm396_vm1, %v525_v41  ;;  %v506_v36 = vmul.f32 %v6346_v5, %v468_v13 }
  0x29   : > { %559 = vst.msk [vmem:[#allocation2 + $0x79] sm:$0xff] %vm396_vm1, %v526_v48  ;;  %560 = vst.msk [vmem:[#allocation2 + $0x81] sm:$0xff] %vm396_vm1, %v527_v49  ;;  %v509_v48 = vmul.f32 %v6346_v5, %v471_v20  ;;  %v546_v49 = vadd.f32 %v6360_v6, %v508_v45  ;;  %v6653_v20 = vld [vmem:[%s8389_s2 + $0x1c] sm:$0xf]  ;;  %v608_v45 = vld [vmem:[#allocation2] sm:$0xff] }
  0x2a   : > { %561 = vst.msk [vmem:[#allocation2 + $0x91] sm:$0xff] %vm396_vm1, %v528_v50  ;;  %562 = vst.msk [vmem:[#allocation2 + $0x99] sm:$0xff] %vm396_vm1, %v529_v55  ;;  %v544_v46 = vadd.f32 %v6360_v6, %v506_v36  ;;  %v510_v50 = vmul.f32 %v6346_v5, %v472_v38  ;;  %v549_v55 = vadd.f32 %v6360_v6, %v511_v51 }
  0x2b   : > { %563 = vst.msk [vmem:[#allocation2 + $0xa9] sm:$0xff] %vm396_vm1, %v530_v56  ;;  %564 = vst.msk [vmem:[#allocation2 + $0xb1] sm:$0xff] %vm396_vm1, %v531_v57  ;;  %v547_v52 = vadd.f32 %v6360_v6, %v509_v48 }
  0x2c   : > { %565 = vst.msk [vmem:[#allocation2 + $0xc1] sm:$0xff] %vm396_vm1, %v532_v60  ;;  %v6453_v21 = vld [vmem:[#allocation2 + $0x18] sm:$0xff]  ;;  %v6457_v23 = vld [vmem:[#allocation2 + $0x20] sm:$0xff]  ;;  %566 = vst.msk [vmem:[#allocation2 + $0xc9] sm:$0xff] %vm396_vm1, %v533_v7  ;;  %v548_v54 = vadd.f32 %v6360_v6, %v510_v50 }
  0x2d   : > { %v6455_v22 = vld [vmem:[#allocation2 + $0x19] sm:$0xff]  ;;  %5285 = vmatprep.mubr.msk.f32.mxu1 %vm396_vm1, %v6453_v21  ;;  %v6473_v29 = vld [vmem:[#allocation2 + $0x21] sm:$0xff]  ;;  %v6475_v30 = vld [vmem:[#allocation2 + $0x30] sm:$0xff]  ;;  %567 = vst.msk [vmem:[#allocation2 + $0xd9] sm:$0xff] %vm396_vm1, %v534_v14 }
  0x2e   : > { %5485 = vmatprep.mubr.msk.f32.mxu0 %vm396_vm1, %v6455_v22  ;;  %v6477_v31 = vld [vmem:[#allocation2 + $0x31] sm:$0xff]  ;;  %568 = vst.msk [vmem:[#allocation2 + $0xe1] sm:$0xff] %vm396_vm1, %v535_v15  ;;  %569 = vst.msk [vmem:[#allocation2 + $0xf1] sm:$0xff] %vm396_vm1, %v536_v16  ;;  %5286 = vmatmul.mubr.msk.f32.vlgmr.msra.gmra.mrb[0].mxu1 %vm396_vm1, %v6457_v23  ;;  %v6508_v42 = vld [vmem:[#allocation2 + $0x39] sm:$0xff] }
  0x2f   : > { %5486 = vmatmul.mubr.msk.f32.vlgmr.msra.gmra.mrb[0].mxu0 %vm396_vm1, %v6473_v29  ;;  %570 = vst.msk [vmem:[#allocation2 + $0xf9] sm:$0xff] %vm396_vm1, %v537_v25  ;;  %571 = vst.msk [vmem:[#allocation2 + $0x109] sm:$0xff] %vm396_vm1, %v538_v26  ;;  %5334 = vmatpush3.msk.msra.mxu1 %vm742_vm0, %v6263_v3  ;;  %v6506_v41 = vld [vmem:[#allocation2 + $0x38] sm:$0xff]  ;;  %v6518_v3 = vld [vmem:[#allocation2 + $0x48] sm:$0xff] }
  0x30   : > { %572 = vst.msk [vmem:[#allocation2 + $0x111] sm:$0xff] %vm396_vm1, %v539_v27  ;;  %5534 = vmatpush3.msk.msra.mxu0 %vm742_vm0, %v6268_v4  ;;  %573 = vst.msk [vmem:[#allocation2 + $0x121] sm:$0xff] %vm396_vm1, %v540_v32  ;;  %5288 = vmatprep.mubr.msk.f32.mxu1 %vm396_vm1, %v6475_v30  ;;  %v6520_v4 = vld [vmem:[#allocation2 + $0x49] sm:$0xff]  ;;  %v6548_v53 = vld [vmem:[#allocation2 + $0x51] sm:$0xff] }
  0x31   : > { %5488 = vmatprep.mubr.msk.f32.mxu0 %vm396_vm1, %v6477_v31  ;;  %574 = vst.msk [vmem:[#allocation2 + $0x129] sm:$0xff] %vm396_vm1, %v541_v35  ;;  %5583 = vmatprep.subr.msk.mxu0 %vm742_vm0, %v6463_v24  ;;  %575 = vst.msk [vmem:[#allocation2 + $0x139] sm:$0xff] %vm396_vm1, %v542_v43  ;;  %v6546_v5 = vld [vmem:[#allocation2 + $0x50] sm:$0xff]  ;;  %v6553_v56 = vld [vmem:[#allocation2 + $0x60] sm:$0xff] }
  0x32   : > { %576 = vst.msk [vmem:[#allocation2 + $0x141] sm:$0xff] %vm396_vm1, %v543_v44  ;;  %5383 = vmatprep.subr.msk.mxu1 %vm742_vm0, %v6500_v40  ;;  %5289 = vmatmul.mubr.msk.f32.gmra.mrb[2].mxu1 %vm396_vm1, %v6506_v41  ;;  %577 = vst.msk [vmem:[#allocation2 + $0x151] sm:$0xff] %vm396_vm1, %v544_v46  ;;  %v6555_v57 = vld [vmem:[#allocation2 + $0x61] sm:$0xff]  ;;  %v6570_v58 = vld [vmem:[#allocation2 + $0x69] sm:$0xff] }
  0x33   : > { %5489 = vmatmul.mubr.msk.f32.gmra.mrb[2].mxu0 %vm396_vm1, %v6508_v42  ;;  %578 = vst.msk [vmem:[#allocation2 + $0x159] sm:$0xff] %vm396_vm1, %v545_v47  ;;  %5291 = vmatprep.mubr.msk.f32.mxu1 %vm396_vm1, %v6518_v3  ;;  %579 = vst.msk [vmem:[#allocation2 + $0x169] sm:$0xff] %vm396_vm1, %v546_v49  ;;  %v6568_v6 = vld [vmem:[#allocation2 + $0x68] sm:$0xff]  ;;  %v6572_v59 = vld [vmem:[#allocation2 + $0x78] sm:$0xff] }
  0x34   : > { %5491 = vmatprep.mubr.msk.f32.mxu0 %vm396_vm1, %v6520_v4  ;;  %580 = vst.msk [vmem:[#allocation2 + $0x171] sm:$0xff] %vm396_vm1, %v547_v52  ;;  %581 = vst.msk [vmem:[#allocation2 + $0x181] sm:$0xff] %vm396_vm1, %v548_v54  ;;  %v6574_v60 = vld [vmem:[#allocation2 + $0x79] sm:$0xff]  ;;  %v6586_v62 = vld [vmem:[#allocation2 + $0x81] sm:$0xff] }
  0x35   : > { %582 = vst.msk [vmem:[#allocation2 + $0x189] sm:$0xff] %vm396_vm1, %v549_v55  ;;  %v6584_v61 = vld [vmem:[#allocation2 + $0x80] sm:$0xff]  ;;  %v6588_v63 = vld [vmem:[#allocation2 + $0x90] sm:$0xff]  ;;  %v6600_v7 = vld [vmem:[#allocation2 + $0x98] sm:$0xff] }
  0x36   : > { %5292 = vmatmul.mubr.msk.f32.gmra.mrb[4].mxu1 %vm396_vm1, %v6546_v5  ;;  %v6590_v0 = vld [vmem:[#allocation2 + $0x91] sm:$0xff]  ;;  %v6602_v8 = vld [vmem:[#allocation2 + $0x99] sm:$0xff]  ;;  %v6604_v9 = vld [vmem:[#allocation2 + $0xa8] sm:$0xff] }
  0x37   : > { %5492 = vmatmul.mubr.msk.f32.gmra.mrb[4].mxu0 %vm396_vm1, %v6548_v53  ;;  %5294 = vmatprep.mubr.msk.f32.mxu1 %vm396_vm1, %v6553_v56  ;;  %v6606_v10 = vld [vmem:[#allocation2 + $0xa9] sm:$0xff]  ;;  %v6618_v12 = vld [vmem:[#allocation2 + $0xb1] sm:$0xff]  ;;  %v6620_v13 = vld [vmem:[#allocation2 + $0xc0] sm:$0xff] }
  0x38   : > { %5494 = vmatprep.mubr.msk.f32.mxu0 %vm396_vm1, %v6555_v57  ;;  %v6616_v11 = vld [vmem:[#allocation2 + $0xb0] sm:$0xff]  ;;  %8433 = vst [vmem:[#allocation3_spill] sm:$0xff] %v6618_v12  ;;  %v6622_v14 = vld [vmem:[#allocation2 + $0xc1] sm:$0xff]  ;;  %v6636_v17 = vld [vmem:[#allocation2 + $0xd8] sm:$0xff] }
  0x39   : > { %8434 = vst [vmem:[#allocation4_spill] sm:$0xff] %v6622_v14  ;;  %v6632_v15 = vld [vmem:[#allocation2 + $0xc8] sm:$0xff]  ;;  %v6646_v18 = vld [vmem:[#allocation2 + $0xe0] sm:$0xff]  ;;  %v6648_v19 = vld [vmem:[#allocation2 + $0xf0] sm:$0xff] }
  0x3a   : > { %5295 = vmatmul.mubr.msk.f32.gmra.mrb[6].mxu1 %vm396_vm1, %v6568_v6  ;;  %v6634_v16 = vld [vmem:[#allocation2 + $0xc9] sm:$0xff]  ;;  %v6663_v25 = vld [vmem:[#allocation2 + $0xf8] sm:$0xff]  ;;  %v6681_v27 = vld [vmem:[#allocation2 + $0x120] sm:$0xff] }
  0x3b   : > { %5495 = vmatmul.mubr.msk.f32.gmra.mrb[6].mxu0 %vm396_vm1, %v6570_v58  ;;  %5297 = vmatprep.mubr.msk.f32.mxu1 %vm396_vm1, %v6572_v59  ;;  %8435 = vst [vmem:[#allocation5_spill] sm:$0xff] %v6634_v16  ;;  %v6667_v26 = vld [vmem:[#allocation2 + $0x108] sm:$0xff]  ;;  %v6693_v32 = vld [vmem:[#allocation2 + $0x138] sm:$0xff]  ;;  %v6703_v33 = vld [vmem:[#allocation2 + $0x140] sm:$0xff] }
  0x3c   : > { %5497 = vmatprep.mubr.msk.f32.mxu0 %vm396_vm1, %v6574_v60  ;;  %v6691_v28 = vld [vmem:[#allocation2 + $0x128] sm:$0xff]  ;;  %v6705_v34 = vld [vmem:[#allocation2 + $0x150] sm:$0xff]  ;;  %v6715_v35 = vld [vmem:[#allocation2 + $0x158] sm:$0xff] }
  0x3d   : > { %v6717_v36 = vld [vmem:[#allocation2 + $0x168] sm:$0xff]  ;;  %v6727_v37 = vld [vmem:[#allocation2 + $0x170] sm:$0xff]  ;;  %v6729_v38 = vld [vmem:[#allocation2 + $0x180] sm:$0xff] }
  0x3e   : > { %5298 = vmatmul.mubr.msk.f32.gmra.mrb[8].mxu1 %vm396_vm1, %v6584_v61  ;;  %v6731_v39 = vld [vmem:[#allocation2 + $0xd9] sm:$0xff]  ;;  %v6741_v43 = vld [vmem:[#allocation2 + $0x188] sm:$0xff]  ;;  %v6745_v46 = vld [vmem:[#allocation2 + $0xf1] sm:$0xff] }
  0x3f   : > { %5498 = vmatmul.mubr.msk.f32.gmra.mrb[8].mxu0 %vm396_vm1, %v6586_v62  ;;  %5300 = vmatprep.mubr.msk.f32.mxu1 %vm396_vm1, %v6588_v63  ;;  %8436 = vst [vmem:[#allocation6_spill] sm:$0xff] %v6731_v39  ;;  %v6743_v44 = vld [vmem:[#allocation2 + $0xe1] sm:$0xff]  ;;  %8438 = vst [vmem:[#allocation8_spill] sm:$0xff] %v6745_v46  ;;  %v6754_v48 = vld [vmem:[#allocation2 + $0xf9] sm:$0xff] }
  0x40   : > { %5500 = vmatprep.mubr.msk.f32.mxu0 %vm396_vm1, %v6590_v0  ;;  %8437 = vst [vmem:[#allocation7_spill] sm:$0xff] %v6743_v44  ;;  %v609_v47 = vld [vmem:[#allocation2 + $0x8] sm:$0xff]  ;;  %8439 = vst [vmem:[#allocation9_spill] sm:$0xff] %v6754_v48  ;;  %v6770_v51 = vld [vmem:[#allocation2 + $0x111] sm:$0xff] }
  0x41   : > { %v6756_v49 = vld [vmem:[#allocation2 + $0x109] sm:$0xff]  ;;  %8441 = vst [vmem:[#allocation11_spill] sm:$0xff] %v6770_v51  ;;  %v6774_v52 = vld [vmem:[#allocation2 + $0x121] sm:$0xff]  ;;  %v6800_v54 = vld [vmem:[#allocation2 + $0x151] sm:$0xff] }
  0x42   : > { %5301 = vmatmul.mubr.msk.f32.gmra.mrb[10].mxu1 %vm396_vm1, %v6600_v7  ;;  %8440 = vst [vmem:[#allocation10_spill] sm:$0xff] %v6756_v49  ;;  %v6761_v50 = vld [vmem:[%s8389_s2 + $0xc] sm:$0xf]  ;;  %8442 = vst [vmem:[#allocation12_spill] sm:$0xff] %v6774_v52  ;;  %v6810_v55 = vld [vmem:[#allocation2 + $0x159] sm:$0xff] }
  0x43   : > { %5501 = vmatmul.mubr.msk.f32.gmra.mrb[10].mxu0 %vm396_vm1, %v6602_v8  ;;  %5303 = vmatprep.mubr.msk.f32.mxu1 %vm396_vm1, %v6604_v9  ;;  %8446 = vst [vmem:[#allocation16_spill] sm:$0xff] %v6800_v54  ;;  %8447 = vst [vmem:[#allocation17_spill] sm:$0xff] %v6810_v55  ;;  %v6824_v2 = vld [vmem:[#allocation2 + $0x181] sm:$0xff] }
  0x44   : > { %5503 = vmatprep.mubr.msk.f32.mxu0 %vm396_vm1, %v6606_v10  ;;  %8450 = vst [vmem:[#allocation20_spill] sm:$0xff] %v6824_v2 }
  0x46   : > { %5304 = vmatmul.mubr.msk.f32.gmra.mrb[12].mxu1 %vm396_vm1, %v6616_v11 }
  0x47   : > { %5504 = vmatmul.mubr.msk.f32.gmra.mrb[12].mxu0 %vm396_vm1, %v6618_v12  ;;  %5306 = vmatprep.mubr.msk.f32.mxu1 %vm396_vm1, %v6620_v13 }
  0x48   : > { %5506 = vmatprep.mubr.msk.f32.mxu0 %vm396_vm1, %v6622_v14 }
  0x4a   : > { %5307 = vmatmul.mubr.msk.f32.gmra.mrb[14].mxu1 %vm396_vm1, %v6632_v15 }
  0x4b   : > { %5507 = vmatmul.mubr.msk.f32.gmra.mrb[14].mxu0 %vm396_vm1, %v6634_v16  ;;  %5309 = vmatprep.mubr.msk.f32.mxu1 %vm396_vm1, %v6636_v17 }
  0x4c   : > { %5535 = vmatprep.mubr.msk.f32.mxu0 %vm396_vm1, %v6477_v31 }
  0x4e   : > { %5310 = vmatmul.mubr.msk.f32.gmra.mrb[16].mxu1 %vm396_vm1, %v6646_v18 }
  0x4f   : > { %5536 = vmatmul.mubr.msk.f32.vlgmr.msra.gmra.mrb[0].mxu0 %vm396_vm1, %v6508_v42  ;;  %5312 = vmatprep.mubr.msk.f32.mxu1 %vm396_vm1, %v6648_v19 }
  0x50   : > { %5584 = vmatpush3.msk.msra.mxu0 %vm742_vm0, %v6463_v24  ;;  %5538 = vmatprep.mubr.msk.f32.mxu0 %vm396_vm1, %v6520_v4  ;;  %v6679_v24 = vld [vmem:[#allocation2 + $0x110] sm:$0xff] }
  0x51   : > { %5633 = vmatprep.subr.msk.mxu0 %vm742_vm0, %v6653_v20 }
  0x52   : > { %5313 = vmatmul.mubr.msk.f32.gmra.mrb[18].mxu1 %vm396_vm1, %v6663_v25 }
  0x53   : > { %5539 = vmatmul.mubr.msk.f32.gmra.mrb[2].mxu0 %vm396_vm1, %v6548_v53  ;;  %5315 = vmatprep.mubr.msk.f32.mxu1 %vm396_vm1, %v6667_v26 }
  0x54   : > { %5541 = vmatprep.mubr.msk.f32.mxu0 %vm396_vm1, %v6555_v57 }
  0x56   : > { %5316 = vmatmul.mubr.msk.f32.gmra.mrb[20].mxu1 %vm396_vm1, %v6679_v24 }
  0x57   : > { %5542 = vmatmul.mubr.msk.f32.gmra.mrb[4].mxu0 %vm396_vm1, %v6570_v58  ;;  %5318 = vmatprep.mubr.msk.f32.mxu1 %vm396_vm1, %v6681_v27 }
  0x58   : > { %5544 = vmatprep.mubr.msk.f32.mxu0 %vm396_vm1, %v6574_v60 }
  0x5a   : > { %5319 = vmatmul.mubr.msk.f32.gmra.mrb[22].mxu1 %vm396_vm1, %v6691_v28 }
  0x5b   : > { %5545 = vmatmul.mubr.msk.f32.gmra.mrb[6].mxu0 %vm396_vm1, %v6586_v62  ;;  %5321 = vmatprep.mubr.msk.f32.mxu1 %vm396_vm1, %v6693_v32 }
  0x5c   : > { %5547 = vmatprep.mubr.msk.f32.mxu0 %vm396_vm1, %v6590_v0 }
  0x5e   : > { %5322 = vmatmul.mubr.msk.f32.gmra.mrb[24].mxu1 %vm396_vm1, %v6703_v33 }
  0x5f   : > { %5548 = vmatmul.mubr.msk.f32.gmra.mrb[8].mxu0 %vm396_vm1, %v6602_v8  ;;  %5324 = vmatprep.mubr.msk.f32.mxu1 %vm396_vm1, %v6705_v34 }
  0x60   : > { %5550 = vmatprep.mubr.msk.f32.mxu0 %vm396_vm1, %v6606_v10 }
  0x62   : > { %5325 = vmatmul.mubr.msk.f32.gmra.mrb[26].mxu1 %vm396_vm1, %v6715_v35 }
  0x63   : > { %5551 = vmatmul.mubr.msk.f32.gmra.mrb[10].mxu0 %vm396_vm1, %v6618_v12  ;;  %5327 = vmatprep.mubr.msk.f32.mxu1 %vm396_vm1, %v6717_v36  ;;  %v6967_v12 = vld [vmem:[#allocation2 + $0xf2] sm:$0xff] }
  0x64   : > { %5553 = vmatprep.mubr.msk.f32.mxu0 %vm396_vm1, %v6622_v14  ;;  %v6953_v14 = vld [vmem:[#allocation2 + $0xda] sm:$0xff] }
  0x66   : > { %5328 = vmatmul.mubr.msk.f32.gmra.mrb[28].mxu1 %vm396_vm1, %v6727_v37 }
  0x67   : > { %5554 = vmatmul.mubr.msk.f32.gmra.mrb[12].mxu0 %vm396_vm1, %v6634_v16  ;;  %5330 = vmatprep.mubr.msk.f32.mxu1 %vm396_vm1, %v6729_v38  ;;  %v6951_v16 = vld [vmem:[#allocation2 + $0xca] sm:$0xff] }
  0x68   : > { %5556 = vmatprep.mubr.msk.f32.mxu0 %vm396_vm1, %v6731_v39  ;;  %v6941_v39 = vld [vmem:[#allocation2 + $0xc2] sm:$0xff] }
  0x6a   : > { %5331 = vmatmul.mubr.msk.f32.gmra.mrb[30].mxu1 %vm396_vm1, %v6741_v43 }
  0x6b   : > { %5557 = vmatmul.mubr.msk.f32.gmra.mrb[14].mxu0 %vm396_vm1, %v6743_v44  ;;  %5335 = vmatprep.mubr.msk.f32.mxu1 %vm396_vm1, %v608_v45  ;;  %v6812_v45 = vld [vmem:[#allocation2 + $0x169] sm:$0xff]  ;;  %v6939_v44 = vld [vmem:[#allocation2 + $0xb2] sm:$0xff] }
  0x6c   : > { %5559 = vmatprep.mubr.msk.f32.mxu0 %vm396_vm1, %v6745_v46  ;;  %8448 = vst [vmem:[#allocation18_spill] sm:$0xff] %v6812_v45  ;;  %v6929_v46 = vld [vmem:[#allocation2 + $0xaa] sm:$0xff] }
  0x6e   : > { %5336 = vmatmul.mubr.msk.f32.vlgmr.msra.gmra.mrb[0].mxu1 %vm396_vm1, %v609_v47  ;;  %v6822_v47 = vld [vmem:[#allocation2 + $0x171] sm:$0xff] }
  0x6f   : > { %5560 = vmatmul.mubr.msk.f32.gmra.mrb[16].mxu0 %vm396_vm1, %v6754_v48  ;;  %5384 = vmatpush3.msk.msra.mxu1 %vm742_vm0, %v6500_v40  ;;  %v6788_v40 = vld [vmem:[#allocation2 + $0x139] sm:$0xff]  ;;  %8449 = vst [vmem:[#allocation19_spill] sm:$0xff] %v6822_v47 }
  0x70   : > { %5338 = vmatprep.mubr.msk.f32.mxu1 %vm396_vm1, %v6453_v21  ;;  %5562 = vmatprep.mubr.msk.f32.mxu0 %vm396_vm1, %v6756_v49  ;;  %v6786_v21 = vld [vmem:[#allocation2 + $0x129] sm:$0xff]  ;;  %8444 = vst [vmem:[#allocation14_spill] sm:$0xff] %v6788_v40  ;;  %v6917_v49 = vld [vmem:[#allocation2 + $0x92] sm:$0xff]  ;;  %v6927_v48 = vld [vmem:[#allocation2 + $0x9a] sm:$0xff] }
  0x71   : > { %5433 = vmatprep.subr.msk.mxu1 %vm742_vm0, %v6761_v50  ;;  %8443 = vst [vmem:[#allocation13_spill] sm:$0xff] %v6786_v21 }
  0x72   : > { %5339 = vmatmul.mubr.msk.f32.gmra.mrb[2].mxu1 %vm396_vm1, %v6457_v23  ;;  %v6798_v23 = vld [vmem:[#allocation2 + $0x141] sm:$0xff] }
  0x73   : > { %5563 = vmatmul.mubr.msk.f32.gmra.mrb[18].mxu0 %vm396_vm1, %v6770_v51  ;;  %5341 = vmatprep.mubr.msk.f32.mxu1 %vm396_vm1, %v6475_v30  ;;  %8445 = vst [vmem:[#allocation15_spill] sm:$0xff] %v6798_v23  ;;  %v6915_v51 = vld [vmem:[#allocation2 + $0x82] sm:$0xff] }
  0x74   : > { %5565 = vmatprep.mubr.msk.f32.mxu0 %vm396_vm1, %v6774_v52  ;;  %v6905_v52 = vld [vmem:[#allocation2 + $0x7a] sm:$0xff] }
  0x76   : > { %5342 = vmatmul.mubr.msk.f32.gmra.mrb[4].mxu1 %vm396_vm1, %v6506_v41 }
  0x77   : > { %5566 = vmatmul.mubr.msk.f32.gmra.mrb[20].mxu0 %vm396_vm1, %v6786_v21  ;;  %5344 = vmatprep.mubr.msk.f32.mxu1 %vm396_vm1, %v6518_v3  ;;  %v6903_v21 = vld [vmem:[#allocation2 + $0x6a] sm:$0xff] }
  0x78   : > { %5568 = vmatprep.mubr.msk.f32.mxu0 %vm396_vm1, %v6788_v40  ;;  %v6893_v40 = vld [vmem:[#allocation2 + $0x62] sm:$0xff] }
  0x7a   : > { %5345 = vmatmul.mubr.msk.f32.gmra.mrb[6].mxu1 %vm396_vm1, %v6546_v5 }
  0x7b   : > { %5569 = vmatmul.mubr.msk.f32.gmra.mrb[22].mxu0 %vm396_vm1, %v6798_v23  ;;  %5347 = vmatprep.mubr.msk.f32.mxu1 %vm396_vm1, %v6553_v56  ;;  %v6849_v23 = vld [vmem:[#allocation2 + $0x1a] sm:$0xff] }
  0x7c   : > { %5571 = vmatprep.mubr.msk.f32.mxu0 %vm396_vm1, %v6800_v54  ;;  %v1506_v54 = vld [vmem:[#allocation2 + $0x199] sm:$0xff] }
  0x7e   : > { %5348 = vmatmul.mubr.msk.f32.gmra.mrb[8].mxu1 %vm396_vm1, %v6568_v6 }
  0x7f   : > { %5572 = vmatmul.mubr.msk.f32.gmra.mrb[24].mxu0 %vm396_vm1, %v6810_v55  ;;  %5350 = vmatprep.mubr.msk.f32.mxu1 %vm396_vm1, %v6572_v59  ;;  %v6834_v55 = vld [vmem:[#allocation2 + $0x189] sm:$0xff] }
  0x80   : > { %5574 = vmatprep.mubr.msk.f32.mxu0 %vm396_vm1, %v6812_v45  ;;  %8451 = vst [vmem:[#allocation21_spill] sm:$0xff] %v6834_v55  ;;  %v2399_v45 = vld [vmem:[#allocation2 + $0x2] sm:$0xff] }
  0x82   : > { %5351 = vmatmul.mubr.msk.f32.gmra.mrb[10].mxu1 %vm396_vm1, %v6584_v61 }
  0x83   : > { %5575 = vmatmul.mubr.msk.f32.gmra.mrb[26].mxu0 %vm396_vm1, %v6822_v47  ;;  %5353 = vmatprep.mubr.msk.f32.mxu1 %vm396_vm1, %v6588_v63  ;;  %v1507_v47 = vld [vmem:[#allocation2 + $0x1a1] sm:$0xff] }
  0x84   : > { %5577 = vmatprep.mubr.msk.f32.mxu0 %vm396_vm1, %v6824_v2  ;;  %v2400_v2 = vld [vmem:[#allocation2 + $0xa] sm:$0xff] }
  0x86   : > { %5354 = vmatmul.mubr.msk.f32.gmra.mrb[12].mxu1 %vm396_vm1, %v6600_v7 }
  0x87   : > { %5578 = vmatmul.mubr.msk.f32.gmra.mrb[28].mxu0 %vm396_vm1, %v6834_v55  ;;  %5356 = vmatprep.mubr.msk.f32.mxu1 %vm396_vm1, %v6604_v9  ;;  %v6854_v55 = vld [vmem:[%s8389_s2 + $0x20] sm:$0xf] }
  0x88   : > { %5580 = vmatprep.mubr.msk.f32.mxu0 %vm396_vm1, %v1506_v54  ;;  %v6863_v54 = vld [vmem:[#allocation2 + $0x22] sm:$0xff] }
  0x8a   : > { %5357 = vmatmul.mubr.msk.f32.gmra.mrb[14].mxu1 %vm396_vm1, %v6616_v11 }
  0x8b   : > { %5581 = vmatmul.mubr.msk.f32.gmra.mrb[30].mxu0 %vm396_vm1, %v1507_v47  ;;  %5359 = vmatprep.mubr.msk.f32.mxu1 %vm396_vm1, %v6620_v13  ;;  %v6891_v47 = vld [vmem:[#allocation2 + $0x52] sm:$0xff] }
  0x8c   : > { %5585 = vmatprep.mubr.msk.f32.mxu0 %vm396_vm1, %v2399_v45  ;;  %v6867_v45 = vld [vmem:[#allocation2 + $0x32] sm:$0xff] }
  0x8e   : > { %5360 = vmatmul.mubr.msk.f32.gmra.mrb[16].mxu1 %vm396_vm1, %v6632_v15 }
  0x8f   : > { %5586 = vmatmul.mubr.msk.f32.vlgmr.msra.gmra.mrb[0].mxu0 %vm396_vm1, %v2400_v2  ;;  %5362 = vmatprep.mubr.msk.f32.mxu1 %vm396_vm1, %v6636_v17  ;;  %v6879_v2 = vld [vmem:[#allocation2 + $0x3a] sm:$0xff] }
  0x90   : > { %5634 = vmatpush3.msk.msra.mxu0 %vm742_vm0, %v6653_v20  ;;  %5588 = vmatprep.mubr.msk.f32.mxu0 %vm396_vm1, %v6849_v23  ;;  %v6881_v20 = vld [vmem:[#allocation2 + $0x4a] sm:$0xff] }
  0x91   : > { %5683 = vmatprep.subr.msk.mxu0 %vm742_vm0, %v6854_v55 }
  0x92   : > { %5363 = vmatmul.mubr.msk.f32.gmra.mrb[18].mxu1 %vm396_vm1, %v6646_v18 }
  0x93   : > { %5589 = vmatmul.mubr.msk.f32.gmra.mrb[2].mxu0 %vm396_vm1, %v6863_v54  ;;  %5365 = vmatprep.mubr.msk.f32.mxu1 %vm396_vm1, %v6648_v19 }
  0x94   : > { %5591 = vmatprep.mubr.msk.f32.mxu0 %vm396_vm1, %v6867_v45 }
  0x96   : > { %5366 = vmatmul.mubr.msk.f32.gmra.mrb[20].mxu1 %vm396_vm1, %v6663_v25 }
  0x97   : > { %5592 = vmatmul.mubr.msk.f32.gmra.mrb[4].mxu0 %vm396_vm1, %v6879_v2  ;;  %5368 = vmatprep.mubr.msk.f32.mxu1 %vm396_vm1, %v6667_v26 }
  0x98   : > { %5594 = vmatprep.mubr.msk.f32.mxu0 %vm396_vm1, %v6881_v20 }
  0x9a   : > { %5369 = vmatmul.mubr.msk.f32.gmra.mrb[22].mxu1 %vm396_vm1, %v6679_v24 }
  0x9b   : > { %5595 = vmatmul.mubr.msk.f32.gmra.mrb[6].mxu0 %vm396_vm1, %v6891_v47  ;;  %5371 = vmatprep.mubr.msk.f32.mxu1 %vm396_vm1, %v6681_v27 }
  0x9c   : > { %5597 = vmatprep.mubr.msk.f32.mxu0 %vm396_vm1, %v6893_v40 }
  0x9e   : > { %5372 = vmatmul.mubr.msk.f32.gmra.mrb[24].mxu1 %vm396_vm1, %v6691_v28 }
  0x9f   : > { %5598 = vmatmul.mubr.msk.f32.gmra.mrb[8].mxu0 %vm396_vm1, %v6903_v21  ;;  %5374 = vmatprep.mubr.msk.f32.mxu1 %vm396_vm1, %v6693_v32 }
  0xa0   : > { %5600 = vmatprep.mubr.msk.f32.mxu0 %vm396_vm1, %v6905_v52 }
  0xa2   : > { %5375 = vmatmul.mubr.msk.f32.gmra.mrb[26].mxu1 %vm396_vm1, %v6703_v33 }
  0xa3   : > { %5601 = vmatmul.mubr.msk.f32.gmra.mrb[10].mxu0 %vm396_vm1, %v6915_v51  ;;  %5377 = vmatprep.mubr.msk.f32.mxu1 %vm396_vm1, %v6705_v34 }
  0xa4   : > { %5603 = vmatprep.mubr.msk.f32.mxu0 %vm396_vm1, %v6917_v49 }
  0xa6   : > { %5378 = vmatmul.mubr.msk.f32.gmra.mrb[28].mxu1 %vm396_vm1, %v6715_v35 }
  0xa7   : > { %5604 = vmatmul.mubr.msk.f32.gmra.mrb[12].mxu0 %vm396_vm1, %v6927_v48  ;;  %5380 = vmatprep.mubr.msk.f32.mxu1 %vm396_vm1, %v6717_v36 }
  0xa8   : > { %5606 = vmatprep.mubr.msk.f32.mxu0 %vm396_vm1, %v6929_v46 }
  0xaa   : > { %5381 = vmatmul.mubr.msk.f32.gmra.mrb[30].mxu1 %vm396_vm1, %v6727_v37 }
  0xab   : > { %5607 = vmatmul.mubr.msk.f32.gmra.mrb[14].mxu0 %vm396_vm1, %v6939_v44  ;;  %5385 = vmatprep.mubr.msk.f32.mxu1 %vm396_vm1, %v6475_v30  ;;  %v6963_v30 = vld [vmem:[#allocation2 + $0xe2] sm:$0xff] }
  0xac   : > { %5609 = vmatprep.mubr.msk.f32.mxu0 %vm396_vm1, %v6941_v39 }
  0xae   : > { %5386 = vmatmul.mubr.msk.f32.vlgmr.msra.gmra.mrb[0].mxu1 %vm396_vm1, %v6506_v41  ;;  %v6979_v41 = vld [vmem:[#allocation2 + $0xfa] sm:$0xff] }
  0xaf   : > { %5610 = vmatmul.mubr.msk.f32.gmra.mrb[16].mxu0 %vm396_vm1, %v6951_v16  ;;  %5434 = vmatpush3.msk.msra.mxu1 %vm742_vm0, %v6761_v50 }
  0xb0   : > { %5388 = vmatprep.mubr.msk.f32.mxu1 %vm396_vm1, %v6518_v3  ;;  %5612 = vmatprep.mubr.msk.f32.mxu0 %vm396_vm1, %v6953_v14  ;;  %v6981_v3 = vld [vmem:[#allocation2 + $0x10a] sm:$0xff] }
  0xb1   : > { %5733 = vmatprep.subr.msk.mxu1 %vm742_vm0, %v6242_v1 }
  0xb2   : > { %5389 = vmatmul.mubr.msk.f32.gmra.mrb[2].mxu1 %vm396_vm1, %v6546_v5  ;;  %v6991_v5 = vld [vmem:[#allocation2 + $0x112] sm:$0xff] }
  0xb3   : > { %5613 = vmatmul.mubr.msk.f32.gmra.mrb[18].mxu0 %vm396_vm1, %v6963_v30  ;;  %5391 = vmatprep.mubr.msk.f32.mxu1 %vm396_vm1, %v6553_v56  ;;  %v6993_v56 = vld [vmem:[#allocation2 + $0x122] sm:$0xff] }
  0xb4   : > { %5615 = vmatprep.mubr.msk.f32.mxu0 %vm396_vm1, %v6967_v12 }
  0xb6   : > { %5392 = vmatmul.mubr.msk.f32.gmra.mrb[4].mxu1 %vm396_vm1, %v6568_v6  ;;  %v7003_v6 = vld [vmem:[#allocation2 + $0x12a] sm:$0xff] }
  0xb7   : > { %5616 = vmatmul.mubr.msk.f32.gmra.mrb[20].mxu0 %vm396_vm1, %v6979_v41  ;;  %5394 = vmatprep.mubr.msk.f32.mxu1 %vm396_vm1, %v6572_v59  ;;  %v7005_v59 = vld [vmem:[#allocation2 + $0x13a] sm:$0xff] }
  0xb8   : > { %5618 = vmatprep.mubr.msk.f32.mxu0 %vm396_vm1, %v6981_v3 }
  0xba   : > { %5395 = vmatmul.mubr.msk.f32.gmra.mrb[6].mxu1 %vm396_vm1, %v6584_v61  ;;  %v7015_v61 = vld [vmem:[#allocation2 + $0x142] sm:$0xff] }
  0xbb   : > { %5619 = vmatmul.mubr.msk.f32.gmra.mrb[22].mxu0 %vm396_vm1, %v6991_v5  ;;  %5397 = vmatprep.mubr.msk.f32.mxu1 %vm396_vm1, %v6588_v63  ;;  %v7017_v63 = vld [vmem:[#allocation2 + $0x152] sm:$0xff] }
  0xbc   : > { %5621 = vmatprep.mubr.msk.f32.mxu0 %vm396_vm1, %v6993_v56 }
  0xbe   : > { %5398 = vmatmul.mubr.msk.f32.gmra.mrb[8].mxu1 %vm396_vm1, %v6600_v7  ;;  %v7027_v7 = vld [vmem:[#allocation2 + $0x15a] sm:$0xff] }
  0xbf   : > { %5622 = vmatmul.mubr.msk.f32.gmra.mrb[24].mxu0 %vm396_vm1, %v7003_v6  ;;  %5400 = vmatprep.mubr.msk.f32.mxu1 %vm396_vm1, %v6604_v9  ;;  %v7029_v9 = vld [vmem:[#allocation2 + $0x16a] sm:$0xff] }
  0xc0   : > { %5624 = vmatprep.mubr.msk.f32.mxu0 %vm396_vm1, %v7005_v59 }
  0xc2   : > { %5401 = vmatmul.mubr.msk.f32.gmra.mrb[10].mxu1 %vm396_vm1, %v6616_v11  ;;  %v7039_v11 = vld [vmem:[#allocation2 + $0x172] sm:$0xff] }
  0xc3   : > { %5625 = vmatmul.mubr.msk.f32.gmra.mrb[26].mxu0 %vm396_vm1, %v7015_v61  ;;  %5403 = vmatprep.mubr.msk.f32.mxu1 %vm396_vm1, %v6620_v13  ;;  %v642_v13 = vld [vmem:[#allocation2 + $0x198] sm:$0xff] }
  0xc4   : > { %5627 = vmatprep.mubr.msk.f32.mxu0 %vm396_vm1, %v7017_v63 }
  0xc6   : > { %5404 = vmatmul.mubr.msk.f32.gmra.mrb[12].mxu1 %vm396_vm1, %v6632_v15  ;;  %v643_v15 = vld [vmem:[#allocation2 + $0x1a0] sm:$0xff] }
  0xc7   : > { %5628 = vmatmul.mubr.msk.f32.gmra.mrb[28].mxu0 %vm396_vm1, %v7027_v7  ;;  %5406 = vmatprep.mubr.msk.f32.mxu1 %vm396_vm1, %v6636_v17  ;;  %v1472_v17 = vld [vmem:[#allocation2 + $0x1] sm:$0xff] }
  0xc8   : > { %5630 = vmatprep.mubr.msk.f32.mxu0 %vm396_vm1, %v7029_v9 }
  0xca   : > { %5407 = vmatmul.mubr.msk.f32.gmra.mrb[14].mxu1 %vm396_vm1, %v6646_v18  ;;  %v1473_v18 = vld [vmem:[#allocation2 + $0x9] sm:$0xff] }
  0xcb   : > { %5631 = vmatmul.mubr.msk.f32.gmra.mrb[30].mxu0 %vm396_vm1, %v7039_v11  ;;  %5409 = vmatprep.mubr.msk.f32.mxu1 %vm396_vm1, %v6648_v19  ;;  %v8464_v19 = vld [vmem:[#allocation15_spill] sm:$0xff] }
  0xcc   : > { %5635 = vmatprep.mubr.msk.f32.mxu0 %vm396_vm1, %v6849_v23 }
  0xce   : > { %5410 = vmatmul.mubr.msk.f32.gmra.mrb[16].mxu1 %vm396_vm1, %v6663_v25  ;;  %v8465_v25 = vld [vmem:[#allocation16_spill] sm:$0xff] }
  0xcf   : > { %5636 = vmatmul.mubr.msk.f32.vlgmr.msra.gmra.mrb[0].mxu0 %vm396_vm1, %v6863_v54  ;;  %5412 = vmatprep.mubr.msk.f32.mxu1 %vm396_vm1, %v6667_v26  ;;  %v8466_v26 = vld [vmem:[#allocation17_spill] sm:$0xff] }
  0xd0   : > { %5684 = vmatpush3.msk.msra.mxu0 %vm742_vm0, %v6854_v55  ;;  %5638 = vmatprep.mubr.msk.f32.mxu0 %vm396_vm1, %v6867_v45 }
  0xd2   : > { %5413 = vmatmul.mubr.msk.f32.gmra.mrb[18].mxu1 %vm396_vm1, %v6679_v24  ;;  %v8467_v24 = vld [vmem:[#allocation18_spill] sm:$0xff] }
  0xd3   : > { %5639 = vmatmul.mubr.msk.f32.gmra.mrb[2].mxu0 %vm396_vm1, %v6879_v2  ;;  %5415 = vmatprep.mubr.msk.f32.mxu1 %vm396_vm1, %v6681_v27  ;;  %v8468_v27 = vld [vmem:[#allocation19_spill] sm:$0xff] }
  0xd4   : > { %5641 = vmatprep.mubr.msk.f32.mxu0 %vm396_vm1, %v6881_v20 }
  0xd6   : > { %5416 = vmatmul.mubr.msk.f32.gmra.mrb[20].mxu1 %vm396_vm1, %v6691_v28  ;;  %v8470_v28 = vld [vmem:[#allocation21_spill] sm:$0xff] }
  0xd7   : > { %5642 = vmatmul.mubr.msk.f32.gmra.mrb[4].mxu0 %vm396_vm1, %v6891_v47  ;;  %5418 = vmatprep.mubr.msk.f32.mxu1 %vm396_vm1, %v6693_v32 }
  0xd8   : > { %5644 = vmatprep.mubr.msk.f32.mxu0 %vm396_vm1, %v6893_v40 }
  0xda   : > { %5419 = vmatmul.mubr.msk.f32.gmra.mrb[22].mxu1 %vm396_vm1, %v6703_v33 }
  0xdb   : > { %5645 = vmatmul.mubr.msk.f32.gmra.mrb[6].mxu0 %vm396_vm1, %v6903_v21  ;;  %5421 = vmatprep.mubr.msk.f32.mxu1 %vm396_vm1, %v6705_v34 }
  0xdc   : > { %5647 = vmatprep.mubr.msk.f32.mxu0 %vm396_vm1, %v6905_v52 }
  0xde   : > { %5422 = vmatmul.mubr.msk.f32.gmra.mrb[24].mxu1 %vm396_vm1, %v6715_v35 }
  0xdf   : > { %5648 = vmatmul.mubr.msk.f32.gmra.mrb[8].mxu0 %vm396_vm1, %v6915_v51  ;;  %5424 = vmatprep.mubr.msk.f32.mxu1 %vm396_vm1, %v6717_v36 }
  0xe0   : > { %5650 = vmatprep.mubr.msk.f32.mxu0 %vm396_vm1, %v6917_v49 }
  0xe2   : > { %5425 = vmatmul.mubr.msk.f32.gmra.mrb[26].mxu1 %vm396_vm1, %v6727_v37 }
  0xe3   : > { %5651 = vmatmul.mubr.msk.f32.gmra.mrb[10].mxu0 %vm396_vm1, %v6927_v48  ;;  %5427 = vmatprep.mubr.msk.f32.mxu1 %vm396_vm1, %v6729_v38 }
  0xe4   : > { %5653 = vmatprep.mubr.msk.f32.mxu0 %vm396_vm1, %v6929_v46 }
  0xe6   : > { %5428 = vmatmul.mubr.msk.f32.gmra.mrb[28].mxu1 %vm396_vm1, %v6741_v43 }
  0xe7   : > { %5654 = vmatmul.mubr.msk.f32.gmra.mrb[12].mxu0 %vm396_vm1, %v6939_v44  ;;  %5430 = vmatprep.mubr.msk.f32.mxu1 %vm396_vm1, %v642_v13 }
  0xe8   : > { %5656 = vmatprep.mubr.msk.f32.mxu0 %vm396_vm1, %v6941_v39 }
  0xea   : > { %5431 = vmatmul.mubr.msk.f32.gmra.mrb[30].mxu1 %vm396_vm1, %v643_v15 }
  0xeb   : > { %5657 = vmatmul.mubr.msk.f32.gmra.mrb[14].mxu0 %vm396_vm1, %v6951_v16  ;;  %5435 = vmatprep.mubr.msk.f32.mxu1 %vm396_vm1, %v1472_v17 }
  0xec   : > { %5659 = vmatprep.mubr.msk.f32.mxu0 %vm396_vm1, %v6953_v14 }
  0xee   : > { %5436 = vmatmul.mubr.msk.f32.vlgmr.msra.gmra.mrb[0].mxu1 %vm396_vm1, %v1473_v18 }
  0xef   : > { %5660 = vmatmul.mubr.msk.f32.gmra.mrb[16].mxu0 %vm396_vm1, %v6963_v30  ;;  %5734 = vmatpush3.msk.msra.mxu1 %vm742_vm0, %v6242_v1  ;;  %v7161_v1 = vld [vmem:[#allocation2 + $0x182] sm:$0xff] }
  0xf0   : > { %5438 = vmatprep.mubr.msk.f32.mxu1 %vm396_vm1, %v6455_v22  ;;  %5662 = vmatprep.mubr.msk.f32.mxu0 %vm396_vm1, %v6967_v12  ;;  %v7171_v22 = vld [vmem:[#allocation2 + $0x18a] sm:$0xff] }
  0xf2   : > { %5439 = vmatmul.mubr.msk.f32.gmra.mrb[2].mxu1 %vm396_vm1, %v6473_v29  ;;  %v8452_v29 = vld [vmem:[#allocation3_spill] sm:$0xff] }
  0xf3   : > { %5663 = vmatmul.mubr.msk.f32.gmra.mrb[18].mxu0 %vm396_vm1, %v6979_v41  ;;  %5441 = vmatprep.mubr.msk.f32.mxu1 %vm396_vm1, %v6477_v31  ;;  %v8453_v31 = vld [vmem:[#allocation4_spill] sm:$0xff] }
  0xf4   : > { %5665 = vmatprep.mubr.msk.f32.mxu0 %vm396_vm1, %v6981_v3 }
  0xf6   : > { %5442 = vmatmul.mubr.msk.f32.gmra.mrb[4].mxu1 %vm396_vm1, %v6508_v42  ;;  %v8454_v42 = vld [vmem:[#allocation5_spill] sm:$0xff] }
  0xf7   : > { %5666 = vmatmul.mubr.msk.f32.gmra.mrb[20].mxu0 %vm396_vm1, %v6991_v5  ;;  %5444 = vmatprep.mubr.msk.f32.mxu1 %vm396_vm1, %v6520_v4  ;;  %v8455_v4 = vld [vmem:[#allocation6_spill] sm:$0xff] }
  0xf8   : > { %5668 = vmatprep.mubr.msk.f32.mxu0 %vm396_vm1, %v6993_v56 }
  0xfa   : > { %5445 = vmatmul.mubr.msk.f32.gmra.mrb[6].mxu1 %vm396_vm1, %v6548_v53  ;;  %v8456_v53 = vld [vmem:[#allocation7_spill] sm:$0xff] }
  0xfb   : > { %5669 = vmatmul.mubr.msk.f32.gmra.mrb[22].mxu0 %vm396_vm1, %v7003_v6  ;;  %5447 = vmatprep.mubr.msk.f32.mxu1 %vm396_vm1, %v6555_v57  ;;  %v8457_v57 = vld [vmem:[#allocation8_spill] sm:$0xff] }
  0xfc   : > { %5671 = vmatprep.mubr.msk.f32.mxu0 %vm396_vm1, %v7005_v59 }
  0xfe   : > { %5448 = vmatmul.mubr.msk.f32.gmra.mrb[8].mxu1 %vm396_vm1, %v6570_v58  ;;  %v8458_v58 = vld [vmem:[#allocation9_spill] sm:$0xff] }
  0xff   : > { %5672 = vmatmul.mubr.msk.f32.gmra.mrb[24].mxu0 %vm396_vm1, %v7015_v61  ;;  %5450 = vmatprep.mubr.msk.f32.mxu1 %vm396_vm1, %v6574_v60  ;;  %v8459_v60 = vld [vmem:[#allocation10_spill] sm:$0xff] }
 0x100   : > { %5674 = vmatprep.mubr.msk.f32.mxu0 %vm396_vm1, %v7017_v63 }
 0x102   : > { %5451 = vmatmul.mubr.msk.f32.gmra.mrb[10].mxu1 %vm396_vm1, %v6586_v62  ;;  %v8460_v62 = vld [vmem:[#allocation11_spill] sm:$0xff] }
 0x103   : > { %5675 = vmatmul.mubr.msk.f32.gmra.mrb[26].mxu0 %vm396_vm1, %v7027_v7  ;;  %5453 = vmatprep.mubr.msk.f32.mxu1 %vm396_vm1, %v6590_v0  ;;  %v8461_v0 = vld [vmem:[#allocation12_spill] sm:$0xff] }
 0x104   : > { %5677 = vmatprep.mubr.msk.f32.mxu0 %vm396_vm1, %v7029_v9 }
 0x106   : > { %5454 = vmatmul.mubr.msk.f32.gmra.mrb[12].mxu1 %vm396_vm1, %v6602_v8  ;;  %v8462_v8 = vld [vmem:[#allocation13_spill] sm:$0xff] }
 0x107   : > { %5678 = vmatmul.mubr.msk.f32.gmra.mrb[28].mxu0 %vm396_vm1, %v7039_v11  ;;  %5456 = vmatprep.mubr.msk.f32.mxu1 %vm396_vm1, %v6606_v10  ;;  %v8463_v10 = vld [vmem:[#allocation14_spill] sm:$0xff] }
 0x108   : > { %5680 = vmatprep.mubr.msk.f32.mxu0 %vm396_vm1, %v7161_v1 }
 0x10a   : > { %5457 = vmatmul.mubr.msk.f32.gmra.mrb[14].mxu1 %vm396_vm1, %v8452_v29 }
 0x10b   : > { %5681 = vmatmul.mubr.msk.f32.gmra.mrb[30].mxu0 %vm396_vm1, %v7171_v22  ;;  %5459 = vmatprep.mubr.msk.f32.mxu1 %vm396_vm1, %v8453_v31 }
 0x10c   : > { %5685 = vmatprep.mubr.msk.f32.mxu0 %vm396_vm1, %v6867_v45 }
 0x10e   : > { %5460 = vmatmul.mubr.msk.f32.gmra.mrb[16].mxu1 %vm396_vm1, %v8454_v42 }
 0x10f   : > { %5686 = vmatmul.mubr.msk.f32.vlgmr.msra.gmra.mrb[0].mxu0 %vm396_vm1, %v6879_v2  ;;  %5462 = vmatprep.mubr.msk.f32.mxu1 %vm396_vm1, %v8455_v4 }
 0x110   : > { %5688 = vmatprep.mubr.msk.f32.mxu0 %vm396_vm1, %v6881_v20 }
 0x112   : > { %5463 = vmatmul.mubr.msk.f32.gmra.mrb[18].mxu1 %vm396_vm1, %v8456_v53 }
 0x113   : > { %5689 = vmatmul.mubr.msk.f32.gmra.mrb[2].mxu0 %vm396_vm1, %v6891_v47  ;;  %5465 = vmatprep.mubr.msk.f32.mxu1 %vm396_vm1, %v8457_v57 }
 0x114   : > { %5691 = vmatprep.mubr.msk.f32.mxu0 %vm396_vm1, %v6893_v40  ;;  %v7326_v40 = vld [vmem:[%s8390_s3] ss:$0 sm:$0xff] }
 0x116   : > { %5466 = vmatmul.mubr.msk.f32.gmra.mrb[20].mxu1 %vm396_vm1, %v8458_v58 }
 0x117   : > { %5692 = vmatmul.mubr.msk.f32.gmra.mrb[4].mxu0 %vm396_vm1, %v6903_v21  ;;  %5468 = vmatprep.mubr.msk.f32.mxu1 %vm396_vm1, %v8459_v60 }
 0x118   : > { %5694 = vmatprep.mubr.msk.f32.mxu0 %vm396_vm1, %v6905_v52 }
 0x11a   : > { %5469 = vmatmul.mubr.msk.f32.gmra.mrb[22].mxu1 %vm396_vm1, %v8460_v62 }
 0x11b   : > { %5695 = vmatmul.mubr.msk.f32.gmra.mrb[6].mxu0 %vm396_vm1, %v6915_v51  ;;  %5471 = vmatprep.mubr.msk.f32.mxu1 %vm396_vm1, %v8461_v0 }
 0x11c   : > { %5697 = vmatprep.mubr.msk.f32.mxu0 %vm396_vm1, %v6917_v49 }
 0x11e   : > { %5472 = vmatmul.mubr.msk.f32.gmra.mrb[24].mxu1 %vm396_vm1, %v8462_v8 }
 0x11f   : > { %5698 = vmatmul.mubr.msk.f32.gmra.mrb[8].mxu0 %vm396_vm1, %v6927_v48  ;;  %5474 = vmatprep.mubr.msk.f32.mxu1 %vm396_vm1, %v8463_v10 }
 0x120   : > { %5700 = vmatprep.mubr.msk.f32.mxu0 %vm396_vm1, %v6929_v46 }
 0x122   : > { %5475 = vmatmul.mubr.msk.f32.gmra.mrb[26].mxu1 %vm396_vm1, %v8464_v19 }
 0x123   : > { %5701 = vmatmul.mubr.msk.f32.gmra.mrb[10].mxu0 %vm396_vm1, %v6939_v44  ;;  %5477 = vmatprep.mubr.msk.f32.mxu1 %vm396_vm1, %v8465_v25 }
 0x124   : > { %5703 = vmatprep.mubr.msk.f32.mxu0 %vm396_vm1, %v6941_v39 }
 0x126   : > { %5478 = vmatmul.mubr.msk.f32.gmra.mrb[28].mxu1 %vm396_vm1, %v8466_v26 }
 0x127   : > { %5704 = vmatmul.mubr.msk.f32.gmra.mrb[12].mxu0 %vm396_vm1, %v6951_v16  ;;  %5480 = vmatprep.mubr.msk.f32.mxu1 %vm396_vm1, %v8467_v24  ;;  %v2434_v16 = vld [vmem:[#allocation2 + $0x1a2] sm:$0xff] }
 0x128   : > { %5706 = vmatprep.mubr.msk.f32.mxu0 %vm396_vm1, %v6953_v14  ;;  %v8469_v14 = vld [vmem:[#allocation20_spill] sm:$0xff] }
 0x12a   : > { %5481 = vmatmul.mubr.msk.f32.gmra.mrb[30].mxu1 %vm396_vm1, %v8468_v27 }
 0x12b   : > { %5707 = vmatmul.mubr.msk.f32.gmra.mrb[14].mxu0 %vm396_vm1, %v6963_v30  ;;  %5509 = vmatprep.mubr.msk.f32.mxu1 %vm396_vm1, %v8455_v4 }
 0x12c   : > { %5709 = vmatprep.mubr.msk.f32.mxu0 %vm396_vm1, %v6967_v12  ;;  %v2433_v12 = vld [vmem:[#allocation2 + $0x19a] sm:$0xff] }
 0x12e   : > { %5510 = vmatmul.mubr.msk.f32.vlgmr.msra.gmra.mrb[16].mxu1 %vm396_vm1, %v8456_v53 }
 0x12f   : > { %5710 = vmatmul.mubr.msk.f32.gmra.mrb[16].mxu0 %vm396_vm1, %v6979_v41  ;;  %5512 = vmatprep.mubr.msk.f32.mxu1 %vm396_vm1, %v8457_v57 }
 0x130   : > { %5712 = vmatprep.mubr.msk.f32.mxu0 %vm396_vm1, %v6981_v3 }
 0x132   : > { %5513 = vmatmul.mubr.msk.f32.gmra.mrb[18].mxu1 %vm396_vm1, %v8458_v58 }
 0x133   : > { %5713 = vmatmul.mubr.msk.f32.gmra.mrb[18].mxu0 %vm396_vm1, %v6991_v5  ;;  %5515 = vmatprep.mubr.msk.f32.mxu1 %vm396_vm1, %v8459_v60 }
 0x134   : > { %5715 = vmatprep.mubr.msk.f32.mxu0 %vm396_vm1, %v6993_v56 }
 0x136   : > { %5516 = vmatmul.mubr.msk.f32.gmra.mrb[20].mxu1 %vm396_vm1, %v8460_v62 }
 0x137   : > { %5716 = vmatmul.mubr.msk.f32.gmra.mrb[20].mxu0 %vm396_vm1, %v7003_v6  ;;  %5518 = vmatprep.mubr.msk.f32.mxu1 %vm396_vm1, %v8461_v0  ;;  %v8431_v0 = vmov -1.0  }
 0x138   : > { %5718 = vmatprep.mubr.msk.f32.mxu0 %vm396_vm1, %v7005_v59 }
 0x13a   : > { %5519 = vmatmul.mubr.msk.f32.gmra.mrb[22].mxu1 %vm396_vm1, %v8462_v8 }
 0x13b   : > { %5719 = vmatmul.mubr.msk.f32.gmra.mrb[22].mxu0 %vm396_vm1, %v7015_v61  ;;  %5521 = vmatprep.mubr.msk.f32.mxu1 %vm396_vm1, %v8463_v10 }
 0x13c   : > { %5721 = vmatprep.mubr.msk.f32.mxu0 %vm396_vm1, %v7017_v63 }
 0x13e   : > { %5522 = vmatmul.mubr.msk.f32.gmra.mrb[24].mxu1 %vm396_vm1, %v8464_v19 }
 0x13f   : > { %5722 = vmatmul.mubr.msk.f32.gmra.mrb[24].mxu0 %vm396_vm1, %v7027_v7  ;;  %5524 = vmatprep.mubr.msk.f32.mxu1 %vm396_vm1, %v8465_v25 }
 0x140   : > { %5724 = vmatprep.mubr.msk.f32.mxu0 %vm396_vm1, %v7029_v9 }
 0x142   : > { %5525 = vmatmul.mubr.msk.f32.gmra.mrb[26].mxu1 %vm396_vm1, %v8466_v26 }
 0x143   : > { %5725 = vmatmul.mubr.msk.f32.gmra.mrb[26].mxu0 %vm396_vm1, %v7039_v11  ;;  %5527 = vmatprep.mubr.msk.f32.mxu1 %vm396_vm1, %v8467_v24 }
 0x144   : > { %5727 = vmatprep.mubr.msk.f32.mxu0 %vm396_vm1, %v7161_v1 }
 0x146   : > { %5528 = vmatmul.mubr.msk.f32.gmra.mrb[28].mxu1 %vm396_vm1, %v8468_v27 }
 0x147   : > { %5728 = vmatmul.mubr.msk.f32.gmra.mrb[28].mxu0 %vm396_vm1, %v7171_v22  ;;  %5530 = vmatprep.mubr.msk.f32.mxu1 %vm396_vm1, %v8469_v14 }
 0x148   : > { %5730 = vmatprep.mubr.msk.f32.mxu0 %vm396_vm1, %v2433_v12 }
 0x14a   : > { %5531 = vmatmul.mubr.msk.f32.gmra.mrb[30].mxu1 %vm396_vm1, %v8470_v28 }
 0x14b   : > { %5731 = vmatmul.mubr.msk.f32.gmra.mrb[30].mxu0 %vm396_vm1, %v2434_v16 }
 0x1c1   : > { %v5437_v32 = vpop.f32.mrb[0].mxu1 }
 0x1c2   : > { %v1674_v33 = vpop.f32.mrb[1].mxu1 }
 0x1c5   : > { %v5440_v34 = vpop.f32.mrb[2].mxu1 }
 0x1c6   : > { %v1684_v35 = vpop.f32.mrb[3].mxu1 }
 0x1c9   : > { %v5443_v36 = vpop.f32.mrb[4].mxu1 }
 0x1ca   : > { %v1694_v37 = vpop.f32.mrb[5].mxu1 }
 0x1cd   : > { %v7303_v38 = vpop.f32.mrb[6].mxu1 }
 0x1ce   : > { %v7305_v39 = vpop.f32.mrb[7].mxu1 }
 0x1d1   : > { %v7307_v43 = vpop.f32.mrb[8].mxu1 }
 0x1d2   : > { %v7309_v44 = vpop.f32.mrb[9].mxu1 }
 0x1d5   : > { %v7311_v46 = vpop.f32.mrb[10].mxu1 }
 0x1d6   : > { %v7313_v48 = vpop.f32.mrb[11].mxu1 }
 0x1d9   : > { %v7315_v49 = vpop.f32.mrb[12].mxu1 }
 0x1da   : > { %v7317_v50 = vpop.f32.mrb[13].mxu1 }
 0x1dd   : > { %v7319_v51 = vpop.f32.mrb[14].mxu1 }
 0x1de   : > { %v7321_v52 = vpop.f32.mrb[15].mxu1 }
 0x1e2   : > { %v5687_v21 = vpop.f32.mrb[0].mxu0 }
 0x1e3   : > { %v5735_v23 = vadd.f32 %v5687_v21, %v5437_v32  ;;  %v3135_v55 = vpop.f32.mrb[1].mxu0 }
 0x1e4   : > { %v5736_v54 = vadd.f32 %v3135_v55, %v1674_v33 }
 0x1e5   : > { %v3334_v45 = vadd.f32 %v5735_v23, %v7326_v40 }
 0x1e6   : > { %v3333_v2 = vadd.f32 %v5736_v54, %v7326_v40  ;;  %v5690_v20 = vpop.f32.mrb[2].mxu0 }
 0x1e7   : > { %v3398_v47 = vmul.f32 0.70710677, %v3334_v45  ;;  %v5737_v30 = vadd.f32 %v5690_v20, %v5440_v34  ;;  %v3145_v41 = vpop.f32.mrb[3].mxu0  ;;  %v7332_v53 = vmul.f32 0.5, %v3334_v45 }
 0x1e8   : > { %v3397_v3 = vmul.f32 0.70710677, %v3333_v2  ;;  %v5738_v5 = vadd.f32 %v3145_v41, %v1684_v35  ;;  %v7334_v58 = vmul.f32 0.5, %v3333_v2 }
 0x1e9   : > { %v3494_v56 = vand.u32 2147483647, %v3398_v47  ;;  %v3336_v6 = vadd.f32 %v5737_v30, %v7326_v40  ;;  %vm3430_vm4 = vcmp.ge.f32.partialorder %v3398_v47, 0.0 }
 0x1ea   : > { %v3493_v59 = vand.u32 2147483647, %v3397_v3  ;;  %v3335_v61 = vadd.f32 %v5738_v5, %v7326_v40  ;;  %v5693_v63 = vpop.f32.mrb[4].mxu0  ;;  %v7337_v8 = vsel %vm3430_vm4, 1.0, %v8431_v0  ;;  %vm3429_vm5 = vcmp.ge.f32.partialorder %v3397_v3, 0.0 }
 0x1eb   : > { %v3526_v7 = vmul.f32 0.3275911, %v3494_v56  ;;  %v4006_v9 = vsub.f32 0.0, %v3494_v56  ;;  %v3155_v11 = vpop.f32.mrb[5].mxu0  ;;  %v3400_v17 = vmul.f32 0.70710677, %v3336_v6  ;;  %v5739_v22 = vadd.f32 %v5693_v63, %v5443_v36 }
 0x1ec   : > { %v3525_v13 = vmul.f32 0.3275911, %v3493_v59  ;;  %v4005_v15 = vsub.f32 0.0, %v3493_v59  ;;  %v3399_v1 = vmul.f32 0.70710677, %v3335_v61  ;;  %v5740_v27 = vadd.f32 %v3155_v11, %v1694_v37 }
 0x1ed   : > { %v3558_v18 = vadd.f32 1.0, %v3526_v7  ;;  %v4038_v29 = vmul.f32 %v4006_v9, %v3494_v56  ;;  %v3496_v42 = vand.u32 2147483647, %v3400_v17  ;;  %v3338_v25 = vadd.f32 %v5739_v22, %v7326_v40 }
 0x1ee   : > { %v3557_v31 = vadd.f32 1.0, %v3525_v13  ;;  %v5696_v4 = vpop.f32.mrb[6].mxu0  ;;  %v4037_v60 = vmul.f32 %v4005_v15, %v3493_v59  ;;  %v3495_v19 = vand.u32 2147483647, %v3399_v1  ;;  %vm3432_vm6 = vcmp.ge.f32.partialorder %v3400_v17, 0.0 }
 0x1ef   : > { %6017 = vrcp.f32 %v3558_v18  ;;  %v3165_v57 = vpop.f32.mrb[7].mxu0  ;;  %v3528_v62 = vmul.f32 0.3275911, %v3496_v42  ;;  %v4008_v10 = vsub.f32 0.0, %v3496_v42  ;;  %v4071_v26 = vmul.f32 1.442695, %v4038_v29 }
 0x1f0   : > { %6019 = vrcp.f32 %v3557_v31  ;;  %vm3431_vm7 = vcmp.ge.f32.partialorder %v3399_v1, 0.0  ;;  %v3527_v14 = vmul.f32 0.3275911, %v3495_v19  ;;  %v3402_v16 = vmul.f32 0.70710677, %v3338_v25 }
 0x1f1   : > { %v3560_v24 = vadd.f32 1.0, %v3528_v62  ;;  %v4069_v28 = vmul.f32 1.442695, %v4037_v60  ;;  %v3337_v32 = vadd.f32 %v5740_v27, %v7326_v40  ;;  %v5741_v33 = vadd.f32 %v5696_v4, %v7303_v38 }
 0x1f2   : > { %v7340_v12 = vpop.f32.mrb[8].mxu0  ;;  %v4040_v35 = vmul.f32 %v4008_v10, %v3496_v42  ;;  %v7346_v36 = vadd.f32 1.0, %v3527_v14  ;;  %v4007_v21 = vsub.f32 0.0, %v3495_v19  ;;  %v3498_v23 = vand.u32 2147483647, %v3402_v16 }
 0x1f3   : > { %6021 = vrcp.f32 %v3560_v24  ;;  %v7344_v34 = vpop.f32.mrb[9].mxu0  ;;  %v7350_v37 = vsel %vm3429_vm5, 1.0, %v8431_v0  ;;  %v7352_v55 = vmul.f32 0.5, %v3336_v6  ;;  %v7354_v54 = vmul.f32 0.70710677, %v3337_v32 }
 0x1f4   : > { %6023 = vpow2.f32 %v4071_v26  ;;  %v7360_v38 = vsel %vm3432_vm6, 1.0, %v8431_v0  ;;  %v7362_v2 = vmul.f32 0.5, %v3335_v61  ;;  %v3530_v20 = vmul.f32 0.3275911, %v3498_v23 }
 0x1f5   : > { %6025 = vrcp.f32 %v7346_v36  ;;  %v7369_v30 = vsel %vm3431_vm7, 1.0, %v8431_v0  ;;  %v3497_v41 = vand.u32 2147483647, %v7354_v54  ;;  %v7373_v3 = vadd.f32 %v5741_v33, %v7326_v40 }
 0x1f6   : > { %v7356_v45 = vpop.f32.mrb[10].mxu0  ;;  %v5742_v5 = vadd.f32 %v3165_v57, %v7305_v39  ;;  %6027 = vpow2.f32 %v4069_v28  ;;  %v4075_v6 = vmul.f32 1.442695, %v4040_v35  ;;  %v4039_v59 = vmul.f32 %v4007_v21, %v3495_v19 }
 0x1f7   : > { %v7365_v47 = vpop.f32.mrb[11].mxu0  ;;  %v7376_v61 = vadd.f32 1.0, %v3530_v20  ;;  %vm3434_vm8 = vcmp.ge.f32.partialorder %v3402_v16, 0.0  ;;  %v4010_v9 = vsub.f32 0.0, %v3498_v23  ;;  %v3529_v11 = vmul.f32 0.3275911, %v3497_v41 }
 0x1f8   : > { %v7380_v17 = vmul.f32 0.5, %v3338_v25  ;;  %v7384_v39 = vmul.f32 0.70710677, %v7373_v3  ;;  %v4009_v42 = vsub.f32 0.0, %v3497_v41  ;;  %v4073_v10 = vmul.f32 1.442695, %v4039_v59 }
 0x1f9   : > { %v6018_v56 = vpop.eup %6017  ;;  %6029 = vrcp.f32 %v7376_v61  ;;  %v7388_v29 = vadd.f32 1.0, %v3529_v11  ;;  %v4042_v19 = vmul.f32 %v4010_v9, %v3498_v23  ;;  %v7409_v21 = vmul.f32 0.5, %v3337_v32 }
 0x1fa   : > { %v6020_v63 = vpop.eup %6019  ;;  %v3622_v7 = vmul.f32 %v6018_v56, %v3558_v18  ;;  %v7378_v13 = vpop.f32.mrb[12].mxu0  ;;  %v7391_v18 = vadd.f32 %v5742_v5, %v7326_v40  ;;  %6031 = vpow2.f32 %v4075_v6  ;;  %v3500_v57 = vand.u32 2147483647, %v7384_v39 }
 0x1fb   : > { %v3621_v15 = vmul.f32 %v6020_v63, %v3557_v31  ;;  %v7386_v1 = vpop.f32.mrb[13].mxu0  ;;  %v7394_v31 = vsel %vm3434_vm8, 1.0, %v8431_v0  ;;  %6033 = vrcp.f32 %v7388_v29  ;;  %v4041_v20 = vmul.f32 %v4009_v42, %v3497_v41 }
 0x1fc   : > { %v3654_v22 = vsub.f32 2.0, %v3622_v7  ;;  %v3532_v14 = vmul.f32 0.3275911, %v3500_v57  ;;  %v4012_v16 = vsub.f32 0.0, %v3500_v57  ;;  %v7412_v23 = vmul.f32 0.70710677, %v7391_v18 }
 0x1fd   : > { %v3653_v4 = vsub.f32 2.0, %v3621_v15  ;;  %v6022_v60 = vpop.eup %6021  ;;  %6035 = vpow2.f32 %v4073_v10  ;;  %v4077_v10 = vmul.f32 1.442695, %v4041_v20  ;;  %vm3433_vm10 = vcmp.ge.f32.partialorder %v7354_v54, 0.0 }
 0x1fe   : > { %v7397_v62 = vmul.f32 %v6018_v56, %v3654_v22  ;;  %v7400_v25 = vpop.f32.mrb[14].mxu0  ;;  %v3624_v27 = vmul.f32 %v6022_v60, %v3560_v24  ;;  %v7406_v33 = vpop.eup %6023  ;;  %v7415_v59 = vadd.f32 1.0, %v3532_v14  ;;  %v4044_v24 = vmul.f32 %v4012_v16, %v3500_v57 }
 0x1ff   : > { %v7402_v26 = vmul.f32 %v6020_v63, %v3653_v4  ;;  %v7404_v28 = vpop.f32.mrb[15].mxu0  ;;  %v6026_v5 = vpop.eup %6025  ;;  %v3499_v9 = vand.u32 2147483647, %v7412_v23  ;;  %v4079_v22 = vmul.f32 1.442695, %v4042_v19  ;;  %vm3436_vm11 = vcmp.ge.f32.partialorder %v7384_v39, 0.0 }
 0x200   : > { %8471 = vst [vmem:[#allocation3_spill] sm:$0xff] %v7404_v28  ;;  %v3718_v35 = vmul.f32 1.0614054, %v7397_v62  ;;  %v3656_v6 = vsub.f32 2.0, %v3624_v27  ;;  %v3623_v7 = vmul.f32 %v6026_v5, %v7346_v36  ;;  %v7421_v32 = vpop.eup %6027  ;;  %6037 = vrcp.f32 %v7415_v59 }
 0x201   : > { %v3717_v56 = vmul.f32 1.0614054, %v7402_v26  ;;  %v7419_v11 = vpop.f32.mrb[16].mxu1  ;;  %v3531_v27 = vmul.f32 0.3275911, %v3499_v9  ;;  %v4011_v19 = vsub.f32 0.0, %v3499_v9 }
 0x202   : > { %v3750_v63 = vadd.f32 -1.4531521, %v3718_v35  ;;  %8472 = vst [vmem:[#allocation4_spill] sm:$0xff] %v7419_v11  ;;  %v7423_v15 = vmul.f32 %v6022_v60, %v3656_v6  ;;  %v7426_v42 = vpop.f32.mrb[16].mxu0  ;;  %v7428_v4 = vpop.f32.mrb[17].mxu1  ;;  %v3655_v36 = vsub.f32 2.0, %v3623_v7 }
 0x203   : > { %v3749_v41 = vadd.f32 -1.4531521, %v3717_v56  ;;  %8473 = vst [vmem:[#allocation5_spill] sm:$0xff] %v7426_v42  ;;  %8474 = vst [vmem:[#allocation6_spill] sm:$0xff] %v7428_v4  ;;  %v7431_v14 = vpop.f32.mrb[17].mxu0  ;;  %v6030_v16 = vpop.eup %6029  ;;  %v7438_v4 = vadd.f32 1.0, %v3531_v27 }
 0x204   : > { %v3782_v57 = vmul.f32 %v3750_v63, %v7397_v62  ;;  %8475 = vst [vmem:[#allocation7_spill] sm:$0xff] %v7431_v14  ;;  %v3720_v60 = vmul.f32 1.0614054, %v7423_v15  ;;  %v4083_v56 = vmul.f32 1.442695, %v4044_v24  ;;  %v7435_v0 = vmul.f32 %v6026_v5, %v3655_v36  ;;  %v7444_v7 = vpop.eup %6031 }
 0x205   : > { %v3781_v35 = vmul.f32 %v3749_v41, %v7402_v26  ;;  %v3626_v42 = vmul.f32 %v6030_v16, %v7376_v61  ;;  %v7440_v63 = vpop.f32.mrb[18].mxu1  ;;  %v4043_v41 = vmul.f32 %v4011_v19, %v3499_v9  ;;  %v5743_v24 = vadd.f32 %v7340_v12, %v7307_v43 }
 0x206   : > { %v3814_v6 = vadd.f32 1.4214138, %v3782_v57  ;;  %8476 = vst [vmem:[#allocation8_spill] sm:$0xff] %v7440_v63  ;;  %v7442_v20 = vpop.f32.mrb[18].mxu0  ;;  %v3752_v11 = vadd.f32 -1.4531521, %v3720_v60  ;;  %v6034_v57 = vpop.eup %6033  ;;  %6039 = vrcp.f32 %v7438_v4 }
 0x207   : > { %8477 = vst [vmem:[#allocation9_spill] sm:$0xff] %v7442_v20  ;;  %v3813_v14 = vadd.f32 1.4214138, %v3781_v35  ;;  %v7448_v28 = vpop.f32.mrb[19].mxu1  ;;  %v7450_v5 = vpop.f32.mrb[19].mxu0  ;;  %v3658_v27 = vsub.f32 2.0, %v3626_v42  ;;  %6041 = vpow2.f32 %v4079_v22  ;;  %v3625_v9 = vmul.f32 %v6034_v57, %v7388_v29 }
 0x208   : > { %8478 = vst [vmem:[#allocation10_spill] sm:$0xff] %v7448_v28  ;;  %8479 = vst [vmem:[#allocation11_spill] sm:$0xff] %v7450_v5  ;;  %v3846_v61 = vmul.f32 %v3814_v6, %v7397_v62  ;;  %v3719_v36 = vmul.f32 1.0614054, %v7435_v0  ;;  %v3784_v35 = vmul.f32 %v3752_v11, %v7423_v15  ;;  %6043 = vpow2.f32 %v4077_v10 }
 0x209   : > { %v3845_v20 = vmul.f32 %v3813_v14, %v7402_v26  ;;  %v7458_v60 = vmul.f32 %v6030_v16, %v3658_v27  ;;  %v7460_v19 = vpop.f32.mrb[20].mxu1  ;;  %v3657_v28 = vsub.f32 2.0, %v3625_v9  ;;  %6045 = vpow2.f32 %v4083_v56  ;;  %v7466_v14 = vpop.eup %6035 }
 0x20a   : > { %v3878_v43 = vadd.f32 -0.28449672, %v3846_v61  ;;  %v3751_v12 = vadd.f32 -1.4531521, %v3719_v36  ;;  %v7462_v6 = vpop.f32.mrb[20].mxu0  ;;  %v7464_v63 = vpop.f32.mrb[21].mxu1  ;;  %v7480_v27 = vadd.f32 %v5743_v24, %v7326_v40 }
 0x20b   : > { %8480 = vst [vmem:[#allocation12_spill] sm:$0xff] %v7462_v6  ;;  %v3877_v5 = vadd.f32 -0.28449672, %v3845_v20  ;;  %v3816_v42 = vadd.f32 1.4214138, %v3784_v35  ;;  %8481 = vst [vmem:[#allocation13_spill] sm:$0xff] %v7464_v63  ;;  %v6038_v61 = vpop.eup %6037  ;;  %v7477_v56 = vmul.f32 %v6034_v57, %v3657_v28 }
 0x20c   : > { %v3910_v11 = vmul.f32 %v3878_v43, %v7397_v62  ;;  %v3783_v29 = vmul.f32 %v3751_v12, %v7435_v0  ;;  %v3722_v22 = vmul.f32 1.0614054, %v7458_v60  ;;  %v7471_v16 = vmul.f32 1.442695, %v4043_v41  ;;  %v7473_v10 = vpop.f32.mrb[21].mxu0 }
 0x20d   : > { %8482 = vst [vmem:[#allocation14_spill] sm:$0xff] %v7473_v10  ;;  %v3909_v20 = vmul.f32 %v3877_v5, %v7402_v26  ;;  %v3848_v36 = vmul.f32 %v3816_v42, %v7423_v15  ;;  %v3628_v12 = vmul.f32 %v6038_v61, %v7415_v59  ;;  %v3721_v6 = vmul.f32 1.0614054, %v7477_v56  ;;  %v7491_v42 = vpop.f32.mrb[22].mxu1 }
 0x20e   : > { %v3942_v35 = vadd.f32 0.2548296, %v3910_v11  ;;  %v3815_v9 = vadd.f32 1.4214138, %v3783_v29  ;;  %v3754_v43 = vadd.f32 -1.4531521, %v3722_v22  ;;  %v7486_v10 = vadd.f32 %v7344_v34, %v7309_v44 }
 0x20f   : > { %v3941_v63 = vadd.f32 0.2548296, %v3909_v20  ;;  %v3880_v41 = vadd.f32 -0.28449672, %v3848_v36  ;;  %v3660_v57 = vsub.f32 2.0, %v3628_v12  ;;  %8483 = vst [vmem:[#allocation15_spill] sm:$0xff] %v7491_v42  ;;  %6047 = vpow2.f32 %v7471_v16 }
 0x210   : > { %v3974_v5 = vmul.f32 %v3942_v35, %v7397_v62  ;;  %v3847_v28 = vmul.f32 %v3815_v9, %v7435_v0  ;;  %v3786_v24 = vmul.f32 %v3754_v43, %v7458_v60  ;;  %v7493_v11 = vpop.f32.mrb[22].mxu0  ;;  %v3753_v22 = vadd.f32 -1.4531521, %v3721_v6  ;;  %v7500_v34 = vpop.f32.mrb[23].mxu1 }
 0x211   : > { %8484 = vst [vmem:[#allocation16_spill] sm:$0xff] %v7493_v11  ;;  %v3973_v59 = vmul.f32 %v3941_v63, %v7402_v26  ;;  %v3912_v29 = vmul.f32 %v3880_v41, %v7423_v15  ;;  %v7498_v44 = vmul.f32 0.70710677, %v7480_v27  ;;  %8485 = vst [vmem:[#allocation17_spill] sm:$0xff] %v7500_v34  ;;  %v7502_v62 = vpop.f32.mrb[23].mxu0  ;;  %v6040_v20 = vpop.eup %6039  ;;  %v7505_v43 = vmul.f32 %v6038_v61, %v3660_v57 }
 0x212   : > { %8486 = vst [vmem:[#allocation18_spill] sm:$0xff] %v7502_v62  ;;  %v4134_v36 = vmul.f32 %v7406_v33, %v3974_v5  ;;  %v3879_v35 = vadd.f32 -0.28449672, %v3847_v28  ;;  %v3818_v9 = vadd.f32 1.4214138, %v3786_v24  ;;  %v6042_v12 = vpop.eup %6041  ;;  %v3785_v6 = vmul.f32 %v3753_v22, %v7477_v56 }
 0x213   : > { %v4133_v26 = vmul.f32 %v7421_v32, %v3973_v59  ;;  %v3944_v63 = vadd.f32 0.2548296, %v3912_v29  ;;  %v3627_v41 = vmul.f32 %v6040_v20, %v7438_v4  ;;  %v6044_v11 = vpop.eup %6043  ;;  %v3724_v33 = vmul.f32 1.0614054, %v7505_v43 }
 0x214   : > { %v4166_v42 = vsub.f32 1.0, %v4134_v36  ;;  %v3911_v34 = vmul.f32 %v3879_v35, %v7435_v0  ;;  %v3850_v62 = vmul.f32 %v3818_v9, %v7458_v60  ;;  %v7513_v5 = vpop.eup %6045  ;;  %v3817_v32 = vadd.f32 1.4214138, %v3785_v6 }
 0x215   : > { %v4165_v61 = vsub.f32 1.0, %v4133_v26  ;;  %v3976_v28 = vmul.f32 %v3944_v63, %v7423_v15  ;;  %v3659_v24 = vsub.f32 2.0, %v3627_v41  ;;  %v3756_v29 = vadd.f32 -1.4531521, %v3724_v33 }
 0x216   : > { %v4198_v57 = vmul.f32 %v4166_v42, %v7337_v8  ;;  %v3943_v59 = vadd.f32 0.2548296, %v3911_v34  ;;  %v3882_v4 = vadd.f32 -0.28449672, %v3850_v62  ;;  %v3849_v35 = vmul.f32 %v3817_v32, %v7477_v56  ;;  %v7539_v32 = vpop.f32.mrb[24].mxu1 }
 0x217   : > { %v4197_v22 = vmul.f32 %v4165_v61, %v7350_v37  ;;  %v4136_v36 = vmul.f32 %v7444_v7, %v3976_v28  ;;  %v7521_v9 = vmul.f32 %v6040_v20, %v3659_v24  ;;  %v3788_v8 = vmul.f32 %v3756_v29, %v7505_v43  ;;  %v7541_v24 = vpop.f32.mrb[24].mxu0 }
 0x218   : > { %v4230_v26 = vadd.f32 1.0, %v4198_v57  ;;  %v3975_v15 = vmul.f32 %v3943_v59, %v7435_v0  ;;  %v3914_v63 = vmul.f32 %v3882_v4, %v7458_v60  ;;  %v3881_v42 = vadd.f32 -0.28449672, %v3849_v35 }
 0x219   : > { %v4229_v37 = vadd.f32 1.0, %v4197_v22  ;;  %v4168_v7 = vsub.f32 1.0, %v4136_v36  ;;  %v3723_v34 = vmul.f32 1.0614054, %v7521_v9  ;;  %v3820_v6 = vadd.f32 1.4214138, %v3788_v8 }
 0x21a   : > { %v4262_v62 = vmul.f32 %v4230_v26, %v7332_v53  ;;  %v4135_v0 = vmul.f32 %v7466_v14, %v3975_v15  ;;  %v3946_v20 = vadd.f32 0.2548296, %v3914_v63  ;;  %v3913_v61 = vmul.f32 %v3881_v42, %v7477_v56 }
 0x21b   : > { %v4261_v41 = vmul.f32 %v4229_v37, %v7334_v58  ;;  %v4200_v33 = vmul.f32 %v4168_v7, %v7360_v38  ;;  %v3755_v28 = vadd.f32 -1.4531521, %v3723_v34  ;;  %v3852_v8 = vmul.f32 %v3820_v6, %v7505_v43 }
 0x21c   : > { %v4303_v57 = vsel %vm4301_vm9, %v4262_v62, 0.0  ;;  %v4376_v59 = vmul.f32 %v4262_v62, %v4262_v62  ;;  %4479 = vst.msk [vmem:[%s7531_s20 + $0x8] sm:$0xff] %vm4301_vm9, %v4262_v62  ;;  %v4167_v53 = vsub.f32 1.0, %v4135_v0  ;;  %v3978_v14 = vmul.f32 %v3946_v20, %v7458_v60 }
 0x21d   : > { %v4302_v4 = vsel %vm4301_vm9, %v4261_v41, 0.0  ;;  %v4375_v58 = vmul.f32 %v4261_v41, %v4261_v41  ;;  %4478 = vst.msk [vmem:[%s7531_s20] sm:$0xff] %vm4301_vm9, %v4261_v41  ;;  %v4232_v38 = vadd.f32 1.0, %v4200_v33  ;;  %v3945_v29 = vadd.f32 0.2548296, %v3913_v61 }
 0x21e   : > { %v4408_v22 = vsel %vm4301_vm9, %v4376_v59, 0.0  ;;  %v4304_v36 = vadd.f32 %v4303_v57, %v4302_v4  ;;  %v4199_v35 = vmul.f32 %v4167_v53, %v7369_v30  ;;  %v4138_v26 = vmul.f32 %v6042_v12, %v3978_v14 }
 0x21f   : > { %v4407_v15 = vsel %vm4301_vm9, %v4375_v58, 0.0  ;;  %v4264_v63 = vmul.f32 %v4232_v38, %v7352_v55  ;;  %v3977_v60 = vmul.f32 %v3945_v29, %v7477_v56  ;;  %v3787_v34 = vmul.f32 %v3755_v28, %v7521_v9 }
 0x220   : > { %v4409_v37 = vadd.f32 %v4408_v22, %v4407_v15  ;;  %v4231_v7 = vadd.f32 1.0, %v4199_v35  ;;  %v4170_v42 = vsub.f32 1.0, %v4138_v26  ;;  %v8487_v62 = vmov -1.0  }
 0x221   : > { %4481 = vst.msk [vmem:[%s7531_s20 + $0x18] sm:$0xff] %vm4301_vm9, %v4264_v63  ;;  %v3465_v30 = vsel %vm3433_vm10, 1.0, %v8487_v62  ;;  %v4137_v12 = vmul.f32 %v6044_v11, %v3977_v60  ;;  %v3884_v55 = vadd.f32 -0.28449672, %v3852_v8  ;;  %v3819_v20 = vadd.f32 1.4214138, %v3787_v34 }
 0x222   : > { %v4263_v56 = vmul.f32 %v4231_v7, %v7362_v2  ;;  %v4202_v0 = vmul.f32 %v4170_v42, %v7394_v31  ;;  %v4378_v6 = vmul.f32 %v4264_v63, %v4264_v63  ;;  %v3502_v61 = vand.u32 2147483647, %v7498_v44  ;;  %v7585_v7 = vpop.f32.mrb[25].mxu0 }
 0x223   : > { %v4169_v41 = vsub.f32 1.0, %v4137_v12  ;;  %v3916_v33 = vmul.f32 %v3884_v55, %v7505_v43  ;;  %v3851_v2 = vmul.f32 %v3819_v20, %v7521_v9  ;;  %v4307_v16 = vsel %vm4301_vm9, %v4264_v63, 0.0 }
 0x224   : > { %v4305_v54 = vsel %vm4301_vm9, %v4263_v56, 0.0  ;;  %v4377_v28 = vmul.f32 %v4263_v56, %v4263_v56  ;;  %4480 = vst.msk [vmem:[%s7531_s20 + $0x10] sm:$0xff] %vm4301_vm9, %v4263_v56  ;;  %v4234_v11 = vadd.f32 1.0, %v4202_v0  ;;  %v3534_v53 = vmul.f32 0.3275911, %v3502_v61 }
 0x225   : > { %v4306_v57 = vadd.f32 %v4305_v54, %v4304_v36  ;;  %v4201_v31 = vmul.f32 %v4169_v41, %v3465_v30  ;;  %v3948_v59 = vadd.f32 0.2548296, %v3916_v33  ;;  %v3883_v58 = vadd.f32 -0.28449672, %v3851_v2 }
 0x226   : > { %v4410_v14 = vsel %vm4301_vm9, %v4377_v28, 0.0  ;;  %v4266_v4 = vmul.f32 %v4234_v11, %v7380_v17  ;;  %v4412_v26 = vsel %vm4301_vm9, %v4378_v6, 0.0  ;;  %v3566_v15 = vadd.f32 1.0, %v3534_v53 }
 0x227   : > { %v4411_v38 = vadd.f32 %v4410_v14, %v4409_v37  ;;  %v4233_v29 = vadd.f32 1.0, %v4201_v31  ;;  %v4308_v22 = vadd.f32 %v4307_v16, %v4306_v57  ;;  %v3980_v35 = vmul.f32 %v3948_v59, %v7505_v43  ;;  %v7583_v37 = vpop.f32.mrb[25].mxu1 }
 0x228   : > { %4483 = vst.msk [vmem:[%s7531_s20 + $0x28] sm:$0xff] %vm4301_vm9, %v4266_v4  ;;  %v3915_v36 = vmul.f32 %v3883_v58, %v7521_v9  ;;  %v3372_v8 = vmul.f32 0.5, %v7373_v3  ;;  %v3468_v43 = vsel %vm3436_vm11, 1.0, %v8487_v62  ;;  %6049 = vrcp.f32 %v3566_v15 }
 0x229   : > { %v4265_v63 = vmul.f32 %v4233_v29, %v7409_v21  ;;  %v4413_v60 = vadd.f32 %v4412_v26, %v4411_v38  ;;  %v4140_v17 = vmul.f32 %v7513_v5, %v3980_v35  ;;  %v3341_v34 = vadd.f32 %v7486_v10, %v7326_v40  ;;  %v6048_v5 = vpop.eup %6047 }
 0x22a   : > { %v3947_v42 = vadd.f32 0.2548296, %v3915_v36  ;;  %v4380_v30 = vmul.f32 %v4266_v4, %v4266_v4  ;;  %v4014_v0 = vsub.f32 0.0, %v3502_v61  ;;  %v4311_v39 = vsel %vm4301_vm9, %v4266_v4, 0.0 }
 0x22b   : > { %v4309_v21 = vsel %vm4301_vm9, %v4265_v63, 0.0  ;;  %v4379_v12 = vmul.f32 %v4265_v63, %v4265_v63  ;;  %4482 = vst.msk [vmem:[%s7531_s20 + $0x20] sm:$0xff] %vm4301_vm9, %v4265_v63  ;;  %v4172_v3 = vsub.f32 1.0, %v4140_v17  ;;  %v7596_v20 = vmul.f32 0.70710677, %v3341_v34 }
 0x22c   : > { %v4310_v55 = vadd.f32 %v4309_v21, %v4308_v22  ;;  %v3979_v56 = vmul.f32 %v3947_v42, %v7521_v9  ;;  %v5745_v10 = vadd.f32 %v7356_v45, %v7311_v46  ;;  %vm3435_vm12 = vcmp.ge.f32.partialorder %v7412_v23, 0.0 }
 0x22d   : > { %v4414_v6 = vsel %vm4301_vm9, %v4379_v12, 0.0  ;;  %v4204_v41 = vmul.f32 %v4172_v3, %v3468_v43  ;;  %v4416_v11 = vsel %vm4301_vm9, %v4380_v30, 0.0  ;;  %v3501_v2 = vand.u32 2147483647, %v7596_v20 }
 0x22e   : > { %v4415_v33 = vadd.f32 %v4414_v6, %v4413_v60  ;;  %v4139_v54 = vmul.f32 %v6048_v5, %v3979_v56  ;;  %v4312_v28 = vadd.f32 %v4311_v39, %v4310_v55  ;;  %v7606_v57 = vadd.f32 %v5745_v10, %v7326_v40  ;;  %v7628_v60 = vpop.f32.mrb[26].mxu1 }
 0x22f   : > { %v4236_v9 = vadd.f32 1.0, %v4204_v41  ;;  %v5746_v53 = vadd.f32 %v7365_v47, %v7313_v48  ;;  %v5747_v46 = vadd.f32 %v7378_v13, %v7315_v49  ;;  %v3467_v23 = vsel %vm3435_vm12, 1.0, %v8487_v62 }
 0x230   : > { %v4171_v31 = vsub.f32 1.0, %v4139_v54  ;;  %v4417_v59 = vadd.f32 %v4416_v11, %v4415_v33  ;;  %v4046_v16 = vmul.f32 %v4014_v0, %v3502_v61  ;;  %v3533_v14 = vmul.f32 0.3275911, %v3501_v2  ;;  %v7652_v11 = vpop.f32.mrb[27].mxu1 }
 0x231   : > { %v4268_v45 = vmul.f32 %v4236_v9, %v3372_v8  ;;  %v7614_v58 = vmul.f32 0.70710677, %v7606_v57  ;;  %vm3438_vm13 = vcmp.ge.f32.partialorder %v7498_v44, 0.0  ;;  %v3343_v29 = vadd.f32 %v5746_v53, %v7326_v40  ;;  %v7630_v8 = vpop.f32.mrb[26].mxu0 }
 0x232   : > { %v4203_v4 = vmul.f32 %v4171_v31, %v3467_v23  ;;  %v3565_v38 = vadd.f32 1.0, %v3533_v14  ;;  %v6050_v48 = vpop.eup %6049  ;;  %v3371_v47 = vmul.f32 0.5, %v7391_v18  ;;  %v7623_v61 = vmul.f32 0.5, %v7480_v27  ;;  %v7654_v9 = vpop.f32.mrb[27].mxu0 }
 0x233   : > { %4485 = vst.msk [vmem:[%s7531_s20 + $0x38] sm:$0xff] %vm4301_vm9, %v4268_v45  ;;  %v3504_v13 = vand.u32 2147483647, %v7614_v58  ;;  %v3630_v22 = vmul.f32 %v6050_v48, %v3566_v15  ;;  %v4087_v35 = vmul.f32 1.442695, %v4046_v16  ;;  %v7626_v36 = vsel %vm3438_vm13, 1.0, %v8487_v62 }
 0x234   : > { %v4235_v49 = vadd.f32 1.0, %v4203_v4  ;;  %6051 = vrcp.f32 %v3565_v38  ;;  %v4013_v44 = vsub.f32 0.0, %v3501_v2  ;;  %v7632_v17 = vmul.f32 0.5, %v3341_v34 }
 0x235   : > { %v3536_v63 = vmul.f32 0.3275911, %v3504_v13  ;;  %v3662_v18 = vsub.f32 2.0, %v3630_v22  ;;  %v7634_v43 = vmul.f32 0.70710677, %v3343_v29  ;;  %v3346_v27 = vadd.f32 %v5747_v46, %v7326_v40 }
 0x236   : > { %v4267_v26 = vmul.f32 %v4235_v49, %v3371_v47  ;;  %v4382_v15 = vmul.f32 %v4268_v45, %v4268_v45  ;;  %vm3437_vm14 = vcmp.ge.f32.partialorder %v7596_v20, 0.0  ;;  %v4315_v34 = vsel %vm4301_vm9, %v4268_v45, 0.0 }
 0x237   : > { %v3568_v21 = vadd.f32 1.0, %v3536_v63  ;;  %v7640_v3 = vmul.f32 %v6050_v48, %v3662_v18  ;;  %v3503_v5 = vand.u32 2147483647, %v7634_v43  ;;  %v4045_v56 = vmul.f32 %v4013_v44, %v3501_v2 }
 0x238   : > { %v4313_v42 = vsel %vm4301_vm9, %v4267_v26, 0.0  ;;  %v4381_v30 = vmul.f32 %v4267_v26, %v4267_v26  ;;  %4484 = vst.msk [vmem:[%s7531_s20 + $0x30] sm:$0xff] %vm4301_vm9, %v4267_v26  ;;  %v4420_v10 = vsel %vm4301_vm9, %v4382_v15, 0.0  ;;  %v4016_v33 = vsub.f32 0.0, %v3504_v13 }
 0x239   : > { %v4314_v12 = vadd.f32 %v4313_v42, %v4312_v28  ;;  %6053 = vrcp.f32 %v3568_v21  ;;  %v3726_v39 = vmul.f32 1.0614054, %v7640_v3  ;;  %v3535_v41 = vmul.f32 0.3275911, %v3503_v5 }
 0x23a   : > { %v4418_v55 = vsel %vm4301_vm9, %v4381_v30, 0.0  ;;  %v3410_v54 = vmul.f32 0.70710677, %v3346_v27  ;;  %v5748_v28 = vadd.f32 %v7386_v1, %v7317_v50  ;;  %v5749_v53 = vadd.f32 %v7400_v25, %v7319_v51 }
 0x23b   : > { %v4419_v0 = vadd.f32 %v4418_v55, %v4417_v59  ;;  %v7647_v6 = vadd.f32 %v4315_v34, %v4314_v12  ;;  %v3758_v31 = vadd.f32 -1.4531521, %v3726_v39  ;;  %v3567_v59 = vadd.f32 1.0, %v3535_v41  ;;  %v7699_v12 = vpop.f32.mrb[28].mxu1 }
 0x23c   : > { %6055 = vpow2.f32 %v4087_v35  ;;  %vm3440_vm15 = vcmp.ge.f32.partialorder %v7614_v58, 0.0  ;;  %v3506_v46 = vand.u32 2147483647, %v3410_v54  ;;  %v7662_v45 = vadd.f32 %v5748_v28, %v7326_v40 }
 0x23d   : > { %v7656_v2 = vadd.f32 %v4420_v10, %v4419_v0  ;;  %v3790_v50 = vmul.f32 %v3758_v31, %v7640_v3  ;;  %v4085_v1 = vmul.f32 1.442695, %v4045_v56  ;;  %6057 = vrcp.f32 %v3567_v59  ;;  %v7705_v0 = vpop.f32.mrb[28].mxu0 }
 0x23e   : > { %v6052_v23 = vpop.eup %6051  ;;  %v7666_v16 = vadd.f32 %v5749_v53, %v7326_v40  ;;  %v7671_v14 = vsel %vm3437_vm14, 1.0, %v8487_v62  ;;  %v4048_v25 = vmul.f32 %v4016_v33, %v3504_v13  ;;  %v3538_v4 = vmul.f32 0.3275911, %v3506_v46 }
 0x23f   : > { %v3629_v51 = vmul.f32 %v6052_v23, %v3565_v38  ;;  %v3822_v48 = vadd.f32 1.4214138, %v3790_v50  ;;  %v7674_v47 = vmul.f32 0.5, %v7606_v57  ;;  %v7676_v49 = vmul.f32 0.5, %v3343_v29  ;;  %v7719_v50 = vpop.f32.mrb[29].mxu0 }
 0x240   : > { %v7679_v22 = vmul.f32 0.70710677, %v7662_v45  ;;  %v7684_v26 = vsel %vm3440_vm15, 1.0, %v8487_v62  ;;  %v4015_v20 = vsub.f32 0.0, %v3503_v5  ;;  %v3570_v44 = vadd.f32 1.0, %v3538_v4 }
 0x241   : > { %v3661_v35 = vsub.f32 2.0, %v3629_v51  ;;  %v3854_v38 = vmul.f32 %v3822_v48, %v7640_v3  ;;  %6059 = vpow2.f32 %v4085_v1  ;;  %v7691_v57 = vmul.f32 0.70710677, %v7666_v16 }
 0x242   : > { %v7688_v13 = vand.u32 2147483647, %v7679_v22  ;;  %v4091_v18 = vmul.f32 1.442695, %v4048_v25  ;;  %v7695_v15 = vmul.f32 0.5, %v3346_v27  ;;  %6061 = vrcp.f32 %v3570_v44 }
 0x243   : > { %v6054_v29 = vpop.eup %6053  ;;  %v7693_v63 = vmul.f32 %v6052_v23, %v3661_v35  ;;  %v3886_v58 = vadd.f32 -0.28449672, %v3854_v38  ;;  %vm3439_vm0 = vcmp.ge.f32.partialorder %v7634_v43, 0.0  ;;  %v4047_v55 = vmul.f32 %v4015_v20, %v3503_v5  ;;  %v7717_v23 = vpop.f32.mrb[29].mxu1  ;;  %v8488_v38 = vld [vmem:[#allocation3_spill] sm:$0xff] }
 0x244   : > { %v3632_v42 = vmul.f32 %v6054_v29, %v3568_v21  ;;  %v3537_v30 = vmul.f32 0.3275911, %v7688_v13  ;;  %vm3442_vm1 = vcmp.ge.f32.partialorder %v3410_v54, 0.0  ;;  %v7703_v56 = vand.u32 2147483647, %v7691_v57 }
 0x245   : > { %v3725_v34 = vmul.f32 1.0614054, %v7693_v63  ;;  %v3918_v27 = vmul.f32 %v3886_v58, %v7640_v3  ;;  %v4018_v41 = vsub.f32 0.0, %v3506_v46  ;;  %6063 = vpow2.f32 %v4091_v18 }
 0x246   : > { %v3664_v39 = vsub.f32 2.0, %v3632_v42  ;;  %v3569_v21 = vadd.f32 1.0, %v3537_v30  ;;  %v6056_v10 = vpop.eup %6055  ;;  %v7709_v33 = vsel %vm3439_vm0, 1.0, %v8487_v62  ;;  %v3540_v28 = vmul.f32 0.3275911, %v7703_v56 }
 0x247   : > { %v3757_v43 = vadd.f32 -1.4531521, %v3725_v34  ;;  %v6058_v5 = vpop.eup %6057  ;;  %v3950_v54 = vadd.f32 0.2548296, %v3918_v27  ;;  %v7715_v53 = vsel %vm3442_vm1, 1.0, %v8487_v62  ;;  %v4050_v20 = vmul.f32 %v4018_v41, %v3506_v46 }
 0x248   : > { %v7712_v31 = vmul.f32 %v6054_v29, %v3664_v39  ;;  %6065 = vrcp.f32 %v3569_v21  ;;  %v3631_v51 = vmul.f32 %v6058_v5, %v3567_v59  ;;  %v4089_v25 = vmul.f32 1.442695, %v4047_v55  ;;  %v8489_v55 = vld [vmem:[#allocation4_spill] sm:$0xff] }
 0x249   : > { %v3789_v1 = vmul.f32 %v3757_v43, %v7693_v63  ;;  %v7722_v4 = vadd.f32 1.0, %v3540_v28  ;;  %v3982_v48 = vmul.f32 %v3950_v54, %v7640_v3  ;;  %v5750_v29 = vadd.f32 %v8488_v38, %v7321_v52  ;;  %v8490_v3 = vld [vmem:[#allocation5_spill] sm:$0xff]  ;;  %v8491_v43 = vld [vmem:[#allocation6_spill] sm:$0xff]  ;;  %v8492_v28 = vld [vmem:[#allocation7_spill] sm:$0xff] }
 0x24a   : > { %v3728_v35 = vmul.f32 1.0614054, %v7712_v31  ;;  %v3663_v58 = vsub.f32 2.0, %v3631_v51  ;;  %vm3441_vm2 = vcmp.ge.f32.partialorder %v7679_v22, 0.0  ;;  %v5751_v27 = vadd.f32 %v8490_v3, %v8489_v55 }
 0x24b   : > { %v3821_v18 = vadd.f32 1.4214138, %v3789_v1  ;;  %6067 = vrcp.f32 %v7722_v4  ;;  %v6060_v42 = vpop.eup %6059  ;;  %v4142_v30 = vmul.f32 %v6056_v10, %v3982_v48  ;;  %v7731_v34 = vadd.f32 %v5750_v29, %v7326_v40 }
 0x24c   : > { %v3760_v59 = vadd.f32 -1.4531521, %v3728_v35  ;;  %v6062_v39 = vpop.eup %6061  ;;  %v7736_v41 = vmul.f32 %v6058_v5, %v3663_v58  ;;  %v4017_v52 = vsub.f32 0.0, %v7688_v13  ;;  %v7741_v54 = vadd.f32 %v8492_v28, %v8491_v43 }
 0x24d   : > { %v3853_v46 = vmul.f32 %v3821_v18, %v7693_v63  ;;  %v4174_v1 = vsub.f32 1.0, %v4142_v30  ;;  %v3634_v51 = vmul.f32 %v6062_v39, %v3570_v44  ;;  %v4095_v40 = vmul.f32 1.442695, %v4050_v20 }
 0x24e   : > { %v3792_v10 = vmul.f32 %v3760_v59, %v7712_v31  ;;  %v3727_v35 = vmul.f32 1.0614054, %v7736_v41  ;;  %6069 = vpow2.f32 %v4089_v25  ;;  %v7746_v38 = vmul.f32 0.70710677, %v7731_v34 }
 0x24f   : > { %v3885_v48 = vadd.f32 -0.28449672, %v3853_v46  ;;  %v4206_v5 = vmul.f32 %v4174_v1, %v7626_v36  ;;  %v3666_v18 = vsub.f32 2.0, %v3634_v51  ;;  %v7752_v58 = vsel %vm3441_vm2, 1.0, %v8487_v62  ;;  %v6064_v30 = vpop.eup %6063  ;;  %v7765_v51 = vpop.f32.mrb[30].mxu1 }
 0x250   : > { %v3824_v29 = vadd.f32 1.4214138, %v3792_v10  ;;  %v3759_v20 = vadd.f32 -1.4531521, %v3727_v35  ;;  %v4049_v59 = vmul.f32 %v4017_v52, %v7688_v13  ;;  %v7757_v25 = vand.u32 2147483647, %v7746_v38 }
 0x251   : > { %v3917_v44 = vmul.f32 %v3885_v48, %v7693_v63  ;;  %v4238_v3 = vadd.f32 1.0, %v4206_v5  ;;  %v7760_v46 = vmul.f32 %v6062_v39, %v3666_v18  ;;  %v4020_v43 = vsub.f32 0.0, %v7703_v56  ;;  %8493 = vst [vmem:[#allocation19_spill] sm:$0xff] %v7765_v51  ;;  %v7767_v13 = vpop.f32.mrb[30].mxu0  ;;  %v7771_v39 = vpop.f32.mrb[31].mxu1 }
 0x252   : > { %v6066_v55 = vpop.eup %6065  ;;  %v3856_v36 = vmul.f32 %v3824_v29, %v7712_v31  ;;  %v3791_v28 = vmul.f32 %v3759_v20, %v7736_v41  ;;  %v3539_v10 = vmul.f32 0.3275911, %v7757_v25  ;;  %8494 = vst [vmem:[#allocation20_spill] sm:$0xff] %v7767_v13  ;;  %6071 = vpow2.f32 %v4095_v40  ;;  %8495 = vst [vmem:[#allocation21_spill] sm:$0xff] %v7771_v39  ;;  %v7776_v20 = vpop.f32.mrb[31].mxu0 }
 0x253   : > { %v3949_v22 = vadd.f32 0.2548296, %v3917_v44  ;;  %v3633_v1 = vmul.f32 %v6066_v55, %v3569_v21  ;;  %v4270_v52 = vmul.f32 %v4238_v3, %v7623_v61  ;;  %v3730_v35 = vmul.f32 1.0614054, %v7760_v46  ;;  %8496 = vst [vmem:[#allocation3_spill] sm:$0xff] %v7776_v20 }
 0x254   : > { %v3888_v48 = vadd.f32 -0.28449672, %v3856_v36  ;;  %v3823_v18 = vadd.f32 1.4214138, %v3791_v28  ;;  %v7774_v21 = vadd.f32 1.0, %v3539_v10  ;;  %v4052_v36 = vmul.f32 %v4020_v43, %v7703_v56 }
 0x255   : > { %v6068_v5 = vpop.eup %6067  ;;  %v3981_v29 = vmul.f32 %v3949_v22, %v7693_v63  ;;  %v3665_v44 = vsub.f32 2.0, %v3633_v1  ;;  %4487 = vst.msk [vmem:[%s7531_s20 + $0x48] sm:$0xff] %vm4301_vm9, %v4270_v52  ;;  %v3762_v61 = vadd.f32 -1.4531521, %v3730_v35  ;;  %v4093_v3 = vmul.f32 1.442695, %v4049_v59 }
 0x256   : > { %v3920_v13 = vmul.f32 %v3888_v48, %v7712_v31  ;;  %v3855_v39 = vmul.f32 %v3823_v18, %v7736_v41  ;;  %v3636_v63 = vmul.f32 %v6068_v5, %v7722_v4  ;;  %6073 = vrcp.f32 %v7774_v21  ;;  %v7791_v1 = vld [vmem:[%s8390_s3] ss:$0 sm:$0xff] }
 0x257   : > { %v4141_v40 = vmul.f32 %v6060_v42, %v3981_v29  ;;  %v7783_v51 = vmul.f32 %v6066_v55, %v3665_v44  ;;  %v3794_v28 = vmul.f32 %v3762_v61, %v7760_v46  ;;  %v7794_v59 = vadd.f32 %v7791_v1, %v5751_v27 }
 0x258   : > { %v3952_v22 = vadd.f32 0.2548296, %v3920_v13  ;;  %v6070_v56 = vpop.eup %6069  ;;  %v3887_v43 = vadd.f32 -0.28449672, %v3855_v39  ;;  %v3668_v10 = vsub.f32 2.0, %v3636_v63  ;;  %6075 = vpow2.f32 %v4093_v3 }
 0x259   : > { %v4173_v42 = vsub.f32 1.0, %v4141_v40  ;;  %v3729_v55 = vmul.f32 1.0614054, %v7783_v51  ;;  %v3826_v13 = vadd.f32 1.4214138, %v3794_v28  ;;  %v4384_v27 = vmul.f32 %v4270_v52, %v4270_v52 }
 0x25a   : > { %v3984_v4 = vmul.f32 %v3952_v22, %v7712_v31  ;;  %v4099_v48 = vmul.f32 1.442695, %v4052_v36  ;;  %v3919_v29 = vmul.f32 %v3887_v43, %v7736_v41  ;;  %v7800_v44 = vmul.f32 %v6068_v5, %v3668_v10 }
 0x25b   : > { %v4205_v35 = vmul.f32 %v4173_v42, %v7671_v14  ;;  %v3761_v18 = vadd.f32 -1.4531521, %v3729_v55  ;;  %v3858_v40 = vmul.f32 %v3826_v13, %v7760_v46  ;;  %v7804_v39 = vmul.f32 0.70710677, %v7794_v59 }
 0x25c   : > { %v4144_v61 = vmul.f32 %v6064_v30, %v3984_v4  ;;  %v3951_v20 = vadd.f32 0.2548296, %v3919_v29  ;;  %v3732_v3 = vmul.f32 1.0614054, %v7800_v44  ;;  %v6072_v14 = vpop.eup %6071  ;;  %v4319_v36 = vsel %vm4301_vm9, %v4270_v52, 0.0 }
 0x25d   : > { %v4237_v63 = vadd.f32 1.0, %v4205_v35  ;;  %v3793_v31 = vmul.f32 %v3761_v18, %v7783_v51  ;;  %v3890_v5 = vadd.f32 -0.28449672, %v3858_v40  ;;  %v4019_v28 = vsub.f32 0.0, %v7757_v25 }
 0x25e   : > { %v4176_v22 = vsub.f32 1.0, %v4144_v61  ;;  %v3983_v42 = vmul.f32 %v3951_v20, %v7736_v41  ;;  %v3764_v55 = vadd.f32 -1.4531521, %v3732_v3  ;;  %v4424_v10 = vsel %vm4301_vm9, %v4384_v27, 0.0 }
 0x25f   : > { %v4269_v30 = vmul.f32 %v4237_v63, %v7632_v17  ;;  %v3825_v43 = vadd.f32 1.4214138, %v3793_v31  ;;  %v3922_v13 = vmul.f32 %v3890_v5, %v7760_v46  ;;  %v7816_v35 = vand.u32 2147483647, %v7804_v39 }
 0x260   : > { %v4208_v4 = vmul.f32 %v4176_v22, %v7684_v26  ;;  %v4143_v18 = vmul.f32 %v6070_v56, %v3983_v42  ;;  %v6074_v41 = vpop.eup %6073  ;;  %v3796_v26 = vmul.f32 %v3764_v55, %v7800_v44  ;;  %6077 = vpow2.f32 %v4099_v48 }
 0x261   : > { %v4317_v52 = vsel %vm4301_vm9, %v4269_v30, 0.0  ;;  %v4383_v29 = vmul.f32 %v4269_v30, %v4269_v30  ;;  %4486 = vst.msk [vmem:[%s7531_s20 + $0x40] sm:$0xff] %vm4301_vm9, %v4269_v30  ;;  %v3857_v17 = vmul.f32 %v3825_v43, %v7783_v51  ;;  %v3954_v27 = vadd.f32 0.2548296, %v3922_v13 }
 0x262   : > { %v4318_v20 = vadd.f32 %v4317_v52, %v7647_v6  ;;  %v4240_v61 = vadd.f32 1.0, %v4208_v4  ;;  %v4175_v63 = vsub.f32 1.0, %v4143_v18  ;;  %v3635_v3 = vmul.f32 %v6074_v41, %v7774_v21  ;;  %v6076_v22 = vpop.eup %6075 }
 0x263   : > { %v4422_v40 = vsel %vm4301_vm9, %v4383_v29, 0.0  ;;  %v3889_v31 = vadd.f32 -0.28449672, %v3857_v17  ;;  %v3986_v42 = vmul.f32 %v3954_v27, %v7760_v46  ;;  %v3828_v4 = vadd.f32 1.4214138, %v3796_v26 }
 0x264   : > { %v4423_v5 = vadd.f32 %v4422_v40, %v7656_v2  ;;  %v4272_v56 = vmul.f32 %v4240_v61, %v7674_v47  ;;  %v4320_v30 = vadd.f32 %v4319_v36, %v4318_v20  ;;  %v4207_v6 = vmul.f32 %v4175_v63, %v7709_v33 }
 0x265   : > { %v3921_v43 = vmul.f32 %v3889_v31, %v7783_v51  ;;  %v3667_v55 = vsub.f32 2.0, %v3635_v3  ;;  %v4146_v52 = vmul.f32 %v6072_v14, %v3986_v42  ;;  %v4051_v21 = vmul.f32 %v4019_v28, %v7757_v25 }
 0x266   : > { %4489 = vst.msk [vmem:[%s7531_s20 + $0x58] sm:$0xff] %vm4301_vm9, %v4272_v56  ;;  %v4425_v13 = vadd.f32 %v4424_v10, %v4423_v5  ;;  %v4239_v29 = vadd.f32 1.0, %v4207_v6  ;;  %v3860_v47 = vmul.f32 %v3828_v4, %v7800_v44  ;;  %vm3444_vm3 = vcmp.ge.f32.partialorder %v7691_v57, 0.0 }
 0x267   : > { %v3953_v2 = vadd.f32 0.2548296, %v3921_v43  ;;  %v7835_v36 = vmul.f32 %v6074_v41, %v3667_v55  ;;  %v4178_v46 = vsub.f32 1.0, %v4146_v52  ;;  %v3542_v33 = vmul.f32 0.3275911, %v7816_v35 }
 0x268   : > { %v7841_v18 = vadd.f32 %v7791_v1, %v7741_v54  ;;  %v4271_v48 = vmul.f32 %v4239_v29, %v7676_v49  ;;  %v3892_v14 = vadd.f32 -0.28449672, %v3860_v47  ;;  %v4386_v10 = vmul.f32 %v4272_v56, %v4272_v56 }
 0x269   : > { %v3985_v25 = vmul.f32 %v3953_v2, %v7783_v51  ;;  %v3731_v28 = vmul.f32 1.0614054, %v7835_v36  ;;  %v4210_v17 = vmul.f32 %v4178_v46, %v7715_v53  ;;  %v4097_v41 = vmul.f32 1.442695, %v4051_v21 }
 0x26a   : > { %v3574_v20 = vadd.f32 1.0, %v3542_v33  ;;  %v4321_v61 = vsel %vm4301_vm9, %v4271_v48, 0.0  ;;  %v4385_v27 = vmul.f32 %v4271_v48, %v4271_v48  ;;  %4488 = vst.msk [vmem:[%s7531_s20 + $0x50] sm:$0xff] %vm4301_vm9, %v4271_v48  ;;  %v3924_v54 = vmul.f32 %v3892_v14, %v7800_v44  ;;  %v8498_v33 = vld [vmem:[#allocation9_spill] sm:$0xff] }
 0x26b   : > { %v4145_v26 = vmul.f32 %v6076_v22, %v3985_v25  ;;  %v4322_v40 = vadd.f32 %v4321_v61, %v4320_v30  ;;  %v4242_v49 = vadd.f32 1.0, %v4210_v17  ;;  %v3763_v51 = vadd.f32 -1.4531521, %v3731_v28  ;;  %v8500_v61 = vld [vmem:[#allocation11_spill] sm:$0xff] }
 0x26c   : > { %6079 = vrcp.f32 %v3574_v20  ;;  %v4323_v63 = vsel %vm4301_vm9, %v4272_v56, 0.0  ;;  %v4426_v31 = vsel %vm4301_vm9, %v4385_v27, 0.0  ;;  %v3956_v3 = vadd.f32 0.2548296, %v3924_v54  ;;  %v6078_v56 = vpop.eup %6077  ;;  %v8501_v27 = vld [vmem:[#allocation12_spill] sm:$0xff] }
 0x26d   : > { %v4177_v53 = vsub.f32 1.0, %v4145_v26  ;;  %v4427_v5 = vadd.f32 %v4426_v31, %v4425_v13  ;;  %v4274_v42 = vmul.f32 %v4242_v49, %v7695_v15  ;;  %v4324_v6 = vadd.f32 %v4323_v63, %v4322_v40 }
 0x26e   : > { %v3795_v43 = vmul.f32 %v3763_v51, %v7835_v36  ;;  %v4428_v22 = vsel %vm4301_vm9, %v4386_v10, 0.0  ;;  %v3988_v4 = vmul.f32 %v3956_v3, %v7800_v44  ;;  %v7859_v55 = vmul.f32 0.70710677, %v7841_v18 }
 0x26f   : > { %v4209_v30 = vmul.f32 %v4177_v53, %v7752_v58  ;;  %4491 = vst.msk [vmem:[%s7531_s20 + $0x68] sm:$0xff] %vm4301_vm9, %v4274_v42  ;;  %v3377_v52 = vmul.f32 0.5, %v7662_v45  ;;  %v4429_v13 = vadd.f32 %v4428_v22, %v4427_v5  ;;  %v3380_v15 = vmul.f32 0.5, %v7666_v16  ;;  %v8497_v45 = vld [vmem:[#allocation8_spill] sm:$0xff] }
 0x270   : > { %v3827_v21 = vadd.f32 1.4214138, %v3795_v43  ;;  %v4148_v2 = vmul.f32 %v6078_v56, %v3988_v4  ;;  %6081 = vpow2.f32 %v4097_v41  ;;  %v7866_v58 = vand.u32 2147483647, %v7859_v55  ;;  %v8499_v41 = vld [vmem:[#allocation10_spill] sm:$0xff] }
 0x271   : > { %v4241_v29 = vadd.f32 1.0, %v4209_v30  ;;  %v3476_v44 = vsel %vm3444_vm3, 1.0, %v8487_v62  ;;  %v4022_v46 = vsub.f32 0.0, %v7816_v35  ;;  %v5753_v48 = vadd.f32 %v8498_v33, %v8497_v45 }
 0x272   : > { %v3859_v47 = vmul.f32 %v3827_v21, %v7835_v36  ;;  %v4388_v16 = vmul.f32 %v4274_v42, %v4274_v42  ;;  %v4180_v14 = vsub.f32 1.0, %v4148_v2  ;;  %v3541_v28 = vmul.f32 0.3275911, %v7866_v58 }
 0x273   : > { %v4273_v25 = vmul.f32 %v4241_v29, %v3377_v52  ;;  %v7877_v17 = vadd.f32 %v7791_v1, %v5753_v48  ;;  %v5754_v57 = vadd.f32 %v8500_v61, %v8499_v41  ;;  %v5755_v26 = vadd.f32 %v8501_v27, %v7460_v19  ;;  %v8503_v41 = vld [vmem:[#allocation14_spill] sm:$0xff] }
 0x274   : > { %v3891_v10 = vadd.f32 -0.28449672, %v3859_v47  ;;  %v4212_v49 = vmul.f32 %v4180_v14, %v3476_v44  ;;  %v3573_v51 = vadd.f32 1.0, %v3541_v28  ;;  %v4327_v31 = vsel %vm4301_vm9, %v4274_v42, 0.0 }
 0x275   : > { %v4325_v54 = vsel %vm4301_vm9, %v4273_v25, 0.0  ;;  %v4387_v40 = vmul.f32 %v4273_v25, %v4273_v25  ;;  %4490 = vst.msk [vmem:[%s7531_s20 + $0x60] sm:$0xff] %vm4301_vm9, %v4273_v25  ;;  %v4054_v5 = vmul.f32 %v4022_v46, %v7816_v35  ;;  %v4432_v30 = vsel %vm4301_vm9, %v4388_v16, 0.0 }
 0x276   : > { %v6080_v63 = vpop.eup %6079  ;;  %v4326_v53 = vadd.f32 %v4325_v54, %v4324_v6  ;;  %v3923_v3 = vmul.f32 %v3891_v10, %v7835_v36  ;;  %v4244_v22 = vadd.f32 1.0, %v4212_v49  ;;  %6083 = vrcp.f32 %v3573_v51  ;;  %v8502_v10 = vld [vmem:[#allocation13_spill] sm:$0xff] }
 0x277   : > { %v4430_v43 = vsel %vm4301_vm9, %v4387_v40, 0.0  ;;  %v3638_v19 = vmul.f32 %v6080_v63, %v3574_v20  ;;  %v7892_v42 = vmul.f32 0.70710677, %v7877_v17  ;;  %v7895_v6 = vadd.f32 %v7791_v1, %v5754_v57 }
 0x278   : > { %v4431_v4 = vadd.f32 %v4430_v43, %v4429_v13  ;;  %v3955_v56 = vadd.f32 0.2548296, %v3923_v3  ;;  %v4328_v52 = vadd.f32 %v4327_v31, %v4326_v53  ;;  %v4276_v21 = vmul.f32 %v4244_v22, %v3380_v15 }
 0x279   : > { %v3670_v29 = vsub.f32 2.0, %v3638_v19  ;;  %vm3443_vm4 = vcmp.ge.f32.partialorder %v7746_v38, 0.0  ;;  %vm3446_vm5 = vcmp.ge.f32.partialorder %v7804_v39, 0.0  ;;  %v4103_v15 = vmul.f32 1.442695, %v4054_v5 }
 0x27a   : > { %v3987_v35 = vmul.f32 %v3955_v56, %v7835_v36  ;;  %v4433_v2 = vadd.f32 %v4432_v30, %v4431_v4  ;;  %v6082_v44 = vpop.eup %6081  ;;  %4493 = vst.msk [vmem:[%s7531_s20 + $0x78] sm:$0xff] %vm4301_vm9, %v4276_v21  ;;  %v7905_v47 = vand.u32 2147483647, %v7892_v42  ;;  %v7908_v46 = vadd.f32 %v7791_v1, %v5755_v26 }
 0x27b   : > { %v7902_v20 = vmul.f32 %v6080_v63, %v3670_v29  ;;  %v3379_v36 = vmul.f32 0.5, %v7731_v34  ;;  %v4021_v33 = vsub.f32 0.0, %v7866_v58  ;;  %v7914_v38 = vmul.f32 0.70710677, %v7895_v6 }
 0x27c   : > { %v4147_v13 = vmul.f32 %v6082_v44, %v3987_v35  ;;  %v3475_v39 = vsel %vm3443_vm4, 1.0, %v8487_v62  ;;  %v7918_v16 = vmul.f32 0.5, %v7794_v59  ;;  %v3544_v25 = vmul.f32 0.3275911, %v7905_v47 }
 0x27d   : > { %v3734_v45 = vmul.f32 1.0614054, %v7902_v20  ;;  %v7922_v14 = vsel %vm3446_vm5, 1.0, %v8487_v62  ;;  %v7925_v34 = vand.u32 2147483647, %v7914_v38  ;;  %v5756_v61 = vadd.f32 %v8503_v41, %v8502_v10 }
 0x27e   : > { %v4179_v48 = vsub.f32 1.0, %v4147_v13  ;;  %vm3445_vm6 = vcmp.ge.f32.partialorder %v7859_v55, 0.0  ;;  %v3576_v27 = vadd.f32 1.0, %v3544_v25  ;;  %v7931_v26 = vmul.f32 0.70710677, %v7908_v46 }
 0x27f   : > { %v3766_v28 = vadd.f32 -1.4531521, %v3734_v45  ;;  %6085 = vpow2.f32 %v4103_v15  ;;  %v4053_v40 = vmul.f32 %v4021_v33, %v7866_v58  ;;  %v3543_v49 = vmul.f32 0.3275911, %v7925_v34 }
 0x280   : > { %v4211_v57 = vmul.f32 %v4179_v48, %v3475_v39  ;;  %v6084_v59 = vpop.eup %6083  ;;  %v7937_v31 = vmul.f32 0.5, %v7841_v18  ;;  %6087 = vrcp.f32 %v3576_v27  ;;  %v7940_v3 = vsel %vm3445_vm6, 1.0, %v8487_v62 }
 0x281   : > { %v3798_v54 = vmul.f32 %v3766_v28, %v7902_v20  ;;  %v3637_v53 = vmul.f32 %v6084_v59, %v3573_v51  ;;  %v7943_v5 = vmul.f32 0.5, %v7877_v17  ;;  %v3575_v43 = vadd.f32 1.0, %v3543_v49  ;;  %v8506_v49 = vld [vmem:[#allocation17_spill] sm:$0xff] }
 0x282   : > { %v4243_v63 = vadd.f32 1.0, %v4211_v57  ;;  %v4390_v22 = vmul.f32 %v4276_v21, %v4276_v21  ;;  %v3514_v30 = vand.u32 2147483647, %v7931_v26  ;;  %v4101_v18 = vmul.f32 1.442695, %v4053_v40 }
 0x283   : > { %v3830_v55 = vadd.f32 1.4214138, %v3798_v54  ;;  %v3669_v58 = vsub.f32 2.0, %v3637_v53  ;;  %6089 = vrcp.f32 %v3575_v43  ;;  %v7948_v51 = vadd.f32 %v7791_v1, %v5756_v61  ;;  %v8505_v61 = vld [vmem:[#allocation16_spill] sm:$0xff] }
 0x284   : > { %v4275_v19 = vmul.f32 %v4243_v63, %v3379_v36  ;;  %v3546_v35 = vmul.f32 0.3275911, %v3514_v30  ;;  %v4331_v44 = vsel %vm4301_vm9, %v4276_v21, 0.0  ;;  %vm3448_vm7 = vcmp.ge.f32.partialorder %v7892_v42, 0.0  ;;  %v8504_v21 = vld [vmem:[#allocation15_spill] sm:$0xff]  ;;  %v8507_v63 = vld [vmem:[#allocation18_spill] sm:$0xff] }
 0x285   : > { %v3862_v4 = vmul.f32 %v3830_v55, %v7902_v20  ;;  %v7953_v17 = vmul.f32 %v6084_v59, %v3669_v58  ;;  %v4436_v36 = vsel %vm4301_vm9, %v4390_v22, 0.0  ;;  %v4024_v10 = vsub.f32 0.0, %v7905_v47 }
 0x286   : > { %v4329_v56 = vsel %vm4301_vm9, %v4275_v19, 0.0  ;;  %v4389_v29 = vmul.f32 %v4275_v19, %v4275_v19  ;;  %4492 = vst.msk [vmem:[%s7531_s20 + $0x70] sm:$0xff] %vm4301_vm9, %v4275_v19  ;;  %v3578_v39 = vadd.f32 1.0, %v3546_v35  ;;  %v5757_v57 = vadd.f32 %v8505_v61, %v8504_v21 }
 0x287   : > { %v4330_v13 = vadd.f32 %v4329_v56, %v4328_v52  ;;  %v3894_v15 = vadd.f32 -0.28449672, %v3862_v4  ;;  %v3733_v33 = vmul.f32 1.0614054, %v7953_v17  ;;  %v7965_v52 = vmul.f32 0.70710677, %v7948_v51 }
 0x288   : > { %v4434_v45 = vsel %vm4301_vm9, %v4389_v29, 0.0  ;;  %6091 = vrcp.f32 %v3578_v39  ;;  %v5758_v53 = vadd.f32 %v8507_v63, %v8506_v49  ;;  %v4026_v19 = vsub.f32 0.0, %v3514_v30 }
 0x289   : > { %v4435_v48 = vadd.f32 %v4434_v45, %v4433_v2  ;;  %v3926_v25 = vmul.f32 %v3894_v15, %v7902_v20  ;;  %v7961_v28 = vadd.f32 %v4331_v44, %v4330_v13  ;;  %v3765_v41 = vadd.f32 -1.4531521, %v3733_v33  ;;  %v6086_v59 = vpop.eup %6085 }
 0x28a   : > { %v4023_v2 = vsub.f32 0.0, %v7925_v34  ;;  %v6088_v55 = vpop.eup %6087  ;;  %v3513_v58 = vand.u32 2147483647, %v7965_v52  ;;  %v7977_v4 = vadd.f32 %v7791_v1, %v5757_v57  ;;  %6093 = vpow2.f32 %v4101_v18 }
 0x28b   : > { %v3958_v54 = vadd.f32 0.2548296, %v3926_v25  ;;  %v7969_v40 = vadd.f32 %v4436_v36, %v4435_v48  ;;  %v3797_v22 = vmul.f32 %v3765_v41, %v7953_v17  ;;  %v7983_v29 = vsel %vm3448_vm7, 1.0, %v8487_v62 }
 0x28c   : > { %v3640_v35 = vmul.f32 %v6088_v55, %v3576_v27  ;;  %v4056_v13 = vmul.f32 %v4024_v10, %v7905_v47  ;;  %v7987_v15 = vmul.f32 0.5, %v7895_v6  ;;  %v3545_v36 = vmul.f32 0.3275911, %v3513_v58 }
 0x28d   : > { %v3990_v56 = vmul.f32 %v3958_v54, %v7902_v20  ;;  %v3829_v44 = vadd.f32 1.4214138, %v3797_v22  ;;  %v6090_v45 = vpop.eup %6089  ;;  %v4055_v25 = vmul.f32 %v4023_v2, %v7925_v34  ;;  %v7991_v20 = vmul.f32 0.70710677, %v7977_v4 }
 0x28e   : > { %v3672_v48 = vsub.f32 2.0, %v3640_v35  ;;  %v3639_v18 = vmul.f32 %v6090_v45, %v3575_v43  ;;  %v4058_v41 = vmul.f32 %v4026_v19, %v3514_v30  ;;  %v3577_v27 = vadd.f32 1.0, %v3545_v36 }
 0x28f   : > { %v4150_v33 = vmul.f32 %v6086_v59, %v3990_v56  ;;  %v3861_v42 = vmul.f32 %v3829_v44, %v7953_v17  ;;  %v7997_v6 = vmul.f32 0.5, %v7908_v46  ;;  %v3516_v47 = vand.u32 2147483647, %v7991_v20 }
 0x290   : > { %v7994_v61 = vmul.f32 %v6088_v55, %v3672_v48  ;;  %v4107_v57 = vmul.f32 1.442695, %v4056_v13  ;;  %v3671_v59 = vsub.f32 2.0, %v3639_v18  ;;  %6095 = vrcp.f32 %v3577_v27 }
 0x291   : > { %v4182_v21 = vsub.f32 1.0, %v4150_v33  ;;  %v3893_v10 = vadd.f32 -0.28449672, %v3861_v42  ;;  %v4105_v2 = vmul.f32 1.442695, %v4055_v25  ;;  %v8006_v46 = vadd.f32 %v7791_v1, %v5758_v53 }
 0x292   : > { %v3736_v54 = vmul.f32 1.0614054, %v7994_v61  ;;  %v3548_v43 = vmul.f32 0.3275911, %v3516_v47  ;;  %v6092_v30 = vpop.eup %6091  ;;  %v8003_v63 = vmul.f32 %v6090_v45, %v3671_v59  ;;  %v4111_v55 = vmul.f32 1.442695, %v4058_v41 }
 0x293   : > { %v4214_v34 = vmul.f32 %v4182_v21, %v7922_v14  ;;  %v3925_v49 = vmul.f32 %v3893_v10, %v7953_v17  ;;  %v3642_v56 = vmul.f32 %v6092_v30, %v3578_v39  ;;  %vm3447_vm8 = vcmp.ge.f32.partialorder %v7914_v38, 0.0 }
 0x294   : > { %v3768_v19 = vadd.f32 -1.4531521, %v3736_v54  ;;  %v3580_v35 = vadd.f32 1.0, %v3548_v43  ;;  %v3735_v14 = vmul.f32 1.0614054, %v8003_v63  ;;  %v4025_v13 = vsub.f32 0.0, %v3513_v58  ;;  %v6094_v36 = vpop.eup %6093 }
 0x295   : > { %v4246_v22 = vadd.f32 1.0, %v4214_v34  ;;  %v3957_v44 = vadd.f32 0.2548296, %v3925_v49  ;;  %v3674_v48 = vsub.f32 2.0, %v3642_v56  ;;  %v8014_v39 = vmul.f32 0.70710677, %v8006_v46 }
 0x296   : > { %v3800_v45 = vmul.f32 %v3768_v19, %v7994_v61  ;;  %6097 = vrcp.f32 %v3580_v35  ;;  %v3767_v25 = vadd.f32 -1.4531521, %v3735_v14  ;;  %v8019_v42 = vsel %vm3447_vm8, 1.0, %v8487_v62 }
 0x297   : > { %v4278_v33 = vmul.f32 %v4246_v22, %v7918_v16  ;;  %v3989_v53 = vmul.f32 %v3957_v44, %v7953_v17  ;;  %6099 = vpow2.f32 %v4107_v57  ;;  %v8021_v18 = vmul.f32 %v6092_v30, %v3674_v48 }
 0x298   : > { %v3832_v38 = vadd.f32 1.4214138, %v3800_v45  ;;  %6101 = vpow2.f32 %v4105_v2  ;;  %v3799_v41 = vmul.f32 %v3767_v25, %v8003_v63  ;;  %v4057_v21 = vmul.f32 %v4025_v13, %v3513_v58 }
 0x299   : > { %4495 = vst.msk [vmem:[%s7531_s20 + $0x88] sm:$0xff] %vm4301_vm9, %v4278_v33  ;;  %v4149_v16 = vmul.f32 %v6094_v36, %v3989_v53  ;;  %6103 = vpow2.f32 %v4111_v55  ;;  %v4392_v17 = vmul.f32 %v4278_v33, %v4278_v33  ;;  %v3738_v57 = vmul.f32 1.0614054, %v8021_v18 }
 0x29a   : > { %v3864_v10 = vmul.f32 %v3832_v38, %v7994_v61  ;;  %v4028_v59 = vsub.f32 0.0, %v3516_v47  ;;  %v6096_v34 = vpop.eup %6095  ;;  %v3831_v43 = vadd.f32 1.4214138, %v3799_v41  ;;  %v8027_v49 = vand.u32 2147483647, %v8014_v39 }
 0x29b   : > { %v4181_v54 = vsub.f32 1.0, %v4149_v16  ;;  %v5759_v2 = vadd.f32 %v7541_v24, %v7539_v32  ;;  %v3770_v22 = vadd.f32 -1.4531521, %v3738_v57  ;;  %v3641_v19 = vmul.f32 %v6096_v34, %v3577_v27 }
 0x29c   : > { %v3896_v30 = vadd.f32 -0.28449672, %v3864_v10  ;;  %v8033_v58 = vadd.f32 %v7585_v7, %v7583_v37  ;;  %v3863_v56 = vmul.f32 %v3831_v43, %v8003_v63  ;;  %v4109_v44 = vmul.f32 1.442695, %v4057_v21 }
 0x29d   : > { %v4213_v55 = vmul.f32 %v4181_v54, %v7940_v3  ;;  %v3547_v14 = vmul.f32 0.3275911, %v8027_v49  ;;  %v3802_v36 = vmul.f32 %v3770_v22, %v8021_v18  ;;  %v3673_v45 = vsub.f32 2.0, %v3641_v19 }
 0x29e   : > { %v3928_v13 = vmul.f32 %v3896_v30, %v7994_v61  ;;  %v4060_v32 = vmul.f32 %v4028_v59, %v3516_v47  ;;  %v4335_v24 = vsel %vm4301_vm9, %v4278_v33, 0.0  ;;  %v3895_v48 = vadd.f32 -0.28449672, %v3863_v56 }
 0x29f   : > { %v4245_v27 = vadd.f32 1.0, %v4213_v55  ;;  %v3579_v53 = vadd.f32 1.0, %v3547_v14  ;;  %v4440_v7 = vsel %vm4301_vm9, %v4392_v17, 0.0  ;;  %vm3450_vm10 = vcmp.ge.f32.partialorder %v7931_v26, 0.0 }
 0x2a0   : > { %v6098_v37 = vpop.eup %6097  ;;  %v3960_v3 = vadd.f32 0.2548296, %v3928_v13  ;;  %v3834_v25 = vadd.f32 1.4214138, %v3802_v36  ;;  %v8043_v38 = vmul.f32 %v6096_v34, %v3673_v45  ;;  %v3927_v47 = vmul.f32 %v3895_v48, %v8003_v63 }
 0x2a1   : > { %v6100_v16 = vpop.eup %6099  ;;  %v4277_v41 = vmul.f32 %v4245_v27, %v7937_v31  ;;  %v3644_v21 = vmul.f32 %v6098_v37, %v3580_v35  ;;  %6105 = vrcp.f32 %v3579_v53  ;;  %v8051_v59 = vadd.f32 %v7791_v1, %v5759_v2 }
 0x2a2   : > { %v6102_v33 = vpop.eup %6101  ;;  %v3992_v10 = vmul.f32 %v3960_v3, %v7994_v61  ;;  %v3866_v57 = vmul.f32 %v3834_v25, %v8021_v18  ;;  %v3737_v17 = vmul.f32 1.0614054, %v8043_v38  ;;  %v3959_v31 = vadd.f32 0.2548296, %v3927_v47 }
 0x2a3   : > { %v6104_v54 = vpop.eup %6103  ;;  %v4333_v34 = vsel %vm4301_vm9, %v4277_v41, 0.0  ;;  %v4391_v43 = vmul.f32 %v4277_v41, %v4277_v41  ;;  %4494 = vst.msk [vmem:[%s7531_s20 + $0x80] sm:$0xff] %vm4301_vm9, %v4277_v41  ;;  %v3676_v30 = vsub.f32 2.0, %v3644_v21  ;;  %v4027_v2 = vsub.f32 0.0, %v8027_v49 }
 0x2a4   : > { %v4334_v35 = vadd.f32 %v4333_v34, %v7961_v28  ;;  %v4152_v22 = vmul.f32 %v6100_v16, %v3992_v10  ;;  %v3898_v19 = vadd.f32 -0.28449672, %v3866_v57  ;;  %v3769_v61 = vadd.f32 -1.4531521, %v3737_v17 }
 0x2a5   : > { %v4438_v55 = vsel %vm4301_vm9, %v4391_v43, 0.0  ;;  %v3991_v56 = vmul.f32 %v3959_v31, %v8003_v63  ;;  %v8059_v14 = vmul.f32 %v6098_v37, %v3676_v30  ;;  %v8067_v25 = vmul.f32 0.70710677, %v8051_v59 }
 0x2a6   : > { %v4439_v13 = vadd.f32 %v4438_v55, %v7969_v40  ;;  %v4184_v36 = vsub.f32 1.0, %v4152_v22  ;;  %v4336_v45 = vadd.f32 %v4335_v24, %v4334_v35  ;;  %v3930_v27 = vmul.f32 %v3898_v19, %v8021_v18 }
 0x2a7   : > { %v4151_v48 = vmul.f32 %v6102_v33, %v3991_v56  ;;  %v3801_v28 = vmul.f32 %v3769_v61, %v8043_v38  ;;  %v3740_v3 = vmul.f32 1.0614054, %v8059_v14  ;;  %v4115_v41 = vmul.f32 1.442695, %v4060_v32 }
 0x2a8   : > { %v4216_v63 = vmul.f32 %v4184_v36, %v7983_v29  ;;  %v4441_v37 = vadd.f32 %v4440_v7, %v4439_v13  ;;  %v3962_v16 = vadd.f32 0.2548296, %v3930_v27  ;;  %6107 = vpow2.f32 %v4109_v44 }
 0x2a9   : > { %v4183_v47 = vsub.f32 1.0, %v4151_v48  ;;  %v3833_v21 = vadd.f32 1.4214138, %v3801_v28  ;;  %v3772_v40 = vadd.f32 -1.4531521, %v3740_v3  ;;  %v4059_v33 = vmul.f32 %v4027_v2, %v8027_v49 }
 0x2aa   : > { %v4248_v24 = vadd.f32 1.0, %v4216_v63  ;;  %v3994_v10 = vmul.f32 %v3962_v16, %v8021_v18  ;;  %v8073_v57 = vand.u32 2147483647, %v8067_v25  ;;  %v3482_v29 = vsel %vm3450_vm10, 1.0, %v8487_v62 }
 0x2ab   : > { %v6106_v17 = vpop.eup %6105  ;;  %v4215_v34 = vmul.f32 %v4183_v47, %v8019_v42  ;;  %v3865_v32 = vmul.f32 %v3833_v21, %v8043_v38  ;;  %v3804_v44 = vmul.f32 %v3772_v40, %v8059_v14  ;;  %vm3449_vm11 = vcmp.ge.f32.partialorder %v7965_v52, 0.0 }
 0x2ac   : > { %v4280_v7 = vmul.f32 %v4248_v24, %v7943_v5  ;;  %v4154_v18 = vmul.f32 %v6104_v54, %v3994_v10  ;;  %v3643_v43 = vmul.f32 %v6106_v17, %v3579_v53  ;;  %v3550_v49 = vmul.f32 0.3275911, %v8073_v57 }
 0x2ad   : > { %v4247_v31 = vadd.f32 1.0, %v4215_v34  ;;  %v3897_v30 = vadd.f32 -0.28449672, %v3865_v32  ;;  %v3836_v35 = vadd.f32 1.4214138, %v3804_v44  ;;  %6109 = vpow2.f32 %v4115_v41 }
 0x2ae   : > { %4497 = vst.msk [vmem:[%s7531_s20 + $0x98] sm:$0xff] %vm4301_vm9, %v4280_v7  ;;  %v4186_v26 = vsub.f32 1.0, %v4154_v18  ;;  %v3675_v42 = vsub.f32 2.0, %v3643_v43  ;;  %v4113_v22 = vmul.f32 1.442695, %v4059_v33  ;;  %v3582_v54 = vadd.f32 1.0, %v3550_v49 }
 0x2af   : > { %v4279_v19 = vmul.f32 %v4247_v31, %v7987_v15  ;;  %v3929_v5 = vmul.f32 %v3897_v30, %v8043_v38  ;;  %v3868_v53 = vmul.f32 %v3836_v35, %v8059_v14  ;;  %v4394_v61 = vmul.f32 %v4280_v7, %v4280_v7 }
 0x2b0   : > { %v4218_v55 = vmul.f32 %v4186_v26, %v3482_v29  ;;  %v8089_v56 = vmul.f32 %v6106_v17, %v3675_v42  ;;  %v8093_v2 = vadd.f32 %v7791_v1, %v8033_v58  ;;  %6111 = vrcp.f32 %v3582_v54 }
 0x2b1   : > { %v4337_v13 = vsel %vm4301_vm9, %v4279_v19, 0.0  ;;  %v4393_v36 = vmul.f32 %v4279_v19, %v4279_v19  ;;  %4496 = vst.msk [vmem:[%s7531_s20 + $0x90] sm:$0xff] %vm4301_vm9, %v4279_v19  ;;  %v3961_v27 = vadd.f32 0.2548296, %v3929_v5  ;;  %v3900_v15 = vadd.f32 -0.28449672, %v3868_v53 }
 0x2b2   : > { %v4338_v48 = vadd.f32 %v4337_v13, %v4336_v45  ;;  %v4250_v28 = vadd.f32 1.0, %v4218_v55  ;;  %v3739_v3 = vmul.f32 1.0614054, %v8089_v56  ;;  %v6108_v63 = vpop.eup %6107  ;;  %v4339_v16 = vsel %vm4301_vm9, %v4280_v7, 0.0 }
 0x2b3   : > { %v4442_v41 = vsel %vm4301_vm9, %v4393_v36, 0.0  ;;  %v3993_v58 = vmul.f32 %v3961_v27, %v8043_v38  ;;  %v3932_v47 = vmul.f32 %v3900_v15, %v8059_v14  ;;  %v4444_v45 = vsel %vm4301_vm9, %v4394_v61, 0.0 }
 0x2b4   : > { %v4443_v21 = vadd.f32 %v4442_v41, %v4441_v37  ;;  %v4282_v40 = vmul.f32 %v4250_v28, %v7997_v6  ;;  %v4340_v24 = vadd.f32 %v4339_v16, %v4338_v48  ;;  %v3771_v10 = vadd.f32 -1.4531521, %v3739_v3 }
 0x2b5   : > { %v4153_v33 = vmul.f32 %v6108_v63, %v3993_v58  ;;  %v3964_v17 = vadd.f32 0.2548296, %v3932_v47  ;;  %v8106_v34 = vmul.f32 0.70710677, %v8093_v2  ;;  %v3385_v38 = vmul.f32 0.5, %v7948_v51 }
 0x2b6   : > { %4499 = vst.msk [vmem:[%s7531_s20 + $0xa8] sm:$0xff] %vm4301_vm9, %v4282_v40  ;;  %v4445_v29 = vadd.f32 %v4444_v45, %v4443_v21  ;;  %v3803_v32 = vmul.f32 %v3771_v10, %v8089_v56  ;;  %v3481_v18 = vsel %vm3449_vm11, 1.0, %v8487_v62  ;;  %vm3452_vm12 = vcmp.ge.f32.partialorder %v7991_v20, 0.0 }
 0x2b7   : > { %v4185_v44 = vsub.f32 1.0, %v4153_v33  ;;  %v3996_v37 = vmul.f32 %v3964_v17, %v8059_v14  ;;  %v8114_v6 = vand.u32 2147483647, %v8106_v34  ;;  %v6110_v7 = vpop.eup %6109  ;;  %v5761_v49 = vadd.f32 %v7630_v8, %v7628_v60 }
 0x2b8   : > { %v3835_v43 = vadd.f32 1.4214138, %v3803_v32  ;;  %6113 = vpow2.f32 %v4113_v22  ;;  %v5762_v52 = vadd.f32 %v7654_v9, %v7652_v11  ;;  %v5763_v26 = vadd.f32 %v7705_v0, %v7699_v12 }
 0x2b9   : > { %v4217_v31 = vmul.f32 %v4185_v44, %v3481_v18  ;;  %v4156_v30 = vmul.f32 %v6110_v7, %v3996_v37  ;;  %v3549_v51 = vmul.f32 0.3275911, %v8114_v6  ;;  %v8125_v35 = vadd.f32 %v7791_v1, %v5761_v49 }
 0x2ba   : > { %v3867_v14 = vmul.f32 %v3835_v43, %v8089_v56  ;;  %v3388_v19 = vmul.f32 0.5, %v7977_v4  ;;  %v6112_v22 = vpop.eup %6111  ;;  %v3484_v5 = vsel %vm3452_vm12, 1.0, %v8487_v62  ;;  %vm3451_vm13 = vcmp.ge.f32.partialorder %v8014_v39, 0.0 }
 0x2bb   : > { %v4249_v42 = vadd.f32 1.0, %v4217_v31  ;;  %v4188_v60 = vsub.f32 1.0, %v4156_v30  ;;  %v3581_v8 = vadd.f32 1.0, %v3549_v51  ;;  %v8137_v61 = vmul.f32 0.70710677, %v8125_v35  ;;  %v8508_v30 = vld [vmem:[#allocation19_spill] sm:$0xff] }
 0x2bc   : > { %v3899_v53 = vadd.f32 -0.28449672, %v3867_v14  ;;  %v3646_v12 = vmul.f32 %v6112_v22, %v3582_v54  ;;  %v4396_v0 = vmul.f32 %v4282_v40, %v4282_v40  ;;  %v4030_v55 = vsub.f32 0.0, %v8073_v57  ;;  %v8509_v51 = vld [vmem:[#allocation20_spill] sm:$0xff] }
 0x2bd   : > { %v4281_v11 = vmul.f32 %v4249_v42, %v3385_v38  ;;  %v4220_v9 = vmul.f32 %v4188_v60, %v3484_v5  ;;  %6115 = vrcp.f32 %v3581_v8  ;;  %v8142_v13 = vand.u32 2147483647, %v8137_v61 }
 0x2be   : > { %v3931_v4 = vmul.f32 %v3899_v53, %v8089_v56  ;;  %v3678_v15 = vsub.f32 2.0, %v3646_v12  ;;  %v4343_v48 = vsel %vm4301_vm9, %v4282_v40, 0.0  ;;  %v8149_v3 = vadd.f32 %v7791_v1, %v5762_v52 }
 0x2bf   : > { %v4341_v20 = vsel %vm4301_vm9, %v4281_v11, 0.0  ;;  %v4395_v36 = vmul.f32 %v4281_v11, %v4281_v11  ;;  %4498 = vst.msk [vmem:[%s7531_s20 + $0xa0] sm:$0xff] %vm4301_vm9, %v4281_v11  ;;  %v4252_v27 = vadd.f32 1.0, %v4220_v9  ;;  %v3552_v58 = vmul.f32 0.3275911, %v8142_v13 }
 0x2c0   : > { %v4342_v54 = vadd.f32 %v4341_v20, %v4340_v24  ;;  %v3963_v28 = vadd.f32 0.2548296, %v3931_v4  ;;  %v8152_v41 = vmul.f32 %v6112_v22, %v3678_v15  ;;  %v4062_v45 = vmul.f32 %v4030_v55, %v8073_v57 }
 0x2c1   : > { %v4446_v63 = vsel %vm4301_vm9, %v4395_v36, 0.0  ;;  %v4284_v16 = vmul.f32 %v4252_v27, %v3388_v19  ;;  %v4448_v40 = vsel %vm4301_vm9, %v4396_v0, 0.0  ;;  %v3584_v17 = vadd.f32 1.0, %v3552_v58 }
 0x2c2   : > { %v4447_v47 = vadd.f32 %v4446_v63, %v4445_v29  ;;  %v3995_v21 = vmul.f32 %v3963_v28, %v8089_v56  ;;  %v4344_v10 = vadd.f32 %v4343_v48, %v4342_v54  ;;  %v6114_v33 = vpop.eup %6113  ;;  %v3742_v24 = vmul.f32 1.0614054, %v8152_v41 }
 0x2c3   : > { %4501 = vst.msk [vmem:[%s7531_s20 + $0xb8] sm:$0xff] %vm4301_vm9, %v4284_v16  ;;  %v3483_v44 = vsel %vm3451_vm13, 1.0, %v8487_v62  ;;  %6117 = vrcp.f32 %v3584_v17  ;;  %v8165_v56 = vmul.f32 0.70710677, %v8149_v3  ;;  %v4119_v37 = vmul.f32 1.442695, %v4062_v45 }
 0x2c4   : > { %v4155_v32 = vmul.f32 %v6114_v33, %v3995_v21  ;;  %v4449_v38 = vadd.f32 %v4448_v40, %v4447_v47  ;;  %v3774_v29 = vadd.f32 -1.4531521, %v3742_v24  ;;  %v8168_v7 = vadd.f32 %v7791_v1, %v5763_v26 }
 0x2c5   : > { %v5764_v18 = vadd.f32 %v7719_v50, %v7717_v23  ;;  %v4029_v31 = vsub.f32 0.0, %v8114_v6  ;;  %v8175_v39 = vand.u32 2147483647, %v8165_v56  ;;  %v5765_v14 = vadd.f32 %v8509_v51, %v8508_v30 }
 0x2c6   : > { %v4187_v57 = vsub.f32 1.0, %v4155_v32  ;;  %v3806_v49 = vmul.f32 %v3774_v29, %v8152_v41  ;;  %v3387_v19 = vmul.f32 0.5, %v8006_v46  ;;  %6119 = vpow2.f32 %v4119_v37 }
 0x2c7   : > { %v6116_v43 = vpop.eup %6115  ;;  %v3551_v60 = vmul.f32 0.3275911, %v8175_v39  ;;  %v8182_v50 = vmul.f32 0.70710677, %v8168_v7  ;;  %vm3454_vm14 = vcmp.ge.f32.partialorder %v8067_v25, 0.0  ;;  %v4061_v53 = vmul.f32 %v4029_v31, %v8114_v6 }
 0x2c8   : > { %v4219_v52 = vmul.f32 %v4187_v57, %v3483_v44  ;;  %v3645_v42 = vmul.f32 %v6116_v43, %v3581_v8  ;;  %v3838_v26 = vadd.f32 1.4214138, %v3806_v49  ;;  %v4032_v46 = vsub.f32 0.0, %v8142_v13 }
 0x2c9   : > { %v3583_v11 = vadd.f32 1.0, %v3551_v60  ;;  %v8191_v12 = vand.u32 2147483647, %v8182_v50  ;;  %v4347_v0 = vsel %vm4301_vm9, %v4284_v16, 0.0  ;;  %v4398_v4 = vmul.f32 %v4284_v16, %v4284_v16 }
 0x2ca   : > { %v4251_v22 = vadd.f32 1.0, %v4219_v52  ;;  %v3677_v23 = vsub.f32 2.0, %v3645_v42  ;;  %v3870_v5 = vmul.f32 %v3838_v26, %v8152_v41  ;;  %v8201_v28 = vadd.f32 %v7791_v1, %v5764_v18 }
 0x2cb   : > { %6121 = vrcp.f32 %v3583_v11  ;;  %v3554_v27 = vmul.f32 0.3275911, %v8191_v12  ;;  %v8204_v63 = vadd.f32 %v7791_v1, %v5765_v14  ;;  %v4117_v40 = vmul.f32 1.442695, %v4061_v53 }
 0x2cc   : > { %v4283_v8 = vmul.f32 %v4251_v22, %v3387_v19  ;;  %v8187_v9 = vmul.f32 %v6116_v43, %v3677_v23  ;;  %v3902_v55 = vadd.f32 -0.28449672, %v3870_v5  ;;  %v4064_v57 = vmul.f32 %v4032_v46, %v8142_v13  ;;  %v8511_v46 = vld [vmem:[#allocation3_spill] sm:$0xff] }
 0x2cd   : > { %v6118_v15 = vpop.eup %6117  ;;  %v3586_v21 = vadd.f32 1.0, %v3554_v27  ;;  %v8221_v43 = vmul.f32 0.70710677, %v8204_v63  ;;  %v3486_v13 = vsel %vm3454_vm14, 1.0, %v8487_v62  ;;  %v4031_v19 = vsub.f32 0.0, %v8175_v39 }
 0x2ce   : > { %v4345_v20 = vsel %vm4301_vm9, %v4283_v8, 0.0  ;;  %v4397_v36 = vmul.f32 %v4283_v8, %v4283_v8  ;;  %4500 = vst.msk [vmem:[%s7531_s20 + $0xb0] sm:$0xff] %vm4301_vm9, %v4283_v8  ;;  %v3741_v6 = vmul.f32 1.0614054, %v8187_v9  ;;  %v3934_v54 = vmul.f32 %v3902_v55, %v8152_v41  ;;  %v8510_v8 = vld [vmem:[#allocation21_spill] sm:$0xff] }
 0x2cf   : > { %v4346_v48 = vadd.f32 %v4345_v20, %v4344_v10  ;;  %v3648_v47 = vmul.f32 %v6118_v15, %v3584_v17  ;;  %v4452_v10 = vsel %vm4301_vm9, %v4398_v4, 0.0  ;;  %6123 = vrcp.f32 %v3586_v21 }
 0x2d0   : > { %v4450_v16 = vsel %vm4301_vm9, %v4397_v36, 0.0  ;;  %v3773_v58 = vadd.f32 -1.4531521, %v3741_v6  ;;  %v3966_v33 = vadd.f32 0.2548296, %v3934_v54  ;;  %6125 = vpow2.f32 %v4117_v40 }
 0x2d1   : > { %v4451_v45 = vadd.f32 %v4450_v16, %v4449_v38  ;;  %v8207_v24 = vadd.f32 %v4347_v0, %v4346_v48  ;;  %v3680_v44 = vsub.f32 2.0, %v3648_v47  ;;  %v8216_v17 = vmul.f32 0.70710677, %v8201_v28  ;;  %v6120_v38 = vpop.eup %6119 }
 0x2d2   : > { %v3805_v32 = vmul.f32 %v3773_v58, %v8187_v9  ;;  %v3998_v29 = vmul.f32 %v3966_v33, %v8152_v41  ;;  %v3390_v41 = vmul.f32 0.5, %v8051_v59  ;;  %v4123_v42 = vmul.f32 1.442695, %v4064_v57 }
 0x2d3   : > { %v8212_v1 = vadd.f32 %v4452_v10, %v4451_v45  ;;  %v8218_v18 = vmul.f32 %v6118_v15, %v3680_v44  ;;  %v8224_v31 = vand.u32 2147483647, %v8216_v17  ;;  %v8235_v59 = vand.u32 2147483647, %v8221_v43 }
 0x2d4   : > { %v3837_v37 = vadd.f32 1.4214138, %v3805_v32  ;;  %v4158_v49 = vmul.f32 %v6120_v38, %v3998_v29  ;;  %v4034_v25 = vsub.f32 0.0, %v8191_v12  ;;  %v5766_v0 = vadd.f32 %v8511_v46, %v8510_v8 }
 0x2d5   : > { %v3744_v51 = vmul.f32 1.0614054, %v8218_v18  ;;  %v6122_v14 = vpop.eup %6121  ;;  %v3553_v26 = vmul.f32 0.3275911, %v8224_v31  ;;  %v3556_v36 = vmul.f32 0.3275911, %v8235_v59  ;;  %v4063_v27 = vmul.f32 %v4031_v19, %v8175_v39 }
 0x2d6   : > { %v3869_v30 = vmul.f32 %v3837_v37, %v8187_v9  ;;  %v4190_v52 = vsub.f32 1.0, %v4158_v49  ;;  %v3647_v23 = vmul.f32 %v6122_v14, %v3583_v11  ;;  %v3389_v11 = vmul.f32 0.5, %v8093_v2 }
 0x2d7   : > { %v3776_v22 = vadd.f32 -1.4531521, %v3744_v51  ;;  %v3585_v53 = vadd.f32 1.0, %v3553_v26  ;;  %v3588_v58 = vadd.f32 1.0, %v3556_v36  ;;  %v4066_v33 = vmul.f32 %v4034_v25, %v8191_v12 }
 0x2d8   : > { %v3901_v60 = vadd.f32 -0.28449672, %v3869_v30  ;;  %v4222_v5 = vmul.f32 %v4190_v52, %v3486_v13  ;;  %v3679_v20 = vsub.f32 2.0, %v3647_v23  ;;  %vm3453_vm15 = vcmp.ge.f32.partialorder %v8106_v34, 0.0  ;;  %v6146_v34 = vld [vmem:[%s8390_s3] ss:$0 sm:$0xff] }
 0x2d9   : > { %v3808_v55 = vmul.f32 %v3776_v22, %v8218_v18  ;;  %6127 = vrcp.f32 %v3585_v53  ;;  %v6124_v15 = vpop.eup %6123  ;;  %vm3456_vm0 = vcmp.ge.f32.partialorder %v8137_v61, 0.0  ;;  %v4121_v32 = vmul.f32 1.442695, %v4063_v27 }
 0x2da   : > { %v3933_v4 = vmul.f32 %v3901_v60, %v8187_v9  ;;  %v4254_v6 = vadd.f32 1.0, %v4222_v5  ;;  %v8245_v16 = vmul.f32 %v6122_v14, %v3679_v20  ;;  %6129 = vpow2.f32 %v4123_v42  ;;  %v6126_v10 = vpop.eup %6125 }
 0x2db   : > { %v3840_v54 = vadd.f32 1.4214138, %v3808_v55  ;;  %v3650_v45 = vmul.f32 %v6124_v15, %v3586_v21  ;;  %6131 = vrcp.f32 %v3588_v58  ;;  %v8270_v29 = vadd.f32 %v6146_v34, %v5766_v0 }
 0x2dc   : > { %v3965_v48 = vadd.f32 0.2548296, %v3933_v4  ;;  %v4286_v47 = vmul.f32 %v4254_v6, %v3390_v41  ;;  %v3743_v39 = vmul.f32 1.0614054, %v8245_v16  ;;  %v4127_v38 = vmul.f32 1.442695, %v4066_v33 }
 0x2dd   : > { %v3872_v2 = vmul.f32 %v3840_v54, %v8218_v18  ;;  %v3682_v44 = vsub.f32 2.0, %v3650_v45  ;;  %v4033_v37 = vsub.f32 0.0, %v8224_v31  ;;  %vm4297_vm1 = vcmask 57344  }
 0x2de   : > { %v3997_v40 = vmul.f32 %v3965_v48, %v8187_v9  ;;  %4503 = vst.msk [vmem:[%s7531_s20 + $0xc8] sm:$0xff] %vm4301_vm9, %v4286_v47  ;;  %v3775_v21 = vadd.f32 -1.4531521, %v3743_v39  ;;  %v3485_v49 = vsel %vm3453_vm15, 1.0, %v8487_v62  ;;  %v8512_v51 = vmov 0.0  }
 0x2df   : > { %v3904_v12 = vadd.f32 -0.28449672, %v3872_v2  ;;  %v8272_v57 = vmul.f32 %v6124_v15, %v3682_v44  ;;  %4298 = vst.msk [vmem:[%s8259_s24] sm:$0x1] %vm4297_vm1, %v8512_v51  ;;  %4299 = vst.msk [vmem:[%s8265_s30] sm:$0x1] %vm4297_vm1, %v8512_v51  ;;  %6133 = vpow2.f32 %v4121_v32  ;;  %v4065_v25 = vmul.f32 %v4033_v37, %v8224_v31 }
 0x2e0   : > { %v4157_v9 = vmul.f32 %v6126_v10, %v3997_v40  ;;  %v3807_v30 = vmul.f32 %v3775_v21, %v8245_v16  ;;  %v3392_v14 = vmul.f32 0.5, %v8125_v35  ;;  %v3488_v52 = vsel %vm3456_vm0, 1.0, %v8487_v62 }
 0x2e1   : > { %v3936_v13 = vmul.f32 %v3904_v12, %v8218_v18  ;;  %v3746_v42 = vmul.f32 1.0614054, %v8272_v57  ;;  %v8290_v19 = vmul.f32 0.70710677, %v8270_v29  ;;  %6135 = vpow2.f32 %v4127_v38 }
 0x2e2   : > { %v4189_v41 = vsub.f32 1.0, %v4157_v9  ;;  %v3839_v22 = vadd.f32 1.4214138, %v3807_v30  ;;  %v4351_v55 = vsel %vm4301_vm9, %v4286_v47, 0.0  ;;  %v4036_v36 = vsub.f32 0.0, %v8235_v59 }
 0x2e3   : > { %v3968_v60 = vadd.f32 0.2548296, %v3936_v13  ;;  %v6128_v23 = vpop.eup %6127  ;;  %v3778_v5 = vadd.f32 -1.4531521, %v3746_v42  ;;  %v8294_v35 = vand.u32 2147483647, %v8290_v19  ;;  %v4400_v54 = vmul.f32 %v4286_v47, %v4286_v47 }
 0x2e4   : > { %v4221_v26 = vmul.f32 %v4189_v41, %v3485_v49  ;;  %v3871_v46 = vmul.f32 %v3839_v22, %v8245_v16  ;;  %v3649_v0 = vmul.f32 %v6128_v23, %v3585_v53  ;;  %v6130_v4 = vpop.eup %6129  ;;  %vm3455_vm2 = vcmp.ge.f32.partialorder %v8165_v56, 0.0 }
 0x2e5   : > { %v4000_v61 = vmul.f32 %v3968_v60, %v8218_v18  ;;  %v3810_v20 = vmul.f32 %v3778_v5, %v8272_v57  ;;  %v3555_v6 = vmul.f32 0.3275911, %v8294_v35  ;;  %v6132_v31 = vpop.eup %6131  ;;  %vm3458_vm3 = vcmp.ge.f32.partialorder %v8182_v50, 0.0 }
 0x2e6   : > { %v4253_v8 = vadd.f32 1.0, %v4221_v26  ;;  %v3903_v48 = vadd.f32 -0.28449672, %v3871_v46  ;;  %v3681_v18 = vsub.f32 2.0, %v3649_v0  ;;  %v3652_v53 = vmul.f32 %v6132_v31, %v3588_v58 }
 0x2e7   : > { %v4160_v15 = vmul.f32 %v6130_v4, %v4000_v61  ;;  %v3842_v45 = vadd.f32 1.4214138, %v3810_v20  ;;  %v3587_v33 = vadd.f32 1.0, %v3555_v6  ;;  %v3487_v0 = vsel %vm3455_vm2, 1.0, %v8487_v62 }
 0x2e8   : > { %v4285_v27 = vmul.f32 %v4253_v8, %v3389_v11  ;;  %v3935_v10 = vmul.f32 %v3903_v48, %v8245_v16  ;;  %v8309_v44 = vmul.f32 %v6128_v23, %v3681_v18  ;;  %v3684_v9 = vsub.f32 2.0, %v3652_v53 }
 0x2e9   : > { %v4192_v39 = vsub.f32 1.0, %v4160_v15  ;;  %v3874_v11 = vmul.f32 %v3842_v45, %v8272_v57  ;;  %6137 = vrcp.f32 %v3587_v33  ;;  %v6134_v49 = vpop.eup %6133  ;;  %v4125_v23 = vmul.f32 1.442695, %v4065_v25 }
 0x2ea   : > { %v4349_v40 = vsel %vm4301_vm9, %v4285_v27, 0.0  ;;  %v4399_v2 = vmul.f32 %v4285_v27, %v4285_v27  ;;  %4502 = vst.msk [vmem:[%s7531_s20 + $0xc0] sm:$0xff] %vm4301_vm9, %v4285_v27  ;;  %v3967_v58 = vadd.f32 0.2548296, %v3935_v10  ;;  %v3745_v37 = vmul.f32 1.0614054, %v8309_v44 }
 0x2eb   : > { %v4350_v32 = vadd.f32 %v4349_v40, %v8207_v24  ;;  %v4224_v12 = vmul.f32 %v4192_v39, %v3488_v52  ;;  %v3906_v38 = vadd.f32 -0.28449672, %v3874_v11  ;;  %v4456_v24 = vsel %vm4301_vm9, %v4400_v54, 0.0  ;;  %v6136_v51 = vpop.eup %6135 }
 0x2ec   : > { %v4454_v47 = vsel %vm4301_vm9, %v4399_v2, 0.0  ;;  %v3999_v13 = vmul.f32 %v3967_v58, %v8245_v16  ;;  %v8316_v30 = vmul.f32 %v6132_v31, %v3684_v9  ;;  %v3777_v26 = vadd.f32 -1.4531521, %v3745_v37 }
 0x2ed   : > { %v4455_v21 = vadd.f32 %v4454_v47, %v8212_v1  ;;  %v4352_v34 = vadd.f32 %v4351_v55, %v4350_v32  ;;  %v4256_v41 = vadd.f32 1.0, %v4224_v12  ;;  %v3938_v52 = vmul.f32 %v3906_v38, %v8272_v57 }
 0x2ee   : > { %v4068_v1 = vmul.f32 %v4036_v36, %v8235_v59  ;;  %v4159_v22 = vmul.f32 %v6134_v49, %v3999_v13  ;;  %v3748_v5 = vmul.f32 1.0614054, %v8316_v30  ;;  %v3809_v61 = vmul.f32 %v3777_v26, %v8309_v44 }
 0x2ef   : > { %v4457_v42 = vadd.f32 %v4456_v24, %v4455_v21  ;;  %v4288_v60 = vmul.f32 %v4256_v41, %v3392_v14  ;;  %v3970_v8 = vadd.f32 0.2548296, %v3938_v52  ;;  %6139 = vpow2.f32 %v4125_v23 }
 0x2f0   : > { %v4191_v16 = vsub.f32 1.0, %v4159_v22  ;;  %v3780_v46 = vadd.f32 -1.4531521, %v3748_v5  ;;  %v3841_v55 = vadd.f32 1.4214138, %v3809_v61  ;;  %v3391_v31 = vmul.f32 0.5, %v8149_v3 }
 0x2f1   : > { %4505 = vst.msk [vmem:[%s7531_s20 + $0xd8] sm:$0xff] %vm4301_vm9, %v4288_v60  ;;  %v4002_v4 = vmul.f32 %v3970_v8, %v8272_v57  ;;  %v4131_v59 = vmul.f32 1.442695, %v4068_v1  ;;  %v3490_v54 = vsel %vm3458_vm3, 1.0, %v8487_v62  ;;  %v4035_v50 = vsub.f32 0.0, %v8294_v35 }
 0x2f2   : > { %v4223_v14 = vmul.f32 %v4191_v16, %v3487_v0  ;;  %v3812_v25 = vmul.f32 %v3780_v46, %v8316_v30  ;;  %v3873_v36 = vmul.f32 %v3841_v55, %v8309_v44  ;;  %v3394_v53 = vmul.f32 0.5, %v8168_v7 }
 0x2f3   : > { %v4162_v20 = vmul.f32 %v6136_v51, %v4002_v4  ;;  %v6138_v6 = vpop.eup %6137  ;;  %6141 = vpow2.f32 %v4131_v59  ;;  %v4402_v39 = vmul.f32 %v4288_v60, %v4288_v60  ;;  %v4355_v58 = vsel %vm4301_vm9, %v4288_v60, 0.0 }
 0x2f4   : > { %v4255_v27 = vadd.f32 1.0, %v4223_v14  ;;  %v3844_v15 = vadd.f32 1.4214138, %v3812_v25  ;;  %v3905_v48 = vadd.f32 -0.28449672, %v3873_v36  ;;  %v3651_v57 = vmul.f32 %v6138_v6, %v3587_v33 }
 0x2f5   : > { %v4194_v56 = vsub.f32 1.0, %v4162_v20  ;;  %v4067_v38 = vmul.f32 %v4035_v50, %v8294_v35  ;;  %vm3457_vm4 = vcmp.ge.f32.partialorder %v8216_v17, 0.0  ;;  %vm3460_vm5 = vcmp.ge.f32.partialorder %v8221_v43, 0.0 }
 0x2f6   : > { %v4287_v18 = vmul.f32 %v4255_v27, %v3391_v31  ;;  %v3876_v45 = vmul.f32 %v3844_v15, %v8316_v30  ;;  %v3937_v2 = vmul.f32 %v3905_v48, %v8309_v44  ;;  %v3683_v3 = vsub.f32 2.0, %v3651_v57 }
 0x2f7   : > { %v4226_v40 = vmul.f32 %v4194_v56, %v3490_v54  ;;  %v4129_v23 = vmul.f32 1.442695, %v4067_v38  ;;  %v3393_v17 = vmul.f32 0.5, %v8201_v28  ;;  %v3492_v4 = vsel %vm3460_vm5, 1.0, %v8487_v62 }
 0x2f8   : > { %v4353_v10 = vsel %vm4301_vm9, %v4287_v18, 0.0  ;;  %v4401_v32 = vmul.f32 %v4287_v18, %v4287_v18  ;;  %4504 = vst.msk [vmem:[%s7531_s20 + $0xd0] sm:$0xff] %vm4301_vm9, %v4287_v18  ;;  %v3908_v33 = vadd.f32 -0.28449672, %v3876_v45  ;;  %v3969_v47 = vadd.f32 0.2548296, %v3937_v2 }
 0x2f9   : > { %v4354_v11 = vadd.f32 %v4353_v10, %v4352_v34  ;;  %v4258_v9 = vadd.f32 1.0, %v4226_v40  ;;  %v3715_v12 = vmul.f32 %v6138_v6, %v3683_v3  ;;  %v6140_v13 = vpop.eup %6139  ;;  %v4460_v34 = vsel %vm4301_vm9, %v4402_v39, 0.0 }
 0x2fa   : > { %v4458_v7 = vsel %vm4301_vm9, %v4401_v32, 0.0  ;;  %v3940_v21 = vmul.f32 %v3908_v33, %v8316_v30  ;;  %v4001_v24 = vmul.f32 %v3969_v47, %v8309_v44  ;;  %v3489_v44 = vsel %vm3457_vm4, 1.0, %v8487_v62 }
 0x2fb   : > { %v4459_v37 = vadd.f32 %v4458_v7, %v4457_v42  ;;  %v4290_v49 = vmul.f32 %v4258_v9, %v3394_v53  ;;  %v4356_v41 = vadd.f32 %v4355_v58, %v4354_v11  ;;  %v3747_v52 = vmul.f32 1.0614054, %v3715_v12 }
 0x2fc   : > { %v3972_v51 = vadd.f32 0.2548296, %v3940_v21  ;;  %v4161_v26 = vmul.f32 %v6140_v13, %v4001_v24  ;;  %6143 = vpow2.f32 %v4129_v23  ;;  %v3396_v14 = vmul.f32 0.5, %v8204_v63 }
 0x2fd   : > { %4507 = vst.msk [vmem:[%s7531_s20 + $0xe8] sm:$0xff] %vm4301_vm9, %v4290_v49  ;;  %v4461_v1 = vadd.f32 %v4460_v34, %v4459_v37  ;;  %v3779_v22 = vadd.f32 -1.4531521, %v3747_v52  ;;  %v6142_v35 = vpop.eup %6141  ;;  %v4404_v20 = vmul.f32 %v4290_v49, %v4290_v49  ;;  %v4359_v56 = vsel %vm4301_vm9, %v4290_v49, 0.0  ;;  %v4300_v52 = vld [vmem:[%s8259_s24] sm:$0x1] }
 0x2fe   : > { %v4004_v60 = vmul.f32 %v3972_v51, %v8316_v30  ;;  %v4193_v42 = vsub.f32 1.0, %v4161_v26  ;;  %vm3459_vm6 = vcmp.ge.f32.partialorder %v8290_v19, 0.0  ;;  %v3395_v39 = vmul.f32 0.5, %v8270_v29 }
 0x2ff   : > { %v3811_v8 = vmul.f32 %v3779_v22, %v3715_v12  ;;  %v4464_v63 = vsel %vm4301_vm9, %v4404_v20, 0.0  ;;  %v3491_v2 = vsel %vm3459_vm6, 1.0, %v8487_v62 }
 0x300   : > { %v4164_v5 = vmul.f32 %v6142_v35, %v4004_v60  ;;  %v4225_v61 = vmul.f32 %v4193_v42, %v3489_v44  ;;  %v4374_v60 = vld [vmem:[%s8265_s30] sm:$0x1] }
 0x301   : > { %v3843_v46 = vadd.f32 1.4214138, %v3811_v8 }
 0x302   : > { %v4196_v16 = vsub.f32 1.0, %v4164_v5  ;;  %v4257_v0 = vadd.f32 1.0, %v4225_v61 }
 0x303   : > { %v3875_v55 = vmul.f32 %v3843_v46, %v3715_v12 }
 0x304   : > { %v4228_v30 = vmul.f32 %v4196_v16, %v3492_v4  ;;  %v4289_v59 = vmul.f32 %v4257_v0, %v3393_v17 }
 0x305   : > { %v3907_v43 = vadd.f32 -0.28449672, %v3875_v55 }
 0x306   : > { %v4260_v25 = vadd.f32 1.0, %v4228_v30  ;;  %v4357_v36 = vsel %vm4301_vm9, %v4289_v59, 0.0  ;;  %v4403_v6 = vmul.f32 %v4289_v59, %v4289_v59  ;;  %4506 = vst.msk [vmem:[%s7531_s20 + $0xe0] sm:$0xff] %vm4301_vm9, %v4289_v59  ;;  %v6144_v50 = vpop.eup %6143 }
 0x307   : > { %v4358_v31 = vadd.f32 %v4357_v36, %v4356_v41  ;;  %v3939_v27 = vmul.f32 %v3907_v43, %v3715_v12 }
 0x308   : > { %v4292_v28 = vmul.f32 %v4260_v25, %v3396_v14  ;;  %v4462_v15 = vsel %vm4301_vm9, %v4403_v6, 0.0 }
 0x309   : > { %v4463_v48 = vadd.f32 %v4462_v15, %v4461_v1  ;;  %v3971_v57 = vadd.f32 0.2548296, %v3939_v27  ;;  %v4360_v18 = vadd.f32 %v4359_v56, %v4358_v31 }
 0x30a   : > { %4509 = vst.msk [vmem:[%s7531_s20 + $0xf8] sm:$0xff] %vm4301_vm9, %v4292_v28  ;;  %v4406_v33 = vmul.f32 %v4292_v28, %v4292_v28 }
 0x30b   : > { %v4003_v54 = vmul.f32 %v3971_v57, %v3715_v12  ;;  %v4465_v45 = vadd.f32 %v4464_v63, %v4463_v48  ;;  %v4363_v12 = vsel %vm4301_vm9, %v4292_v28, 0.0 }
 0x30c   : > { %v4468_v7 = vsel %vm4301_vm9, %v4406_v33, 0.0 }
 0x30d   : > { %v4163_v53 = vmul.f32 %v6144_v50, %v4003_v54 }
 0x30f   : > { %v4195_v40 = vsub.f32 1.0, %v4163_v53 }
 0x311   : > { %v4227_v3 = vmul.f32 %v4195_v40, %v3491_v2 }
 0x313   : > { %v4259_v10 = vadd.f32 1.0, %v4227_v3 }
 0x315   : > { %v4291_v32 = vmul.f32 %v4259_v10, %v3395_v39 }
 0x317   : > { %v4361_v11 = vsel %vm4301_vm9, %v4291_v32, 0.0  ;;  %v4405_v9 = vmul.f32 %v4291_v32, %v4291_v32  ;;  %4508 = vst.msk [vmem:[%s7531_s20 + $0xf0] sm:$0xff] %vm4301_vm9, %v4291_v32 }
 0x318   : > { %v4362_v47 = vadd.f32 %v4361_v11, %v4360_v18 }
 0x319   : > { %v4466_v19 = vsel %vm4301_vm9, %v4405_v9, 0.0 }
 0x31a   : > { %v4364_v58 = vadd.f32 %v4363_v12, %v4362_v47  ;;  %v4467_v62 = vadd.f32 %v4466_v19, %v4465_v45 }
 0x31c   : > { %v4365_v29 = vrot.slane %v4364_v58, 4  ;;  %v4469_v21 = vadd.f32 %v4468_v7, %v4467_v62 }
 0x31e   : > { %v4366_v38 = vadd.f32 %v4365_v29, %v4364_v58  ;;  %v4470_v37 = vrot.slane %v4469_v21, 4 }
 0x320   : > { %v4367_v49 = vrot.slane %v4366_v38, 2  ;;  %v4471_v24 = vadd.f32 %v4470_v37, %v4469_v21 }
 0x322   : > { %v4368_v41 = vadd.f32 %v4367_v49, %v4366_v38  ;;  %v4472_v13 = vrot.slane %v4471_v24, 2 }
 0x324   : > { %v4369_v34 = vrot.slane %v4368_v41, 1  ;;  %v4473_v51 = vadd.f32 %v4472_v13, %v4471_v24 }
 0x326   : > { %v4370_v26 = vadd.f32 %v4369_v34, %v4368_v41  ;;  %v4474_v1 = vrot.slane %v4473_v51, 1 }
 0x328   : > { %v4371_v22 = vadd.f32 %v4370_v26, %v4300_v52  ;;  %v4475_v35 = vadd.f32 %v4474_v1, %v4473_v51 }
 0x32a   : > { %4373 = vst.msk [vmem:[%s8259_s24] sm:$0x1] %vm4297_vm1, %v4371_v22  ;;  %v4476_v42 = vadd.f32 %v4475_v35, %v4374_v60 }
 0x32c   : > { %4477 = vst.msk [vmem:[%s8265_s30] sm:$0x1] %vm4297_vm1, %v4476_v42 }
 0x32d PF: > { %s19_s28 = sadd.s32 1, %s6169_s28   ;;  %s8513_s26 = smov %s6165_s27 }
 0x32e   : > { %p16_p5 = scmp.ge.s32.totalorder %s19_s28, 4   ;;  %s8514_s27 = smov %s8516_s29 }
 0x330   :  { %18 = sbr.rel (!%p16_p5) target bundleno = 2 (0x2), region = 116 }

// kernel: double_conv.5
= control target key start
LH: loop header
LB: loop body
LE: loop exit
PB: predicated region body
PF: predicated region fallthrough
CT: control target
= control target key end

     0   :  { %s5864_s21 = smov 0   ;;  %s5866_s22 = smov 0   ;;  %s7880_s0 = inlined_call_operand.vmem [shape: f32[2,16,16,8], index: 0, kind: input, shape index: {}]   ;;  %s7881_s1 = inlined_call_operand.vmem [shape: f32[2,2,16,8], index: 1, kind: input, shape index: {}]   ;;  %s7882_s2 = inlined_call_operand.vmem [shape: f32[72,8], index: 2, kind: input, shape index: {}]   ;;  %s7883_s3 = inlined_call_operand.vmem [shape: f32[1,8], index: 3, kind: input, shape index: {}]   ;;  %s7884_s4 = inlined_call_operand.vmem [shape: f32[1,8], index: 4, kind: input, shape index: {}]   ;;  %s7885_s5 = inlined_call_operand.vmem [shape: f32[1,8], index: 5, kind: input, shape index: {}]   ;;  %s7886_s6 = inlined_call_operand.vmem [shape: f32[2,16,16,8], index: 6, kind: output, shape index: {}]  }
   0x1   :  { %s5868_s1 = smov 0  }
   0x2 LB: > { %s28_s23 = sadd.s32 1, %s5821_s22  ;;  %p4338_p0 = scmp.ge.s32.totalorder %s5825_s1, 1  ;;  %s5825_s1 = sphi %s5868_s1, %s16_s1   ;;  %s5821_s22 = sphi %s5866_s22, %s8006_s22   ;;  %s5817_s21 = sphi %s5864_s21, %s8005_s21  }
   0x3   : > { %p30_p1 = scmp.ge.s32.totalorder %s28_s23, 2  ;;  %p248_p2 = scmp.lt.s32.totalorder %s5825_s1, 3 }
   0x5   : > { %s8008_s23 = smov (%p30_p1, %s28_s23), 0  ;;  %p249_p3 = pnand %p4338_p0, %p248_p2 }
   0x7   : > { %252 = sbr.rel (%p249_p3) target bundleno = 757 (0x2f5), region = 44 }
   0xe   : > { %v574_v0 = vld [vmem:[%s7882_s2 + $0x8] sm:$0xff]  ;;  %v5888_v1 = vld [vmem:[%s7882_s2 + $0x20] sm:$0xff]  ;;  %p295_p4 = scmp.lt.s32.totalorder %s5817_s21, 1  ;;  %vm325_vm0 = vcmask 64512   ;;  %vm334_vm1 = vcmask 57344   ;;  %v5827_v4 = vmov 0.0  }
   0xf   : > { %4940 = vmatprep.subr.mxu1 %v574_v0  ;;  %5140 = vmatprep.subr.mxu0 %v5888_v1  ;;  %v5894_v2 = vld [vmem:[%s7882_s2] sm:$0xff]  ;;  %v5899_v3 = vld [vmem:[%s7882_s2 + $0x28] sm:$0xff]  ;;  %336 = vst.msk [vmem:[#allocation2 + $0x18] sm:$0x1] %vm334_vm1, %v5827_v4  ;;  %337 = vst.msk [vmem:[#allocation2 + $0x30] sm:$0x1] %vm334_vm1, %v5827_v4 }
  0x10   : > { %4941 = vmatpush3.msra.mxu1 %v574_v0  ;;  %5141 = vmatpush3.msra.mxu0 %v5888_v1  ;;  %s8010_s21 = smov (!%p295_p4, %s5817_s21), 1  ;;  %326 = vst.msk [vmem:[#allocation2] sm:$0xff] %vm325_vm0, %v5827_v4  ;;  %327 = vst.msk [vmem:[#allocation2 + $0x8] sm:$0xff] %vm325_vm0, %v5827_v4  ;;  %vm328_vm2 = vcmask 58368   ;;  %v5948_v5 = vld [vmem:[%s7884_s4] ss:$0 sm:$0xff] }
  0x11   : > { %331 = vst.msk [vmem:[#allocation2 + $0x198] sm:$0xff] %vm325_vm0, %v5827_v4  ;;  %332 = vst.msk [vmem:[#allocation2 + $0x1a0] sm:$0xff] %vm325_vm0, %v5827_v4  ;;  %4990 = vmatprep.subr.mxu1 %v5894_v2  ;;  %5190 = vmatprep.subr.mxu0 %v5899_v3  ;;  %s4640_s8 = sshll.u32 %s8010_s21, 8  ;;  %v5962_v6 = vld [vmem:[%s7885_s5] ss:$0 sm:$0xff] }
  0x12   : > { %338 = vst.msk [vmem:[#allocation2 + $0x48] sm:$0x1] %vm334_vm1, %v5827_v4  ;;  %339 = vst.msk [vmem:[#allocation2 + $0x60] sm:$0x1] %vm334_vm1, %v5827_v4  ;;  %s5957_s13 = scalar_lea.vmem %s7880_s0, %s4640_s8  ;;  %s7134_s10 = scalar_lea.vmem %s7886_s6, %s4640_s8 }
  0x13   : > { %340 = vst.msk [vmem:[#allocation2 + $0x78] sm:$0x1] %vm334_vm1, %v5827_v4  ;;  %341 = vst.msk [vmem:[#allocation2 + $0x90] sm:$0x1] %vm334_vm1, %v5827_v4  ;;  %v371_v7 = vld [vmem:[%s5957_s13] sm:$0xff]  ;;  %v372_v8 = vld [vmem:[%s5957_s13 + $0x8] sm:$0xff] }
  0x14   : > { %342 = vst.msk [vmem:[#allocation2 + $0xa8] sm:$0x1] %vm334_vm1, %v5827_v4  ;;  %343 = vst.msk [vmem:[#allocation2 + $0xc0] sm:$0x1] %vm334_vm1, %v5827_v4  ;;  %v373_v9 = vld [vmem:[%s5957_s13 + $0x10] sm:$0xff]  ;;  %v409_v10 = vmul.f32 %v5948_v5, %v371_v7  ;;  %v410_v11 = vmul.f32 %v5948_v5, %v372_v8  ;;  %v374_v13 = vld [vmem:[%s5957_s13 + $0x18] sm:$0xff] }
  0x15   : > { %344 = vst.msk [vmem:[#allocation2 + $0xd8] sm:$0x1] %vm334_vm1, %v5827_v4  ;;  %345 = vst.msk [vmem:[#allocation2 + $0xf0] sm:$0x1] %vm334_vm1, %v5827_v4  ;;  %v411_v12 = vmul.f32 %v5948_v5, %v373_v9  ;;  %v375_v14 = vld [vmem:[%s5957_s13 + $0x20] sm:$0xff]  ;;  %v376_v15 = vld [vmem:[%s5957_s13 + $0x28] sm:$0xff]  ;;  %v412_v16 = vmul.f32 %v5948_v5, %v374_v13 }
  0x16   : > { %346 = vst.msk [vmem:[#allocation2 + $0x108] sm:$0x1] %vm334_vm1, %v5827_v4  ;;  %347 = vst.msk [vmem:[#allocation2 + $0x120] sm:$0x1] %vm334_vm1, %v5827_v4  ;;  %v413_v17 = vmul.f32 %v5948_v5, %v375_v14  ;;  %v414_v18 = vmul.f32 %v5948_v5, %v376_v15  ;;  %v377_v19 = vld [vmem:[%s5957_s13 + $0x30] sm:$0xff]  ;;  %v378_v20 = vld [vmem:[%s5957_s13 + $0x38] sm:$0xff]  ;;  %v447_v22 = vadd.f32 %v5962_v6, %v409_v10 }
  0x17   : > { %348 = vst.msk [vmem:[#allocation2 + $0x138] sm:$0x1] %vm334_vm1, %v5827_v4  ;;  %349 = vst.msk [vmem:[#allocation2 + $0x150] sm:$0x1] %vm334_vm1, %v5827_v4  ;;  %v379_v21 = vld [vmem:[%s5957_s13 + $0x40] sm:$0xff]  ;;  %v448_v23 = vadd.f32 %v5962_v6, %v410_v11  ;;  %v449_v24 = vadd.f32 %v5962_v6, %v411_v12  ;;  %v415_v25 = vmul.f32 %v5948_v5, %v377_v19  ;;  %v380_v26 = vld [vmem:[%s5957_s13 + $0x48] sm:$0xff] }
  0x18   : > { %350 = vst.msk [vmem:[#allocation2 + $0x168] sm:$0x1] %vm334_vm1, %v5827_v4  ;;  %351 = vst.msk [vmem:[#allocation2 + $0x180] sm:$0x1] %vm334_vm1, %v5827_v4  ;;  %v381_v27 = vld [vmem:[%s5957_s13 + $0x50] sm:$0xff]  ;;  %v382_v28 = vld [vmem:[%s5957_s13 + $0x58] sm:$0xff]  ;;  %v450_v29 = vadd.f32 %v5962_v6, %v412_v16  ;;  %v451_v30 = vadd.f32 %v5962_v6, %v413_v17  ;;  %v452_v31 = vadd.f32 %v5962_v6, %v414_v18 }
  0x19   : > { %354 = vst.msk [vmem:[#allocation2 + $0x29] sm:$0x1] %vm334_vm1, %v5827_v4  ;;  %355 = vst.msk [vmem:[#allocation2 + $0x41] sm:$0x1] %vm334_vm1, %v5827_v4  ;;  %v416_v32 = vmul.f32 %v5948_v5, %v378_v20  ;;  %v383_v33 = vld [vmem:[%s5957_s13 + $0x60] sm:$0xff]  ;;  %v384_v34 = vld [vmem:[%s5957_s13 + $0x68] sm:$0xff]  ;;  %v453_v36 = vadd.f32 %v5962_v6, %v415_v25  ;;  %v417_v37 = vmul.f32 %v5948_v5, %v379_v21 }
  0x1a   : > { %356 = vst.msk [vmem:[#allocation2 + $0x59] sm:$0x1] %vm334_vm1, %v5827_v4  ;;  %357 = vst.msk [vmem:[#allocation2 + $0x71] sm:$0x1] %vm334_vm1, %v5827_v4  ;;  %v385_v35 = vld [vmem:[%s5957_s13 + $0x70] sm:$0xff]  ;;  %v418_v38 = vmul.f32 %v5948_v5, %v380_v26  ;;  %v419_v39 = vmul.f32 %v5948_v5, %v381_v27  ;;  %v386_v40 = vld [vmem:[%s5957_s13 + $0x78] sm:$0xff]  ;;  %v420_v42 = vmul.f32 %v5948_v5, %v382_v28 }
  0x1b   : > { %358 = vst.msk [vmem:[#allocation2 + $0x89] sm:$0x1] %vm334_vm1, %v5827_v4  ;;  %359 = vst.msk [vmem:[#allocation2 + $0xa1] sm:$0x1] %vm334_vm1, %v5827_v4  ;;  %v454_v41 = vadd.f32 %v5962_v6, %v416_v32  ;;  %v421_v43 = vmul.f32 %v5948_v5, %v383_v33  ;;  %v422_v44 = vmul.f32 %v5948_v5, %v384_v34  ;;  %v387_v45 = vld [vmem:[%s5957_s13 + $0x80] sm:$0xff]  ;;  %v388_v46 = vld [vmem:[%s5957_s13 + $0x88] sm:$0xff] }
  0x1c   : > { %360 = vst.msk [vmem:[#allocation2 + $0xb9] sm:$0x1] %vm334_vm1, %v5827_v4  ;;  %361 = vst.msk [vmem:[#allocation2 + $0xd1] sm:$0x1] %vm334_vm1, %v5827_v4  ;;  %v389_v47 = vld [vmem:[%s5957_s13 + $0x90] sm:$0xff]  ;;  %v455_v48 = vadd.f32 %v5962_v6, %v417_v37  ;;  %v456_v49 = vadd.f32 %v5962_v6, %v418_v38  ;;  %v457_v50 = vadd.f32 %v5962_v6, %v419_v39  ;;  %v390_v52 = vld [vmem:[%s5957_s13 + $0x98] sm:$0xff] }
  0x1d   : > { %362 = vst.msk [vmem:[#allocation2 + $0xe9] sm:$0x1] %vm334_vm1, %v5827_v4  ;;  %363 = vst.msk [vmem:[#allocation2 + $0x101] sm:$0x1] %vm334_vm1, %v5827_v4  ;;  %v423_v51 = vmul.f32 %v5948_v5, %v385_v35  ;;  %v391_v53 = vld [vmem:[%s5957_s13 + $0xa0] sm:$0xff]  ;;  %v392_v54 = vld [vmem:[%s5957_s13 + $0xa8] sm:$0xff]  ;;  %v458_v55 = vadd.f32 %v5962_v6, %v420_v42  ;;  %v459_v56 = vadd.f32 %v5962_v6, %v421_v43 }
  0x1e   : > { %364 = vst.msk [vmem:[#allocation2 + $0x119] sm:$0x1] %vm334_vm1, %v5827_v4  ;;  %365 = vst.msk [vmem:[#allocation2 + $0x131] sm:$0x1] %vm334_vm1, %v5827_v4  ;;  %v460_v57 = vadd.f32 %v5962_v6, %v422_v44  ;;  %v424_v58 = vmul.f32 %v5948_v5, %v386_v40  ;;  %v393_v59 = vld [vmem:[%s5957_s13 + $0xb0] sm:$0xff]  ;;  %v425_v61 = vmul.f32 %v5948_v5, %v387_v45  ;;  %v394_v0 = vld [vmem:[%s5957_s13 + $0xb8] sm:$0xff] }
  0x1f   : > { %366 = vst.msk [vmem:[#allocation2 + $0x149] sm:$0x1] %vm334_vm1, %v5827_v4  ;;  %367 = vst.msk [vmem:[#allocation2 + $0x161] sm:$0x1] %vm334_vm1, %v5827_v4  ;;  %v461_v60 = vadd.f32 %v5962_v6, %v423_v51  ;;  %v426_v62 = vmul.f32 %v5948_v5, %v388_v46  ;;  %v427_v63 = vmul.f32 %v5948_v5, %v389_v47  ;;  %v395_v10 = vld [vmem:[%s5957_s13 + $0xc0] sm:$0xff]  ;;  %v396_v11 = vld [vmem:[%s5957_s13 + $0xc8] sm:$0xff] }
  0x20   : > { %368 = vst.msk [vmem:[#allocation2 + $0x179] sm:$0x1] %vm334_vm1, %v5827_v4  ;;  %369 = vst.msk [vmem:[#allocation2 + $0x191] sm:$0x1] %vm334_vm1, %v5827_v4  ;;  %v428_v7 = vmul.f32 %v5948_v5, %v390_v52  ;;  %v429_v8 = vmul.f32 %v5948_v5, %v391_v53  ;;  %v430_v9 = vmul.f32 %v5948_v5, %v392_v54  ;;  %v397_v12 = vld [vmem:[%s5957_s13 + $0xd0] sm:$0xff]  ;;  %v398_v17 = vld [vmem:[%s5957_s13 + $0xd8] sm:$0xff] }
  0x21   : > { %335 = vst.msk [vmem:[#allocation2] sm:$0x1] %vm334_vm1, %v5827_v4  ;;  %352 = vst.msk [vmem:[#allocation2 + $0x198] sm:$0x1] %vm334_vm1, %v5827_v4  ;;  %v463_v13 = vadd.f32 %v5962_v6, %v425_v61  ;;  %v464_v14 = vadd.f32 %v5962_v6, %v426_v62  ;;  %v465_v15 = vadd.f32 %v5962_v6, %v427_v63  ;;  %v399_v18 = vld [vmem:[%s5957_s13 + $0xe0] sm:$0xff]  ;;  %v400_v19 = vld [vmem:[%s5957_s13 + $0xe8] sm:$0xff] }
  0x22   : > { %329 = vst.msk [vmem:[#allocation2 + $0x10] sm:$0x3] %vm328_vm2, %v5827_v4  ;;  %333 = vst.msk [vmem:[#allocation2 + $0x1a8] sm:$0x3] %vm328_vm2, %v5827_v4  ;;  %v431_v16 = vmul.f32 %v5948_v5, %v393_v59  ;;  %v467_v25 = vadd.f32 %v5962_v6, %v429_v8  ;;  %v468_v26 = vadd.f32 %v5962_v6, %v430_v9  ;;  %v401_v37 = vld [vmem:[%s5957_s13 + $0xf0] sm:$0xff]  ;;  %v402_v38 = vld [vmem:[%s5957_s13 + $0xf8] sm:$0xff] }
  0x23   : > { %353 = vst.msk [vmem:[#allocation2 + $0x11] sm:$0x1] %vm334_vm1, %v5827_v4  ;;  %370 = vst.msk [vmem:[#allocation2 + $0x1a9] sm:$0x1] %vm334_vm1, %v5827_v4  ;;  %v462_v4 = vadd.f32 %v5962_v6, %v424_v58  ;;  %v432_v27 = vmul.f32 %v5948_v5, %v394_v0  ;;  %v433_v32 = vmul.f32 %v5948_v5, %v395_v10  ;;  %v6098_v39 = vld [vmem:[%s7882_s2 + $0x10] sm:$0xff] }
  0x24   : > { %480 = vst.msk [vmem:[#allocation2 + $0x19] sm:$0xff] %vm325_vm0, %v447_v22  ;;  %481 = vst.msk [vmem:[#allocation2 + $0x21] sm:$0xff] %vm325_vm0, %v448_v23  ;;  %v6061_v23 = vld [vmem:[%s7882_s2 + $0x30] sm:$0xff]  ;;  %v434_v33 = vmul.f32 %v5948_v5, %v396_v11  ;;  %v435_v35 = vmul.f32 %v5948_v5, %v397_v12  ;;  %v437_v44 = vmul.f32 %v5948_v5, %v399_v18  ;;  %v6247_v18 = vld [vmem:[%s7882_s2 + $0x38] sm:$0xff] }
  0x25   : > { %482 = vst.msk [vmem:[#allocation2 + $0x31] sm:$0xff] %vm325_vm0, %v449_v24  ;;  %483 = vst.msk [vmem:[#allocation2 + $0x39] sm:$0xff] %vm325_vm0, %v450_v29  ;;  %v466_v24 = vadd.f32 %v5962_v6, %v428_v7  ;;  %v470_v34 = vadd.f32 %v5962_v6, %v432_v27  ;;  %v471_v42 = vadd.f32 %v5962_v6, %v433_v32 }
  0x26   : > { %484 = vst.msk [vmem:[#allocation2 + $0x49] sm:$0xff] %vm325_vm0, %v451_v30  ;;  %485 = vst.msk [vmem:[#allocation2 + $0x51] sm:$0xff] %vm325_vm0, %v452_v31  ;;  %v469_v31 = vadd.f32 %v5962_v6, %v431_v16  ;;  %v472_v43 = vadd.f32 %v5962_v6, %v434_v33  ;;  %v473_v45 = vadd.f32 %v5962_v6, %v435_v35 }
  0x27   : > { %486 = vst.msk [vmem:[#allocation2 + $0x61] sm:$0xff] %vm325_vm0, %v453_v36  ;;  %487 = vst.msk [vmem:[#allocation2 + $0x69] sm:$0xff] %vm325_vm0, %v454_v41  ;;  %v436_v36 = vmul.f32 %v5948_v5, %v398_v17  ;;  %v438_v47 = vmul.f32 %v5948_v5, %v400_v19 }
  0x28   : > { %488 = vst.msk [vmem:[#allocation2 + $0x79] sm:$0xff] %vm325_vm0, %v455_v48  ;;  %489 = vst.msk [vmem:[#allocation2 + $0x81] sm:$0xff] %vm325_vm0, %v456_v49  ;;  %v475_v48 = vadd.f32 %v5962_v6, %v437_v44  ;;  %v439_v49 = vmul.f32 %v5948_v5, %v401_v37 }
  0x29   : > { %490 = vst.msk [vmem:[#allocation2 + $0x91] sm:$0xff] %vm325_vm0, %v457_v50  ;;  %491 = vst.msk [vmem:[#allocation2 + $0x99] sm:$0xff] %vm325_vm0, %v458_v55  ;;  %v474_v46 = vadd.f32 %v5962_v6, %v436_v36  ;;  %v440_v50 = vmul.f32 %v5948_v5, %v402_v38  ;;  %v476_v51 = vadd.f32 %v5962_v6, %v438_v47 }
  0x2a   : > { %492 = vst.msk [vmem:[#allocation2 + $0xa9] sm:$0xff] %vm325_vm0, %v459_v56  ;;  %493 = vst.msk [vmem:[#allocation2 + $0xb1] sm:$0xff] %vm325_vm0, %v460_v57  ;;  %v477_v53 = vadd.f32 %v5962_v6, %v439_v49 }
  0x2b   : > { %494 = vst.msk [vmem:[#allocation2 + $0xc1] sm:$0xff] %vm325_vm0, %v461_v60  ;;  %v6051_v20 = vld [vmem:[#allocation2 + $0x18] sm:$0xff]  ;;  %v6055_v22 = vld [vmem:[#allocation2 + $0x20] sm:$0xff]  ;;  %495 = vst.msk [vmem:[#allocation2 + $0xc9] sm:$0xff] %vm325_vm0, %v462_v4  ;;  %v478_v54 = vadd.f32 %v5962_v6, %v440_v50 }
  0x2c   : > { %v6053_v21 = vld [vmem:[#allocation2 + $0x19] sm:$0xff]  ;;  %4942 = vmatprep.mubr.msk.f32.mxu1 %vm325_vm0, %v6051_v20  ;;  %v6071_v28 = vld [vmem:[#allocation2 + $0x21] sm:$0xff]  ;;  %v6073_v29 = vld [vmem:[#allocation2 + $0x30] sm:$0xff]  ;;  %496 = vst.msk [vmem:[#allocation2 + $0xd9] sm:$0xff] %vm325_vm0, %v463_v13 }
  0x2d   : > { %5142 = vmatprep.mubr.msk.f32.mxu0 %vm325_vm0, %v6053_v21  ;;  %v6075_v30 = vld [vmem:[#allocation2 + $0x31] sm:$0xff]  ;;  %497 = vst.msk [vmem:[#allocation2 + $0xe1] sm:$0xff] %vm325_vm0, %v464_v14  ;;  %498 = vst.msk [vmem:[#allocation2 + $0xf1] sm:$0xff] %vm325_vm0, %v465_v15  ;;  %4943 = vmatmul.mubr.msk.f32.vlgmr.msra.gmra.mrb[0].mxu1 %vm325_vm0, %v6055_v22  ;;  %v6104_v41 = vld [vmem:[#allocation2 + $0x39] sm:$0xff] }
  0x2e   : > { %5143 = vmatmul.mubr.msk.f32.vlgmr.msra.gmra.mrb[0].mxu0 %vm325_vm0, %v6071_v28  ;;  %499 = vst.msk [vmem:[#allocation2 + $0xf9] sm:$0xff] %vm325_vm0, %v466_v24  ;;  %500 = vst.msk [vmem:[#allocation2 + $0x109] sm:$0xff] %vm325_vm0, %v467_v25  ;;  %4991 = vmatpush3.msra.mxu1 %v5894_v2  ;;  %v6102_v40 = vld [vmem:[#allocation2 + $0x38] sm:$0xff]  ;;  %v6114_v2 = vld [vmem:[#allocation2 + $0x48] sm:$0xff] }
  0x2f   : > { %501 = vst.msk [vmem:[#allocation2 + $0x111] sm:$0xff] %vm325_vm0, %v468_v26  ;;  %5191 = vmatpush3.msra.mxu0 %v5899_v3  ;;  %502 = vst.msk [vmem:[#allocation2 + $0x121] sm:$0xff] %vm325_vm0, %v469_v31  ;;  %4945 = vmatprep.mubr.msk.f32.mxu1 %vm325_vm0, %v6073_v29  ;;  %v6116_v3 = vld [vmem:[#allocation2 + $0x49] sm:$0xff]  ;;  %v6142_v52 = vld [vmem:[#allocation2 + $0x51] sm:$0xff] }
  0x30   : > { %5145 = vmatprep.mubr.msk.f32.mxu0 %vm325_vm0, %v6075_v30  ;;  %503 = vst.msk [vmem:[#allocation2 + $0x129] sm:$0xff] %vm325_vm0, %v470_v34  ;;  %5240 = vmatprep.subr.mxu0 %v6061_v23  ;;  %504 = vst.msk [vmem:[#allocation2 + $0x139] sm:$0xff] %vm325_vm0, %v471_v42  ;;  %v6140_v5 = vld [vmem:[#allocation2 + $0x50] sm:$0xff]  ;;  %v6147_v55 = vld [vmem:[#allocation2 + $0x60] sm:$0xff] }
  0x31   : > { %505 = vst.msk [vmem:[#allocation2 + $0x141] sm:$0xff] %vm325_vm0, %v472_v43  ;;  %5040 = vmatprep.subr.mxu1 %v6098_v39  ;;  %4946 = vmatmul.mubr.msk.f32.gmra.mrb[2].mxu1 %vm325_vm0, %v6102_v40  ;;  %506 = vst.msk [vmem:[#allocation2 + $0x151] sm:$0xff] %vm325_vm0, %v473_v45  ;;  %v6149_v56 = vld [vmem:[#allocation2 + $0x61] sm:$0xff]  ;;  %v6164_v57 = vld [vmem:[#allocation2 + $0x69] sm:$0xff] }
  0x32   : > { %5146 = vmatmul.mubr.msk.f32.gmra.mrb[2].mxu0 %vm325_vm0, %v6104_v41  ;;  %507 = vst.msk [vmem:[#allocation2 + $0x159] sm:$0xff] %vm325_vm0, %v474_v46  ;;  %4948 = vmatprep.mubr.msk.f32.mxu1 %vm325_vm0, %v6114_v2  ;;  %508 = vst.msk [vmem:[#allocation2 + $0x169] sm:$0xff] %vm325_vm0, %v475_v48  ;;  %v6162_v6 = vld [vmem:[#allocation2 + $0x68] sm:$0xff]  ;;  %v6166_v58 = vld [vmem:[#allocation2 + $0x78] sm:$0xff] }
  0x33   : > { %5148 = vmatprep.mubr.msk.f32.mxu0 %vm325_vm0, %v6116_v3  ;;  %509 = vst.msk [vmem:[#allocation2 + $0x171] sm:$0xff] %vm325_vm0, %v476_v51  ;;  %510 = vst.msk [vmem:[#allocation2 + $0x181] sm:$0xff] %vm325_vm0, %v477_v53  ;;  %v6168_v59 = vld [vmem:[#allocation2 + $0x79] sm:$0xff]  ;;  %v6180_v61 = vld [vmem:[#allocation2 + $0x81] sm:$0xff] }
  0x34   : > { %511 = vst.msk [vmem:[#allocation2 + $0x189] sm:$0xff] %vm325_vm0, %v478_v54  ;;  %v6178_v60 = vld [vmem:[#allocation2 + $0x80] sm:$0xff]  ;;  %v6182_v62 = vld [vmem:[#allocation2 + $0x90] sm:$0xff]  ;;  %v6194_v0 = vld [vmem:[#allocation2 + $0x98] sm:$0xff] }
  0x35   : > { %4949 = vmatmul.mubr.msk.f32.gmra.mrb[4].mxu1 %vm325_vm0, %v6140_v5  ;;  %v6184_v63 = vld [vmem:[#allocation2 + $0x91] sm:$0xff]  ;;  %v6196_v4 = vld [vmem:[#allocation2 + $0x99] sm:$0xff]  ;;  %v6198_v7 = vld [vmem:[#allocation2 + $0xa8] sm:$0xff] }
  0x36   : > { %5149 = vmatmul.mubr.msk.f32.gmra.mrb[4].mxu0 %vm325_vm0, %v6142_v52  ;;  %4951 = vmatprep.mubr.msk.f32.mxu1 %vm325_vm0, %v6147_v55  ;;  %v6200_v8 = vld [vmem:[#allocation2 + $0xa9] sm:$0xff]  ;;  %v6212_v10 = vld [vmem:[#allocation2 + $0xb1] sm:$0xff]  ;;  %v6214_v11 = vld [vmem:[#allocation2 + $0xc0] sm:$0xff] }
  0x37   : > { %5151 = vmatprep.mubr.msk.f32.mxu0 %vm325_vm0, %v6149_v56  ;;  %v6210_v9 = vld [vmem:[#allocation2 + $0xb0] sm:$0xff]  ;;  %7922 = vst [vmem:[#allocation3_spill] sm:$0xff] %v6212_v10  ;;  %v6216_v12 = vld [vmem:[#allocation2 + $0xc1] sm:$0xff]  ;;  %v6230_v15 = vld [vmem:[#allocation2 + $0xd8] sm:$0xff] }
  0x38   : > { %7923 = vst [vmem:[#allocation4_spill] sm:$0xff] %v6216_v12  ;;  %v6226_v13 = vld [vmem:[#allocation2 + $0xc8] sm:$0xff]  ;;  %v6240_v16 = vld [vmem:[#allocation2 + $0xe0] sm:$0xff]  ;;  %v6242_v17 = vld [vmem:[#allocation2 + $0xf0] sm:$0xff] }
  0x39   : > { %4952 = vmatmul.mubr.msk.f32.gmra.mrb[6].mxu1 %vm325_vm0, %v6162_v6  ;;  %v6228_v14 = vld [vmem:[#allocation2 + $0xc9] sm:$0xff]  ;;  %v6256_v19 = vld [vmem:[#allocation2 + $0xf8] sm:$0xff]  ;;  %v6273_v25 = vld [vmem:[#allocation2 + $0x120] sm:$0xff] }
  0x3a   : > { %5152 = vmatmul.mubr.msk.f32.gmra.mrb[6].mxu0 %vm325_vm0, %v6164_v57  ;;  %4954 = vmatprep.mubr.msk.f32.mxu1 %vm325_vm0, %v6166_v58  ;;  %7924 = vst [vmem:[#allocation5_spill] sm:$0xff] %v6228_v14  ;;  %v6260_v24 = vld [vmem:[#allocation2 + $0x108] sm:$0xff]  ;;  %v6285_v27 = vld [vmem:[#allocation2 + $0x138] sm:$0xff]  ;;  %v6295_v31 = vld [vmem:[#allocation2 + $0x140] sm:$0xff] }
  0x3b   : > { %5154 = vmatprep.mubr.msk.f32.mxu0 %vm325_vm0, %v6168_v59  ;;  %v6283_v26 = vld [vmem:[#allocation2 + $0x128] sm:$0xff]  ;;  %v6297_v32 = vld [vmem:[#allocation2 + $0x150] sm:$0xff]  ;;  %v6307_v33 = vld [vmem:[#allocation2 + $0x158] sm:$0xff] }
  0x3c   : > { %v6309_v34 = vld [vmem:[#allocation2 + $0x168] sm:$0xff]  ;;  %v6319_v35 = vld [vmem:[#allocation2 + $0x170] sm:$0xff]  ;;  %v6321_v36 = vld [vmem:[#allocation2 + $0x180] sm:$0xff] }
  0x3d   : > { %4955 = vmatmul.mubr.msk.f32.gmra.mrb[8].mxu1 %vm325_vm0, %v6178_v60  ;;  %v6323_v37 = vld [vmem:[#allocation2 + $0xd9] sm:$0xff]  ;;  %v6333_v38 = vld [vmem:[#allocation2 + $0x188] sm:$0xff]  ;;  %v6337_v44 = vld [vmem:[#allocation2 + $0xf1] sm:$0xff] }
  0x3e   : > { %5155 = vmatmul.mubr.msk.f32.gmra.mrb[8].mxu0 %vm325_vm0, %v6180_v61  ;;  %4957 = vmatprep.mubr.msk.f32.mxu1 %vm325_vm0, %v6182_v62  ;;  %7925 = vst [vmem:[#allocation6_spill] sm:$0xff] %v6323_v37  ;;  %v6335_v42 = vld [vmem:[#allocation2 + $0xe1] sm:$0xff]  ;;  %7927 = vst [vmem:[#allocation8_spill] sm:$0xff] %v6337_v44  ;;  %v6346_v46 = vld [vmem:[#allocation2 + $0xf9] sm:$0xff] }
  0x3f   : > { %5157 = vmatprep.mubr.msk.f32.mxu0 %vm325_vm0, %v6184_v63  ;;  %7926 = vst [vmem:[#allocation7_spill] sm:$0xff] %v6335_v42  ;;  %v537_v43 = vld [vmem:[#allocation2] sm:$0xff]  ;;  %v538_v45 = vld [vmem:[#allocation2 + $0x8] sm:$0xff]  ;;  %7928 = vst [vmem:[#allocation9_spill] sm:$0xff] %v6346_v46 }
  0x40   : > { %v6348_v47 = vld [vmem:[#allocation2 + $0x109] sm:$0xff]  ;;  %v6353_v48 = vld [vmem:[%s7882_s2 + $0x18] sm:$0xff]  ;;  %v6365_v50 = vld [vmem:[#allocation2 + $0x121] sm:$0xff] }
  0x41   : > { %4958 = vmatmul.mubr.msk.f32.gmra.mrb[10].mxu1 %vm325_vm0, %v6194_v0  ;;  %7929 = vst [vmem:[#allocation10_spill] sm:$0xff] %v6348_v47  ;;  %v6361_v49 = vld [vmem:[#allocation2 + $0x111] sm:$0xff]  ;;  %7931 = vst [vmem:[#allocation12_spill] sm:$0xff] %v6365_v50  ;;  %v6400_v53 = vld [vmem:[#allocation2 + $0x159] sm:$0xff] }
  0x42   : > { %5158 = vmatmul.mubr.msk.f32.gmra.mrb[10].mxu0 %vm325_vm0, %v6196_v4  ;;  %4960 = vmatprep.mubr.msk.f32.mxu1 %vm325_vm0, %v6198_v7  ;;  %7930 = vst [vmem:[#allocation11_spill] sm:$0xff] %v6361_v49  ;;  %v6390_v51 = vld [vmem:[#allocation2 + $0x151] sm:$0xff]  ;;  %7936 = vst [vmem:[#allocation17_spill] sm:$0xff] %v6400_v53  ;;  %v6402_v54 = vld [vmem:[#allocation2 + $0x169] sm:$0xff] }
  0x43   : > { %5160 = vmatprep.mubr.msk.f32.mxu0 %vm325_vm0, %v6200_v8  ;;  %7935 = vst [vmem:[#allocation16_spill] sm:$0xff] %v6390_v51  ;;  %7937 = vst [vmem:[#allocation18_spill] sm:$0xff] %v6402_v54 }
  0x45   : > { %4961 = vmatmul.mubr.msk.f32.gmra.mrb[12].mxu1 %vm325_vm0, %v6210_v9 }
  0x46   : > { %5161 = vmatmul.mubr.msk.f32.gmra.mrb[12].mxu0 %vm325_vm0, %v6212_v10  ;;  %4963 = vmatprep.mubr.msk.f32.mxu1 %vm325_vm0, %v6214_v11 }
  0x47   : > { %5163 = vmatprep.mubr.msk.f32.mxu0 %vm325_vm0, %v6216_v12 }
  0x49   : > { %4964 = vmatmul.mubr.msk.f32.gmra.mrb[14].mxu1 %vm325_vm0, %v6226_v13 }
  0x4a   : > { %5164 = vmatmul.mubr.msk.f32.gmra.mrb[14].mxu0 %vm325_vm0, %v6228_v14  ;;  %4966 = vmatprep.mubr.msk.f32.mxu1 %vm325_vm0, %v6230_v15 }
  0x4b   : > { %5192 = vmatprep.mubr.msk.f32.mxu0 %vm325_vm0, %v6075_v30 }
  0x4d   : > { %4967 = vmatmul.mubr.msk.f32.gmra.mrb[16].mxu1 %vm325_vm0, %v6240_v16 }
  0x4e   : > { %5193 = vmatmul.mubr.msk.f32.vlgmr.msra.gmra.mrb[0].mxu0 %vm325_vm0, %v6104_v41  ;;  %4969 = vmatprep.mubr.msk.f32.mxu1 %vm325_vm0, %v6242_v17 }
  0x4f   : > { %5241 = vmatpush3.msra.mxu0 %v6061_v23  ;;  %5195 = vmatprep.mubr.msk.f32.mxu0 %vm325_vm0, %v6116_v3  ;;  %v6271_v23 = vld [vmem:[#allocation2 + $0x110] sm:$0xff] }
  0x50   : > { %5290 = vmatprep.subr.mxu0 %v6247_v18 }
  0x51   : > { %4970 = vmatmul.mubr.msk.f32.gmra.mrb[18].mxu1 %vm325_vm0, %v6256_v19 }
  0x52   : > { %5196 = vmatmul.mubr.msk.f32.gmra.mrb[2].mxu0 %vm325_vm0, %v6142_v52  ;;  %4972 = vmatprep.mubr.msk.f32.mxu1 %vm325_vm0, %v6260_v24 }
  0x53   : > { %5198 = vmatprep.mubr.msk.f32.mxu0 %vm325_vm0, %v6149_v56 }
  0x55   : > { %4973 = vmatmul.mubr.msk.f32.gmra.mrb[20].mxu1 %vm325_vm0, %v6271_v23 }
  0x56   : > { %5199 = vmatmul.mubr.msk.f32.gmra.mrb[4].mxu0 %vm325_vm0, %v6164_v57  ;;  %4975 = vmatprep.mubr.msk.f32.mxu1 %vm325_vm0, %v6273_v25 }
  0x57   : > { %5201 = vmatprep.mubr.msk.f32.mxu0 %vm325_vm0, %v6168_v59 }
  0x59   : > { %4976 = vmatmul.mubr.msk.f32.gmra.mrb[22].mxu1 %vm325_vm0, %v6283_v26 }
  0x5a   : > { %5202 = vmatmul.mubr.msk.f32.gmra.mrb[6].mxu0 %vm325_vm0, %v6180_v61  ;;  %4978 = vmatprep.mubr.msk.f32.mxu1 %vm325_vm0, %v6285_v27 }
  0x5b   : > { %5204 = vmatprep.mubr.msk.f32.mxu0 %vm325_vm0, %v6184_v63 }
  0x5d   : > { %4979 = vmatmul.mubr.msk.f32.gmra.mrb[24].mxu1 %vm325_vm0, %v6295_v31 }
  0x5e   : > { %5205 = vmatmul.mubr.msk.f32.gmra.mrb[8].mxu0 %vm325_vm0, %v6196_v4  ;;  %4981 = vmatprep.mubr.msk.f32.mxu1 %vm325_vm0, %v6297_v32 }
  0x5f   : > { %5207 = vmatprep.mubr.msk.f32.mxu0 %vm325_vm0, %v6200_v8 }
  0x61   : > { %4982 = vmatmul.mubr.msk.f32.gmra.mrb[26].mxu1 %vm325_vm0, %v6307_v33 }
  0x62   : > { %5208 = vmatmul.mubr.msk.f32.gmra.mrb[10].mxu0 %vm325_vm0, %v6212_v10  ;;  %4984 = vmatprep.mubr.msk.f32.mxu1 %vm325_vm0, %v6309_v34  ;;  %v6550_v10 = vld [vmem:[#allocation2 + $0xe2] sm:$0xff] }
  0x63   : > { %5210 = vmatprep.mubr.msk.f32.mxu0 %vm325_vm0, %v6216_v12  ;;  %v6541_v12 = vld [vmem:[#allocation2 + $0xda] sm:$0xff] }
  0x65   : > { %4985 = vmatmul.mubr.msk.f32.gmra.mrb[28].mxu1 %vm325_vm0, %v6319_v35 }
  0x66   : > { %5211 = vmatmul.mubr.msk.f32.gmra.mrb[12].mxu0 %vm325_vm0, %v6228_v14  ;;  %4987 = vmatprep.mubr.msk.f32.mxu1 %vm325_vm0, %v6321_v36  ;;  %v6539_v14 = vld [vmem:[#allocation2 + $0xca] sm:$0xff] }
  0x67   : > { %5213 = vmatprep.mubr.msk.f32.mxu0 %vm325_vm0, %v6323_v37  ;;  %v6529_v37 = vld [vmem:[#allocation2 + $0xc2] sm:$0xff] }
  0x69   : > { %4988 = vmatmul.mubr.msk.f32.gmra.mrb[30].mxu1 %vm325_vm0, %v6333_v38 }
  0x6a   : > { %5214 = vmatmul.mubr.msk.f32.gmra.mrb[14].mxu0 %vm325_vm0, %v6335_v42  ;;  %4992 = vmatprep.mubr.msk.f32.mxu1 %vm325_vm0, %v537_v43  ;;  %v6412_v43 = vld [vmem:[#allocation2 + $0x171] sm:$0xff] }
  0x6b   : > { %5216 = vmatprep.mubr.msk.f32.mxu0 %vm325_vm0, %v6337_v44  ;;  %7938 = vst [vmem:[#allocation19_spill] sm:$0xff] %v6412_v43  ;;  %v6517_v44 = vld [vmem:[#allocation2 + $0xaa] sm:$0xff]  ;;  %v6527_v42 = vld [vmem:[#allocation2 + $0xb2] sm:$0xff] }
  0x6d   : > { %4993 = vmatmul.mubr.msk.f32.vlgmr.msra.gmra.mrb[0].mxu1 %vm325_vm0, %v538_v45  ;;  %v6414_v45 = vld [vmem:[#allocation2 + $0x181] sm:$0xff] }
  0x6e   : > { %5217 = vmatmul.mubr.msk.f32.gmra.mrb[16].mxu0 %vm325_vm0, %v6346_v46  ;;  %5041 = vmatpush3.msra.mxu1 %v6098_v39  ;;  %v6378_v39 = vld [vmem:[#allocation2 + $0x139] sm:$0xff]  ;;  %7939 = vst [vmem:[#allocation20_spill] sm:$0xff] %v6414_v45 }
  0x6f   : > { %4995 = vmatprep.mubr.msk.f32.mxu1 %vm325_vm0, %v6051_v20  ;;  %5219 = vmatprep.mubr.msk.f32.mxu0 %vm325_vm0, %v6348_v47  ;;  %v6376_v20 = vld [vmem:[#allocation2 + $0x129] sm:$0xff]  ;;  %7933 = vst [vmem:[#allocation14_spill] sm:$0xff] %v6378_v39  ;;  %v6505_v47 = vld [vmem:[#allocation2 + $0x92] sm:$0xff]  ;;  %v6515_v46 = vld [vmem:[#allocation2 + $0x9a] sm:$0xff] }
  0x70   : > { %5090 = vmatprep.subr.mxu1 %v6353_v48  ;;  %7932 = vst [vmem:[#allocation13_spill] sm:$0xff] %v6376_v20 }
  0x71   : > { %4996 = vmatmul.mubr.msk.f32.gmra.mrb[2].mxu1 %vm325_vm0, %v6055_v22  ;;  %v6388_v22 = vld [vmem:[#allocation2 + $0x141] sm:$0xff] }
  0x72   : > { %5220 = vmatmul.mubr.msk.f32.gmra.mrb[18].mxu0 %vm325_vm0, %v6361_v49  ;;  %4998 = vmatprep.mubr.msk.f32.mxu1 %vm325_vm0, %v6073_v29  ;;  %7934 = vst [vmem:[#allocation15_spill] sm:$0xff] %v6388_v22  ;;  %v6503_v49 = vld [vmem:[#allocation2 + $0x82] sm:$0xff] }
  0x73   : > { %5222 = vmatprep.mubr.msk.f32.mxu0 %vm325_vm0, %v6365_v50  ;;  %v6493_v50 = vld [vmem:[#allocation2 + $0x7a] sm:$0xff] }
  0x75   : > { %4999 = vmatmul.mubr.msk.f32.gmra.mrb[4].mxu1 %vm325_vm0, %v6102_v40 }
  0x76   : > { %5223 = vmatmul.mubr.msk.f32.gmra.mrb[20].mxu0 %vm325_vm0, %v6376_v20  ;;  %5001 = vmatprep.mubr.msk.f32.mxu1 %vm325_vm0, %v6114_v2  ;;  %v6491_v20 = vld [vmem:[#allocation2 + $0x6a] sm:$0xff] }
  0x77   : > { %5225 = vmatprep.mubr.msk.f32.mxu0 %vm325_vm0, %v6378_v39  ;;  %v6481_v39 = vld [vmem:[#allocation2 + $0x62] sm:$0xff] }
  0x79   : > { %5002 = vmatmul.mubr.msk.f32.gmra.mrb[6].mxu1 %vm325_vm0, %v6140_v5 }
  0x7a   : > { %5226 = vmatmul.mubr.msk.f32.gmra.mrb[22].mxu0 %vm325_vm0, %v6388_v22  ;;  %5004 = vmatprep.mubr.msk.f32.mxu1 %vm325_vm0, %v6147_v55  ;;  %v6439_v22 = vld [vmem:[#allocation2 + $0x1a] sm:$0xff] }
  0x7b   : > { %5228 = vmatprep.mubr.msk.f32.mxu0 %vm325_vm0, %v6390_v51  ;;  %v1425_v51 = vld [vmem:[#allocation2 + $0x199] sm:$0xff] }
  0x7d   : > { %5005 = vmatmul.mubr.msk.f32.gmra.mrb[8].mxu1 %vm325_vm0, %v6162_v6 }
  0x7e   : > { %5229 = vmatmul.mubr.msk.f32.gmra.mrb[24].mxu0 %vm325_vm0, %v6400_v53  ;;  %5007 = vmatprep.mubr.msk.f32.mxu1 %vm325_vm0, %v6166_v58  ;;  %v6424_v53 = vld [vmem:[#allocation2 + $0x189] sm:$0xff] }
  0x7f   : > { %5231 = vmatprep.mubr.msk.f32.mxu0 %vm325_vm0, %v6402_v54  ;;  %7940 = vst [vmem:[#allocation21_spill] sm:$0xff] %v6424_v53  ;;  %v2309_v54 = vld [vmem:[#allocation2 + $0x2] sm:$0xff] }
  0x81   : > { %5008 = vmatmul.mubr.msk.f32.gmra.mrb[10].mxu1 %vm325_vm0, %v6178_v60 }
  0x82   : > { %5232 = vmatmul.mubr.msk.f32.gmra.mrb[26].mxu0 %vm325_vm0, %v6412_v43  ;;  %5010 = vmatprep.mubr.msk.f32.mxu1 %vm325_vm0, %v6182_v62  ;;  %v1426_v43 = vld [vmem:[#allocation2 + $0x1a1] sm:$0xff] }
  0x83   : > { %5234 = vmatprep.mubr.msk.f32.mxu0 %vm325_vm0, %v6414_v45  ;;  %v2310_v45 = vld [vmem:[#allocation2 + $0xa] sm:$0xff] }
  0x85   : > { %5011 = vmatmul.mubr.msk.f32.gmra.mrb[12].mxu1 %vm325_vm0, %v6194_v0 }
  0x86   : > { %5235 = vmatmul.mubr.msk.f32.gmra.mrb[28].mxu0 %vm325_vm0, %v6424_v53  ;;  %5013 = vmatprep.mubr.msk.f32.mxu1 %vm325_vm0, %v6198_v7  ;;  %v6444_v53 = vld [vmem:[%s7882_s2 + $0x40] sm:$0xff] }
  0x87   : > { %5237 = vmatprep.mubr.msk.f32.mxu0 %vm325_vm0, %v1425_v51  ;;  %v6452_v51 = vld [vmem:[#allocation2 + $0x22] sm:$0xff] }
  0x89   : > { %5014 = vmatmul.mubr.msk.f32.gmra.mrb[14].mxu1 %vm325_vm0, %v6210_v9 }
  0x8a   : > { %5238 = vmatmul.mubr.msk.f32.gmra.mrb[30].mxu0 %vm325_vm0, %v1426_v43  ;;  %5016 = vmatprep.mubr.msk.f32.mxu1 %vm325_vm0, %v6214_v11  ;;  %v6469_v43 = vld [vmem:[#allocation2 + $0x4a] sm:$0xff] }
  0x8b   : > { %5242 = vmatprep.mubr.msk.f32.mxu0 %vm325_vm0, %v2309_v54  ;;  %v6456_v54 = vld [vmem:[#allocation2 + $0x32] sm:$0xff] }
  0x8d   : > { %5017 = vmatmul.mubr.msk.f32.gmra.mrb[16].mxu1 %vm325_vm0, %v6226_v13 }
  0x8e   : > { %5243 = vmatmul.mubr.msk.f32.vlgmr.msra.gmra.mrb[0].mxu0 %vm325_vm0, %v2310_v45  ;;  %5019 = vmatprep.mubr.msk.f32.mxu1 %vm325_vm0, %v6230_v15  ;;  %v6479_v45 = vld [vmem:[#allocation2 + $0x52] sm:$0xff] }
  0x8f   : > { %5291 = vmatpush3.msra.mxu0 %v6247_v18  ;;  %5245 = vmatprep.mubr.msk.f32.mxu0 %vm325_vm0, %v6439_v22  ;;  %v6467_v18 = vld [vmem:[#allocation2 + $0x3a] sm:$0xff] }
  0x90   : > { %5340 = vmatprep.subr.mxu0 %v6444_v53 }
  0x91   : > { %5020 = vmatmul.mubr.msk.f32.gmra.mrb[18].mxu1 %vm325_vm0, %v6240_v16 }
  0x92   : > { %5246 = vmatmul.mubr.msk.f32.gmra.mrb[2].mxu0 %vm325_vm0, %v6452_v51  ;;  %5022 = vmatprep.mubr.msk.f32.mxu1 %vm325_vm0, %v6242_v17 }
  0x93   : > { %5248 = vmatprep.mubr.msk.f32.mxu0 %vm325_vm0, %v6456_v54 }
  0x95   : > { %5023 = vmatmul.mubr.msk.f32.gmra.mrb[20].mxu1 %vm325_vm0, %v6256_v19 }
  0x96   : > { %5249 = vmatmul.mubr.msk.f32.gmra.mrb[4].mxu0 %vm325_vm0, %v6467_v18  ;;  %5025 = vmatprep.mubr.msk.f32.mxu1 %vm325_vm0, %v6260_v24 }
  0x97   : > { %5251 = vmatprep.mubr.msk.f32.mxu0 %vm325_vm0, %v6469_v43 }
  0x99   : > { %5026 = vmatmul.mubr.msk.f32.gmra.mrb[22].mxu1 %vm325_vm0, %v6271_v23 }
  0x9a   : > { %5252 = vmatmul.mubr.msk.f32.gmra.mrb[6].mxu0 %vm325_vm0, %v6479_v45  ;;  %5028 = vmatprep.mubr.msk.f32.mxu1 %vm325_vm0, %v6273_v25 }
  0x9b   : > { %5254 = vmatprep.mubr.msk.f32.mxu0 %vm325_vm0, %v6481_v39 }
  0x9d   : > { %5029 = vmatmul.mubr.msk.f32.gmra.mrb[24].mxu1 %vm325_vm0, %v6283_v26 }
  0x9e   : > { %5255 = vmatmul.mubr.msk.f32.gmra.mrb[8].mxu0 %vm325_vm0, %v6491_v20  ;;  %5031 = vmatprep.mubr.msk.f32.mxu1 %vm325_vm0, %v6285_v27 }
  0x9f   : > { %5257 = vmatprep.mubr.msk.f32.mxu0 %vm325_vm0, %v6493_v50 }
  0xa1   : > { %5032 = vmatmul.mubr.msk.f32.gmra.mrb[26].mxu1 %vm325_vm0, %v6295_v31 }
  0xa2   : > { %5258 = vmatmul.mubr.msk.f32.gmra.mrb[10].mxu0 %vm325_vm0, %v6503_v49  ;;  %5034 = vmatprep.mubr.msk.f32.mxu1 %vm325_vm0, %v6297_v32 }
  0xa3   : > { %5260 = vmatprep.mubr.msk.f32.mxu0 %vm325_vm0, %v6505_v47 }
  0xa5   : > { %5035 = vmatmul.mubr.msk.f32.gmra.mrb[28].mxu1 %vm325_vm0, %v6307_v33 }
  0xa6   : > { %5261 = vmatmul.mubr.msk.f32.gmra.mrb[12].mxu0 %vm325_vm0, %v6515_v46  ;;  %5037 = vmatprep.mubr.msk.f32.mxu1 %vm325_vm0, %v6309_v34 }
  0xa7   : > { %5263 = vmatprep.mubr.msk.f32.mxu0 %vm325_vm0, %v6517_v44 }
  0xa9   : > { %5038 = vmatmul.mubr.msk.f32.gmra.mrb[30].mxu1 %vm325_vm0, %v6319_v35 }
  0xaa   : > { %5264 = vmatmul.mubr.msk.f32.gmra.mrb[14].mxu0 %vm325_vm0, %v6527_v42  ;;  %5042 = vmatprep.mubr.msk.f32.mxu1 %vm325_vm0, %v6073_v29  ;;  %v6554_v29 = vld [vmem:[#allocation2 + $0xf2] sm:$0xff] }
  0xab   : > { %5266 = vmatprep.mubr.msk.f32.mxu0 %vm325_vm0, %v6529_v37 }
  0xad   : > { %5043 = vmatmul.mubr.msk.f32.vlgmr.msra.gmra.mrb[0].mxu1 %vm325_vm0, %v6102_v40  ;;  %v6565_v40 = vld [vmem:[#allocation2 + $0xfa] sm:$0xff] }
  0xae   : > { %5267 = vmatmul.mubr.msk.f32.gmra.mrb[16].mxu0 %vm325_vm0, %v6539_v14  ;;  %5091 = vmatpush3.msra.mxu1 %v6353_v48 }
  0xaf   : > { %5045 = vmatprep.mubr.msk.f32.mxu1 %vm325_vm0, %v6114_v2  ;;  %5269 = vmatprep.mubr.msk.f32.mxu0 %vm325_vm0, %v6541_v12  ;;  %v6567_v2 = vld [vmem:[#allocation2 + $0x10a] sm:$0xff] }
  0xb0   : > { %5390 = vmatprep.subr.mxu1 %v5888_v1 }
  0xb1   : > { %5046 = vmatmul.mubr.msk.f32.gmra.mrb[2].mxu1 %vm325_vm0, %v6140_v5  ;;  %v6577_v5 = vld [vmem:[#allocation2 + $0x112] sm:$0xff] }
  0xb2   : > { %5270 = vmatmul.mubr.msk.f32.gmra.mrb[18].mxu0 %vm325_vm0, %v6550_v10  ;;  %5048 = vmatprep.mubr.msk.f32.mxu1 %vm325_vm0, %v6147_v55  ;;  %v6579_v55 = vld [vmem:[#allocation2 + $0x122] sm:$0xff] }
  0xb3   : > { %5272 = vmatprep.mubr.msk.f32.mxu0 %vm325_vm0, %v6554_v29 }
  0xb5   : > { %5049 = vmatmul.mubr.msk.f32.gmra.mrb[4].mxu1 %vm325_vm0, %v6162_v6  ;;  %v6589_v6 = vld [vmem:[#allocation2 + $0x12a] sm:$0xff] }
  0xb6   : > { %5273 = vmatmul.mubr.msk.f32.gmra.mrb[20].mxu0 %vm325_vm0, %v6565_v40  ;;  %5051 = vmatprep.mubr.msk.f32.mxu1 %vm325_vm0, %v6166_v58  ;;  %v6591_v58 = vld [vmem:[#allocation2 + $0x13a] sm:$0xff] }
  0xb7   : > { %5275 = vmatprep.mubr.msk.f32.mxu0 %vm325_vm0, %v6567_v2 }
  0xb9   : > { %5052 = vmatmul.mubr.msk.f32.gmra.mrb[6].mxu1 %vm325_vm0, %v6178_v60  ;;  %v6601_v60 = vld [vmem:[#allocation2 + $0x142] sm:$0xff] }
  0xba   : > { %5276 = vmatmul.mubr.msk.f32.gmra.mrb[22].mxu0 %vm325_vm0, %v6577_v5  ;;  %5054 = vmatprep.mubr.msk.f32.mxu1 %vm325_vm0, %v6182_v62  ;;  %v6603_v62 = vld [vmem:[#allocation2 + $0x152] sm:$0xff] }
  0xbb   : > { %5278 = vmatprep.mubr.msk.f32.mxu0 %vm325_vm0, %v6579_v55 }
  0xbd   : > { %5055 = vmatmul.mubr.msk.f32.gmra.mrb[8].mxu1 %vm325_vm0, %v6194_v0  ;;  %v6613_v0 = vld [vmem:[#allocation2 + $0x15a] sm:$0xff] }
  0xbe   : > { %5279 = vmatmul.mubr.msk.f32.gmra.mrb[24].mxu0 %vm325_vm0, %v6589_v6  ;;  %5057 = vmatprep.mubr.msk.f32.mxu1 %vm325_vm0, %v6198_v7  ;;  %v6615_v7 = vld [vmem:[#allocation2 + $0x16a] sm:$0xff] }
  0xbf   : > { %5281 = vmatprep.mubr.msk.f32.mxu0 %vm325_vm0, %v6591_v58 }
  0xc1   : > { %5058 = vmatmul.mubr.msk.f32.gmra.mrb[10].mxu1 %vm325_vm0, %v6210_v9  ;;  %v6625_v9 = vld [vmem:[#allocation2 + $0x172] sm:$0xff] }
  0xc2   : > { %5282 = vmatmul.mubr.msk.f32.gmra.mrb[26].mxu0 %vm325_vm0, %v6601_v60  ;;  %5060 = vmatprep.mubr.msk.f32.mxu1 %vm325_vm0, %v6214_v11  ;;  %v571_v11 = vld [vmem:[#allocation2 + $0x198] sm:$0xff] }
  0xc3   : > { %5284 = vmatprep.mubr.msk.f32.mxu0 %vm325_vm0, %v6603_v62 }
  0xc5   : > { %5061 = vmatmul.mubr.msk.f32.gmra.mrb[12].mxu1 %vm325_vm0, %v6226_v13  ;;  %v572_v13 = vld [vmem:[#allocation2 + $0x1a0] sm:$0xff] }
  0xc6   : > { %5285 = vmatmul.mubr.msk.f32.gmra.mrb[28].mxu0 %vm325_vm0, %v6613_v0  ;;  %5063 = vmatprep.mubr.msk.f32.mxu1 %vm325_vm0, %v6230_v15  ;;  %v1391_v15 = vld [vmem:[#allocation2 + $0x1] sm:$0xff] }
  0xc7   : > { %5287 = vmatprep.mubr.msk.f32.mxu0 %vm325_vm0, %v6615_v7 }
  0xc9   : > { %5064 = vmatmul.mubr.msk.f32.gmra.mrb[14].mxu1 %vm325_vm0, %v6240_v16  ;;  %v1392_v16 = vld [vmem:[#allocation2 + $0x9] sm:$0xff] }
  0xca   : > { %5288 = vmatmul.mubr.msk.f32.gmra.mrb[30].mxu0 %vm325_vm0, %v6625_v9  ;;  %5066 = vmatprep.mubr.msk.f32.mxu1 %vm325_vm0, %v6242_v17  ;;  %v7953_v17 = vld [vmem:[#allocation15_spill] sm:$0xff] }
  0xcb   : > { %5292 = vmatprep.mubr.msk.f32.mxu0 %vm325_vm0, %v6439_v22 }
  0xcd   : > { %5067 = vmatmul.mubr.msk.f32.gmra.mrb[16].mxu1 %vm325_vm0, %v6256_v19  ;;  %v7954_v19 = vld [vmem:[#allocation16_spill] sm:$0xff] }
  0xce   : > { %5293 = vmatmul.mubr.msk.f32.vlgmr.msra.gmra.mrb[0].mxu0 %vm325_vm0, %v6452_v51  ;;  %5069 = vmatprep.mubr.msk.f32.mxu1 %vm325_vm0, %v6260_v24  ;;  %v7955_v24 = vld [vmem:[#allocation17_spill] sm:$0xff] }
  0xcf   : > { %5341 = vmatpush3.msra.mxu0 %v6444_v53  ;;  %5295 = vmatprep.mubr.msk.f32.mxu0 %vm325_vm0, %v6456_v54 }
  0xd1   : > { %5070 = vmatmul.mubr.msk.f32.gmra.mrb[18].mxu1 %vm325_vm0, %v6271_v23  ;;  %v7956_v23 = vld [vmem:[#allocation18_spill] sm:$0xff] }
  0xd2   : > { %5296 = vmatmul.mubr.msk.f32.gmra.mrb[2].mxu0 %vm325_vm0, %v6467_v18  ;;  %5072 = vmatprep.mubr.msk.f32.mxu1 %vm325_vm0, %v6273_v25  ;;  %v7957_v25 = vld [vmem:[#allocation19_spill] sm:$0xff] }
  0xd3   : > { %5298 = vmatprep.mubr.msk.f32.mxu0 %vm325_vm0, %v6469_v43 }
  0xd5   : > { %5073 = vmatmul.mubr.msk.f32.gmra.mrb[20].mxu1 %vm325_vm0, %v6283_v26  ;;  %v7959_v26 = vld [vmem:[#allocation21_spill] sm:$0xff] }
  0xd6   : > { %5299 = vmatmul.mubr.msk.f32.gmra.mrb[4].mxu0 %vm325_vm0, %v6479_v45  ;;  %5075 = vmatprep.mubr.msk.f32.mxu1 %vm325_vm0, %v6285_v27 }
  0xd7   : > { %5301 = vmatprep.mubr.msk.f32.mxu0 %vm325_vm0, %v6481_v39 }
  0xd9   : > { %5076 = vmatmul.mubr.msk.f32.gmra.mrb[22].mxu1 %vm325_vm0, %v6295_v31 }
  0xda   : > { %5302 = vmatmul.mubr.msk.f32.gmra.mrb[6].mxu0 %vm325_vm0, %v6491_v20  ;;  %5078 = vmatprep.mubr.msk.f32.mxu1 %vm325_vm0, %v6297_v32 }
  0xdb   : > { %5304 = vmatprep.mubr.msk.f32.mxu0 %vm325_vm0, %v6493_v50 }
  0xdd   : > { %5079 = vmatmul.mubr.msk.f32.gmra.mrb[24].mxu1 %vm325_vm0, %v6307_v33 }
  0xde   : > { %5305 = vmatmul.mubr.msk.f32.gmra.mrb[8].mxu0 %vm325_vm0, %v6503_v49  ;;  %5081 = vmatprep.mubr.msk.f32.mxu1 %vm325_vm0, %v6309_v34 }
  0xdf   : > { %5307 = vmatprep.mubr.msk.f32.mxu0 %vm325_vm0, %v6505_v47 }
  0xe1   : > { %5082 = vmatmul.mubr.msk.f32.gmra.mrb[26].mxu1 %vm325_vm0, %v6319_v35 }
  0xe2   : > { %5308 = vmatmul.mubr.msk.f32.gmra.mrb[10].mxu0 %vm325_vm0, %v6515_v46  ;;  %5084 = vmatprep.mubr.msk.f32.mxu1 %vm325_vm0, %v6321_v36 }
  0xe3   : > { %5310 = vmatprep.mubr.msk.f32.mxu0 %vm325_vm0, %v6517_v44 }
  0xe5   : > { %5085 = vmatmul.mubr.msk.f32.gmra.mrb[28].mxu1 %vm325_vm0, %v6333_v38 }
  0xe6   : > { %5311 = vmatmul.mubr.msk.f32.gmra.mrb[12].mxu0 %vm325_vm0, %v6527_v42  ;;  %5087 = vmatprep.mubr.msk.f32.mxu1 %vm325_vm0, %v571_v11 }
  0xe7   : > { %5313 = vmatprep.mubr.msk.f32.mxu0 %vm325_vm0, %v6529_v37 }
  0xe9   : > { %5088 = vmatmul.mubr.msk.f32.gmra.mrb[30].mxu1 %vm325_vm0, %v572_v13 }
  0xea   : > { %5314 = vmatmul.mubr.msk.f32.gmra.mrb[14].mxu0 %vm325_vm0, %v6539_v14  ;;  %5092 = vmatprep.mubr.msk.f32.mxu1 %vm325_vm0, %v1391_v15 }
  0xeb   : > { %5316 = vmatprep.mubr.msk.f32.mxu0 %vm325_vm0, %v6541_v12 }
  0xed   : > { %5093 = vmatmul.mubr.msk.f32.vlgmr.msra.gmra.mrb[0].mxu1 %vm325_vm0, %v1392_v16 }
  0xee   : > { %5317 = vmatmul.mubr.msk.f32.gmra.mrb[16].mxu0 %vm325_vm0, %v6550_v10  ;;  %5391 = vmatpush3.msra.mxu1 %v5888_v1  ;;  %v6745_v1 = vld [vmem:[#allocation2 + $0x182] sm:$0xff] }
  0xef   : > { %5095 = vmatprep.mubr.msk.f32.mxu1 %vm325_vm0, %v6053_v21  ;;  %5319 = vmatprep.mubr.msk.f32.mxu0 %vm325_vm0, %v6554_v29  ;;  %v6755_v21 = vld [vmem:[#allocation2 + $0x18a] sm:$0xff] }
  0xf1   : > { %5096 = vmatmul.mubr.msk.f32.gmra.mrb[2].mxu1 %vm325_vm0, %v6071_v28  ;;  %v7941_v28 = vld [vmem:[#allocation3_spill] sm:$0xff] }
  0xf2   : > { %5320 = vmatmul.mubr.msk.f32.gmra.mrb[18].mxu0 %vm325_vm0, %v6565_v40  ;;  %5098 = vmatprep.mubr.msk.f32.mxu1 %vm325_vm0, %v6075_v30  ;;  %v7942_v30 = vld [vmem:[#allocation4_spill] sm:$0xff] }
  0xf3   : > { %5322 = vmatprep.mubr.msk.f32.mxu0 %vm325_vm0, %v6567_v2 }
  0xf5   : > { %5099 = vmatmul.mubr.msk.f32.gmra.mrb[4].mxu1 %vm325_vm0, %v6104_v41  ;;  %v7943_v41 = vld [vmem:[#allocation5_spill] sm:$0xff] }
  0xf6   : > { %5323 = vmatmul.mubr.msk.f32.gmra.mrb[20].mxu0 %vm325_vm0, %v6577_v5  ;;  %5101 = vmatprep.mubr.msk.f32.mxu1 %vm325_vm0, %v6116_v3  ;;  %v7944_v3 = vld [vmem:[#allocation6_spill] sm:$0xff] }
  0xf7   : > { %5325 = vmatprep.mubr.msk.f32.mxu0 %vm325_vm0, %v6579_v55 }
  0xf9   : > { %5102 = vmatmul.mubr.msk.f32.gmra.mrb[6].mxu1 %vm325_vm0, %v6142_v52  ;;  %v7945_v52 = vld [vmem:[#allocation7_spill] sm:$0xff] }
  0xfa   : > { %5326 = vmatmul.mubr.msk.f32.gmra.mrb[22].mxu0 %vm325_vm0, %v6589_v6  ;;  %5104 = vmatprep.mubr.msk.f32.mxu1 %vm325_vm0, %v6149_v56  ;;  %v7946_v56 = vld [vmem:[#allocation8_spill] sm:$0xff] }
  0xfb   : > { %5328 = vmatprep.mubr.msk.f32.mxu0 %vm325_vm0, %v6591_v58 }
  0xfd   : > { %5105 = vmatmul.mubr.msk.f32.gmra.mrb[8].mxu1 %vm325_vm0, %v6164_v57  ;;  %v7947_v57 = vld [vmem:[#allocation9_spill] sm:$0xff] }
  0xfe   : > { %5329 = vmatmul.mubr.msk.f32.gmra.mrb[24].mxu0 %vm325_vm0, %v6601_v60  ;;  %5107 = vmatprep.mubr.msk.f32.mxu1 %vm325_vm0, %v6168_v59  ;;  %v7948_v59 = vld [vmem:[#allocation10_spill] sm:$0xff] }
  0xff   : > { %5331 = vmatprep.mubr.msk.f32.mxu0 %vm325_vm0, %v6603_v62 }
 0x101   : > { %5108 = vmatmul.mubr.msk.f32.gmra.mrb[10].mxu1 %vm325_vm0, %v6180_v61  ;;  %v7949_v61 = vld [vmem:[#allocation11_spill] sm:$0xff] }
 0x102   : > { %5332 = vmatmul.mubr.msk.f32.gmra.mrb[26].mxu0 %vm325_vm0, %v6613_v0  ;;  %5110 = vmatprep.mubr.msk.f32.mxu1 %vm325_vm0, %v6184_v63  ;;  %v7950_v63 = vld [vmem:[#allocation12_spill] sm:$0xff] }
 0x103   : > { %5334 = vmatprep.mubr.msk.f32.mxu0 %vm325_vm0, %v6615_v7 }
 0x105   : > { %5111 = vmatmul.mubr.msk.f32.gmra.mrb[12].mxu1 %vm325_vm0, %v6196_v4  ;;  %v7951_v4 = vld [vmem:[#allocation13_spill] sm:$0xff] }
 0x106   : > { %5335 = vmatmul.mubr.msk.f32.gmra.mrb[28].mxu0 %vm325_vm0, %v6625_v9  ;;  %5113 = vmatprep.mubr.msk.f32.mxu1 %vm325_vm0, %v6200_v8  ;;  %v7952_v8 = vld [vmem:[#allocation14_spill] sm:$0xff] }
 0x107   : > { %5337 = vmatprep.mubr.msk.f32.mxu0 %vm325_vm0, %v6745_v1 }
 0x109   : > { %5114 = vmatmul.mubr.msk.f32.gmra.mrb[14].mxu1 %vm325_vm0, %v7941_v28 }
 0x10a   : > { %5338 = vmatmul.mubr.msk.f32.gmra.mrb[30].mxu0 %vm325_vm0, %v6755_v21  ;;  %5116 = vmatprep.mubr.msk.f32.mxu1 %vm325_vm0, %v7942_v30 }
 0x10b   : > { %5342 = vmatprep.mubr.msk.f32.mxu0 %vm325_vm0, %v6456_v54 }
 0x10d   : > { %5117 = vmatmul.mubr.msk.f32.gmra.mrb[16].mxu1 %vm325_vm0, %v7943_v41 }
 0x10e   : > { %5343 = vmatmul.mubr.msk.f32.vlgmr.msra.gmra.mrb[0].mxu0 %vm325_vm0, %v6467_v18  ;;  %5119 = vmatprep.mubr.msk.f32.mxu1 %vm325_vm0, %v7944_v3 }
 0x10f   : > { %5345 = vmatprep.mubr.msk.f32.mxu0 %vm325_vm0, %v6469_v43 }
 0x111   : > { %5120 = vmatmul.mubr.msk.f32.gmra.mrb[18].mxu1 %vm325_vm0, %v7945_v52 }
 0x112   : > { %5346 = vmatmul.mubr.msk.f32.gmra.mrb[2].mxu0 %vm325_vm0, %v6479_v45  ;;  %5122 = vmatprep.mubr.msk.f32.mxu1 %vm325_vm0, %v7946_v56 }
 0x113   : > { %5348 = vmatprep.mubr.msk.f32.mxu0 %vm325_vm0, %v6481_v39  ;;  %v6910_v39 = vld [vmem:[%s7883_s3] ss:$0 sm:$0xff] }
 0x115   : > { %5123 = vmatmul.mubr.msk.f32.gmra.mrb[20].mxu1 %vm325_vm0, %v7947_v57 }
 0x116   : > { %5349 = vmatmul.mubr.msk.f32.gmra.mrb[4].mxu0 %vm325_vm0, %v6491_v20  ;;  %5125 = vmatprep.mubr.msk.f32.mxu1 %vm325_vm0, %v7948_v59 }
 0x117   : > { %5351 = vmatprep.mubr.msk.f32.mxu0 %vm325_vm0, %v6493_v50 }
 0x119   : > { %5126 = vmatmul.mubr.msk.f32.gmra.mrb[22].mxu1 %vm325_vm0, %v7949_v61 }
 0x11a   : > { %5352 = vmatmul.mubr.msk.f32.gmra.mrb[6].mxu0 %vm325_vm0, %v6503_v49  ;;  %5128 = vmatprep.mubr.msk.f32.mxu1 %vm325_vm0, %v7950_v63 }
 0x11b   : > { %5354 = vmatprep.mubr.msk.f32.mxu0 %vm325_vm0, %v6505_v47 }
 0x11d   : > { %5129 = vmatmul.mubr.msk.f32.gmra.mrb[24].mxu1 %vm325_vm0, %v7951_v4 }
 0x11e   : > { %5355 = vmatmul.mubr.msk.f32.gmra.mrb[8].mxu0 %vm325_vm0, %v6515_v46  ;;  %5131 = vmatprep.mubr.msk.f32.mxu1 %vm325_vm0, %v7952_v8 }
 0x11f   : > { %5357 = vmatprep.mubr.msk.f32.mxu0 %vm325_vm0, %v6517_v44 }
 0x121   : > { %5132 = vmatmul.mubr.msk.f32.gmra.mrb[26].mxu1 %vm325_vm0, %v7953_v17 }
 0x122   : > { %5358 = vmatmul.mubr.msk.f32.gmra.mrb[10].mxu0 %vm325_vm0, %v6527_v42  ;;  %5134 = vmatprep.mubr.msk.f32.mxu1 %vm325_vm0, %v7954_v19 }
 0x123   : > { %5360 = vmatprep.mubr.msk.f32.mxu0 %vm325_vm0, %v6529_v37 }
 0x125   : > { %5135 = vmatmul.mubr.msk.f32.gmra.mrb[28].mxu1 %vm325_vm0, %v7955_v24 }
 0x126   : > { %5361 = vmatmul.mubr.msk.f32.gmra.mrb[12].mxu0 %vm325_vm0, %v6539_v14  ;;  %5137 = vmatprep.mubr.msk.f32.mxu1 %vm325_vm0, %v7956_v23  ;;  %v2344_v14 = vld [vmem:[#allocation2 + $0x1a2] sm:$0xff] }
 0x127   : > { %5363 = vmatprep.mubr.msk.f32.mxu0 %vm325_vm0, %v6541_v12  ;;  %v7958_v12 = vld [vmem:[#allocation20_spill] sm:$0xff] }
 0x129   : > { %5138 = vmatmul.mubr.msk.f32.gmra.mrb[30].mxu1 %vm325_vm0, %v7957_v25 }
 0x12a   : > { %5364 = vmatmul.mubr.msk.f32.gmra.mrb[14].mxu0 %vm325_vm0, %v6550_v10  ;;  %5166 = vmatprep.mubr.msk.f32.mxu1 %vm325_vm0, %v7944_v3  ;;  %v2343_v10 = vld [vmem:[#allocation2 + $0x19a] sm:$0xff] }
 0x12b   : > { %5366 = vmatprep.mubr.msk.f32.mxu0 %vm325_vm0, %v6554_v29 }
 0x12d   : > { %5167 = vmatmul.mubr.msk.f32.vlgmr.msra.gmra.mrb[16].mxu1 %vm325_vm0, %v7945_v52 }
 0x12e   : > { %5367 = vmatmul.mubr.msk.f32.gmra.mrb[16].mxu0 %vm325_vm0, %v6565_v40  ;;  %5169 = vmatprep.mubr.msk.f32.mxu1 %vm325_vm0, %v7946_v56 }
 0x12f   : > { %5369 = vmatprep.mubr.msk.f32.mxu0 %vm325_vm0, %v6567_v2 }
 0x131   : > { %5170 = vmatmul.mubr.msk.f32.gmra.mrb[18].mxu1 %vm325_vm0, %v7947_v57 }
 0x132   : > { %5370 = vmatmul.mubr.msk.f32.gmra.mrb[18].mxu0 %vm325_vm0, %v6577_v5  ;;  %5172 = vmatprep.mubr.msk.f32.mxu1 %vm325_vm0, %v7948_v59 }
 0x133   : > { %5372 = vmatprep.mubr.msk.f32.mxu0 %vm325_vm0, %v6579_v55 }
 0x135   : > { %5173 = vmatmul.mubr.msk.f32.gmra.mrb[20].mxu1 %vm325_vm0, %v7949_v61 }
 0x136   : > { %5373 = vmatmul.mubr.msk.f32.gmra.mrb[20].mxu0 %vm325_vm0, %v6589_v6  ;;  %5175 = vmatprep.mubr.msk.f32.mxu1 %vm325_vm0, %v7950_v63 }
 0x137   : > { %5375 = vmatprep.mubr.msk.f32.mxu0 %vm325_vm0, %v6591_v58 }
 0x139   : > { %5176 = vmatmul.mubr.msk.f32.gmra.mrb[22].mxu1 %vm325_vm0, %v7951_v4 }
 0x13a   : > { %5376 = vmatmul.mubr.msk.f32.gmra.mrb[22].mxu0 %vm325_vm0, %v6601_v60  ;;  %5178 = vmatprep.mubr.msk.f32.mxu1 %vm325_vm0, %v7952_v8 }
 0x13b   : > { %5378 = vmatprep.mubr.msk.f32.mxu0 %vm325_vm0, %v6603_v62 }
 0x13d   : > { %5179 = vmatmul.mubr.msk.f32.gmra.mrb[24].mxu1 %vm325_vm0, %v7953_v17 }
 0x13e   : > { %5379 = vmatmul.mubr.msk.f32.gmra.mrb[24].mxu0 %vm325_vm0, %v6613_v0  ;;  %5181 = vmatprep.mubr.msk.f32.mxu1 %vm325_vm0, %v7954_v19 }
 0x13f   : > { %5381 = vmatprep.mubr.msk.f32.mxu0 %vm325_vm0, %v6615_v7 }
 0x141   : > { %5182 = vmatmul.mubr.msk.f32.gmra.mrb[26].mxu1 %vm325_vm0, %v7955_v24 }
 0x142   : > { %5382 = vmatmul.mubr.msk.f32.gmra.mrb[26].mxu0 %vm325_vm0, %v6625_v9  ;;  %5184 = vmatprep.mubr.msk.f32.mxu1 %vm325_vm0, %v7956_v23  ;;  %v7920_v23 = vmov -1.0  }
 0x143   : > { %5384 = vmatprep.mubr.msk.f32.mxu0 %vm325_vm0, %v6745_v1 }
 0x145   : > { %5185 = vmatmul.mubr.msk.f32.gmra.mrb[28].mxu1 %vm325_vm0, %v7957_v25 }
 0x146   : > { %5385 = vmatmul.mubr.msk.f32.gmra.mrb[28].mxu0 %vm325_vm0, %v6755_v21  ;;  %5187 = vmatprep.mubr.msk.f32.mxu1 %vm325_vm0, %v7958_v12 }
 0x147   : > { %5387 = vmatprep.mubr.msk.f32.mxu0 %vm325_vm0, %v2343_v10 }
 0x149   : > { %5188 = vmatmul.mubr.msk.f32.gmra.mrb[30].mxu1 %vm325_vm0, %v7959_v26 }
 0x14a   : > { %5388 = vmatmul.mubr.msk.f32.gmra.mrb[30].mxu0 %vm325_vm0, %v2344_v14 }
 0x1c0   : > { %v5094_v27 = vpop.f32.mrb[0].mxu1 }
 0x1c1   : > { %v1590_v31 = vpop.f32.mrb[1].mxu1 }
 0x1c4   : > { %v5097_v32 = vpop.f32.mrb[2].mxu1 }
 0x1c5   : > { %v1600_v33 = vpop.f32.mrb[3].mxu1 }
 0x1c8   : > { %v5100_v34 = vpop.f32.mrb[4].mxu1 }
 0x1c9   : > { %v1610_v35 = vpop.f32.mrb[5].mxu1 }
 0x1cc   : > { %v6887_v36 = vpop.f32.mrb[6].mxu1 }
 0x1cd   : > { %v6889_v37 = vpop.f32.mrb[7].mxu1 }
 0x1d0   : > { %v6891_v38 = vpop.f32.mrb[8].mxu1 }
 0x1d1   : > { %v6893_v42 = vpop.f32.mrb[9].mxu1 }
 0x1d4   : > { %v6895_v44 = vpop.f32.mrb[10].mxu1 }
 0x1d5   : > { %v6897_v46 = vpop.f32.mrb[11].mxu1 }
 0x1d8   : > { %v6899_v47 = vpop.f32.mrb[12].mxu1 }
 0x1d9   : > { %v6901_v48 = vpop.f32.mrb[13].mxu1 }
 0x1dc   : > { %v6903_v49 = vpop.f32.mrb[14].mxu1 }
 0x1dd   : > { %v6905_v50 = vpop.f32.mrb[15].mxu1 }
 0x1de   : > { %7960 = vst [vmem:[#allocation3_spill] sm:$0xff] %v6905_v50 }
 0x1e1   : > { %v5344_v20 = vpop.f32.mrb[0].mxu0 }
 0x1e2   : > { %v5392_v22 = vadd.f32 %v5344_v20, %v5094_v27  ;;  %v3036_v53 = vpop.f32.mrb[1].mxu0 }
 0x1e3   : > { %v5393_v51 = vadd.f32 %v3036_v53, %v1590_v31 }
 0x1e4   : > { %v3235_v54 = vadd.f32 %v5392_v22, %v6910_v39 }
 0x1e5   : > { %v3234_v18 = vadd.f32 %v5393_v51, %v6910_v39  ;;  %v5347_v43 = vpop.f32.mrb[2].mxu0 }
 0x1e6   : > { %v3299_v45 = vmul.f32 0.70710677, %v3235_v54  ;;  %v5394_v29 = vadd.f32 %v5347_v43, %v5097_v32  ;;  %v3046_v40 = vpop.f32.mrb[3].mxu0  ;;  %v6918_v3 = vmul.f32 0.5, %v3235_v54 }
 0x1e7   : > { %v3298_v2 = vmul.f32 0.70710677, %v3234_v18  ;;  %v5395_v5 = vadd.f32 %v3046_v40, %v1600_v33  ;;  %v6924_v4 = vmul.f32 0.5, %v3234_v18 }
 0x1e8   : > { %v3395_v55 = vand.u32 2147483647, %v3299_v45  ;;  %v3237_v6 = vadd.f32 %v5394_v29, %v6910_v39  ;;  %vm3331_vm3 = vcmp.ge.f32.partialorder %v3299_v45, 0.0 }
 0x1e9   : > { %v3394_v58 = vand.u32 2147483647, %v3298_v2  ;;  %v3236_v60 = vadd.f32 %v5395_v5, %v6910_v39  ;;  %v5350_v62 = vpop.f32.mrb[4].mxu0  ;;  %vm3330_vm4 = vcmp.ge.f32.partialorder %v3298_v2, 0.0  ;;  %v6929_v25 = vsel %vm3331_vm3, 1.0, %v7920_v23 }
 0x1ea   : > { %v3427_v0 = vmul.f32 0.3275911, %v3395_v55  ;;  %v3056_v7 = vpop.f32.mrb[5].mxu0  ;;  %v3301_v11 = vmul.f32 0.70710677, %v3237_v6  ;;  %v3907_v15 = vsub.f32 0.0, %v3395_v55  ;;  %v5396_v1 = vadd.f32 %v5350_v62, %v5100_v34 }
 0x1eb   : > { %v3426_v9 = vmul.f32 0.3275911, %v3394_v58  ;;  %v6916_v16 = vmul.f32 0.70710677, %v3236_v60  ;;  %v3906_v28 = vsub.f32 0.0, %v3394_v58  ;;  %v5397_v19 = vadd.f32 %v3056_v7, %v1610_v35 }
 0x1ec   : > { %v3459_v13 = vadd.f32 1.0, %v3427_v0  ;;  %v3397_v30 = vand.u32 2147483647, %v3301_v11  ;;  %v3939_v57 = vmul.f32 %v3907_v15, %v3395_v55  ;;  %v6922_v63 = vadd.f32 %v5396_v1, %v6910_v39 }
 0x1ed   : > { %v3458_v21 = vadd.f32 1.0, %v3426_v9  ;;  %v5353_v41 = vpop.f32.mrb[6].mxu0  ;;  %v3396_v61 = vand.u32 2147483647, %v6916_v16  ;;  %v3938_v8 = vmul.f32 %v3906_v28, %v3394_v58  ;;  %v6932_v10 = vsel %vm3330_vm4, 1.0, %v7920_v23 }
 0x1ee   : > { %5674 = vrcp.f32 %v3459_v13  ;;  %v3066_v52 = vpop.f32.mrb[7].mxu0  ;;  %v3429_v56 = vmul.f32 0.3275911, %v3397_v30  ;;  %v3909_v59 = vsub.f32 0.0, %v3397_v30  ;;  %v6935_v14 = vmul.f32 0.70710677, %v6922_v63 }
 0x1ef   : > { %5676 = vrcp.f32 %v3458_v21  ;;  %v3428_v12 = vmul.f32 0.3275911, %v3396_v61  ;;  %vm3333_vm5 = vcmp.ge.f32.partialorder %v3301_v11, 0.0  ;;  %v6938_v26 = vadd.f32 %v5397_v19, %v6910_v39 }
 0x1f0   : > { %v3461_v17 = vadd.f32 1.0, %v3429_v56  ;;  %v5398_v27 = vadd.f32 %v5353_v41, %v6887_v36  ;;  %v3972_v32 = vmul.f32 1.442695, %v3939_v57  ;;  %v3941_v33 = vmul.f32 %v3909_v59, %v3397_v30 }
 0x1f1   : > { %v6926_v24 = vpop.f32.mrb[8].mxu0  ;;  %v3460_v34 = vadd.f32 1.0, %v3428_v12  ;;  %v3399_v35 = vand.u32 2147483647, %v6935_v14  ;;  %v3970_v20 = vmul.f32 1.442695, %v3938_v8  ;;  %v5399_v2 = vadd.f32 %v3066_v52, %v6889_v37 }
 0x1f2   : > { %5678 = vrcp.f32 %v3461_v17  ;;  %v6941_v31 = vpop.f32.mrb[9].mxu0  ;;  %v6944_v22 = vmul.f32 0.5, %v3237_v6  ;;  %v6947_v53 = vmul.f32 0.70710677, %v6938_v26  ;;  %v6951_v54 = vmul.f32 0.5, %v3236_v60 }
 0x1f3   : > { %5680 = vrcp.f32 %v3460_v34  ;;  %v3908_v18 = vsub.f32 0.0, %v3396_v61  ;;  %v3431_v36 = vmul.f32 0.3275911, %v3399_v35  ;;  %v6957_v45 = vsel %vm3333_vm5, 1.0, %v7920_v23 }
 0x1f4   : > { %v3398_v29 = vand.u32 2147483647, %v6947_v53  ;;  %v6961_v40 = vadd.f32 %v5398_v27, %v6910_v39  ;;  %5682 = vpow2.f32 %v3972_v32  ;;  %v3976_v55 = vmul.f32 1.442695, %v3941_v33 }
 0x1f5   : > { %v6949_v51 = vpop.f32.mrb[10].mxu0  ;;  %vm3332_vm6 = vcmp.ge.f32.partialorder %v6916_v16, 0.0  ;;  %v6965_v6 = vadd.f32 1.0, %v3431_v36  ;;  %5684 = vpow2.f32 %v3970_v20  ;;  %v3911_v62 = vsub.f32 0.0, %v3399_v35 }
 0x1f6   : > { %v6953_v43 = vpop.f32.mrb[11].mxu0  ;;  %v3430_v0 = vmul.f32 0.3275911, %v3398_v29  ;;  %v3940_v11 = vmul.f32 %v3908_v18, %v3396_v61  ;;  %v6971_v37 = vmul.f32 0.70710677, %v6961_v40  ;;  %v3910_v30 = vsub.f32 0.0, %v3398_v29 }
 0x1f7   : > { %5686 = vrcp.f32 %v6965_v6  ;;  %vm3335_vm7 = vcmp.ge.f32.partialorder %v6935_v14, 0.0  ;;  %v3943_v59 = vmul.f32 %v3911_v62, %v3399_v35  ;;  %vm3334_vm8 = vcmp.ge.f32.partialorder %v6947_v53, 0.0 }
 0x1f8   : > { %v5675_v5 = vpop.eup %5674  ;;  %v6975_v28 = vadd.f32 1.0, %v3430_v0  ;;  %5688 = vpow2.f32 %v3976_v55  ;;  %v3401_v52 = vand.u32 2147483647, %v6971_v37  ;;  %v3974_v33 = vmul.f32 1.442695, %v3940_v11 }
 0x1f9   : > { %v5677_v58 = vpop.eup %5676  ;;  %v3523_v60 = vmul.f32 %v5675_v5, %v3459_v13  ;;  %v6967_v7 = vpop.f32.mrb[12].mxu0  ;;  %v6978_v13 = vadd.f32 %v5399_v2, %v6910_v39  ;;  %v3942_v20 = vmul.f32 %v3910_v30, %v3398_v29  ;;  %vm3337_vm9 = vcmp.ge.f32.partialorder %v6971_v37, 0.0 }
 0x1fa   : > { %v3522_v9 = vmul.f32 %v5677_v58, %v3458_v21  ;;  %v6973_v15 = vpop.f32.mrb[13].mxu0  ;;  %v6983_v21 = vsel %vm3332_vm6, 1.0, %v7920_v23  ;;  %5690 = vrcp.f32 %v6975_v28  ;;  %v3433_v12 = vmul.f32 0.3275911, %v3401_v52 }
 0x1fb   : > { %v3555_v1 = vsub.f32 2.0, %v3523_v60  ;;  %v3913_v27 = vsub.f32 0.0, %v3401_v52  ;;  %v6998_v18 = vmul.f32 0.70710677, %v6978_v13  ;;  %v7006_v60 = vsel %vm3335_vm7, 1.0, %v7920_v23 }
 0x1fc   : > { %v3554_v41 = vsub.f32 2.0, %v3522_v9  ;;  %v5679_v56 = vpop.eup %5678  ;;  %v5404_v37 = vadd.f32 %v6967_v7, %v6899_v47 }
 0x1fd   : > { %v6986_v57 = vmul.f32 %v5675_v5, %v3555_v1  ;;  %v6990_v61 = vpop.f32.mrb[14].mxu0  ;;  %v3525_v19 = vmul.f32 %v5679_v56, %v3461_v17  ;;  %v5681_v36 = vpop.eup %5680  ;;  %v7001_v5 = vadd.f32 1.0, %v3433_v12  ;;  %v3945_v55 = vmul.f32 %v3913_v27, %v3401_v52 }
 0x1fe   : > { %v6992_v8 = vmul.f32 %v5677_v58, %v3554_v41  ;;  %v6994_v16 = vpop.f32.mrb[15].mxu0  ;;  %v3524_v17 = vmul.f32 %v5681_v36, %v3460_v34  ;;  %v3400_v62 = vand.u32 2147483647, %v6998_v18  ;;  %v7011_v0 = vpop.eup %5682  ;;  %v3980_v1 = vmul.f32 1.442695, %v3943_v59 }
 0x1ff   : > { %7961 = vst [vmem:[#allocation4_spill] sm:$0xff] %v6994_v16  ;;  %v3619_v32 = vmul.f32 1.0614054, %v6986_v57  ;;  %v3557_v2 = vsub.f32 2.0, %v3525_v19  ;;  %5692 = vrcp.f32 %v7001_v5  ;;  %v7020_v41 = vpop.eup %5684  ;;  %v3978_v19 = vmul.f32 1.442695, %v3942_v20 }
 0x200   : > { %v3618_v35 = vmul.f32 1.0614054, %v6992_v8  ;;  %v7009_v29 = vpop.f32.mrb[16].mxu1  ;;  %v3556_v52 = vsub.f32 2.0, %v3524_v17  ;;  %v3432_v12 = vmul.f32 0.3275911, %v3400_v62  ;;  %5694 = vpow2.f32 %v3974_v33 }
 0x201   : > { %v3651_v58 = vadd.f32 -1.4531521, %v3619_v32  ;;  %7962 = vst [vmem:[#allocation5_spill] sm:$0xff] %v7009_v29  ;;  %v7013_v11 = vmul.f32 %v5679_v56, %v3557_v2  ;;  %v7016_v30 = vpop.f32.mrb[16].mxu0  ;;  %v7018_v34 = vpop.f32.mrb[17].mxu1  ;;  %v3912_v2 = vsub.f32 0.0, %v3400_v62 }
 0x202   : > { %v3650_v9 = vadd.f32 -1.4531521, %v3618_v35  ;;  %7963 = vst [vmem:[#allocation6_spill] sm:$0xff] %v7016_v30  ;;  %7964 = vst [vmem:[#allocation7_spill] sm:$0xff] %v7018_v34  ;;  %v7023_v27 = vpop.f32.mrb[17].mxu0  ;;  %v5687_v32 = vpop.eup %5686  ;;  %v7027_v30 = vmul.f32 %v5681_v36, %v3556_v52  ;;  %v7030_v29 = vadd.f32 1.0, %v3432_v12 }
 0x203   : > { %v3683_v14 = vmul.f32 %v3651_v58, %v6986_v57  ;;  %7965 = vst [vmem:[#allocation8_spill] sm:$0xff] %v7023_v27  ;;  %v3621_v59 = vmul.f32 1.0614054, %v7013_v11  ;;  %v3984_v35 = vmul.f32 1.442695, %v3945_v55  ;;  %v3527_v34 = vmul.f32 %v5687_v32, %v6965_v6  ;;  %v7036_v17 = vpop.eup %5688 }
 0x204   : > { %v3682_v56 = vmul.f32 %v3650_v9, %v6992_v8  ;;  %v7032_v58 = vpop.f32.mrb[18].mxu1  ;;  %v5400_v55 = vadd.f32 %v6926_v24, %v6891_v38  ;;  %v3620_v52 = vmul.f32 1.0614054, %v7027_v30  ;;  %5696 = vrcp.f32 %v7030_v29 }
 0x205   : > { %v3715_v23 = vadd.f32 1.4214138, %v3683_v14  ;;  %7966 = vst [vmem:[#allocation9_spill] sm:$0xff] %v7032_v58  ;;  %v7034_v20 = vpop.f32.mrb[18].mxu0  ;;  %v3653_v16 = vadd.f32 -1.4531521, %v3621_v59  ;;  %v5691_v14 = vpop.eup %5690  ;;  %5698 = vpow2.f32 %v3980_v1 }
 0x206   : > { %7967 = vst [vmem:[#allocation10_spill] sm:$0xff] %v7034_v20  ;;  %v3714_v27 = vadd.f32 1.4214138, %v3682_v56  ;;  %v7040_v9 = vpop.f32.mrb[19].mxu1  ;;  %v7042_v36 = vpop.f32.mrb[19].mxu0  ;;  %v3559_v12 = vsub.f32 2.0, %v3527_v34  ;;  %v3526_v33 = vmul.f32 %v5691_v14, %v6975_v28  ;;  %5700 = vpow2.f32 %v3978_v19 }
 0x207   : > { %7968 = vst [vmem:[#allocation11_spill] sm:$0xff] %v7040_v9  ;;  %7969 = vst [vmem:[#allocation12_spill] sm:$0xff] %v7042_v36  ;;  %v3747_v6 = vmul.f32 %v3715_v23, %v6986_v57  ;;  %v3685_v56 = vmul.f32 %v3653_v16, %v7013_v11  ;;  %v3652_v24 = vadd.f32 -1.4531521, %v3620_v52  ;;  %5702 = vpow2.f32 %v3984_v35 }
 0x208   : > { %v3746_v20 = vmul.f32 %v3714_v27, %v6992_v8  ;;  %v7050_v59 = vmul.f32 %v5687_v32, %v3559_v12  ;;  %v7052_v36 = vpop.f32.mrb[20].mxu1  ;;  %v3558_v58 = vsub.f32 2.0, %v3526_v33  ;;  %v7061_v27 = vmul.f32 %v3912_v2, %v3400_v62 }
 0x209   : > { %v3779_v38 = vadd.f32 -0.28449672, %v3747_v6  ;;  %v7054_v23 = vpop.f32.mrb[20].mxu0  ;;  %v3717_v34 = vadd.f32 1.4214138, %v3685_v56  ;;  %v7056_v50 = vpop.f32.mrb[21].mxu1  ;;  %v3684_v1 = vmul.f32 %v3652_v24, %v7027_v30  ;;  %v7070_v35 = vadd.f32 %v5400_v55, %v6910_v39 }
 0x20a   : > { %7970 = vst [vmem:[#allocation13_spill] sm:$0xff] %v7054_v23  ;;  %v3778_v9 = vadd.f32 -0.28449672, %v3746_v20  ;;  %7971 = vst [vmem:[#allocation14_spill] sm:$0xff] %v7056_v50  ;;  %v3623_v28 = vmul.f32 1.0614054, %v7050_v59  ;;  %v5693_v19 = vpop.eup %5692  ;;  %v7067_v52 = vmul.f32 %v5691_v14, %v3558_v58 }
 0x20b   : > { %v3811_v16 = vmul.f32 %v3779_v38, %v6986_v57  ;;  %v7063_v32 = vpop.f32.mrb[21].mxu0  ;;  %v3749_v20 = vmul.f32 %v3717_v34, %v7013_v11  ;;  %v3716_v56 = vadd.f32 1.4214138, %v3684_v1  ;;  %v3529_v38 = vmul.f32 %v5693_v19, %v7001_v5  ;;  %v5695_v5 = vpop.eup %5694 }
 0x20c   : > { %7972 = vst [vmem:[#allocation15_spill] sm:$0xff] %v7063_v32  ;;  %v3810_v6 = vmul.f32 %v3778_v9, %v6992_v8  ;;  %v3655_v33 = vadd.f32 -1.4531521, %v3623_v28  ;;  %v3622_v2 = vmul.f32 1.0614054, %v7067_v52  ;;  %v7076_v32 = vadd.f32 %v6941_v31, %v6893_v42  ;;  %v7081_v34 = vpop.f32.mrb[22].mxu1 }
 0x20d   : > { %v3843_v12 = vadd.f32 0.2548296, %v3811_v16  ;;  %v3781_v62 = vadd.f32 -0.28449672, %v3749_v20  ;;  %v3748_v58 = vmul.f32 %v3716_v56, %v7027_v30  ;;  %v3561_v14 = vsub.f32 2.0, %v3529_v38  ;;  %7973 = vst [vmem:[#allocation16_spill] sm:$0xff] %v7081_v34 }
 0x20e   : > { %v3842_v24 = vadd.f32 0.2548296, %v3810_v6  ;;  %v3687_v55 = vmul.f32 %v3655_v33, %v7050_v59  ;;  %v7083_v16 = vpop.f32.mrb[22].mxu0  ;;  %v3654_v6 = vadd.f32 -1.4531521, %v3622_v2  ;;  %v7090_v31 = vpop.f32.mrb[23].mxu1 }
 0x20f   : > { %v3875_v9 = vmul.f32 %v3843_v12, %v6986_v57  ;;  %7974 = vst [vmem:[#allocation17_spill] sm:$0xff] %v7083_v16  ;;  %v3813_v28 = vmul.f32 %v3781_v62, %v7013_v11  ;;  %v7088_v42 = vmul.f32 0.70710677, %v7070_v35  ;;  %7975 = vst [vmem:[#allocation18_spill] sm:$0xff] %v7090_v31  ;;  %v7092_v57 = vpop.f32.mrb[23].mxu0  ;;  %v5697_v20 = vpop.eup %5696  ;;  %v7095_v38 = vmul.f32 %v5693_v19, %v3561_v14 }
 0x210   : > { %v3874_v1 = vmul.f32 %v3842_v24, %v6992_v8  ;;  %7976 = vst [vmem:[#allocation19_spill] sm:$0xff] %v7092_v57  ;;  %v3780_v56 = vadd.f32 -0.28449672, %v3748_v58  ;;  %v3719_v33 = vadd.f32 1.4214138, %v3687_v55  ;;  %v7097_v16 = vpop.f32.mrb[24].mxu1  ;;  %v5699_v24 = vpop.eup %5698  ;;  %v3686_v34 = vmul.f32 %v3654_v6, %v7067_v52 }
 0x211   : > { %v4035_v12 = vmul.f32 %v7011_v0, %v3875_v9  ;;  %7977 = vst [vmem:[#allocation20_spill] sm:$0xff] %v7097_v16  ;;  %v7099_v8 = vpop.f32.mrb[24].mxu0  ;;  %v3845_v2 = vadd.f32 0.2548296, %v3813_v28  ;;  %v3528_v31 = vmul.f32 %v5697_v20, %v7030_v29  ;;  %v7104_v57 = vpop.f32.mrb[25].mxu1  ;;  %vm3336_vm10 = vcmp.ge.f32.partialorder %v6998_v18, 0.0 }
 0x212   : > { %7978 = vst [vmem:[#allocation21_spill] sm:$0xff] %v7099_v8  ;;  %v4034_v62 = vmul.f32 %v7020_v41, %v3874_v1  ;;  %7979 = vst [vmem:[#allocation22_spill] sm:$0xff] %v7104_v57  ;;  %v7106_v50 = vpop.f32.mrb[25].mxu0  ;;  %v7108_v0 = vpop.eup %5700  ;;  %v3812_v9 = vmul.f32 %v3780_v56, %v7027_v30  ;;  %v3751_v58 = vmul.f32 %v3719_v33, %v7050_v59  ;;  %v3625_v55 = vmul.f32 1.0614054, %v7095_v38 }
 0x213   : > { %7980 = vst [vmem:[#allocation23_spill] sm:$0xff] %v7106_v50  ;;  %v4067_v19 = vsub.f32 1.0, %v4035_v12  ;;  %v7113_v14 = vpop.eup %5702  ;;  %v3877_v1 = vmul.f32 %v3845_v2, %v7013_v11  ;;  %v3718_v28 = vadd.f32 1.4214138, %v3686_v34  ;;  %v3560_v29 = vsub.f32 2.0, %v3528_v31 }
 0x214   : > { %v4066_v41 = vsub.f32 1.0, %v4034_v62  ;;  %v3844_v50 = vadd.f32 0.2548296, %v3812_v9  ;;  %v3783_v57 = vadd.f32 -0.28449672, %v3751_v58  ;;  %v7122_v23 = vpop.f32.mrb[26].mxu1 }
 0x215   : > { %v4099_v6 = vmul.f32 %v4067_v19, %v6929_v25  ;;  %v3657_v8 = vadd.f32 -1.4531521, %v3625_v55  ;;  %v4037_v56 = vmul.f32 %v7036_v17, %v3877_v1  ;;  %v3750_v33 = vmul.f32 %v3718_v28, %v7067_v52  ;;  %v7124_v62 = vpop.f32.mrb[26].mxu0 }
 0x216   : > { %v4098_v12 = vmul.f32 %v4066_v41, %v6932_v10  ;;  %v7120_v16 = vmul.f32 %v5697_v20, %v3560_v29  ;;  %v3876_v34 = vmul.f32 %v3844_v50, %v7027_v30  ;;  %v3815_v25 = vmul.f32 %v3783_v57, %v7050_v59 }
 0x217   : > { %v4131_v11 = vadd.f32 1.0, %v4099_v6  ;;  %v3689_v31 = vmul.f32 %v3657_v8, %v7095_v38  ;;  %v4069_v17 = vsub.f32 1.0, %v4037_v56  ;;  %v3782_v20 = vadd.f32 -0.28449672, %v3750_v33  ;;  %v7157_v33 = vpop.f32.mrb[27].mxu1 }
 0x218   : > { %v4130_v10 = vadd.f32 1.0, %v4098_v12  ;;  %v3624_v2 = vmul.f32 1.0614054, %v7120_v16  ;;  %v4036_v50 = vmul.f32 %v5695_v5, %v3876_v34  ;;  %v3847_v30 = vadd.f32 0.2548296, %v3815_v25 }
 0x219   : > { %v4163_v19 = vmul.f32 %v4131_v11, %v6918_v3  ;;  %v3721_v57 = vadd.f32 1.4214138, %v3689_v31  ;;  %v4101_v9 = vmul.f32 %v4069_v17, %v6957_v45  ;;  %v3814_v58 = vmul.f32 %v3782_v20, %v7067_v52 }
 0x21a   : > { %v4162_v8 = vmul.f32 %v4130_v10, %v6924_v4  ;;  %v3656_v55 = vadd.f32 -1.4531521, %v3624_v2  ;;  %v4068_v41 = vsub.f32 1.0, %v4036_v50  ;;  %v3879_v1 = vmul.f32 %v3847_v30, %v7050_v59 }
 0x21b   : > { %4195 = vst.msk [vmem:[%s7134_s10 + $0x8] sm:$0xff] %vm325_vm0, %v4163_v19  ;;  %v3753_v28 = vmul.f32 %v3721_v57, %v7095_v38  ;;  %v3982_v29 = vmul.f32 1.442695, %v7061_v27  ;;  %v4133_v3 = vadd.f32 1.0, %v4101_v9  ;;  %v3846_v5 = vadd.f32 0.2548296, %v3814_v58 }
 0x21c   : > { %4194 = vst.msk [vmem:[%s7134_s10] sm:$0xff] %vm325_vm0, %v4162_v8  ;;  %v3688_v4 = vmul.f32 %v3656_v55, %v7120_v16  ;;  %v7150_v45 = vand.u32 2147483647, %v7088_v42  ;;  %v4100_v6 = vmul.f32 %v4068_v41, %v6983_v21  ;;  %v4039_v12 = vmul.f32 %v5699_v24, %v3879_v1  ;;  %v7159_v27 = vpop.f32.mrb[27].mxu0 }
 0x21d   : > { %v3785_v56 = vadd.f32 -0.28449672, %v3753_v28  ;;  %v7155_v59 = vadd.f32 %v7076_v32, %v6910_v39  ;;  %v4165_v11 = vmul.f32 %v4133_v3, %v6944_v22  ;;  %v3878_v34 = vmul.f32 %v3846_v5, %v7067_v52 }
 0x21e   : > { %v3720_v25 = vadd.f32 1.4214138, %v3688_v4  ;;  %v3435_v31 = vmul.f32 0.3275911, %v7150_v45  ;;  %v4132_v10 = vadd.f32 1.0, %v4100_v6  ;;  %v4071_v17 = vsub.f32 1.0, %v4039_v12 }
 0x21f   : > { %v3817_v21 = vmul.f32 %v3785_v56, %v7095_v38  ;;  %5704 = vpow2.f32 %v3982_v29  ;;  %4197 = vst.msk [vmem:[%s7134_s10 + $0x18] sm:$0xff] %vm325_vm0, %v4165_v11  ;;  %v4038_v32 = vmul.f32 %v7108_v0, %v3878_v34  ;;  %v3271_v20 = vmul.f32 0.5, %v6922_v63  ;;  %v7204_v34 = vpop.f32.mrb[28].mxu1 }
 0x220   : > { %v3752_v24 = vmul.f32 %v3720_v25, %v7120_v16  ;;  %v3467_v22 = vadd.f32 1.0, %v3435_v31  ;;  %v4164_v52 = vmul.f32 %v4132_v10, %v6951_v54  ;;  %v4103_v2 = vmul.f32 %v4071_v17, %v7006_v60  ;;  %v7213_v25 = vpop.f32.mrb[29].mxu1 }
 0x221   : > { %v3849_v19 = vadd.f32 0.2548296, %v3817_v21  ;;  %v4070_v50 = vsub.f32 1.0, %v4038_v32  ;;  %v7174_v57 = vmul.f32 0.70710677, %v7155_v59  ;;  %v7981_v0 = vmov -1.0  }
 0x222   : > { %v3784_v30 = vadd.f32 -0.28449672, %v3752_v24  ;;  %5706 = vrcp.f32 %v3467_v22  ;;  %4196 = vst.msk [vmem:[%s7134_s10 + $0x10] sm:$0xff] %vm325_vm0, %v4164_v52  ;;  %v4135_v53 = vadd.f32 1.0, %v4103_v2  ;;  %v3366_v8 = vsel %vm3334_vm8, 1.0, %v7981_v0 }
 0x223   : > { %v3881_v9 = vmul.f32 %v3849_v19, %v7095_v38  ;;  %v5402_v63 = vadd.f32 %v6949_v51, %v6895_v44  ;;  %v4102_v54 = vmul.f32 %v4070_v50, %v3366_v8  ;;  %v3402_v58 = vand.u32 2147483647, %v7174_v57 }
 0x224   : > { %v3816_v60 = vmul.f32 %v3784_v30, %v7120_v16  ;;  %v4167_v55 = vmul.f32 %v4135_v53, %v3271_v20  ;;  %v3270_v1 = vmul.f32 0.5, %v6938_v26  ;;  %v5403_v51 = vadd.f32 %v6953_v43, %v6897_v46  ;;  %v7206_v46 = vpop.f32.mrb[28].mxu0 }
 0x225   : > { %v4041_v41 = vmul.f32 %v7113_v14, %v3881_v9  ;;  %v4134_v28 = vadd.f32 1.0, %v4102_v54  ;;  %v3434_v3 = vmul.f32 0.3275911, %v3402_v58  ;;  %v7190_v44 = vadd.f32 %v5402_v63, %v6910_v39  ;;  %v7222_v18 = vpop.f32.mrb[29].mxu0 }
 0x226   : > { %v3848_v29 = vadd.f32 0.2548296, %v3816_v60  ;;  %4199 = vst.msk [vmem:[%s7134_s10 + $0x28] sm:$0xff] %vm325_vm0, %v4167_v55  ;;  %v3369_v14 = vsel %vm3337_vm9, 1.0, %v7981_v0  ;;  %v7202_v11 = vadd.f32 %v5403_v51, %v6910_v39  ;;  %v3273_v43 = vmul.f32 0.5, %v6961_v40 }
 0x227   : > { %v4073_v38 = vsub.f32 1.0, %v4041_v41  ;;  %v4166_v5 = vmul.f32 %v4134_v28, %v3270_v1  ;;  %v3466_v4 = vadd.f32 1.0, %v3434_v3  ;;  %v7199_v56 = vmul.f32 0.70710677, %v7190_v44 }
 0x228   : > { %v3880_v26 = vmul.f32 %v3848_v29, %v7120_v16  ;;  %v3915_v17 = vsub.f32 0.0, %v7150_v45  ;;  %v7217_v21 = vmul.f32 0.70710677, %v7202_v11  ;;  %v7220_v32 = vadd.f32 %v5404_v37, %v6910_v39  ;;  %v7260_v37 = vpop.f32.mrb[30].mxu0 }
 0x229   : > { %v5705_v6 = vpop.eup %5704  ;;  %v4105_v12 = vmul.f32 %v4073_v38, %v3369_v14  ;;  %4198 = vst.msk [vmem:[%s7134_s10 + $0x20] sm:$0xff] %vm325_vm0, %v4166_v5  ;;  %5708 = vrcp.f32 %v3466_v4  ;;  %v3405_v16 = vand.u32 2147483647, %v7199_v56  ;;  %v3368_v40 = vsel %vm3336_vm10, 1.0, %v7981_v0 }
 0x22a   : > { %v4040_v47 = vmul.f32 %v5705_v6, %v3880_v26  ;;  %v3914_v19 = vsub.f32 0.0, %v3402_v58  ;;  %v3404_v50 = vand.u32 2147483647, %v7217_v21  ;;  %v3272_v30 = vmul.f32 0.5, %v6978_v13 }
 0x22b   : > { %v4137_v7 = vadd.f32 1.0, %v4105_v12  ;;  %v3437_v20 = vmul.f32 0.3275911, %v3405_v16  ;;  %vm3339_vm11 = vcmp.ge.f32.partialorder %v7088_v42, 0.0  ;;  %v3947_v63 = vmul.f32 %v3915_v17, %v7150_v45 }
 0x22c   : > { %v5707_v31 = vpop.eup %5706  ;;  %v4072_v10 = vsub.f32 1.0, %v4040_v47  ;;  %v3436_v54 = vmul.f32 0.3275911, %v3404_v50  ;;  %v7235_v60 = vmul.f32 0.5, %v7070_v35  ;;  %v5405_v13 = vadd.f32 %v6973_v15, %v6901_v48 }
 0x22d   : > { %v4169_v24 = vmul.f32 %v4137_v7, %v3273_v43  ;;  %v3531_v52 = vmul.f32 %v5707_v31, %v3467_v22  ;;  %v3469_v8 = vadd.f32 1.0, %v3437_v20  ;;  %v7232_v22 = vmul.f32 0.70710677, %v7220_v32 }
 0x22e   : > { %v4104_v2 = vmul.f32 %v4072_v10, %v3368_v40  ;;  %v7242_v41 = vsel %vm3339_vm11, 1.0, %v7981_v0  ;;  %v3946_v1 = vmul.f32 %v3914_v19, %v3402_v58  ;;  %v3468_v45 = vadd.f32 1.0, %v3436_v54  ;;  %v7258_v58 = vpop.f32.mrb[30].mxu1 }
 0x22f   : > { %4201 = vst.msk [vmem:[%s7134_s10 + $0x38] sm:$0xff] %vm325_vm0, %v4169_v24  ;;  %v3563_v53 = vsub.f32 2.0, %v3531_v52  ;;  %5710 = vrcp.f32 %v3469_v8  ;;  %v7246_v29 = vmul.f32 0.5, %v7155_v59  ;;  %v3917_v3 = vsub.f32 0.0, %v3405_v16  ;;  %v7285_v40 = vpop.f32.mrb[31].mxu1 }
 0x230   : > { %v4136_v9 = vadd.f32 1.0, %v4104_v2  ;;  %v7249_v35 = vand.u32 2147483647, %v7232_v22  ;;  %v3988_v51 = vmul.f32 1.442695, %v3947_v63  ;;  %5712 = vrcp.f32 %v3468_v45 }
 0x231   : > { %v7237_v55 = vmul.f32 %v5707_v31, %v3563_v53  ;;  %v7254_v48 = vadd.f32 %v5405_v13, %v6910_v39  ;;  %v5406_v15 = vadd.f32 %v6990_v61, %v6903_v49  ;;  %vm3338_vm12 = vcmp.ge.f32.partialorder %v7174_v57, 0.0 }
 0x232   : > { %v4168_v42 = vmul.f32 %v4136_v9, %v3272_v30  ;;  %v3439_v14 = vmul.f32 0.3275911, %v7249_v35  ;;  %v3986_v26 = vmul.f32 1.442695, %v3946_v1  ;;  %vm3341_vm13 = vcmp.ge.f32.partialorder %v7199_v56, 0.0  ;;  %v7983_v56 = vld [vmem:[#allocation3_spill] sm:$0xff] }
 0x233   : > { %v3627_v28 = vmul.f32 1.0614054, %v7237_v55  ;;  %v5709_v38 = vpop.eup %5708  ;;  %v7266_v6 = vmul.f32 0.70710677, %v7254_v48  ;;  %v7269_v12 = vadd.f32 %v5406_v15, %v6910_v39  ;;  %v3949_v47 = vmul.f32 %v3917_v3, %v3405_v16  ;;  %v7287_v16 = vpop.f32.mrb[31].mxu0  ;;  %v7984_v1 = vld [vmem:[#allocation4_spill] sm:$0xff] }
 0x234   : > { %4200 = vst.msk [vmem:[%s7134_s10 + $0x30] sm:$0xff] %vm325_vm0, %v4168_v42  ;;  %v3530_v5 = vmul.f32 %v5709_v38, %v3466_v4  ;;  %v3471_v43 = vadd.f32 1.0, %v3439_v14  ;;  %5714 = vpow2.f32 %v3988_v51  ;;  %v3916_v7 = vsub.f32 0.0, %v3404_v50  ;;  %7982 = vst [vmem:[#allocation24_spill] sm:$0xff] %v7287_v16  ;;  %v7985_v3 = vld [vmem:[#allocation5_spill] sm:$0xff] }
 0x235   : > { %v3659_v59 = vadd.f32 -1.4531521, %v3627_v28  ;;  %v7273_v4 = vand.u32 2147483647, %v7266_v6  ;;  %v7276_v31 = vmul.f32 0.70710677, %v7269_v12  ;;  %v5407_v28 = vadd.f32 %v7984_v1, %v7983_v56 }
 0x236   : > { %v3562_v61 = vsub.f32 2.0, %v3530_v5  ;;  %v7281_v17 = vsel %vm3338_vm12, 1.0, %v7981_v0  ;;  %5716 = vrcp.f32 %v3471_v43  ;;  %v7290_v52 = vmul.f32 0.5, %v7190_v44 }
 0x237   : > { %v3691_v49 = vmul.f32 %v3659_v59, %v7237_v55  ;;  %5718 = vpow2.f32 %v3986_v26  ;;  %v7295_v20 = vsel %vm3341_vm13, 1.0, %v7981_v0  ;;  %v3438_v57 = vmul.f32 0.3275911, %v7273_v4 }
 0x238   : > { %v7283_v24 = vmul.f32 %v5709_v38, %v3562_v61  ;;  %v3992_v53 = vmul.f32 1.442695, %v3949_v47  ;;  %vm3340_vm14 = vcmp.ge.f32.partialorder %v7217_v21, 0.0  ;;  %v3948_v63 = vmul.f32 %v3916_v7, %v3404_v50  ;;  %v7986_v38 = vld [vmem:[#allocation6_spill] sm:$0xff] }
 0x239   : > { %v3723_v10 = vadd.f32 1.4214138, %v3691_v49  ;;  %v5711_v2 = vpop.eup %5710  ;;  %v3470_v54 = vadd.f32 1.0, %v3438_v57  ;;  %v3409_v44 = vand.u32 2147483647, %v7276_v31  ;;  %v7306_v51 = vadd.f32 %v7986_v38, %v7985_v3 }
 0x23a   : > { %v3626_v30 = vmul.f32 1.0614054, %v7283_v24  ;;  %v3533_v9 = vmul.f32 %v5711_v2, %v3469_v8  ;;  %v5713_v15 = vpop.eup %5712  ;;  %v7309_v5 = vsel %vm3340_vm14, 1.0, %v7981_v0  ;;  %v3919_v26 = vsub.f32 0.0, %v7249_v35 }
 0x23b   : > { %v3755_v19 = vmul.f32 %v3723_v10, %v7237_v55  ;;  %5720 = vrcp.f32 %v3470_v54  ;;  %v3441_v21 = vmul.f32 0.3275911, %v3409_v44  ;;  %v3532_v14 = vmul.f32 %v5713_v15, %v3468_v45 }
 0x23c   : > { %v3658_v42 = vadd.f32 -1.4531521, %v3626_v30  ;;  %v3565_v59 = vsub.f32 2.0, %v3533_v9  ;;  %v3990_v61 = vmul.f32 1.442695, %v3948_v63  ;;  %v7317_v7 = vadd.f32 %v5407_v28, %v6910_v39 }
 0x23d   : > { %v3787_v13 = vadd.f32 -0.28449672, %v3755_v19  ;;  %v3473_v47 = vadd.f32 1.0, %v3441_v21  ;;  %5722 = vpow2.f32 %v3992_v53  ;;  %v3564_v19 = vsub.f32 2.0, %v3532_v14 }
 0x23e   : > { %v3690_v8 = vmul.f32 %v3658_v42, %v7283_v24  ;;  %v7314_v49 = vmul.f32 %v5711_v2, %v3565_v59  ;;  %v5715_v30 = vpop.eup %5714  ;;  %v7322_v45 = vmul.f32 0.70710677, %v7317_v7  ;;  %v3951_v1 = vmul.f32 %v3919_v26, %v7249_v35 }
 0x23f   : > { %v3819_v50 = vmul.f32 %v3787_v13, %v7237_v55  ;;  %v3918_v13 = vsub.f32 0.0, %v7273_v4  ;;  %5724 = vrcp.f32 %v3473_v47  ;;  %v7326_v56 = vmul.f32 %v5713_v15, %v3564_v19 }
 0x240   : > { %v3722_v57 = vadd.f32 1.4214138, %v3690_v8  ;;  %v3629_v9 = vmul.f32 1.0614054, %v7314_v49  ;;  %v5717_v2 = vpop.eup %5716  ;;  %v3921_v38 = vsub.f32 0.0, %v3409_v44  ;;  %5726 = vpow2.f32 %v3990_v61 }
 0x241   : > { %v3851_v10 = vadd.f32 0.2548296, %v3819_v50  ;;  %v5719_v53 = vpop.eup %5718  ;;  %v3535_v3 = vmul.f32 %v5717_v2, %v3471_v43  ;;  %v7330_v59 = vand.u32 2147483647, %v7322_v45  ;;  %v3628_v8 = vmul.f32 1.0614054, %v7326_v56 }
 0x242   : > { %v3754_v42 = vmul.f32 %v3722_v57, %v7283_v24  ;;  %v3661_v28 = vadd.f32 -1.4531521, %v3629_v9  ;;  %v3950_v15 = vmul.f32 %v3918_v13, %v7273_v4  ;;  %v3996_v57 = vmul.f32 1.442695, %v3951_v1 }
 0x243   : > { %v3883_v63 = vmul.f32 %v3851_v10, %v7237_v55  ;;  %v3567_v14 = vsub.f32 2.0, %v3535_v3  ;;  %v3440_v10 = vmul.f32 0.3275911, %v7330_v59  ;;  %v3660_v43 = vadd.f32 -1.4531521, %v3628_v8 }
 0x244   : > { %v3786_v50 = vadd.f32 -0.28449672, %v3754_v42  ;;  %v3693_v55 = vmul.f32 %v3661_v28, %v7314_v49  ;;  %vm3343_vm15 = vcmp.ge.f32.partialorder %v7232_v22, 0.0  ;;  %vm3342_vm1 = vcmp.ge.f32.partialorder %v7266_v6, 0.0 }
 0x245   : > { %v4043_v21 = vmul.f32 %v5715_v30, %v3883_v63  ;;  %v5721_v19 = vpop.eup %5720  ;;  %v7337_v16 = vmul.f32 %v5717_v2, %v3567_v14  ;;  %v3953_v30 = vmul.f32 %v3921_v38, %v3409_v44  ;;  %v3472_v63 = vadd.f32 1.0, %v3440_v10  ;;  %v7987_v10 = vld [vmem:[#allocation7_spill] sm:$0xff] }
 0x246   : > { %v3818_v26 = vmul.f32 %v3786_v50, %v7283_v24  ;;  %v3725_v9 = vadd.f32 1.4214138, %v3693_v55  ;;  %v3692_v28 = vmul.f32 %v3660_v43, %v7326_v56  ;;  %v3534_v3 = vmul.f32 %v5721_v19, %v3470_v54 }
 0x247   : > { %v4075_v35 = vsub.f32 1.0, %v4043_v21  ;;  %v3631_v13 = vmul.f32 1.0614054, %v7337_v16  ;;  %v3994_v21 = vmul.f32 1.442695, %v3950_v15  ;;  %5728 = vrcp.f32 %v3472_v63  ;;  %v5723_v50 = vpop.eup %5722 }
 0x248   : > { %v3850_v42 = vadd.f32 0.2548296, %v3818_v26  ;;  %v3757_v4 = vmul.f32 %v3725_v9, %v7314_v49  ;;  %v3724_v2 = vadd.f32 1.4214138, %v3692_v28  ;;  %v3566_v44 = vsub.f32 2.0, %v3534_v3 }
 0x249   : > { %v4107_v61 = vmul.f32 %v4075_v35, %v7242_v41  ;;  %v5725_v38 = vpop.eup %5724  ;;  %v3663_v41 = vadd.f32 -1.4531521, %v3631_v13  ;;  %v4000_v14 = vmul.f32 1.442695, %v3953_v30  ;;  %v7988_v35 = vld [vmem:[#allocation8_spill] sm:$0xff]  ;;  %v7354_v28 = vadd.f32 %v7306_v51, %v6910_v39 }
 0x24a   : > { %v3882_v8 = vmul.f32 %v3850_v42, %v7283_v24  ;;  %v3789_v55 = vadd.f32 -0.28449672, %v3757_v4  ;;  %v5409_v54 = vadd.f32 %v7988_v35, %v7987_v10  ;;  %v3756_v15 = vmul.f32 %v3724_v2, %v7326_v56  ;;  %v5727_v30 = vpop.eup %5726 }
 0x24b   : > { %v4139_v1 = vadd.f32 1.0, %v4107_v61  ;;  %v7348_v9 = vmul.f32 %v5721_v19, %v3566_v44  ;;  %v3695_v24 = vmul.f32 %v3663_v41, %v7337_v16  ;;  %v3537_v42 = vmul.f32 %v5725_v38, %v3473_v47 }
 0x24c   : > { %v4042_v43 = vmul.f32 %v5719_v53, %v3882_v8  ;;  %v3821_v61 = vmul.f32 %v3789_v55, %v7314_v49  ;;  %v3788_v4 = vadd.f32 -0.28449672, %v3756_v15  ;;  %5730 = vpow2.f32 %v3996_v57 }
 0x24d   : > { %v4171_v26 = vmul.f32 %v4139_v1, %v7235_v60  ;;  %v3630_v60 = vmul.f32 1.0614054, %v7348_v9  ;;  %v3727_v19 = vadd.f32 1.4214138, %v3695_v24  ;;  %v3569_v13 = vsub.f32 2.0, %v3537_v42 }
 0x24e   : > { %v4074_v3 = vsub.f32 1.0, %v4042_v43  ;;  %v3853_v53 = vadd.f32 0.2548296, %v3821_v61  ;;  %v3920_v1 = vsub.f32 0.0, %v7330_v59  ;;  %v3820_v47 = vmul.f32 %v3788_v4, %v7326_v56 }
 0x24f   : > { %4203 = vst.msk [vmem:[%s7134_s10 + $0x48] sm:$0xff] %vm325_vm0, %v4171_v26  ;;  %v3662_v2 = vadd.f32 -1.4531521, %v3630_v60  ;;  %5732 = vpow2.f32 %v3994_v21  ;;  %v3759_v51 = vmul.f32 %v3727_v19, %v7337_v16  ;;  %v7364_v44 = vmul.f32 %v5725_v38, %v3569_v13 }
 0x250   : > { %v4106_v8 = vmul.f32 %v4074_v3, %v7281_v17  ;;  %v3885_v39 = vmul.f32 %v3853_v53, %v7314_v49  ;;  %v7367_v57 = vmul.f32 0.70710677, %v7354_v28  ;;  %v3852_v41 = vadd.f32 0.2548296, %v3820_v47 }
 0x251   : > { %v3694_v17 = vmul.f32 %v3662_v2, %v7348_v9  ;;  %5734 = vpow2.f32 %v4000_v14  ;;  %v5729_v10 = vpop.eup %5728  ;;  %v3791_v21 = vadd.f32 -0.28449672, %v3759_v51  ;;  %v3633_v49 = vmul.f32 1.0614054, %v7364_v44 }
 0x252   : > { %v4138_v55 = vadd.f32 1.0, %v4106_v8  ;;  %v4045_v35 = vmul.f32 %v5723_v50, %v3885_v39  ;;  %v3952_v26 = vmul.f32 %v3920_v1, %v7330_v59  ;;  %v3884_v43 = vmul.f32 %v3852_v41, %v7326_v56 }
 0x253   : > { %v3726_v15 = vadd.f32 1.4214138, %v3694_v17  ;;  %v3536_v61 = vmul.f32 %v5729_v10, %v3472_v63  ;;  %v3823_v42 = vmul.f32 %v3791_v21, %v7337_v16  ;;  %v3665_v3 = vadd.f32 -1.4531521, %v3633_v49 }
 0x254   : > { %v4170_v38 = vmul.f32 %v4138_v55, %v7246_v29  ;;  %v4077_v24 = vsub.f32 1.0, %v4045_v35  ;;  %v7377_v4 = vand.u32 2147483647, %v7367_v57  ;;  %v4044_v50 = vmul.f32 %v5727_v30, %v3884_v43  ;;  %v7385_v29 = vld [vmem:[%s7883_s3] ss:$0 sm:$0xff] }
 0x255   : > { %v3758_v14 = vmul.f32 %v3726_v15, %v7348_v9  ;;  %v3568_v60 = vsub.f32 2.0, %v3536_v61  ;;  %v7388_v56 = vadd.f32 %v7385_v29, %v5409_v54  ;;  %v3855_v63 = vadd.f32 0.2548296, %v3823_v42 }
 0x256   : > { %4202 = vst.msk [vmem:[%s7134_s10 + $0x40] sm:$0xff] %vm325_vm0, %v4170_v38  ;;  %v4109_v59 = vmul.f32 %v4077_v24, %v7295_v20  ;;  %v3697_v53 = vmul.f32 %v3665_v3, %v7364_v44  ;;  %v3443_v19 = vmul.f32 0.3275911, %v7377_v4  ;;  %v5731_v13 = vpop.eup %5730  ;;  %v4076_v30 = vsub.f32 1.0, %v4044_v50 }
 0x257   : > { %v3790_v1 = vadd.f32 -0.28449672, %v3758_v14  ;;  %v7393_v8 = vmul.f32 %v5729_v10, %v3568_v60  ;;  %v3998_v47 = vmul.f32 1.442695, %v3952_v26  ;;  %v3887_v39 = vmul.f32 %v3855_v63, %v7337_v16 }
 0x258   : > { %v4141_v2 = vadd.f32 1.0, %v4109_v59  ;;  %v3729_v51 = vadd.f32 1.4214138, %v3697_v53  ;;  %v3475_v54 = vadd.f32 1.0, %v3443_v19  ;;  %v4108_v20 = vmul.f32 %v4076_v30, %v7309_v5  ;;  %v7990_v59 = vld [vmem:[#allocation10_spill] sm:$0xff] }
 0x259   : > { %v5733_v55 = vpop.eup %5732  ;;  %v3822_v41 = vmul.f32 %v3790_v1, %v7348_v9  ;;  %v3632_v17 = vmul.f32 1.0614054, %v7393_v8  ;;  %v7400_v35 = vmul.f32 0.70710677, %v7388_v56  ;;  %v4047_v21 = vmul.f32 %v5731_v13, %v3887_v39  ;;  %v7991_v1 = vld [vmem:[#allocation11_spill] sm:$0xff] }
 0x25a   : > { %v4173_v10 = vmul.f32 %v4141_v2, %v7290_v52  ;;  %v3761_v49 = vmul.f32 %v3729_v51, %v7364_v44  ;;  %5736 = vrcp.f32 %v3475_v54  ;;  %v3276_v26 = vmul.f32 0.5, %v7202_v11  ;;  %v7992_v2 = vld [vmem:[#allocation12_spill] sm:$0xff] }
 0x25b   : > { %v5735_v16 = vpop.eup %5734  ;;  %v4140_v38 = vadd.f32 1.0, %v4108_v20  ;;  %v3854_v43 = vadd.f32 0.2548296, %v3822_v41  ;;  %v3664_v5 = vadd.f32 -1.4531521, %v3632_v17  ;;  %v3279_v15 = vmul.f32 0.5, %v7220_v32 }
 0x25c   : > { %4205 = vst.msk [vmem:[%s7134_s10 + $0x58] sm:$0xff] %vm325_vm0, %v4173_v10  ;;  %v3375_v61 = vsel %vm3343_vm15, 1.0, %v7981_v0  ;;  %v4079_v52 = vsub.f32 1.0, %v4047_v21  ;;  %v3793_v24 = vadd.f32 -0.28449672, %v3761_v49  ;;  %v7989_v32 = vld [vmem:[#allocation9_spill] sm:$0xff]  ;;  %5738 = vpow2.f32 %v3998_v47 }
 0x25d   : > { %v4172_v42 = vmul.f32 %v4140_v38, %v3276_v26  ;;  %v3886_v3 = vmul.f32 %v3854_v43, %v7348_v9  ;;  %v3696_v50 = vmul.f32 %v3664_v5, %v7393_v8  ;;  %v7414_v11 = vand.u32 2147483647, %v7400_v35 }
 0x25e   : > { %v4111_v14 = vmul.f32 %v4079_v52, %v3375_v61  ;;  %v3825_v60 = vmul.f32 %v3793_v24, %v7364_v44  ;;  %v5410_v63 = vadd.f32 %v7990_v59, %v7989_v32  ;;  %v5411_v39 = vadd.f32 %v7992_v2, %v7991_v1 }
 0x25f   : > { %4204 = vst.msk [vmem:[%s7134_s10 + $0x50] sm:$0xff] %vm325_vm0, %v4172_v42  ;;  %v4046_v22 = vmul.f32 %v5733_v55, %v3886_v3  ;;  %v3728_v53 = vadd.f32 1.4214138, %v3696_v50  ;;  %v3442_v9 = vmul.f32 0.3275911, %v7414_v11  ;;  %v3374_v47 = vsel %vm3342_vm1, 1.0, %v7981_v0 }
 0x260   : > { %v4143_v19 = vadd.f32 1.0, %v4111_v14  ;;  %v3857_v13 = vadd.f32 0.2548296, %v3825_v60  ;;  %v7424_v30 = vadd.f32 %v7385_v29, %v5410_v63  ;;  %vm3345_vm2 = vcmp.ge.f32.partialorder %v7276_v31, 0.0  ;;  %v7993_v63 = vld [vmem:[#allocation13_spill] sm:$0xff] }
 0x261   : > { %v4078_v51 = vsub.f32 1.0, %v4046_v22  ;;  %v3760_v20 = vmul.f32 %v3728_v53, %v7393_v8  ;;  %v3474_v41 = vadd.f32 1.0, %v3442_v9  ;;  %v7443_v6 = vadd.f32 %v7385_v29, %v5411_v39  ;;  %v7994_v53 = vld [vmem:[#allocation14_spill] sm:$0xff]  ;;  %v7995_v9 = vld [vmem:[#allocation15_spill] sm:$0xff] }
 0x262   : > { %v4175_v17 = vmul.f32 %v4143_v19, %v3279_v15  ;;  %v3889_v55 = vmul.f32 %v3857_v13, %v7364_v44  ;;  %v7434_v10 = vmul.f32 0.70710677, %v7424_v30  ;;  %v3278_v44 = vmul.f32 0.5, %v7254_v48 }
 0x263   : > { %v4110_v21 = vmul.f32 %v4078_v51, %v3374_v47  ;;  %v3792_v49 = vadd.f32 -0.28449672, %v3760_v20  ;;  %5740 = vrcp.f32 %v3474_v41  ;;  %v3923_v24 = vsub.f32 0.0, %v7377_v4 }
 0x264   : > { %v5737_v26 = vpop.eup %5736  ;;  %4207 = vst.msk [vmem:[%s7134_s10 + $0x68] sm:$0xff] %vm325_vm0, %v4175_v17  ;;  %v4049_v38 = vmul.f32 %v5735_v16, %v3889_v55  ;;  %v7440_v43 = vand.u32 2147483647, %v7434_v10  ;;  %v3377_v16 = vsel %vm3345_vm2, 1.0, %v7981_v0  ;;  %vm3344_vm3 = vcmp.ge.f32.partialorder %v7322_v45, 0.0 }
 0x265   : > { %v4142_v5 = vadd.f32 1.0, %v4110_v21  ;;  %v3824_v15 = vmul.f32 %v3792_v49, %v7393_v8  ;;  %v3539_v61 = vmul.f32 %v5737_v26, %v3475_v54  ;;  %v7452_v48 = vmul.f32 0.70710677, %v7443_v6 }
 0x266   : > { %v4081_v52 = vsub.f32 1.0, %v4049_v38  ;;  %v3445_v42 = vmul.f32 0.3275911, %v7440_v43  ;;  %v5739_v32 = vpop.eup %5738  ;;  %v5412_v22 = vadd.f32 %v7993_v63, %v7052_v36  ;;  %v5413_v19 = vadd.f32 %v7995_v9, %v7994_v53 }
 0x267   : > { %v4174_v31 = vmul.f32 %v4142_v5, %v3278_v44  ;;  %v3856_v3 = vadd.f32 0.2548296, %v3824_v15  ;;  %v3571_v50 = vsub.f32 2.0, %v3539_v61  ;;  %v3281_v13 = vmul.f32 0.5, %v7269_v12 }
 0x268   : > { %v4113_v14 = vmul.f32 %v4081_v52, %v3377_v16  ;;  %v3477_v60 = vadd.f32 1.0, %v3445_v42  ;;  %v3955_v2 = vmul.f32 %v3923_v24, %v7377_v4  ;;  %v7468_v20 = vand.u32 2147483647, %v7452_v48 }
 0x269   : > { %4206 = vst.msk [vmem:[%s7134_s10 + $0x60] sm:$0xff] %vm325_vm0, %v4174_v31  ;;  %v3888_v54 = vmul.f32 %v3856_v3, %v7393_v8  ;;  %v7457_v59 = vmul.f32 %v5737_v26, %v3571_v50  ;;  %v3922_v8 = vsub.f32 0.0, %v7414_v11  ;;  %v3280_v36 = vmul.f32 0.5, %v7317_v7 }
 0x26a   : > { %v4145_v1 = vadd.f32 1.0, %v4113_v14  ;;  %5742 = vrcp.f32 %v3477_v60  ;;  %v3376_v12 = vsel %vm3344_vm3, 1.0, %v7981_v0  ;;  %v7475_v47 = vadd.f32 %v7385_v29, %v5412_v22 }
 0x26b   : > { %v4048_v39 = vmul.f32 %v5739_v32, %v3888_v54  ;;  %v3635_v51 = vmul.f32 1.0614054, %v7457_v59  ;;  %v3444_v49 = vmul.f32 0.3275911, %v7468_v20  ;;  %v7479_v26 = vadd.f32 %v7385_v29, %v5413_v19 }
 0x26c   : > { %v4177_v17 = vmul.f32 %v4145_v1, %v3281_v13  ;;  %vm3347_vm4 = vcmp.ge.f32.partialorder %v7367_v57, 0.0  ;;  %v4004_v7 = vmul.f32 1.442695, %v3955_v2  ;;  %v7485_v45 = vmul.f32 0.70710677, %v7475_v47  ;;  %v7996_v13 = vld [vmem:[#allocation16_spill] sm:$0xff] }
 0x26d   : > { %v5741_v4 = vpop.eup %5740  ;;  %v4080_v55 = vsub.f32 1.0, %v4048_v39  ;;  %v3667_v21 = vadd.f32 -1.4531521, %v3635_v51  ;;  %v3954_v15 = vmul.f32 %v3922_v8, %v7414_v11  ;;  %v3476_v61 = vadd.f32 1.0, %v3444_v49  ;;  %v7997_v1 = vld [vmem:[#allocation17_spill] sm:$0xff]  ;;  %v7998_v51 = vld [vmem:[#allocation18_spill] sm:$0xff] }
 0x26e   : > { %4209 = vst.msk [vmem:[%s7134_s10 + $0x78] sm:$0xff] %vm325_vm0, %v4177_v17  ;;  %v3538_v38 = vmul.f32 %v5741_v4, %v3474_v41  ;;  %v7490_v52 = vmul.f32 0.5, %v7354_v28  ;;  %v7493_v24 = vmul.f32 0.5, %v7388_v56  ;;  %v7496_v31 = vand.u32 2147483647, %v7485_v45  ;;  %v7999_v8 = vld [vmem:[#allocation19_spill] sm:$0xff] }
 0x26f   : > { %v4112_v44 = vmul.f32 %v4080_v55, %v3376_v12  ;;  %v3699_v5 = vmul.f32 %v3667_v21, %v7457_v59  ;;  %5744 = vrcp.f32 %v3476_v61  ;;  %v7499_v3 = vmul.f32 0.70710677, %v7479_v26 }
 0x270   : > { %v3570_v42 = vsub.f32 2.0, %v3538_v38  ;;  %v7504_v11 = vsel %vm3347_vm4, 1.0, %v7981_v0  ;;  %5746 = vpow2.f32 %v4004_v7  ;;  %v3447_v56 = vmul.f32 0.3275911, %v7496_v31 }
 0x271   : > { %v4144_v41 = vadd.f32 1.0, %v4112_v44  ;;  %v3731_v16 = vadd.f32 1.4214138, %v3699_v5  ;;  %vm3346_vm5 = vcmp.ge.f32.partialorder %v7400_v35, 0.0  ;;  %v4002_v32 = vmul.f32 1.442695, %v3954_v15 }
 0x272   : > { %v7506_v28 = vmul.f32 %v5741_v4, %v3570_v42  ;;  %vm3349_vm6 = vcmp.ge.f32.partialorder %v7434_v10, 0.0  ;;  %v3925_v57 = vsub.f32 0.0, %v7440_v43  ;;  %v3479_v22 = vadd.f32 1.0, %v3447_v56 }
 0x273   : > { %v4176_v50 = vmul.f32 %v4144_v41, %v3280_v36  ;;  %v3763_v14 = vmul.f32 %v3731_v16, %v7457_v59  ;;  %v7517_v19 = vand.u32 2147483647, %v7499_v3  ;;  %v5414_v2 = vadd.f32 %v7997_v1, %v7996_v13 }
 0x274   : > { %v5743_v54 = vpop.eup %5742  ;;  %v3634_v63 = vmul.f32 1.0614054, %v7506_v28  ;;  %v7522_v35 = vsel %vm3346_vm5, 1.0, %v7981_v0  ;;  %5748 = vrcp.f32 %v3479_v22  ;;  %v5415_v17 = vadd.f32 %v7999_v8, %v7998_v51  ;;  %v8000_v51 = vld [vmem:[#allocation20_spill] sm:$0xff]  ;;  %v8001_v8 = vld [vmem:[#allocation21_spill] sm:$0xff] }
 0x275   : > { %4208 = vst.msk [vmem:[%s7134_s10 + $0x70] sm:$0xff] %vm325_vm0, %v4176_v50  ;;  %v3795_v53 = vadd.f32 -0.28449672, %v3763_v14  ;;  %v3541_v9 = vmul.f32 %v5743_v54, %v3477_v60  ;;  %v7528_v12 = vmul.f32 0.5, %v7424_v30  ;;  %v3446_v4 = vmul.f32 0.3275911, %v7517_v19 }
 0x276   : > { %v3666_v39 = vadd.f32 -1.4531521, %v3634_v63  ;;  %5750 = vpow2.f32 %v4002_v32  ;;  %v7535_v21 = vsel %vm3349_vm6, 1.0, %v7981_v0  ;;  %v7538_v49 = vadd.f32 %v7385_v29, %v5414_v2 }
 0x277   : > { %v3827_v36 = vmul.f32 %v3795_v53, %v7457_v59  ;;  %v3573_v60 = vsub.f32 2.0, %v3541_v9  ;;  %v3957_v30 = vmul.f32 %v3925_v57, %v7440_v43  ;;  %v3478_v44 = vadd.f32 1.0, %v3446_v4 }
 0x278   : > { %v3698_v55 = vmul.f32 %v3666_v39, %v7506_v28  ;;  %vm3348_vm7 = vcmp.ge.f32.partialorder %v7452_v48, 0.0  ;;  %v3924_v15 = vsub.f32 0.0, %v7468_v20  ;;  %v7546_v42 = vmul.f32 0.70710677, %v7538_v49 }
 0x279   : > { %v3859_v7 = vadd.f32 0.2548296, %v3827_v36  ;;  %v7540_v38 = vmul.f32 %v5743_v54, %v3573_v60  ;;  %v5745_v10 = vpop.eup %5744  ;;  %v7551_v56 = vmul.f32 0.5, %v7443_v6  ;;  %5752 = vrcp.f32 %v3478_v44 }
 0x27a   : > { %v3730_v5 = vadd.f32 1.4214138, %v3698_v55  ;;  %v5747_v50 = vpop.eup %5746  ;;  %v3540_v14 = vmul.f32 %v5745_v10, %v3476_v61  ;;  %v7555_v32 = vand.u32 2147483647, %v7546_v42  ;;  %v7558_v54 = vadd.f32 %v7385_v29, %v5415_v17 }
 0x27b   : > { %v3891_v41 = vmul.f32 %v3859_v7, %v7457_v59  ;;  %v3637_v16 = vmul.f32 1.0614054, %v7540_v38  ;;  %v4008_v53 = vmul.f32 1.442695, %v3957_v30  ;;  %v7563_v59 = vsel %vm3348_vm7, 1.0, %v7981_v0 }
 0x27c   : > { %v3762_v43 = vmul.f32 %v3730_v5, %v7506_v28  ;;  %v3572_v9 = vsub.f32 2.0, %v3540_v14  ;;  %v3956_v13 = vmul.f32 %v3924_v15, %v7468_v20  ;;  %v3449_v61 = vmul.f32 0.3275911, %v7555_v32 }
 0x27d   : > { %v4051_v63 = vmul.f32 %v5747_v50, %v3891_v41  ;;  %v3669_v57 = vadd.f32 -1.4531521, %v3637_v16  ;;  %v3927_v39 = vsub.f32 0.0, %v7496_v31  ;;  %v5416_v17 = vadd.f32 %v8001_v8, %v8000_v51 }
 0x27e   : > { %v3794_v6 = vadd.f32 -0.28449672, %v3762_v43  ;;  %v5749_v36 = vpop.eup %5748  ;;  %v7572_v48 = vmul.f32 %v5745_v10, %v3572_v9  ;;  %v3481_v4 = vadd.f32 1.0, %v3449_v61  ;;  %v7575_v55 = vmul.f32 0.70710677, %v7558_v54 }
 0x27f   : > { %v4083_v1 = vsub.f32 1.0, %v4051_v63  ;;  %v3701_v2 = vmul.f32 %v3669_v57, %v7540_v38  ;;  %5754 = vpow2.f32 %v4008_v53  ;;  %v3543_v30 = vmul.f32 %v5749_v36, %v3479_v22 }
 0x280   : > { %v3826_v60 = vmul.f32 %v3794_v6, %v7506_v28  ;;  %v5751_v5 = vpop.eup %5750  ;;  %v3636_v41 = vmul.f32 1.0614054, %v7572_v48  ;;  %v4006_v16 = vmul.f32 1.442695, %v3956_v13  ;;  %5756 = vrcp.f32 %v3481_v4 }
 0x281   : > { %v4115_v20 = vmul.f32 %v4083_v1, %v7504_v11  ;;  %v3733_v7 = vadd.f32 1.4214138, %v3701_v2  ;;  %v3575_v10 = vsub.f32 2.0, %v3543_v30  ;;  %v3959_v14 = vmul.f32 %v3927_v39, %v7496_v31 }
 0x282   : > { %v3858_v15 = vadd.f32 0.2548296, %v3826_v60  ;;  %v3668_v57 = vadd.f32 -1.4531521, %v3636_v41  ;;  %v3926_v11 = vsub.f32 0.0, %v7517_v19  ;;  %v7590_v61 = vadd.f32 %v7385_v29, %v5416_v17 }
 0x283   : > { %v4147_v50 = vadd.f32 1.0, %v4115_v20  ;;  %v3765_v43 = vmul.f32 %v3733_v7, %v7540_v38  ;;  %v7584_v22 = vand.u32 2147483647, %v7575_v55  ;;  %v5753_v53 = vpop.eup %5752  ;;  %v7587_v13 = vmul.f32 %v5749_v36, %v3575_v10 }
 0x284   : > { %v3890_v63 = vmul.f32 %v3858_v15, %v7506_v28  ;;  %v3700_v31 = vmul.f32 %v3668_v57, %v7572_v48  ;;  %v3542_v2 = vmul.f32 %v5753_v53, %v3478_v44  ;;  %5758 = vpow2.f32 %v4006_v16 }
 0x285   : > { %v4179_v6 = vmul.f32 %v4147_v50, %v7490_v52  ;;  %v3797_v9 = vadd.f32 -0.28449672, %v3765_v43  ;;  %v3448_v28 = vmul.f32 0.3275911, %v7584_v22  ;;  %v3639_v51 = vmul.f32 1.0614054, %v7587_v13 }
 0x286   : > { %v4050_v1 = vmul.f32 %v5751_v5, %v3890_v63  ;;  %v4012_v52 = vmul.f32 1.442695, %v3959_v14  ;;  %v3732_v36 = vadd.f32 1.4214138, %v3700_v31  ;;  %v3574_v60 = vsub.f32 2.0, %v3542_v2 }
 0x287   : > { %4211 = vst.msk [vmem:[%s7134_s10 + $0x88] sm:$0xff] %vm325_vm0, %v4179_v6  ;;  %v3829_v39 = vmul.f32 %v3797_v9, %v7540_v38  ;;  %v3480_v20 = vadd.f32 1.0, %v3448_v28  ;;  %v3671_v7 = vadd.f32 -1.4531521, %v3639_v51  ;;  %v3958_v30 = vmul.f32 %v3926_v11, %v7517_v19  ;;  %v8002_v51 = vld [vmem:[#allocation22_spill] sm:$0xff] }
 0x288   : > { %v4082_v8 = vsub.f32 1.0, %v4050_v1  ;;  %v7600_v44 = vmul.f32 0.70710677, %v7590_v61  ;;  %v3764_v15 = vmul.f32 %v3732_v36, %v7572_v48  ;;  %v7604_v41 = vmul.f32 %v5753_v53, %v3574_v60 }
 0x289   : > { %v3861_v17 = vadd.f32 0.2548296, %v3829_v39  ;;  %5760 = vrcp.f32 %v3480_v20  ;;  %v5755_v16 = vpop.eup %5754  ;;  %v7608_v43 = vmul.f32 0.5, %v7475_v47  ;;  %v3703_v10 = vmul.f32 %v3671_v7, %v7587_v13 }
 0x28a   : > { %v4114_v5 = vmul.f32 %v4082_v8, %v7522_v35  ;;  %5762 = vpow2.f32 %v4012_v52  ;;  %v5757_v19 = vpop.eup %5756  ;;  %v3796_v63 = vadd.f32 -0.28449672, %v3764_v15  ;;  %v3638_v35 = vmul.f32 1.0614054, %v7604_v41  ;;  %v8003_v52 = vld [vmem:[#allocation23_spill] sm:$0xff] }
 0x28b   : > { %v3893_v50 = vmul.f32 %v3861_v17, %v7540_v38  ;;  %v3929_v57 = vsub.f32 0.0, %v7555_v32  ;;  %v3735_v53 = vadd.f32 1.4214138, %v3703_v10  ;;  %v4010_v6 = vmul.f32 1.442695, %v3958_v30 }
 0x28c   : > { %v4146_v14 = vadd.f32 1.0, %v4114_v5  ;;  %v3545_v9 = vmul.f32 %v5757_v19, %v3481_v4  ;;  %v3828_v47 = vmul.f32 %v3796_v63, %v7572_v48  ;;  %v3670_v1 = vadd.f32 -1.4531521, %v3638_v35 }
 0x28d   : > { %v4053_v11 = vmul.f32 %v5755_v16, %v3893_v50  ;;  %v7616_v31 = vand.u32 2147483647, %v7600_v44  ;;  %v3767_v28 = vmul.f32 %v3735_v53, %v7587_v13  ;;  %v5417_v8 = vadd.f32 %v8003_v52, %v8002_v51 }
 0x28e   : > { %v4178_v38 = vmul.f32 %v4146_v14, %v7493_v24  ;;  %v3577_v39 = vsub.f32 2.0, %v3545_v9  ;;  %v3860_v36 = vadd.f32 0.2548296, %v3828_v47  ;;  %v3702_v4 = vmul.f32 %v3670_v1, %v7604_v41  ;;  %v5759_v17 = vpop.eup %5758 }
 0x28f   : > { %v4085_v2 = vsub.f32 1.0, %v4053_v11  ;;  %v3961_v24 = vmul.f32 %v3929_v57, %v7555_v32  ;;  %v3451_v60 = vmul.f32 0.3275911, %v7616_v31  ;;  %v3799_v30 = vadd.f32 -0.28449672, %v3767_v28 }
 0x290   : > { %4210 = vst.msk [vmem:[%s7134_s10 + $0x80] sm:$0xff] %vm325_vm0, %v4178_v38  ;;  %v7628_v5 = vmul.f32 0.5, %v7479_v26  ;;  %v7630_v15 = vmul.f32 %v5757_v19, %v3577_v39  ;;  %v3892_v16 = vmul.f32 %v3860_v36, %v7572_v48  ;;  %v3734_v50 = vadd.f32 1.4214138, %v3702_v4 }
 0x291   : > { %v4117_v7 = vmul.f32 %v4085_v2, %v7535_v21  ;;  %v3483_v10 = vadd.f32 1.0, %v3451_v60  ;;  %v7634_v14 = vadd.f32 %v7385_v29, %v5417_v8  ;;  %v3831_v32 = vmul.f32 %v3799_v30, %v7587_v13 }
 0x292   : > { %5764 = vpow2.f32 %v4010_v6  ;;  %v3641_v21 = vmul.f32 1.0614054, %v7630_v15  ;;  %v4052_v57 = vmul.f32 %v5759_v17, %v3892_v16  ;;  %v3766_v26 = vmul.f32 %v3734_v50, %v7604_v41 }
 0x293   : > { %v4149_v63 = vadd.f32 1.0, %v4117_v7  ;;  %v5761_v35 = vpop.eup %5760  ;;  %v4016_v19 = vmul.f32 1.442695, %v3961_v24  ;;  %5766 = vrcp.f32 %v3483_v10  ;;  %v3863_v53 = vadd.f32 0.2548296, %v3831_v32 }
 0x294   : > { %v5763_v11 = vpop.eup %5762  ;;  %v3673_v9 = vadd.f32 -1.4531521, %v3641_v21  ;;  %v3544_v38 = vmul.f32 %v5761_v35, %v3480_v20  ;;  %v4084_v47 = vsub.f32 1.0, %v4052_v57  ;;  %v3798_v1 = vadd.f32 -0.28449672, %v3766_v26 }
 0x295   : > { %v4181_v48 = vmul.f32 %v4149_v63, %v7528_v12  ;;  %v3928_v2 = vsub.f32 0.0, %v7584_v22  ;;  %v7642_v6 = vmul.f32 0.70710677, %v7634_v14  ;;  %v3895_v28 = vmul.f32 %v3863_v53, %v7587_v13 }
 0x296   : > { %v3705_v39 = vmul.f32 %v3673_v9, %v7630_v15  ;;  %v3576_v51 = vsub.f32 2.0, %v3544_v38  ;;  %v5418_v12 = vadd.f32 %v7124_v62, %v7122_v23  ;;  %v4116_v52 = vmul.f32 %v4084_v47, %v7563_v59 }
 0x297   : > { %4213 = vst.msk [vmem:[%s7134_s10 + $0x98] sm:$0xff] %vm325_vm0, %v4181_v48  ;;  %vm3351_vm8 = vcmp.ge.f32.partialorder %v7485_v45, 0.0  ;;  %v3830_v20 = vmul.f32 %v3798_v1, %v7604_v41  ;;  %v7654_v8 = vand.u32 2147483647, %v7642_v6  ;;  %v4055_v36 = vmul.f32 %v5763_v11, %v3895_v28 }
 0x298   : > { %v3737_v4 = vadd.f32 1.4214138, %v3705_v39  ;;  %5768 = vpow2.f32 %v4016_v19  ;;  %v7656_v24 = vmul.f32 %v5761_v35, %v3576_v51  ;;  %v4148_v13 = vadd.f32 1.0, %v4116_v52 }
 0x299   : > { %v3862_v60 = vadd.f32 0.2548296, %v3830_v20  ;;  %v3960_v17 = vmul.f32 %v3928_v2, %v7584_v22  ;;  %v3450_v23 = vmul.f32 0.3275911, %v7654_v8  ;;  %v4087_v62 = vsub.f32 1.0, %v4055_v36 }
 0x29a   : > { %v3769_v59 = vmul.f32 %v3737_v4, %v7630_v15  ;;  %v3640_v7 = vmul.f32 1.0614054, %v7656_v24  ;;  %v7663_v30 = vadd.f32 %v7385_v29, %v5418_v12  ;;  %v4180_v16 = vmul.f32 %v4148_v13, %v7551_v56 }
 0x29b   : > { %v3383_v50 = vsel %vm3351_vm8, 1.0, %v7981_v0  ;;  %v3894_v63 = vmul.f32 %v3862_v60, %v7604_v41  ;;  %v3482_v22 = vadd.f32 1.0, %v3450_v23  ;;  %vm3350_vm9 = vcmp.ge.f32.partialorder %v7499_v3, 0.0 }
 0x29c   : > { %v5765_v32 = vpop.eup %5764  ;;  %v4119_v21 = vmul.f32 %v4087_v62, %v3383_v50  ;;  %v3801_v35 = vadd.f32 -0.28449672, %v3769_v59  ;;  %v3672_v57 = vadd.f32 -1.4531521, %v3640_v7  ;;  %4212 = vst.msk [vmem:[%s7134_s10 + $0x90] sm:$0xff] %vm325_vm0, %v4180_v16  ;;  %v3382_v3 = vsel %vm3350_vm9, 1.0, %v7981_v0 }
 0x29d   : > { %v5767_v26 = vpop.eup %5766  ;;  %v4054_v19 = vmul.f32 %v5765_v32, %v3894_v63  ;;  %v4014_v11 = vmul.f32 1.442695, %v3960_v17  ;;  %5770 = vrcp.f32 %v3482_v22  ;;  %v7674_v56 = vmul.f32 0.70710677, %v7663_v30 }
 0x29e   : > { %v4151_v45 = vadd.f32 1.0, %v4119_v21  ;;  %v3833_v48 = vmul.f32 %v3801_v35, %v7630_v15  ;;  %v3704_v41 = vmul.f32 %v3672_v57, %v7656_v24  ;;  %v3547_v53 = vmul.f32 %v5767_v26, %v3483_v10 }
 0x29f   : > { %v4086_v9 = vsub.f32 1.0, %v4054_v19  ;;  %v3931_v38 = vsub.f32 0.0, %v7616_v31  ;;  %v7681_v47 = vand.u32 2147483647, %v7674_v56  ;;  %vm3353_vm10 = vcmp.ge.f32.partialorder %v7546_v42, 0.0 }
 0x2a0   : > { %v4183_v1 = vmul.f32 %v4151_v45, %v7608_v43  ;;  %v3865_v2 = vadd.f32 0.2548296, %v3833_v48  ;;  %v3736_v28 = vadd.f32 1.4214138, %v3704_v41  ;;  %v3579_v39 = vsub.f32 2.0, %v3547_v53 }
 0x2a1   : > { %v4118_v51 = vmul.f32 %v4086_v9, %v3382_v3  ;;  %5772 = vpow2.f32 %v4014_v11  ;;  %v3453_v12 = vmul.f32 0.3275911, %v7681_v47  ;;  %v5419_v43 = vadd.f32 %v7159_v27, %v7157_v33 }
 0x2a2   : > { %v5769_v10 = vpop.eup %5768  ;;  %4215 = vst.msk [vmem:[%s7134_s10 + $0xa8] sm:$0xff] %vm325_vm0, %v4183_v1  ;;  %v3897_v52 = vmul.f32 %v3865_v2, %v7630_v15  ;;  %v3768_v20 = vmul.f32 %v3736_v28, %v7656_v24  ;;  %v7690_v36 = vmul.f32 %v5767_v26, %v3579_v39  ;;  %v3963_v13 = vmul.f32 %v3931_v38, %v7616_v31 }
 0x2a3   : > { %v4150_v4 = vadd.f32 1.0, %v4118_v51  ;;  %v3485_v60 = vadd.f32 1.0, %v3453_v12  ;;  %v5420_v17 = vadd.f32 %v7206_v46, %v7204_v34  ;;  %v7699_v15 = vadd.f32 %v7385_v29, %v5419_v43 }
 0x2a4   : > { %v4057_v23 = vmul.f32 %v5769_v10, %v3897_v52  ;;  %v3800_v62 = vadd.f32 -0.28449672, %v3768_v20  ;;  %v3643_v59 = vmul.f32 1.0614054, %v7690_v36  ;;  %v3385_v27 = vsel %vm3353_vm10, 1.0, %v7981_v0 }
 0x2a5   : > { %v4182_v7 = vmul.f32 %v4150_v4, %v7628_v5  ;;  %5774 = vrcp.f32 %v3485_v60  ;;  %v7703_v33 = vadd.f32 %v7385_v29, %v5420_v17  ;;  %v4020_v50 = vmul.f32 1.442695, %v3963_v13 }
 0x2a6   : > { %v4089_v31 = vsub.f32 1.0, %v4057_v23  ;;  %v3832_v34 = vmul.f32 %v3800_v62, %v7656_v24  ;;  %v3675_v46 = vadd.f32 -1.4531521, %v3643_v59  ;;  %v7712_v63 = vmul.f32 0.70710677, %v7699_v15 }
 0x2a7   : > { %v5771_v16 = vpop.eup %5770  ;;  %4214 = vst.msk [vmem:[%s7134_s10 + $0xa0] sm:$0xff] %vm325_vm0, %v4182_v7  ;;  %v7715_v5 = vmul.f32 0.70710677, %v7703_v33  ;;  %v3289_v57 = vmul.f32 0.5, %v7538_v49  ;;  %v3930_v26 = vsub.f32 0.0, %v7654_v8  ;;  %vm3352_vm11 = vcmp.ge.f32.partialorder %v7575_v55, 0.0 }
 0x2a8   : > { %v4121_v32 = vmul.f32 %v4089_v31, %v3385_v27  ;;  %v3864_v21 = vadd.f32 0.2548296, %v3832_v34  ;;  %v3707_v35 = vmul.f32 %v3675_v46, %v7690_v36  ;;  %v3546_v42 = vmul.f32 %v5771_v16, %v3482_v22 }
 0x2a9   : > { %v7721_v19 = vand.u32 2147483647, %v7712_v63  ;;  %v7724_v11 = vand.u32 2147483647, %v7715_v5  ;;  %5776 = vpow2.f32 %v4020_v50  ;;  %v3962_v2 = vmul.f32 %v3930_v26, %v7654_v8 }
 0x2aa   : > { %v4153_v45 = vadd.f32 1.0, %v4121_v32  ;;  %v3896_v48 = vmul.f32 %v3864_v21, %v7656_v24  ;;  %v3739_v41 = vadd.f32 1.4214138, %v3707_v35  ;;  %v3578_v53 = vsub.f32 2.0, %v3546_v42 }
 0x2ab   : > { %v5773_v3 = vpop.eup %5772  ;;  %v3452_v49 = vmul.f32 0.3275911, %v7721_v19  ;;  %v3455_v39 = vmul.f32 0.3275911, %v7724_v11  ;;  %v5421_v10 = vadd.f32 %v7222_v18, %v7213_v25  ;;  %v3288_v20 = vmul.f32 0.5, %v7558_v54 }
 0x2ac   : > { %v4185_v22 = vmul.f32 %v4153_v45, %v3289_v57  ;;  %v4056_v9 = vmul.f32 %v5773_v3, %v3896_v48  ;;  %v3771_v38 = vmul.f32 %v3739_v41, %v7690_v36  ;;  %v7730_v1 = vmul.f32 %v5771_v16, %v3578_v53 }
 0x2ad   : > { %v3484_v28 = vadd.f32 1.0, %v3452_v49  ;;  %v3384_v43 = vsel %vm3352_vm11, 1.0, %v7981_v0  ;;  %v7743_v8 = vadd.f32 1.0, %v3455_v39  ;;  %v4018_v62 = vmul.f32 1.442695, %v3962_v2 }
 0x2ae   : > { %4217 = vst.msk [vmem:[%s7134_s10 + $0xb8] sm:$0xff] %vm325_vm0, %v4185_v22  ;;  %v4088_v24 = vsub.f32 1.0, %v4056_v9  ;;  %v3803_v51 = vadd.f32 -0.28449672, %v3771_v38  ;;  %v3642_v12 = vmul.f32 1.0614054, %v7730_v1  ;;  %v7748_v25 = vadd.f32 %v7385_v29, %v5421_v10 }
 0x2af   : > { %v5775_v52 = vpop.eup %5774  ;;  %5778 = vrcp.f32 %v3484_v28  ;;  %v3933_v59 = vsub.f32 0.0, %v7681_v47  ;;  %v5422_v18 = vadd.f32 %v7260_v37, %v7258_v58  ;;  %vm3355_vm12 = vcmp.ge.f32.partialorder %v7600_v44, 0.0  ;;  %v8004_v44 = vld [vmem:[#allocation24_spill] sm:$0xff] }
 0x2b0   : > { %v4120_v4 = vmul.f32 %v4088_v24, %v3384_v43  ;;  %v3835_v13 = vmul.f32 %v3803_v51, %v7690_v36  ;;  %v3674_v17 = vadd.f32 -1.4531521, %v3642_v12  ;;  %v3549_v23 = vmul.f32 %v5775_v52, %v3485_v60 }
 0x2b1   : > { %5780 = vrcp.f32 %v7743_v8  ;;  %v7755_v31 = vmul.f32 0.70710677, %v7748_v25  ;;  %v7758_v60 = vadd.f32 %v7385_v29, %v5422_v18  ;;  %v3965_v37 = vmul.f32 %v3933_v59, %v7681_v47 }
 0x2b2   : > { %v4152_v54 = vadd.f32 1.0, %v4120_v4  ;;  %v3867_v55 = vadd.f32 0.2548296, %v3835_v13  ;;  %v3706_v7 = vmul.f32 %v3674_v17, %v7730_v1  ;;  %v3581_v27 = vsub.f32 2.0, %v3549_v23 }
 0x2b3   : > { %v5777_v58 = vpop.eup %5776  ;;  %5782 = vpow2.f32 %v4018_v62  ;;  %v7766_v32 = vand.u32 2147483647, %v7755_v31  ;;  %v7774_v57 = vmul.f32 0.70710677, %v7758_v60  ;;  %v5423_v26 = vadd.f32 %v8004_v44, %v7285_v40 }
 0x2b4   : > { %v4184_v34 = vmul.f32 %v4152_v54, %v3288_v20  ;;  %v3899_v46 = vmul.f32 %v3867_v55, %v7690_v36  ;;  %v3738_v16 = vadd.f32 1.4214138, %v3706_v7  ;;  %v7761_v50 = vmul.f32 %v5775_v52, %v3581_v27 }
 0x2b5   : > { %v3454_v36 = vmul.f32 0.3275911, %v7766_v32  ;;  %v3387_v47 = vsel %vm3355_vm12, 1.0, %v7981_v0  ;;  %v4024_v3 = vmul.f32 1.442695, %v3965_v37  ;;  %v3932_v49 = vsub.f32 0.0, %v7721_v19 }
 0x2b6   : > { %4216 = vst.msk [vmem:[%s7134_s10 + $0xb0] sm:$0xff] %vm325_vm0, %v4184_v34  ;;  %v4059_v21 = vmul.f32 %v5777_v58, %v3899_v46  ;;  %v3770_v35 = vmul.f32 %v3738_v16, %v7730_v1  ;;  %v3645_v42 = vmul.f32 1.0614054, %v7761_v50  ;;  %v7781_v9 = vand.u32 2147483647, %v7774_v57 }
 0x2b7   : > { %v3486_v22 = vadd.f32 1.0, %v3454_v36  ;;  %v3291_v40 = vmul.f32 0.5, %v7590_v61  ;;  %v3964_v4 = vmul.f32 %v3932_v49, %v7721_v19  ;;  %v7789_v17 = vadd.f32 %v7385_v29, %v5423_v26 }
 0x2b8   : > { %v4091_v45 = vsub.f32 1.0, %v4059_v21  ;;  %v3802_v48 = vadd.f32 -0.28449672, %v3770_v35  ;;  %v3677_v41 = vadd.f32 -1.4531521, %v3645_v42  ;;  %vm3354_vm13 = vcmp.ge.f32.partialorder %v7642_v6, 0.0 }
 0x2b9   : > { %v5779_v53 = vpop.eup %5778  ;;  %5784 = vrcp.f32 %v3486_v22  ;;  %v3457_v51 = vmul.f32 0.3275911, %v7781_v9  ;;  %v3935_v54 = vsub.f32 0.0, %v7724_v11  ;;  %v4022_v7 = vmul.f32 1.442695, %v3964_v4 }
 0x2ba   : > { %v4123_v38 = vmul.f32 %v4091_v45, %v3387_v47  ;;  %v3834_v2 = vmul.f32 %v3802_v48, %v7730_v1  ;;  %v3709_v39 = vmul.f32 %v3677_v41, %v7761_v50  ;;  %v3548_v24 = vmul.f32 %v5779_v53, %v3484_v28 }
 0x2bb   : > { %v5781_v43 = vpop.eup %5780  ;;  %5786 = vpow2.f32 %v4024_v3  ;;  %v3489_v13 = vadd.f32 1.0, %v3457_v51  ;;  %v3967_v58 = vmul.f32 %v3935_v54, %v7724_v11  ;;  %v3290_v21 = vmul.f32 0.5, %v7634_v14 }
 0x2bc   : > { %v4155_v12 = vadd.f32 1.0, %v4123_v38  ;;  %v3866_v10 = vadd.f32 0.2548296, %v3834_v2  ;;  %v3741_v52 = vadd.f32 1.4214138, %v3709_v39  ;;  %v3580_v20 = vsub.f32 2.0, %v3548_v24 }
 0x2bd   : > { %v5783_v59 = vpop.eup %5782  ;;  %v3551_v18 = vmul.f32 %v5781_v43, %v7743_v8  ;;  %5788 = vrcp.f32 %v3489_v13  ;;  %v3386_v8 = vsel %vm3354_vm13, 1.0, %v7981_v0  ;;  %vm3357_vm14 = vcmp.ge.f32.partialorder %v7674_v56, 0.0 }
 0x2be   : > { %v4187_v23 = vmul.f32 %v4155_v12, %v3291_v40  ;;  %v3898_v28 = vmul.f32 %v3866_v10, %v7730_v1  ;;  %v3773_v61 = vmul.f32 %v3741_v52, %v7761_v50  ;;  %v7793_v62 = vmul.f32 %v5779_v53, %v3580_v20 }
 0x2bf   : > { %v7802_v1 = vmul.f32 0.70710677, %v7789_v17  ;;  %v3583_v27 = vsub.f32 2.0, %v3551_v18  ;;  %5790 = vpow2.f32 %v4022_v7  ;;  %v4028_v3 = vmul.f32 1.442695, %v3967_v58 }
 0x2c0   : > { %4219 = vst.msk [vmem:[%s7134_s10 + $0xc8] sm:$0xff] %vm325_vm0, %v4187_v23  ;;  %v4058_v19 = vmul.f32 %v5783_v59, %v3898_v28  ;;  %v3805_v29 = vadd.f32 -0.28449672, %v3773_v61  ;;  %v3644_v55 = vmul.f32 1.0614054, %v7793_v62  ;;  %v3934_v49 = vsub.f32 0.0, %v7766_v32 }
 0x2c1   : > { %v7806_v16 = vmul.f32 %v5781_v43, %v3583_v27  ;;  %v7810_v37 = vand.u32 2147483647, %v7802_v1  ;;  %v3389_v12 = vsel %vm3357_vm14, 1.0, %v7981_v0  ;;  %v3937_v23 = vsub.f32 0.0, %v7781_v9 }
 0x2c2   : > { %v4090_v34 = vsub.f32 1.0, %v4058_v19  ;;  %v3837_v46 = vmul.f32 %v3805_v29, %v7761_v50  ;;  %v3676_v6 = vadd.f32 -1.4531521, %v3644_v55  ;;  %v3966_v4 = vmul.f32 %v3934_v49, %v7766_v32 }
 0x2c3   : > { %v5785_v44 = vpop.eup %5784  ;;  %v3647_v26 = vmul.f32 1.0614054, %v7806_v16  ;;  %v3456_v47 = vmul.f32 0.3275911, %v7810_v37  ;;  %v3293_v18 = vmul.f32 0.5, %v7663_v30  ;;  %vm3356_vm15 = vcmp.ge.f32.partialorder %v7712_v63, 0.0 }
 0x2c4   : > { %v4122_v35 = vmul.f32 %v4090_v34, %v3386_v8  ;;  %v3869_v42 = vadd.f32 0.2548296, %v3837_v46  ;;  %v3708_v36 = vmul.f32 %v3676_v6, %v7793_v62  ;;  %v3550_v41 = vmul.f32 %v5785_v44, %v3486_v22 }
 0x2c5   : > { %v5787_v53 = vpop.eup %5786  ;;  %v3679_v14 = vadd.f32 -1.4531521, %v3647_v26  ;;  %v3488_v38 = vadd.f32 1.0, %v3456_v47  ;;  %v4026_v32 = vmul.f32 1.442695, %v3966_v4  ;;  %v3969_v34 = vmul.f32 %v3937_v23, %v7781_v9 }
 0x2c6   : > { %v4154_v45 = vadd.f32 1.0, %v4122_v35  ;;  %v3901_v11 = vmul.f32 %v3869_v42, %v7761_v50  ;;  %v3740_v48 = vadd.f32 1.4214138, %v3708_v36  ;;  %v3582_v40 = vsub.f32 2.0, %v3550_v41 }
 0x2c7   : > { %v5789_v51 = vpop.eup %5788  ;;  %v3711_v50 = vmul.f32 %v3679_v14, %v7806_v16  ;;  %5792 = vrcp.f32 %v3488_v38  ;;  %v4032_v26 = vmul.f32 1.442695, %v3969_v34  ;;  %vm3359_vm1 = vcmp.ge.f32.partialorder %v7715_v5, 0.0 }
 0x2c8   : > { %v4186_v2 = vmul.f32 %v4154_v45, %v3290_v21  ;;  %v4061_v39 = vmul.f32 %v5787_v53, %v3901_v11  ;;  %v3772_v24 = vmul.f32 %v3740_v48, %v7793_v62  ;;  %v7826_v52 = vmul.f32 %v5785_v44, %v3582_v40 }
 0x2c9   : > { %v3553_v20 = vmul.f32 %v5789_v51, %v3489_v13  ;;  %v3743_v43 = vadd.f32 1.4214138, %v3711_v50  ;;  %5794 = vpow2.f32 %v4028_v3  ;;  %v5791_v7 = vpop.eup %5790  ;;  %v3388_v48 = vsel %vm3356_vm15, 1.0, %v7981_v0 }
 0x2ca   : > { %4218 = vst.msk [vmem:[%s7134_s10 + $0xc0] sm:$0xff] %vm325_vm0, %v4186_v2  ;;  %v4093_v22 = vsub.f32 1.0, %v4061_v39  ;;  %v3804_v10 = vadd.f32 -0.28449672, %v3772_v24  ;;  %v3646_v61 = vmul.f32 1.0614054, %v7826_v52  ;;  %5796 = vpow2.f32 %v4026_v32 }
 0x2cb   : > { %v3585_v59 = vsub.f32 2.0, %v3553_v20  ;;  %v3775_v54 = vmul.f32 %v3743_v43, %v7806_v16  ;;  %v3936_v63 = vsub.f32 0.0, %v7810_v37  ;;  %v3292_v2 = vmul.f32 0.5, %v7699_v15 }
 0x2cc   : > { %v4125_v28 = vmul.f32 %v4093_v22, %v3389_v12  ;;  %v3836_v56 = vmul.f32 %v3804_v10, %v7793_v62  ;;  %v3678_v13 = vadd.f32 -1.4531521, %v3646_v61  ;;  %5798 = vpow2.f32 %v4032_v26 }
 0x2cd   : > { %v3617_v55 = vmul.f32 %v5789_v51, %v3585_v59  ;;  %v3807_v27 = vadd.f32 -0.28449672, %v3775_v54  ;;  %v3391_v5 = vsel %vm3359_vm1, 1.0, %v7981_v0  ;;  %vm3358_vm2 = vcmp.ge.f32.partialorder %v7755_v31, 0.0 }
 0x2ce   : > { %v4157_v19 = vadd.f32 1.0, %v4125_v28  ;;  %v3868_v29 = vadd.f32 0.2548296, %v3836_v56  ;;  %v3710_v8 = vmul.f32 %v3678_v13, %v7826_v52  ;;  %v3295_v56 = vmul.f32 0.5, %v7703_v33 }
 0x2cf   : > { %v3649_v58 = vmul.f32 1.0614054, %v3617_v55  ;;  %v3839_v21 = vmul.f32 %v3807_v27, %v7806_v16  ;;  %vm3361_vm3 = vcmp.ge.f32.partialorder %v7774_v57, 0.0  ;;  %v3294_v31 = vmul.f32 0.5, %v7748_v25 }
 0x2d0   : > { %v4189_v46 = vmul.f32 %v4157_v19, %v3293_v18  ;;  %v3900_v6 = vmul.f32 %v3868_v29, %v7793_v62  ;;  %v3742_v35 = vadd.f32 1.4214138, %v3710_v8  ;;  %vm3360_vm4 = vcmp.ge.f32.partialorder %v7802_v1, 0.0 }
 0x2d1   : > { %v3681_v42 = vadd.f32 -1.4531521, %v3649_v58  ;;  %v5793_v36 = vpop.eup %5792  ;;  %v3871_v44 = vadd.f32 0.2548296, %v3839_v21 }
 0x2d2   : > { %4221 = vst.msk [vmem:[%s7134_s10 + $0xd8] sm:$0xff] %vm325_vm0, %v4189_v46  ;;  %v4060_v30 = vmul.f32 %v5791_v7, %v3900_v6  ;;  %v3774_v47 = vmul.f32 %v3742_v35, %v7826_v52  ;;  %v3552_v45 = vmul.f32 %v5793_v36, %v3488_v38  ;;  %v3297_v35 = vmul.f32 0.5, %v7758_v60 }
 0x2d3   : > { %v3713_v62 = vmul.f32 %v3681_v42, %v3617_v55  ;;  %v5795_v11 = vpop.eup %5794  ;;  %v3903_v41 = vmul.f32 %v3871_v44, %v7806_v16  ;;  %v3968_v16 = vmul.f32 %v3936_v63, %v7810_v37 }
 0x2d4   : > { %v4092_v9 = vsub.f32 1.0, %v4060_v30  ;;  %v3806_v14 = vadd.f32 -0.28449672, %v3774_v47  ;;  %v3584_v49 = vsub.f32 2.0, %v3552_v45  ;;  %v5797_v28 = vpop.eup %5796  ;;  %v3392_v47 = vsel %vm3360_vm4, 1.0, %v7981_v0 }
 0x2d5   : > { %v3745_v3 = vadd.f32 1.4214138, %v3713_v62  ;;  %v4063_v39 = vmul.f32 %v5795_v11, %v3903_v41  ;;  %v4030_v59 = vmul.f32 1.442695, %v3968_v16  ;;  %v3296_v45 = vmul.f32 0.5, %v7789_v17 }
 0x2d6   : > { %v4124_v53 = vmul.f32 %v4092_v9, %v3388_v48  ;;  %v3838_v38 = vmul.f32 %v3806_v14, %v7826_v52  ;;  %v3616_v51 = vmul.f32 %v5793_v36, %v3584_v49  ;;  %v5799_v27 = vpop.eup %5798 }
 0x2d7   : > { %v3777_v40 = vmul.f32 %v3745_v3, %v3617_v55  ;;  %v4095_v12 = vsub.f32 1.0, %v4063_v39  ;;  %5800 = vpow2.f32 %v4030_v59 }
 0x2d8   : > { %v4156_v24 = vadd.f32 1.0, %v4124_v53  ;;  %v3870_v22 = vadd.f32 0.2548296, %v3838_v38  ;;  %v3648_v20 = vmul.f32 1.0614054, %v3616_v51 }
 0x2d9   : > { %v3809_v10 = vadd.f32 -0.28449672, %v3777_v40  ;;  %v4127_v43 = vmul.f32 %v4095_v12, %v3391_v5 }
 0x2da   : > { %v4188_v50 = vmul.f32 %v4156_v24, %v3292_v2  ;;  %v3902_v15 = vmul.f32 %v3870_v22, %v7826_v52  ;;  %v3680_v23 = vadd.f32 -1.4531521, %v3648_v20  ;;  %v3390_v52 = vsel %vm3358_vm2, 1.0, %v7981_v0 }
 0x2db   : > { %v3841_v4 = vmul.f32 %v3809_v10, %v3617_v55  ;;  %v4159_v61 = vadd.f32 1.0, %v4127_v43 }
 0x2dc   : > { %4220 = vst.msk [vmem:[%s7134_s10 + $0xd0] sm:$0xff] %vm325_vm0, %v4188_v50  ;;  %v4062_v37 = vmul.f32 %v5797_v28, %v3902_v15  ;;  %v3712_v54 = vmul.f32 %v3680_v23, %v3616_v51 }
 0x2dd   : > { %v3873_v18 = vadd.f32 0.2548296, %v3841_v4  ;;  %v4191_v19 = vmul.f32 %v4159_v61, %v3295_v56 }
 0x2de   : > { %v4094_v29 = vsub.f32 1.0, %v4062_v37  ;;  %v3744_v7 = vadd.f32 1.4214138, %v3712_v54 }
 0x2df   : > { %v3905_v13 = vmul.f32 %v3873_v18, %v3617_v55  ;;  %4223 = vst.msk [vmem:[%s7134_s10 + $0xe8] sm:$0xff] %vm325_vm0, %v4191_v19  ;;  %v3393_v55 = vsel %vm3361_vm3, 1.0, %v7981_v0 }
 0x2e0   : > { %v4126_v32 = vmul.f32 %v4094_v29, %v3390_v52  ;;  %v3776_v34 = vmul.f32 %v3744_v7, %v3616_v51 }
 0x2e1   : > { %v4065_v33 = vmul.f32 %v5799_v27, %v3905_v13  ;;  %v5801_v26 = vpop.eup %5800 }
 0x2e2   : > { %v4158_v46 = vadd.f32 1.0, %v4126_v32  ;;  %v3808_v8 = vadd.f32 -0.28449672, %v3776_v34 }
 0x2e3   : > { %v4097_v6 = vsub.f32 1.0, %v4065_v33 }
 0x2e4   : > { %v4190_v58 = vmul.f32 %v4158_v46, %v3294_v31  ;;  %v3840_v30 = vmul.f32 %v3808_v8, %v3616_v51 }
 0x2e5   : > { %v4129_v21 = vmul.f32 %v4097_v6, %v3393_v55 }
 0x2e6   : > { %4222 = vst.msk [vmem:[%s7134_s10 + $0xe0] sm:$0xff] %vm325_vm0, %v4190_v58  ;;  %v3872_v57 = vadd.f32 0.2548296, %v3840_v30 }
 0x2e7   : > { %v4161_v42 = vadd.f32 1.0, %v4129_v21 }
 0x2e8   : > { %v3904_v44 = vmul.f32 %v3872_v57, %v3616_v51 }
 0x2e9   : > { %v4193_v36 = vmul.f32 %v4161_v42, %v3297_v35 }
 0x2ea   : > { %v4064_v25 = vmul.f32 %v5801_v26, %v3904_v44 }
 0x2eb   : > { %4225 = vst.msk [vmem:[%s7134_s10 + $0xf8] sm:$0xff] %vm325_vm0, %v4193_v36 }
 0x2ec   : > { %v4096_v9 = vsub.f32 1.0, %v4064_v25 }
 0x2ee   : > { %v4128_v62 = vmul.f32 %v4096_v9, %v3392_v47 }
 0x2f0   : > { %v4160_v11 = vadd.f32 1.0, %v4128_v62 }
 0x2f2   : > { %v4192_v48 = vmul.f32 %v4160_v11, %v3296_v45 }
 0x2f4   : > { %4224 = vst.msk [vmem:[%s7134_s10 + $0xf0] sm:$0xff] %vm325_vm0, %v4192_v48 }
 0x2f5 PF: > { %s16_s1 = sadd.s32 1, %s5825_s1   ;;  %s8005_s21 = smov %s5821_s22 }
 0x2f6   : > { %p13_p5 = scmp.ge.s32.totalorder %s16_s1, 4   ;;  %s8006_s22 = smov %s8008_s23 }
 0x2f8   :  { %15 = sbr.rel (!%p13_p5) target bundleno = 2 (0x2), region = 88 }

</bundles_post_ra>
